<compile_context>
chip_gen: v6e
topology: v6e:2x2x1
jax: 0.10.0
libtpu: 0.0.40
codegen_flags: <defaults>
</compile_context>

<pallas_src>
import functools

import jax
import jax.numpy as jnp
from jax.experimental import pallas as pl
from jax.experimental.pallas import tpu as pltpu


def _pad_to(x, m):
    return ((x + m - 1) // m) * m


def _choose_tm(M, cap=128):
    """Largest sublane-aligned (multiple-of-8) M tile <= cap minimizing row padding."""
    Mp8 = _pad_to(M, 8)
    best_tm, best_pad = 8, None
    for tm in range(min(cap, Mp8), 7, -8):
        pad = _pad_to(M, tm) - M
        if best_pad is None or pad < best_pad:
            best_tm, best_pad = tm, pad
            if pad == 0:
                break
    return best_tm


def _choose_tk(K, max_tk=2560):
    """Lane-aligned (multiple-of-128) K tile <= max_tk minimizing padded K columns."""
    Kp = _pad_to(K, 128)
    n = 1
    while True:
        tk = _pad_to(-(-Kp // n), 128)
        if tk <= max_tk:
            return tk
        n += 1


# ----------------------------------------------------------------------------
# Pallas kernel 1: tiled GEMM + bias + optional ReLU
#   bf16 operands -> MXU, f32 accumulation, f32 epilogue, cast at store.
# ----------------------------------------------------------------------------
def _gemm_bias_act_kernel(x_ref, w_ref, b_ref, o_ref, acc_ref, *, relu):
    k = pl.program_id(2)

    @pl.when(k == 0)
    def _():
        acc_ref[...] = jnp.zeros_like(acc_ref)

    acc_ref[...] += jnp.dot(x_ref[...], w_ref[...],
                            preferred_element_type=jnp.float32)

    @pl.when(k == pl.num_programs(2) - 1)
    def _():
        r = acc_ref[...] + b_ref[0:1, :]          # (tm,tn) + (1,tn) broadcast, f32
        if relu:
            r = jnp.maximum(r, 0.0)
        o_ref[...] = r.astype(o_ref.dtype)


def matmul_bias(x, w, b, *, relu=False, out_dtype=jnp.float32):
    """act((M,K) @ (K,N) + (N,)) with bf16 MXU operands, f32 accumulation."""
    M, K = x.shape
    K2, N = w.shape
    assert K == K2

    tm = _choose_tm(M)                    # e.g. 120 for M=1800 (zero row padding)
    tn = min(512, _pad_to(N, 128))
    tk = _choose_tk(K)
    Mp, Np, Kp = _pad_to(M, tm), _pad_to(N, tn), _pad_to(K, tk)

    xp = jnp.pad(x.astype(jnp.bfloat16), ((0, Mp - M), (0, Kp - K)))
    wp = jnp.pad(w.astype(jnp.bfloat16), ((0, Kp - K), (0, Np - N)))
    bp = jnp.broadcast_to(
        jnp.pad(b.astype(jnp.float32), (0, Np - N)).reshape(1, Np), (8, Np))

    out = pl.pallas_call(
        functools.partial(_gemm_bias_act_kernel, relu=relu),
        out_shape=jax.ShapeDtypeStruct((Mp, Np), out_dtype),
        grid=(Mp // tm, Np // tn, Kp // tk),
        in_specs=[
            pl.BlockSpec((tm, tk), lambda i, j, k: (i, k)),
            pl.BlockSpec((tk, tn), lambda i, j, k: (k, j)),
            pl.BlockSpec((8, tn), lambda i, j, k: (0, j)),
        ],
        out_specs=pl.BlockSpec((tm, tn), lambda i, j, k: (i, j)),
        scratch_shapes=[pltpu.VMEM((tm, tn), jnp.float32)],
        compiler_params=pltpu.CompilerParams(
            dimension_semantics=("parallel", "parallel", "arbitrary")),
    )(xp, wp, bp)
    return out[:M, :N]


# ----------------------------------------------------------------------------
# Pallas kernel 2: fused head  (proto = x @ W1 + b1 ; out = proto @ W2 + b2)
#   One launch per branch; W2/b2 stay resident (constant block index).
# ----------------------------------------------------------------------------
def _head_kernel(x_ref, w1_ref, b1_ref, w2_ref, b2_ref,
                 proto_ref, out_ref, acc_ref):
    k = pl.program_id(1)

    @pl.when(k == 0)
    def _():
        acc_ref[...] = jnp.zeros_like(acc_ref)

    acc_ref[...] += jnp.dot(x_ref[...], w1_ref[...],
                            preferred_element_type=jnp.float32)

    @pl.when(k == pl.num_programs(1) - 1)
    def _():
        proto = acc_ref[...] + b1_ref[0:1, :]                     # (tm, N1) f32
        proto_ref[...] = proto.astype(proto_ref.dtype)
        out = jnp.dot(proto.astype(jnp.bfloat16), w2_ref[...],
                      preferred_element_type=jnp.float32) + b2_ref[0:1, :]
        out_ref[...] = out.astype(out_ref.dtype)


def fused_head(x, w1, b1, w2, b2):
    """Returns (out, proto) for a  Linear(K->N1) -> Linear(N1->N2)  head."""
    M, K = x.shape
    N1 = w1.shape[1]
    N2 = w2.shape[1]
    assert N1 % 128 == 0 and w2.shape[0] == N1

    tm = _choose_tm(M)                    # real batch (8), not 128
    tk = _choose_tk(K)                    # 2432 for K=7200 -> Kp=7296 (1.3% pad)
    Mp, Kp, N2p = _pad_to(M, tm), _pad_to(K, tk), _pad_to(N2, 128)

    xp = jnp.pad(x.astype(jnp.bfloat16), ((0, Mp - M), (0, Kp - K)))
    w1p = jnp.pad(w1.astype(jnp.bfloat16), ((0, Kp - K), (0, 0)))
    w2p = jnp.pad(w2.astype(jnp.bfloat16), ((0, 0), (0, N2p - N2)))
    b1p = jnp.broadcast_to(b1.astype(jnp.float32).reshape(1, N1), (8, N1))
    b2p = jnp.broadcast_to(
        jnp.pad(b2.astype(jnp.float32), (0, N2p - N2)).reshape(1, N2p), (8, N2p))

    proto, out = pl.pallas_call(
        _head_kernel,
        out_shape=(jax.ShapeDtypeStruct((Mp, N1), jnp.float32),
                   jax.ShapeDtypeStruct((Mp, N2p), jnp.float32)),
        grid=(Mp // tm, Kp // tk),
        in_specs=[
            pl.BlockSpec((tm, tk), lambda i, k: (i, k)),
            pl.BlockSpec((tk, N1), lambda i, k: (k, 0)),
            pl.BlockSpec((8, N1), lambda i, k: (0, 0)),
            pl.BlockSpec((N1, N2p), lambda i, k: (0, 0)),
            pl.BlockSpec((8, N2p), lambda i, k: (0, 0)),
        ],
        out_specs=(pl.BlockSpec((tm, N1), lambda i, k: (i, 0)),
                   pl.BlockSpec((tm, N2p), lambda i, k: (i, 0))),
        scratch_shapes=[pltpu.VMEM((tm, N1), jnp.float32)],
        compiler_params=pltpu.CompilerParams(
            dimension_semantics=("parallel", "arbitrary")),
    )(xp, w1p, b1p, w2p, b2p)
    return out[:M, :N2], proto[:M, :N1]


# ----------------------------------------------------------------------------
# Pallas kernel 3: 2x2 max-pool on a free (N, 2*Ho, Wo, 2*C) view — no strided
# slice copies, one launch per pool, per-sample blocks.
# ----------------------------------------------------------------------------
def _maxpool_kernel(x_ref, o_ref):
    Ho, Wo, C = o_ref.shape
    v = x_ref[...]                                  # (2*Ho, Wo, 2*C)
    h = jnp.maximum(v[:, :, :C], v[:, :, C:])       # horizontal (w) pair max
    h = h.reshape(Ho, 2, Wo, C)                     # leading-dim split (free)
    o_ref[...] = jnp.maximum(h[:, 0], h[:, 1])      # vertical (h) pair max


def maxpool2x2(x):
    """x: (N, H, W, C) NHWC -> (N, H//2, W//2, C), floor semantics like torch."""
    N, H, W, C = x.shape
    Ho, Wo = H // 2, W // 2
    xr = x[:, :2 * Ho, :2 * Wo, :].reshape(N, 2 * Ho, Wo, 2 * C)  # free when H,W even
    return pl.pallas_call(
        _maxpool_kernel,
        out_shape=jax.ShapeDtypeStruct((N, Ho, Wo, C), x.dtype),
        grid=(N,),
        in_specs=[pl.BlockSpec((None, 2 * Ho, Wo, 2 * C),
                               lambda n: (n, 0, 0, 0))],
        out_specs=pl.BlockSpec((None, Ho, Wo, C), lambda n: (n, 0, 0, 0)),
        compiler_params=pltpu.CompilerParams(dimension_semantics=("parallel",)),
    )(xr)


# ----------------------------------------------------------------------------
# Conv2d(k=3, stride=1) + ReLU via im2col + Pallas GEMM (bf16 end-to-end).
# ----------------------------------------------------------------------------
def conv3x3_relu(x_nhwc, w_mat, bias, pad):
    """x: (N,H,W,Cin), w_mat: (9*Cin, Cout) bf16, bias: (Cout,) f32."""
    N, H, W, C = x_nhwc.shape
    Cout = w_mat.shape[1]
    xp = jnp.pad(x_nhwc.astype(jnp.bfloat16),
                 ((0, 0), (pad, pad), (pad, pad), (0, 0)))
    Ho, Wo = H + 2 * pad - 2, W + 2 * pad - 2
    # TODO(synk): the (kh,kw,cin) patch matrix is still materialized in HBM
    # (bf16, tiny at these activation sizes); a true shifted-window BlockSpec
    # would need element-offset index maps / manual DMA and is not worth it here.
    cols = [xp[:, dh:dh + Ho, dw:dw + Wo, :]
            for dh in range(3) for dw in range(3)]
    pat = jnp.concatenate(cols, axis=-1).reshape(N * Ho * Wo, 9 * C)
    out = matmul_bias(pat, w_mat, bias, relu=True, out_dtype=jnp.bfloat16)
    return out.reshape(N, Ho, Wo, Cout)


def nchw_flatten(x_nhwc):
    """Flatten like torch.nn.Flatten on NCHW: (N, C*H*W)."""
    N = x_nhwc.shape[0]
    return jnp.transpose(x_nhwc, (0, 3, 1, 2)).reshape(N, -1)


# ----------------------------------------------------------------------------
# Parameters (deterministic synthetic init) — dataset='CIFAR10', input_shape=3
# ----------------------------------------------------------------------------
def init_params(key, cin=3, num_classes=10):
    ks = jax.random.split(key, 16)
    s = 0.05

    def w(k, shape):
        return jax.random.normal(k, shape, jnp.float32) * s

    return {
        # student: Conv(cin->32,k3,pad0) ReLU MaxPool2 Flatten Linear(1800*4 -> 512); out: Linear(512->10)
        "s_conv_w": w(ks[0], (3, 3, cin, 32)), "s_conv_b": w(ks[1], (32,)),
        "s_fc1_w": w(ks[2], (32 * 15 * 15, 512)), "s_fc1_b": w(ks[3], (512,)),
        "s_out_w": w(ks[4], (512, num_classes)), "s_out_b": w(ks[5], (num_classes,)),
        # teacher: 4 x [Conv k3 pad1 ReLU MaxPool2], Flatten, Linear(16*4*4 -> 512); fc: Linear(512->10)
        "t_c1_w": w(ks[6], (3, 3, cin, 32)), "t_c1_b": w(ks[7], (32,)),
        "t_c2_w": w(ks[8], (3, 3, 32, 64)), "t_c2_b": w(ks[9], (64,)),
        "t_c3_w": w(ks[10], (3, 3, 64, 64)), "t_c3_b": w(ks[11], (64,)),
        "t_c4_w": w(ks[12], (3, 3, 64, 64)), "t_c4_b": w(ks[13], (64,)),
        "t_fc1_w": w(ks[14], (64 * 2 * 2, 512)), "t_fc1_b": jnp.zeros((512,), jnp.float32),
        "t_fc2_w": w(ks[15], (512, num_classes)), "t_fc2_b": jnp.zeros((num_classes,), jnp.float32),
    }


def prepare_params(p):
    """One-time weight prep: conv HWIO -> (9*Cin,Cout) bf16 matrices, bf16 FC
    weights, f32 biases (done once, outside the jitted forward)."""
    prep = {}
    for k, v in p.items():
        if k.endswith("_b"):
            prep[k] = v.astype(jnp.float32)
        elif v.ndim == 4:                                # conv weight (3,3,Ci,Co)
            prep[k] = v.reshape(-1, v.shape[-1]).astype(jnp.bfloat16)
        else:                                            # linear weight (In,Out)
            prep[k] = v.astype(jnp.bfloat16)
    return prep


# ----------------------------------------------------------------------------
# Forward pass of CNNDistillation (CIFAR10 branch: student mid_dim=1800,
# teacher mid_dim=16). Returns (out_student, proto_student, out_teacher, proto_teacher).
# ----------------------------------------------------------------------------
def cnn_distillation_forward(prep, x_nchw):
    x = jnp.transpose(x_nchw, (0, 2, 3, 1)).astype(jnp.bfloat16)   # NCHW -> NHWC

    # ---------------- student ----------------
    h = conv3x3_relu(x, prep["s_conv_w"], prep["s_conv_b"], pad=0)   # (N,30,30,32)
    h = maxpool2x2(h)                                                # (N,15,15,32)
    h = nchw_flatten(h)                                              # (N,7200)
    out_student, proto_student = fused_head(
        h, prep["s_fc1_w"], prep["s_fc1_b"], prep["s_out_w"], prep["s_out_b"])

    # ---------------- teacher ----------------
    t = conv3x3_relu(x, prep["t_c1_w"], prep["t_c1_b"], pad=1)   # (N,32,32,32)
    t = maxpool2x2(t)                                            # (N,16,16,32)
    t = conv3x3_relu(t, prep["t_c2_w"], prep["t_c2_b"], pad=1)   # (N,16,16,64)
    t = maxpool2x2(t)                                            # (N,8,8,64)
    t = conv3x3_relu(t, prep["t_c3_w"], prep["t_c3_b"], pad=1)   # (N,8,8,64)
    t = maxpool2x2(t)                                            # (N,4,4,64)
    t = conv3x3_relu(t, prep["t_c4_w"], prep["t_c4_b"], pad=1)   # (N,4,4,64)
    t = maxpool2x2(t)                                            # (N,2,2,64)
    t = nchw_flatten(t)                                          # (N,256)
    out_teacher, proto_teacher = fused_head(
        t, prep["t_fc1_w"], prep["t_fc1_b"], prep["t_fc2_w"], prep["t_fc2_b"])

    return out_student, proto_student, out_teacher, proto_teacher


if __name__ == "__main__":
    key = jax.random.PRNGKey(0)
    pkey, xkey = jax.random.split(key)
    params = init_params(pkey, cin=3, num_classes=10)
    prep = prepare_params(params)   # one-time bf16 weight prep (outside jit)

    # CIFAR10-shaped input (batch=2, channels=3, 32x32) — required by the
    # module's Linear dims (student 1800*4=7200, teacher 16*4*4=256).
    x = jax.random.normal(xkey, (2, 3, 32, 32), jnp.float32)

    fwd = jax.jit(functools.partial(cnn_distillation_forward, prep))
    out_s, proto_s, out_t, proto_t = fwd(x)
    jax.block_until_ready((out_s, proto_s, out_t, proto_t))

    assert out_s.shape == (2, 10) and proto_s.shape == (2, 512)
    assert out_t.shape == (2, 10) and proto_t.shape == (2, 512)
    assert bool(jnp.isfinite(out_s).all()) and bool(jnp.isfinite(out_t).all())
    print("KERNEL_OK")
</pallas_src>

<mosaic_0001>
module attributes {stable_mosaic.version = 11 : i64} {
  func.func @_gemm_bias_act_kernel(%arg0: i32, %arg1: i32, %arg2: i32, %arg3: memref<120x128xbf16, #tpu.memory_space<vmem>>, %arg4: memref<128x128xbf16, #tpu.memory_space<vmem>>, %arg5: memref<8x128xf32, #tpu.memory_space<vmem>>, %arg6: memref<120x128xbf16, #tpu.memory_space<vmem>>, %arg7: memref<120x128xf32, #tpu.memory_space<vmem>>) attributes {dimension_semantics = [#tpu.dimension_semantics<parallel>, #tpu.dimension_semantics<parallel>, #tpu.dimension_semantics<arbitrary>], iteration_bounds = array<i64: 15, 1, 1>, scalar_prefetch = 0 : i64, scratch_operands = 1 : i64, tpu.core_type = #tpu.core_type<tc>, window_params = [{transform_indices = @transform_0, window_bounds = array<i64: 120, 128>}, {transform_indices = @transform_1, window_bounds = array<i64: 128, 128>}, {transform_indices = @transform_2, window_bounds = array<i64: 8, 128>}, {transform_indices = @transform_3, window_bounds = array<i64: 120, 128>}]} {
    %c0_i32 = arith.constant 0 : i32
    %0 = arith.cmpi eq, %arg2, %c0_i32 : i32
    %1 = arith.extui %0 : i1 to i32
    %c0_i32_0 = arith.constant 0 : i32
    %2 = arith.cmpi ne, %1, %c0_i32_0 : i32
    scf.if %2 {
      %cst_10 = arith.constant 0.000000e+00 : f32
      %12 = vector.broadcast %cst_10 : f32 to vector<120x128xf32>
      %c0_11 = arith.constant 0 : index
      %c0_12 = arith.constant 0 : index
      %13 = vector.load %arg7[%c0_11, %c0_12] : memref<120x128xf32, #tpu.memory_space<vmem>>, vector<120x128xf32>
      tpu.vector_store %arg7[%c0_11, %c0_12], %12 {strides = array<i32>} : memref<120x128xf32, #tpu.memory_space<vmem>>, vector<120x128xf32>,
    } else {
    }
    %c0 = arith.constant 0 : index
    %c0_1 = arith.constant 0 : index
    %3 = vector.load %arg7[%c0, %c0_1] : memref<120x128xf32, #tpu.memory_space<vmem>>, vector<120x128xf32>
    %c0_2 = arith.constant 0 : index
    %c0_3 = arith.constant 0 : index
    %4 = vector.load %arg3[%c0_2, %c0_3] : memref<120x128xbf16, #tpu.memory_space<vmem>>, vector<120x128xbf16>
    %c0_4 = arith.constant 0 : index
    %c0_5 = arith.constant 0 : index
    %5 = vector.load %arg4[%c0_4, %c0_5] : memref<128x128xbf16, #tpu.memory_space<vmem>>, vector<128x128xbf16>
    %cst = arith.constant dense<0.000000e+00> : vector<120x128xf32>
    %6 = tpu.matmul %4, %5, %cst {dimension_numbers = #tpu.dot_dimension_numbers<[1], [0], [0], [1], [0, 0, 1, 1], [], []>} : vector<120x128xbf16>, vector<128x128xbf16>, vector<120x128xf32> -> vector<120x128xf32>
    %7 = arith.addf %3, %6 : vector<120x128xf32>
    %c0_6 = arith.constant 0 : index
    %c0_7 = arith.constant 0 : index
    %8 = vector.load %arg7[%c0_6, %c0_7] : memref<120x128xf32, #tpu.memory_space<vmem>>, vector<120x128xf32>
    tpu.vector_store %arg7[%c0_6, %c0_7], %7 {strides = array<i32>} : memref<120x128xf32, #tpu.memory_space<vmem>>, vector<120x128xf32>,
    %c0_i32_8 = arith.constant 0 : i32
    %9 = arith.cmpi eq, %arg2, %c0_i32_8 : i32
    %10 = arith.extui %9 : i1 to i32
    %c0_i32_9 = arith.constant 0 : i32
    %11 = arith.cmpi ne, %10, %c0_i32_9 : i32
    scf.if %11 {
      %c0_10 = arith.constant 0 : index
      %c0_11 = arith.constant 0 : index
      %12 = vector.load %arg7[%c0_10, %c0_11] : memref<120x128xf32, #tpu.memory_space<vmem>>, vector<120x128xf32>
      %c0_12 = arith.constant 0 : index
      %c0_13 = arith.constant 0 : index
      %13 = vector.load %arg5[%c0_12, %c0_13] : memref<8x128xf32, #tpu.memory_space<vmem>>, vector<1x128xf32>
      %14 = vector.broadcast %13 : vector<1x128xf32> to vector<120x128xf32>
      %15 = arith.addf %12, %14 : vector<120x128xf32>
      %cst_14 = arith.constant 0.000000e+00 : f32
      %16 = vector.broadcast %cst_14 : f32 to vector<120x128xf32>
      %17 = arith.maximumf %15, %16 : vector<120x128xf32>
      %18 = arith.truncf %17 : vector<120x128xf32> to vector<120x128xbf16>
      %c0_15 = arith.constant 0 : index
      %c0_16 = arith.constant 0 : index
      %19 = vector.load %arg6[%c0_15, %c0_16] : memref<120x128xbf16, #tpu.memory_space<vmem>>, vector<120x128xbf16>
      tpu.vector_store %arg6[%c0_15, %c0_16], %18 {strides = array<i32>} : memref<120x128xbf16, #tpu.memory_space<vmem>>, vector<120x128xbf16>,
    } else {
    }
    return
  }
  func.func @transform_0(%arg0: i32, %arg1: i32, %arg2: i32) -> (i32, i32) {
    %c0_i32 = arith.constant 0 : i32
    return %arg0, %arg2 : i32, i32
  }
  func.func @transform_1(%arg0: i32, %arg1: i32, %arg2: i32) -> (i32, i32) {
    %c0_i32 = arith.constant 0 : i32
    return %arg2, %arg1 : i32, i32
  }
  func.func @transform_2(%arg0: i32, %arg1: i32, %arg2: i32) -> (i32, i32) {
    %c0_i32 = arith.constant 0 : i32
    %c0_i32_0 = arith.constant 0 : i32
    return %c0_i32, %arg1 : i32, i32
  }
  func.func @transform_3(%arg0: i32, %arg1: i32, %arg2: i32) -> (i32, i32) {
    %c0_i32 = arith.constant 0 : i32
    return %arg0, %arg1 : i32, i32
  }
}

module attributes {stable_mosaic.version = 11 : i64} {
  func.func @_maxpool_kernel(%arg0: i32, %arg1: memref<1x30x15x64xbf16, #tpu.memory_space<vmem>>, %arg2: memref<1x15x15x32xbf16, #tpu.memory_space<vmem>>) attributes {dimension_semantics = [#tpu.dimension_semantics<parallel>], iteration_bounds = array<i64: 2>, scalar_prefetch = 0 : i64, scratch_operands = 0 : i64, tpu.core_type = #tpu.core_type<tc>, window_params = [{transform_indices = @transform_0, window_bounds = array<i64: 1, 30, 15, 64>}, {transform_indices = @transform_1, window_bounds = array<i64: 1, 15, 15, 32>}]} {
    %c0 = arith.constant 0 : index
    %c0_0 = arith.constant 0 : index
    %c0_1 = arith.constant 0 : index
    %c0_2 = arith.constant 0 : index
    %0 = vector.load %arg1[%c0, %c0_0, %c0_1, %c0_2] : memref<1x30x15x64xbf16, #tpu.memory_space<vmem>>, vector<1x30x15x64xbf16>
    %1 = vector.shape_cast %0 : vector<1x30x15x64xbf16> to vector<30x15x64xbf16>
    %2 = vector.extract_strided_slice %1 {offsets = [0, 0, 0], sizes = [30, 15, 32], strides = [1, 1, 1]} : vector<30x15x64xbf16> to vector<30x15x32xbf16>
    %3 = vector.extract_strided_slice %1 {offsets = [0, 0, 32], sizes = [30, 15, 32], strides = [1, 1, 1]} : vector<30x15x64xbf16> to vector<30x15x32xbf16>
    %4 = arith.maximumf %2, %3 : vector<30x15x32xbf16>
    %5 = vector.shape_cast %4 : vector<30x15x32xbf16> to vector<15x2x15x32xbf16>
    %6 = vector.extract_strided_slice %5 {offsets = [0, 0, 0, 0], sizes = [15, 1, 15, 32], strides = [1, 1, 1, 1]} : vector<15x2x15x32xbf16> to vector<15x1x15x32xbf16>
    %7 = vector.shape_cast %6 : vector<15x1x15x32xbf16> to vector<15x15x32xbf16>
    %8 = vector.extract_strided_slice %5 {offsets = [0, 1, 0, 0], sizes = [15, 1, 15, 32], strides = [1, 1, 1, 1]} : vector<15x2x15x32xbf16> to vector<15x1x15x32xbf16>
    %9 = vector.shape_cast %8 : vector<15x1x15x32xbf16> to vector<15x15x32xbf16>
    %10 = arith.maximumf %7, %9 : vector<15x15x32xbf16>
    %c0_3 = arith.constant 0 : index
    %c0_4 = arith.constant 0 : index
    %c0_5 = arith.constant 0 : index
    %c0_6 = arith.constant 0 : index
    %11 = vector.load %arg2[%c0_3, %c0_4, %c0_5, %c0_6] : memref<1x15x15x32xbf16, #tpu.memory_space<vmem>>, vector<1x15x15x32xbf16>
    %12 = vector.shape_cast %11 : vector<1x15x15x32xbf16> to vector<15x15x32xbf16>
    %13 = vector.shape_cast %10 : vector<15x15x32xbf16> to vector<1x15x15x32xbf16>
    tpu.vector_store %arg2[%c0_3, %c0_4, %c0_5, %c0_6], %13 {strides = array<i32>} : memref<1x15x15x32xbf16, #tpu.memory_space<vmem>>, vector<1x15x15x32xbf16>,
    return
  }
  func.func @transform_0(%arg0: i32) -> (i32, i32, i32, i32) {
    %c0_i32 = arith.constant 0 : i32
    %c0_i32_0 = arith.constant 0 : i32
    %c0_i32_1 = arith.constant 0 : i32
    %c0_i32_2 = arith.constant 0 : i32
    return %arg0, %c0_i32, %c0_i32_0, %c0_i32_1 : i32, i32, i32, i32
  }
  func.func @transform_1(%arg0: i32) -> (i32, i32, i32, i32) {
    %c0_i32 = arith.constant 0 : i32
    %c0_i32_0 = arith.constant 0 : i32
    %c0_i32_1 = arith.constant 0 : i32
    %c0_i32_2 = arith.constant 0 : i32
    return %arg0, %c0_i32, %c0_i32_0, %c0_i32_1 : i32, i32, i32, i32
  }
}

module attributes {stable_mosaic.version = 11 : i64} {
  func.func @_head_kernel(%arg0: i32, %arg1: i32, %arg2: memref<8x2432xbf16, #tpu.memory_space<vmem>>, %arg3: memref<2432x512xbf16, #tpu.memory_space<vmem>>, %arg4: memref<8x512xf32, #tpu.memory_space<vmem>>, %arg5: memref<512x128xbf16, #tpu.memory_space<vmem>>, %arg6: memref<8x128xf32, #tpu.memory_space<vmem>>, %arg7: memref<8x512xf32, #tpu.memory_space<vmem>>, %arg8: memref<8x128xf32, #tpu.memory_space<vmem>>, %arg9: memref<8x512xf32, #tpu.memory_space<vmem>>) attributes {dimension_semantics = [#tpu.dimension_semantics<parallel>, #tpu.dimension_semantics<arbitrary>], iteration_bounds = array<i64: 1, 3>, scalar_prefetch = 0 : i64, scratch_operands = 1 : i64, tpu.core_type = #tpu.core_type<tc>, window_params = [{transform_indices = @transform_0, window_bounds = array<i64: 8, 2432>}, {transform_indices = @transform_1, window_bounds = array<i64: 2432, 512>}, {pipeline_mode = #tpu.pipeline_mode<synchronous>, transform_indices = @transform_2, window_bounds = array<i64: 8, 512>}, {pipeline_mode = #tpu.pipeline_mode<synchronous>, transform_indices = @transform_3, window_bounds = array<i64: 512, 128>}, {pipeline_mode = #tpu.pipeline_mode<synchronous>, transform_indices = @transform_4, window_bounds = array<i64: 8, 128>}, {transform_indices = @transform_5, window_bounds = array<i64: 8, 512>}, {transform_indices = @transform_6, window_bounds = array<i64: 8, 128>}]} {
    %c0_i32 = arith.constant 0 : i32
    %0 = arith.cmpi eq, %arg1, %c0_i32 : i32
    %1 = arith.extui %0 : i1 to i32
    %c0_i32_0 = arith.constant 0 : i32
    %2 = arith.cmpi ne, %1, %c0_i32_0 : i32
    scf.if %2 {
      %cst_9 = arith.constant 0.000000e+00 : f32
      %12 = vector.broadcast %cst_9 : f32 to vector<8x512xf32>
      %c0_10 = arith.constant 0 : index
      %c0_11 = arith.constant 0 : index
      %13 = vector.load %arg9[%c0_10, %c0_11] : memref<8x512xf32, #tpu.memory_space<vmem>>, vector<8x512xf32>
      tpu.vector_store %arg9[%c0_10, %c0_11], %12 {strides = array<i32>} : memref<8x512xf32, #tpu.memory_space<vmem>>, vector<8x512xf32>,
    } else {
    }
    %c0 = arith.constant 0 : index
    %c0_1 = arith.constant 0 : index
    %3 = vector.load %arg9[%c0, %c0_1] : memref<8x512xf32, #tpu.memory_space<vmem>>, vector<8x512xf32>
    %c0_2 = arith.constant 0 : index
    %c0_3 = arith.constant 0 : index
    %4 = vector.load %arg2[%c0_2, %c0_3] : memref<8x2432xbf16, #tpu.memory_space<vmem>>, vector<8x2432xbf16>
    %c0_4 = arith.constant 0 : index
    %c0_5 = arith.constant 0 : index
    %5 = vector.load %arg3[%c0_4, %c0_5] : memref<2432x512xbf16, #tpu.memory_space<vmem>>, vector<2432x512xbf16>
    %cst = arith.constant dense<0.000000e+00> : vector<8x512xf32>
    %6 = tpu.matmul %4, %5, %cst {dimension_numbers = #tpu.dot_dimension_numbers<[1], [0], [0], [1], [0, 0, 1, 1], [], []>} : vector<8x2432xbf16>, vector<2432x512xbf16>, vector<8x512xf32> -> vector<8x512xf32>
    %7 = arith.addf %3, %6 : vector<8x512xf32>
    %c0_6 = arith.constant 0 : index
    %c0_7 = arith.constant 0 : index
    %8 = vector.load %arg9[%c0_6, %c0_7] : memref<8x512xf32, #tpu.memory_space<vmem>>, vector<8x512xf32>
    tpu.vector_store %arg9[%c0_6, %c0_7], %7 {strides = array<i32>} : memref<8x512xf32, #tpu.memory_space<vmem>>, vector<8x512xf32>,
    %c2_i32 = arith.constant 2 : i32
    %9 = arith.cmpi eq, %arg1, %c2_i32 : i32
    %10 = arith.extui %9 : i1 to i32
    %c0_i32_8 = arith.constant 0 : i32
    %11 = arith.cmpi ne, %10, %c0_i32_8 : i32
    scf.if %11 {
      %c0_9 = arith.constant 0 : index
      %c0_10 = arith.constant 0 : index
      %12 = vector.load %arg9[%c0_9, %c0_10] : memref<8x512xf32, #tpu.memory_space<vmem>>, vector<8x512xf32>
      %c0_11 = arith.constant 0 : index
      %c0_12 = arith.constant 0 : index
      %13 = vector.load %arg4[%c0_11, %c0_12] : memref<8x512xf32, #tpu.memory_space<vmem>>, vector<1x512xf32>
      %14 = vector.broadcast %13 : vector<1x512xf32> to vector<8x512xf32>
      %15 = arith.addf %12, %14 : vector<8x512xf32>
      %c0_13 = arith.constant 0 : index
      %c0_14 = arith.constant 0 : index
      %16 = vector.load %arg7[%c0_13, %c0_14] : memref<8x512xf32, #tpu.memory_space<vmem>>, vector<8x512xf32>
      tpu.vector_store %arg7[%c0_13, %c0_14], %15 {strides = array<i32>} : memref<8x512xf32, #tpu.memory_space<vmem>>, vector<8x512xf32>,
      %17 = arith.truncf %15 : vector<8x512xf32> to vector<8x512xbf16>
      %c0_15 = arith.constant 0 : index
      %c0_16 = arith.constant 0 : index
      %18 = vector.load %arg5[%c0_15, %c0_16] : memref<512x128xbf16, #tpu.memory_space<vmem>>, vector<512x128xbf16>
      %cst_17 = arith.constant dense<0.000000e+00> : vector<8x128xf32>
      %19 = tpu.matmul %17, %18, %cst_17 {dimension_numbers = #tpu.dot_dimension_numbers<[1], [0], [0], [1], [0, 0, 1, 1], [], []>} : vector<8x512xbf16>, vector<512x128xbf16>, vector<8x128xf32> -> vector<8x128xf32>
      %c0_18 = arith.constant 0 : index
      %c0_19 = arith.constant 0 : index
      %20 = vector.load %arg6[%c0_18, %c0_19] : memref<8x128xf32, #tpu.memory_space<vmem>>, vector<1x128xf32>
      %21 = vector.broadcast %20 : vector<1x128xf32> to vector<8x128xf32>
      %22 = arith.addf %19, %21 : vector<8x128xf32>
      %c0_20 = arith.constant 0 : index
      %c0_21 = arith.constant 0 : index
      %23 = vector.load %arg8[%c0_20, %c0_21] : memref<8x128xf32, #tpu.memory_space<vmem>>, vector<8x128xf32>
      tpu.vector_store %arg8[%c0_20, %c0_21], %22 {strides = array<i32>} : memref<8x128xf32, #tpu.memory_space<vmem>>, vector<8x128xf32>,
    } else {
    }
    return
  }
  func.func @transform_0(%arg0: i32, %arg1: i32) -> (i32, i32) {
    %c0_i32 = arith.constant 0 : i32
    return %arg0, %arg1 : i32, i32
  }
  func.func @transform_1(%arg0: i32, %arg1: i32) -> (i32, i32) {
    %c0_i32 = arith.constant 0 : i32
    %c0_i32_0 = arith.constant 0 : i32
    return %arg1, %c0_i32 : i32, i32
  }
  func.func @transform_2(%arg0: i32, %arg1: i32) -> (i32, i32) {
    %c0_i32 = arith.constant 0 : i32
    %c0_i32_0 = arith.constant 0 : i32
    %c0_i32_1 = arith.constant 0 : i32
    return %c0_i32, %c0_i32_0 : i32, i32
  }
  func.func @transform_3(%arg0: i32, %arg1: i32) -> (i32, i32) {
    %c0_i32 = arith.constant 0 : i32
    %c0_i32_0 = arith.constant 0 : i32
    %c0_i32_1 = arith.constant 0 : i32
    return %c0_i32, %c0_i32_0 : i32, i32
  }
  func.func @transform_4(%arg0: i32, %arg1: i32) -> (i32, i32) {
    %c0_i32 = arith.constant 0 : i32
    %c0_i32_0 = arith.constant 0 : i32
    %c0_i32_1 = arith.constant 0 : i32
    return %c0_i32, %c0_i32_0 : i32, i32
  }
  func.func @transform_5(%arg0: i32, %arg1: i32) -> (i32, i32) {
    %c0_i32 = arith.constant 0 : i32
    %c0_i32_0 = arith.constant 0 : i32
    return %arg0, %c0_i32 : i32, i32
  }
  func.func @transform_6(%arg0: i32, %arg1: i32) -> (i32, i32) {
    %c0_i32 = arith.constant 0 : i32
    %c0_i32_0 = arith.constant 0 : i32
    return %arg0, %c0_i32 : i32, i32
  }
}

module attributes {stable_mosaic.version = 11 : i64} {
  func.func @_gemm_bias_act_kernel(%arg0: i32, %arg1: i32, %arg2: i32, %arg3: memref<128x128xbf16, #tpu.memory_space<vmem>>, %arg4: memref<128x128xbf16, #tpu.memory_space<vmem>>, %arg5: memref<8x128xf32, #tpu.memory_space<vmem>>, %arg6: memref<128x128xbf16, #tpu.memory_space<vmem>>, %arg7: memref<128x128xf32, #tpu.memory_space<vmem>>) attributes {dimension_semantics = [#tpu.dimension_semantics<parallel>, #tpu.dimension_semantics<parallel>, #tpu.dimension_semantics<arbitrary>], iteration_bounds = array<i64: 16, 1, 1>, scalar_prefetch = 0 : i64, scratch_operands = 1 : i64, tpu.core_type = #tpu.core_type<tc>, window_params = [{transform_indices = @transform_0, window_bounds = array<i64: 128, 128>}, {transform_indices = @transform_1, window_bounds = array<i64: 128, 128>}, {transform_indices = @transform_2, window_bounds = array<i64: 8, 128>}, {transform_indices = @transform_3, window_bounds = array<i64: 128, 128>}]} {
    %c0_i32 = arith.constant 0 : i32
    %0 = arith.cmpi eq, %arg2, %c0_i32 : i32
    %1 = arith.extui %0 : i1 to i32
    %c0_i32_0 = arith.constant 0 : i32
    %2 = arith.cmpi ne, %1, %c0_i32_0 : i32
    scf.if %2 {
      %cst_10 = arith.constant 0.000000e+00 : f32
      %12 = vector.broadcast %cst_10 : f32 to vector<128x128xf32>
      %c0_11 = arith.constant 0 : index
      %c0_12 = arith.constant 0 : index
      %13 = vector.load %arg7[%c0_11, %c0_12] : memref<128x128xf32, #tpu.memory_space<vmem>>, vector<128x128xf32>
      tpu.vector_store %arg7[%c0_11, %c0_12], %12 {strides = array<i32>} : memref<128x128xf32, #tpu.memory_space<vmem>>, vector<128x128xf32>,
    } else {
    }
    %c0 = arith.constant 0 : index
    %c0_1 = arith.constant 0 : index
    %3 = vector.load %arg7[%c0, %c0_1] : memref<128x128xf32, #tpu.memory_space<vmem>>, vector<128x128xf32>
    %c0_2 = arith.constant 0 : index
    %c0_3 = arith.constant 0 : index
    %4 = vector.load %arg3[%c0_2, %c0_3] : memref<128x128xbf16, #tpu.memory_space<vmem>>, vector<128x128xbf16>
    %c0_4 = arith.constant 0 : index
    %c0_5 = arith.constant 0 : index
    %5 = vector.load %arg4[%c0_4, %c0_5] : memref<128x128xbf16, #tpu.memory_space<vmem>>, vector<128x128xbf16>
    %cst = arith.constant dense<0.000000e+00> : vector<128x128xf32>
    %6 = tpu.matmul %4, %5, %cst {dimension_numbers = #tpu.dot_dimension_numbers<[1], [0], [0], [1], [0, 0, 1, 1], [], []>} : vector<128x128xbf16>, vector<128x128xbf16>, vector<128x128xf32> -> vector<128x128xf32>
    %7 = arith.addf %3, %6 : vector<128x128xf32>
    %c0_6 = arith.constant 0 : index
    %c0_7 = arith.constant 0 : index
    %8 = vector.load %arg7[%c0_6, %c0_7] : memref<128x128xf32, #tpu.memory_space<vmem>>, vector<128x128xf32>
    tpu.vector_store %arg7[%c0_6, %c0_7], %7 {strides = array<i32>} : memref<128x128xf32, #tpu.memory_space<vmem>>, vector<128x128xf32>,
    %c0_i32_8 = arith.constant 0 : i32
    %9 = arith.cmpi eq, %arg2, %c0_i32_8 : i32
    %10 = arith.extui %9 : i1 to i32
    %c0_i32_9 = arith.constant 0 : i32
    %11 = arith.cmpi ne, %10, %c0_i32_9 : i32
    scf.if %11 {
      %c0_10 = arith.constant 0 : index
      %c0_11 = arith.constant 0 : index
      %12 = vector.load %arg7[%c0_10, %c0_11] : memref<128x128xf32, #tpu.memory_space<vmem>>, vector<128x128xf32>
      %c0_12 = arith.constant 0 : index
      %c0_13 = arith.constant 0 : index
      %13 = vector.load %arg5[%c0_12, %c0_13] : memref<8x128xf32, #tpu.memory_space<vmem>>, vector<1x128xf32>
      %14 = vector.broadcast %13 : vector<1x128xf32> to vector<128x128xf32>
      %15 = arith.addf %12, %14 : vector<128x128xf32>
      %cst_14 = arith.constant 0.000000e+00 : f32
      %16 = vector.broadcast %cst_14 : f32 to vector<128x128xf32>
      %17 = arith.maximumf %15, %16 : vector<128x128xf32>
      %18 = arith.truncf %17 : vector<128x128xf32> to vector<128x128xbf16>
      %c0_15 = arith.constant 0 : index
      %c0_16 = arith.constant 0 : index
      %19 = vector.load %arg6[%c0_15, %c0_16] : memref<128x128xbf16, #tpu.memory_space<vmem>>, vector<128x128xbf16>
      tpu.vector_store %arg6[%c0_15, %c0_16], %18 {strides = array<i32>} : memref<128x128xbf16, #tpu.memory_space<vmem>>, vector<128x128xbf16>,
    } else {
    }
    return
  }
  func.func @transform_0(%arg0: i32, %arg1: i32, %arg2: i32) -> (i32, i32) {
    %c0_i32 = arith.constant 0 : i32
    return %arg0, %arg2 : i32, i32
  }
  func.func @transform_1(%arg0: i32, %arg1: i32, %arg2: i32) -> (i32, i32) {
    %c0_i32 = arith.constant 0 : i32
    return %arg2, %arg1 : i32, i32
  }
  func.func @transform_2(%arg0: i32, %arg1: i32, %arg2: i32) -> (i32, i32) {
    %c0_i32 = arith.constant 0 : i32
    %c0_i32_0 = arith.constant 0 : i32
    return %c0_i32, %arg1 : i32, i32
  }
  func.func @transform_3(%arg0: i32, %arg1: i32, %arg2: i32) -> (i32, i32) {
    %c0_i32 = arith.constant 0 : i32
    return %arg0, %arg1 : i32, i32
  }
}

module attributes {stable_mosaic.version = 11 : i64} {
  func.func @_maxpool_kernel(%arg0: i32, %arg1: memref<1x32x16x64xbf16, #tpu.memory_space<vmem>>, %arg2: memref<1x16x16x32xbf16, #tpu.memory_space<vmem>>) attributes {dimension_semantics = [#tpu.dimension_semantics<parallel>], iteration_bounds = array<i64: 2>, scalar_prefetch = 0 : i64, scratch_operands = 0 : i64, tpu.core_type = #tpu.core_type<tc>, window_params = [{transform_indices = @transform_0, window_bounds = array<i64: 1, 32, 16, 64>}, {transform_indices = @transform_1, window_bounds = array<i64: 1, 16, 16, 32>}]} {
    %c0 = arith.constant 0 : index
    %c0_0 = arith.constant 0 : index
    %c0_1 = arith.constant 0 : index
    %c0_2 = arith.constant 0 : index
    %0 = vector.load %arg1[%c0, %c0_0, %c0_1, %c0_2] : memref<1x32x16x64xbf16, #tpu.memory_space<vmem>>, vector<1x32x16x64xbf16>
    %1 = vector.shape_cast %0 : vector<1x32x16x64xbf16> to vector<32x16x64xbf16>
    %2 = vector.extract_strided_slice %1 {offsets = [0, 0, 0], sizes = [32, 16, 32], strides = [1, 1, 1]} : vector<32x16x64xbf16> to vector<32x16x32xbf16>
    %3 = vector.extract_strided_slice %1 {offsets = [0, 0, 32], sizes = [32, 16, 32], strides = [1, 1, 1]} : vector<32x16x64xbf16> to vector<32x16x32xbf16>
    %4 = arith.maximumf %2, %3 : vector<32x16x32xbf16>
    %5 = vector.shape_cast %4 : vector<32x16x32xbf16> to vector<16x2x16x32xbf16>
    %6 = vector.extract_strided_slice %5 {offsets = [0, 0, 0, 0], sizes = [16, 1, 16, 32], strides = [1, 1, 1, 1]} : vector<16x2x16x32xbf16> to vector<16x1x16x32xbf16>
    %7 = vector.shape_cast %6 : vector<16x1x16x32xbf16> to vector<16x16x32xbf16>
    %8 = vector.extract_strided_slice %5 {offsets = [0, 1, 0, 0], sizes = [16, 1, 16, 32], strides = [1, 1, 1, 1]} : vector<16x2x16x32xbf16> to vector<16x1x16x32xbf16>
    %9 = vector.shape_cast %8 : vector<16x1x16x32xbf16> to vector<16x16x32xbf16>
    %10 = arith.maximumf %7, %9 : vector<16x16x32xbf16>
    %c0_3 = arith.constant 0 : index
    %c0_4 = arith.constant 0 : index
    %c0_5 = arith.constant 0 : index
    %c0_6 = arith.constant 0 : index
    %11 = vector.load %arg2[%c0_3, %c0_4, %c0_5, %c0_6] : memref<1x16x16x32xbf16, #tpu.memory_space<vmem>>, vector<1x16x16x32xbf16>
    %12 = vector.shape_cast %11 : vector<1x16x16x32xbf16> to vector<16x16x32xbf16>
    %13 = vector.shape_cast %10 : vector<16x16x32xbf16> to vector<1x16x16x32xbf16>
    tpu.vector_store %arg2[%c0_3, %c0_4, %c0_5, %c0_6], %13 {strides = array<i32>} : memref<1x16x16x32xbf16, #tpu.memory_space<vmem>>, vector<1x16x16x32xbf16>,
    return
  }
  func.func @transform_0(%arg0: i32) -> (i32, i32, i32, i32) {
    %c0_i32 = arith.constant 0 : i32
    %c0_i32_0 = arith.constant 0 : i32
    %c0_i32_1 = arith.constant 0 : i32
    %c0_i32_2 = arith.constant 0 : i32
    return %arg0, %c0_i32, %c0_i32_0, %c0_i32_1 : i32, i32, i32, i32
  }
  func.func @transform_1(%arg0: i32) -> (i32, i32, i32, i32) {
    %c0_i32 = arith.constant 0 : i32
    %c0_i32_0 = arith.constant 0 : i32
    %c0_i32_1 = arith.constant 0 : i32
    %c0_i32_2 = arith.constant 0 : i32
    return %arg0, %c0_i32, %c0_i32_0, %c0_i32_1 : i32, i32, i32, i32
  }
}

module attributes {stable_mosaic.version = 11 : i64} {
  func.func @_gemm_bias_act_kernel(%arg0: i32, %arg1: i32, %arg2: i32, %arg3: memref<128x384xbf16, #tpu.memory_space<vmem>>, %arg4: memref<384x128xbf16, #tpu.memory_space<vmem>>, %arg5: memref<8x128xf32, #tpu.memory_space<vmem>>, %arg6: memref<128x128xbf16, #tpu.memory_space<vmem>>, %arg7: memref<128x128xf32, #tpu.memory_space<vmem>>) attributes {dimension_semantics = [#tpu.dimension_semantics<parallel>, #tpu.dimension_semantics<parallel>, #tpu.dimension_semantics<arbitrary>], iteration_bounds = array<i64: 4, 1, 1>, scalar_prefetch = 0 : i64, scratch_operands = 1 : i64, tpu.core_type = #tpu.core_type<tc>, window_params = [{transform_indices = @transform_0, window_bounds = array<i64: 128, 384>}, {transform_indices = @transform_1, window_bounds = array<i64: 384, 128>}, {transform_indices = @transform_2, window_bounds = array<i64: 8, 128>}, {transform_indices = @transform_3, window_bounds = array<i64: 128, 128>}]} {
    %c0_i32 = arith.constant 0 : i32
    %0 = arith.cmpi eq, %arg2, %c0_i32 : i32
    %1 = arith.extui %0 : i1 to i32
    %c0_i32_0 = arith.constant 0 : i32
    %2 = arith.cmpi ne, %1, %c0_i32_0 : i32
    scf.if %2 {
      %cst_10 = arith.constant 0.000000e+00 : f32
      %12 = vector.broadcast %cst_10 : f32 to vector<128x128xf32>
      %c0_11 = arith.constant 0 : index
      %c0_12 = arith.constant 0 : index
      %13 = vector.load %arg7[%c0_11, %c0_12] : memref<128x128xf32, #tpu.memory_space<vmem>>, vector<128x128xf32>
      tpu.vector_store %arg7[%c0_11, %c0_12], %12 {strides = array<i32>} : memref<128x128xf32, #tpu.memory_space<vmem>>, vector<128x128xf32>,
    } else {
    }
    %c0 = arith.constant 0 : index
    %c0_1 = arith.constant 0 : index
    %3 = vector.load %arg7[%c0, %c0_1] : memref<128x128xf32, #tpu.memory_space<vmem>>, vector<128x128xf32>
    %c0_2 = arith.constant 0 : index
    %c0_3 = arith.constant 0 : index
    %4 = vector.load %arg3[%c0_2, %c0_3] : memref<128x384xbf16, #tpu.memory_space<vmem>>, vector<128x384xbf16>
    %c0_4 = arith.constant 0 : index
    %c0_5 = arith.constant 0 : index
    %5 = vector.load %arg4[%c0_4, %c0_5] : memref<384x128xbf16, #tpu.memory_space<vmem>>, vector<384x128xbf16>
    %cst = arith.constant dense<0.000000e+00> : vector<128x128xf32>
    %6 = tpu.matmul %4, %5, %cst {dimension_numbers = #tpu.dot_dimension_numbers<[1], [0], [0], [1], [0, 0, 1, 1], [], []>} : vector<128x384xbf16>, vector<384x128xbf16>, vector<128x128xf32> -> vector<128x128xf32>
    %7 = arith.addf %3, %6 : vector<128x128xf32>
    %c0_6 = arith.constant 0 : index
    %c0_7 = arith.constant 0 : index
    %8 = vector.load %arg7[%c0_6, %c0_7] : memref<128x128xf32, #tpu.memory_space<vmem>>, vector<128x128xf32>
    tpu.vector_store %arg7[%c0_6, %c0_7], %7 {strides = array<i32>} : memref<128x128xf32, #tpu.memory_space<vmem>>, vector<128x128xf32>,
    %c0_i32_8 = arith.constant 0 : i32
    %9 = arith.cmpi eq, %arg2, %c0_i32_8 : i32
    %10 = arith.extui %9 : i1 to i32
    %c0_i32_9 = arith.constant 0 : i32
    %11 = arith.cmpi ne, %10, %c0_i32_9 : i32
    scf.if %11 {
      %c0_10 = arith.constant 0 : index
      %c0_11 = arith.constant 0 : index
      %12 = vector.load %arg7[%c0_10, %c0_11] : memref<128x128xf32, #tpu.memory_space<vmem>>, vector<128x128xf32>
      %c0_12 = arith.constant 0 : index
      %c0_13 = arith.constant 0 : index
      %13 = vector.load %arg5[%c0_12, %c0_13] : memref<8x128xf32, #tpu.memory_space<vmem>>, vector<1x128xf32>
      %14 = vector.broadcast %13 : vector<1x128xf32> to vector<128x128xf32>
      %15 = arith.addf %12, %14 : vector<128x128xf32>
      %cst_14 = arith.constant 0.000000e+00 : f32
      %16 = vector.broadcast %cst_14 : f32 to vector<128x128xf32>
      %17 = arith.maximumf %15, %16 : vector<128x128xf32>
      %18 = arith.truncf %17 : vector<128x128xf32> to vector<128x128xbf16>
      %c0_15 = arith.constant 0 : index
      %c0_16 = arith.constant 0 : index
      %19 = vector.load %arg6[%c0_15, %c0_16] : memref<128x128xbf16, #tpu.memory_space<vmem>>, vector<128x128xbf16>
      tpu.vector_store %arg6[%c0_15, %c0_16], %18 {strides = array<i32>} : memref<128x128xbf16, #tpu.memory_space<vmem>>, vector<128x128xbf16>,
    } else {
    }
    return
  }
  func.func @transform_0(%arg0: i32, %arg1: i32, %arg2: i32) -> (i32, i32) {
    %c0_i32 = arith.constant 0 : i32
    return %arg0, %arg2 : i32, i32
  }
  func.func @transform_1(%arg0: i32, %arg1: i32, %arg2: i32) -> (i32, i32) {
    %c0_i32 = arith.constant 0 : i32
    return %arg2, %arg1 : i32, i32
  }
  func.func @transform_2(%arg0: i32, %arg1: i32, %arg2: i32) -> (i32, i32) {
    %c0_i32 = arith.constant 0 : i32
    %c0_i32_0 = arith.constant 0 : i32
    return %c0_i32, %arg1 : i32, i32
  }
  func.func @transform_3(%arg0: i32, %arg1: i32, %arg2: i32) -> (i32, i32) {
    %c0_i32 = arith.constant 0 : i32
    return %arg0, %arg1 : i32, i32
  }
}

module attributes {stable_mosaic.version = 11 : i64} {
  func.func @_maxpool_kernel(%arg0: i32, %arg1: memref<1x16x8x128xbf16, #tpu.memory_space<vmem>>, %arg2: memref<1x8x8x64xbf16, #tpu.memory_space<vmem>>) attributes {dimension_semantics = [#tpu.dimension_semantics<parallel>], iteration_bounds = array<i64: 2>, scalar_prefetch = 0 : i64, scratch_operands = 0 : i64, tpu.core_type = #tpu.core_type<tc>, window_params = [{transform_indices = @transform_0, window_bounds = array<i64: 1, 16, 8, 128>}, {transform_indices = @transform_1, window_bounds = array<i64: 1, 8, 8, 64>}]} {
    %c0 = arith.constant 0 : index
    %c0_0 = arith.constant 0 : index
    %c0_1 = arith.constant 0 : index
    %c0_2 = arith.constant 0 : index
    %0 = vector.load %arg1[%c0, %c0_0, %c0_1, %c0_2] : memref<1x16x8x128xbf16, #tpu.memory_space<vmem>>, vector<1x16x8x128xbf16>
    %1 = vector.shape_cast %0 : vector<1x16x8x128xbf16> to vector<16x8x128xbf16>
    %2 = vector.extract_strided_slice %1 {offsets = [0, 0, 0], sizes = [16, 8, 64], strides = [1, 1, 1]} : vector<16x8x128xbf16> to vector<16x8x64xbf16>
    %3 = vector.extract_strided_slice %1 {offsets = [0, 0, 64], sizes = [16, 8, 64], strides = [1, 1, 1]} : vector<16x8x128xbf16> to vector<16x8x64xbf16>
    %4 = arith.maximumf %2, %3 : vector<16x8x64xbf16>
    %5 = vector.shape_cast %4 : vector<16x8x64xbf16> to vector<8x2x8x64xbf16>
    %6 = vector.extract_strided_slice %5 {offsets = [0, 0, 0, 0], sizes = [8, 1, 8, 64], strides = [1, 1, 1, 1]} : vector<8x2x8x64xbf16> to vector<8x1x8x64xbf16>
    %7 = vector.shape_cast %6 : vector<8x1x8x64xbf16> to vector<8x8x64xbf16>
    %8 = vector.extract_strided_slice %5 {offsets = [0, 1, 0, 0], sizes = [8, 1, 8, 64], strides = [1, 1, 1, 1]} : vector<8x2x8x64xbf16> to vector<8x1x8x64xbf16>
    %9 = vector.shape_cast %8 : vector<8x1x8x64xbf16> to vector<8x8x64xbf16>
    %10 = arith.maximumf %7, %9 : vector<8x8x64xbf16>
    %c0_3 = arith.constant 0 : index
    %c0_4 = arith.constant 0 : index
    %c0_5 = arith.constant 0 : index
    %c0_6 = arith.constant 0 : index
    %11 = vector.load %arg2[%c0_3, %c0_4, %c0_5, %c0_6] : memref<1x8x8x64xbf16, #tpu.memory_space<vmem>>, vector<1x8x8x64xbf16>
    %12 = vector.shape_cast %11 : vector<1x8x8x64xbf16> to vector<8x8x64xbf16>
    %13 = vector.shape_cast %10 : vector<8x8x64xbf16> to vector<1x8x8x64xbf16>
    tpu.vector_store %arg2[%c0_3, %c0_4, %c0_5, %c0_6], %13 {strides = array<i32>} : memref<1x8x8x64xbf16, #tpu.memory_space<vmem>>, vector<1x8x8x64xbf16>,
    return
  }
  func.func @transform_0(%arg0: i32) -> (i32, i32, i32, i32) {
    %c0_i32 = arith.constant 0 : i32
    %c0_i32_0 = arith.constant 0 : i32
    %c0_i32_1 = arith.constant 0 : i32
    %c0_i32_2 = arith.constant 0 : i32
    return %arg0, %c0_i32, %c0_i32_0, %c0_i32_1 : i32, i32, i32, i32
  }
  func.func @transform_1(%arg0: i32) -> (i32, i32, i32, i32) {
    %c0_i32 = arith.constant 0 : i32
    %c0_i32_0 = arith.constant 0 : i32
    %c0_i32_1 = arith.constant 0 : i32
    %c0_i32_2 = arith.constant 0 : i32
    return %arg0, %c0_i32, %c0_i32_0, %c0_i32_1 : i32, i32, i32, i32
  }
}

module attributes {stable_mosaic.version = 11 : i64} {
  func.func @_maxpool_kernel(%arg0: i32, %arg1: memref<1x8x4x128xbf16, #tpu.memory_space<vmem>>, %arg2: memref<1x4x4x64xbf16, #tpu.memory_space<vmem>>) attributes {dimension_semantics = [#tpu.dimension_semantics<parallel>], iteration_bounds = array<i64: 2>, scalar_prefetch = 0 : i64, scratch_operands = 0 : i64, tpu.core_type = #tpu.core_type<tc>, window_params = [{transform_indices = @transform_0, window_bounds = array<i64: 1, 8, 4, 128>}, {transform_indices = @transform_1, window_bounds = array<i64: 1, 4, 4, 64>}]} {
    %c0 = arith.constant 0 : index
    %c0_0 = arith.constant 0 : index
    %c0_1 = arith.constant 0 : index
    %c0_2 = arith.constant 0 : index
    %0 = vector.load %arg1[%c0, %c0_0, %c0_1, %c0_2] : memref<1x8x4x128xbf16, #tpu.memory_space<vmem>>, vector<1x8x4x128xbf16>
    %1 = vector.shape_cast %0 : vector<1x8x4x128xbf16> to vector<8x4x128xbf16>
    %2 = vector.extract_strided_slice %1 {offsets = [0, 0, 0], sizes = [8, 4, 64], strides = [1, 1, 1]} : vector<8x4x128xbf16> to vector<8x4x64xbf16>
    %3 = vector.extract_strided_slice %1 {offsets = [0, 0, 64], sizes = [8, 4, 64], strides = [1, 1, 1]} : vector<8x4x128xbf16> to vector<8x4x64xbf16>
    %4 = arith.maximumf %2, %3 : vector<8x4x64xbf16>
    %5 = vector.shape_cast %4 : vector<8x4x64xbf16> to vector<4x2x4x64xbf16>
    %6 = vector.extract_strided_slice %5 {offsets = [0, 0, 0, 0], sizes = [4, 1, 4, 64], strides = [1, 1, 1, 1]} : vector<4x2x4x64xbf16> to vector<4x1x4x64xbf16>
    %7 = vector.shape_cast %6 : vector<4x1x4x64xbf16> to vector<4x4x64xbf16>
    %8 = vector.extract_strided_slice %5 {offsets = [0, 1, 0, 0], sizes = [4, 1, 4, 64], strides = [1, 1, 1, 1]} : vector<4x2x4x64xbf16> to vector<4x1x4x64xbf16>
    %9 = vector.shape_cast %8 : vector<4x1x4x64xbf16> to vector<4x4x64xbf16>
    %10 = arith.maximumf %7, %9 : vector<4x4x64xbf16>
    %c0_3 = arith.constant 0 : index
    %c0_4 = arith.constant 0 : index
    %c0_5 = arith.constant 0 : index
    %c0_6 = arith.constant 0 : index
    %11 = vector.load %arg2[%c0_3, %c0_4, %c0_5, %c0_6] : memref<1x4x4x64xbf16, #tpu.memory_space<vmem>>, vector<1x4x4x64xbf16>
    %12 = vector.shape_cast %11 : vector<1x4x4x64xbf16> to vector<4x4x64xbf16>
    %13 = vector.shape_cast %10 : vector<4x4x64xbf16> to vector<1x4x4x64xbf16>
    tpu.vector_store %arg2[%c0_3, %c0_4, %c0_5, %c0_6], %13 {strides = array<i32>} : memref<1x4x4x64xbf16, #tpu.memory_space<vmem>>, vector<1x4x4x64xbf16>,
    return
  }
  func.func @transform_0(%arg0: i32) -> (i32, i32, i32, i32) {
    %c0_i32 = arith.constant 0 : i32
    %c0_i32_0 = arith.constant 0 : i32
    %c0_i32_1 = arith.constant 0 : i32
    %c0_i32_2 = arith.constant 0 : i32
    return %arg0, %c0_i32, %c0_i32_0, %c0_i32_1 : i32, i32, i32, i32
  }
  func.func @transform_1(%arg0: i32) -> (i32, i32, i32, i32) {
    %c0_i32 = arith.constant 0 : i32
    %c0_i32_0 = arith.constant 0 : i32
    %c0_i32_1 = arith.constant 0 : i32
    %c0_i32_2 = arith.constant 0 : i32
    return %arg0, %c0_i32, %c0_i32_0, %c0_i32_1 : i32, i32, i32, i32
  }
}

module attributes {stable_mosaic.version = 11 : i64} {
  func.func @_gemm_bias_act_kernel(%arg0: i32, %arg1: i32, %arg2: i32, %arg3: memref<128x640xbf16, #tpu.memory_space<vmem>>, %arg4: memref<640x128xbf16, #tpu.memory_space<vmem>>, %arg5: memref<8x128xf32, #tpu.memory_space<vmem>>, %arg6: memref<128x128xbf16, #tpu.memory_space<vmem>>, %arg7: memref<128x128xf32, #tpu.memory_space<vmem>>) attributes {dimension_semantics = [#tpu.dimension_semantics<parallel>, #tpu.dimension_semantics<parallel>, #tpu.dimension_semantics<arbitrary>], iteration_bounds = array<i64: 1, 1, 1>, scalar_prefetch = 0 : i64, scratch_operands = 1 : i64, tpu.core_type = #tpu.core_type<tc>, window_params = [{transform_indices = @transform_0, window_bounds = array<i64: 128, 640>}, {transform_indices = @transform_1, window_bounds = array<i64: 640, 128>}, {transform_indices = @transform_2, window_bounds = array<i64: 8, 128>}, {transform_indices = @transform_3, window_bounds = array<i64: 128, 128>}]} {
    %c0_i32 = arith.constant 0 : i32
    %0 = arith.cmpi eq, %arg2, %c0_i32 : i32
    %1 = arith.extui %0 : i1 to i32
    %c0_i32_0 = arith.constant 0 : i32
    %2 = arith.cmpi ne, %1, %c0_i32_0 : i32
    scf.if %2 {
      %cst_10 = arith.constant 0.000000e+00 : f32
      %12 = vector.broadcast %cst_10 : f32 to vector<128x128xf32>
      %c0_11 = arith.constant 0 : index
      %c0_12 = arith.constant 0 : index
      %13 = vector.load %arg7[%c0_11, %c0_12] : memref<128x128xf32, #tpu.memory_space<vmem>>, vector<128x128xf32>
      tpu.vector_store %arg7[%c0_11, %c0_12], %12 {strides = array<i32>} : memref<128x128xf32, #tpu.memory_space<vmem>>, vector<128x128xf32>,
    } else {
    }
    %c0 = arith.constant 0 : index
    %c0_1 = arith.constant 0 : index
    %3 = vector.load %arg7[%c0, %c0_1] : memref<128x128xf32, #tpu.memory_space<vmem>>, vector<128x128xf32>
    %c0_2 = arith.constant 0 : index
    %c0_3 = arith.constant 0 : index
    %4 = vector.load %arg3[%c0_2, %c0_3] : memref<128x640xbf16, #tpu.memory_space<vmem>>, vector<128x640xbf16>
    %c0_4 = arith.constant 0 : index
    %c0_5 = arith.constant 0 : index
    %5 = vector.load %arg4[%c0_4, %c0_5] : memref<640x128xbf16, #tpu.memory_space<vmem>>, vector<640x128xbf16>
    %cst = arith.constant dense<0.000000e+00> : vector<128x128xf32>
    %6 = tpu.matmul %4, %5, %cst {dimension_numbers = #tpu.dot_dimension_numbers<[1], [0], [0], [1], [0, 0, 1, 1], [], []>} : vector<128x640xbf16>, vector<640x128xbf16>, vector<128x128xf32> -> vector<128x128xf32>
    %7 = arith.addf %3, %6 : vector<128x128xf32>
    %c0_6 = arith.constant 0 : index
    %c0_7 = arith.constant 0 : index
    %8 = vector.load %arg7[%c0_6, %c0_7] : memref<128x128xf32, #tpu.memory_space<vmem>>, vector<128x128xf32>
    tpu.vector_store %arg7[%c0_6, %c0_7], %7 {strides = array<i32>} : memref<128x128xf32, #tpu.memory_space<vmem>>, vector<128x128xf32>,
    %c0_i32_8 = arith.constant 0 : i32
    %9 = arith.cmpi eq, %arg2, %c0_i32_8 : i32
    %10 = arith.extui %9 : i1 to i32
    %c0_i32_9 = arith.constant 0 : i32
    %11 = arith.cmpi ne, %10, %c0_i32_9 : i32
    scf.if %11 {
      %c0_10 = arith.constant 0 : index
      %c0_11 = arith.constant 0 : index
      %12 = vector.load %arg7[%c0_10, %c0_11] : memref<128x128xf32, #tpu.memory_space<vmem>>, vector<128x128xf32>
      %c0_12 = arith.constant 0 : index
      %c0_13 = arith.constant 0 : index
      %13 = vector.load %arg5[%c0_12, %c0_13] : memref<8x128xf32, #tpu.memory_space<vmem>>, vector<1x128xf32>
      %14 = vector.broadcast %13 : vector<1x128xf32> to vector<128x128xf32>
      %15 = arith.addf %12, %14 : vector<128x128xf32>
      %cst_14 = arith.constant 0.000000e+00 : f32
      %16 = vector.broadcast %cst_14 : f32 to vector<128x128xf32>
      %17 = arith.maximumf %15, %16 : vector<128x128xf32>
      %18 = arith.truncf %17 : vector<128x128xf32> to vector<128x128xbf16>
      %c0_15 = arith.constant 0 : index
      %c0_16 = arith.constant 0 : index
      %19 = vector.load %arg6[%c0_15, %c0_16] : memref<128x128xbf16, #tpu.memory_space<vmem>>, vector<128x128xbf16>
      tpu.vector_store %arg6[%c0_15, %c0_16], %18 {strides = array<i32>} : memref<128x128xbf16, #tpu.memory_space<vmem>>, vector<128x128xbf16>,
    } else {
    }
    return
  }
  func.func @transform_0(%arg0: i32, %arg1: i32, %arg2: i32) -> (i32, i32) {
    %c0_i32 = arith.constant 0 : i32
    return %arg0, %arg2 : i32, i32
  }
  func.func @transform_1(%arg0: i32, %arg1: i32, %arg2: i32) -> (i32, i32) {
    %c0_i32 = arith.constant 0 : i32
    return %arg2, %arg1 : i32, i32
  }
  func.func @transform_2(%arg0: i32, %arg1: i32, %arg2: i32) -> (i32, i32) {
    %c0_i32 = arith.constant 0 : i32
    %c0_i32_0 = arith.constant 0 : i32
    return %c0_i32, %arg1 : i32, i32
  }
  func.func @transform_3(%arg0: i32, %arg1: i32, %arg2: i32) -> (i32, i32) {
    %c0_i32 = arith.constant 0 : i32
    return %arg0, %arg1 : i32, i32
  }
}

module attributes {stable_mosaic.version = 11 : i64} {
  func.func @_gemm_bias_act_kernel(%arg0: i32, %arg1: i32, %arg2: i32, %arg3: memref<32x640xbf16, #tpu.memory_space<vmem>>, %arg4: memref<640x128xbf16, #tpu.memory_space<vmem>>, %arg5: memref<8x128xf32, #tpu.memory_space<vmem>>, %arg6: memref<32x128xbf16, #tpu.memory_space<vmem>>, %arg7: memref<32x128xf32, #tpu.memory_space<vmem>>) attributes {dimension_semantics = [#tpu.dimension_semantics<parallel>, #tpu.dimension_semantics<parallel>, #tpu.dimension_semantics<arbitrary>], iteration_bounds = array<i64: 1, 1, 1>, scalar_prefetch = 0 : i64, scratch_operands = 1 : i64, tpu.core_type = #tpu.core_type<tc>, window_params = [{transform_indices = @transform_0, window_bounds = array<i64: 32, 640>}, {transform_indices = @transform_1, window_bounds = array<i64: 640, 128>}, {transform_indices = @transform_2, window_bounds = array<i64: 8, 128>}, {transform_indices = @transform_3, window_bounds = array<i64: 32, 128>}]} {
    %c0_i32 = arith.constant 0 : i32
    %0 = arith.cmpi eq, %arg2, %c0_i32 : i32
    %1 = arith.extui %0 : i1 to i32
    %c0_i32_0 = arith.constant 0 : i32
    %2 = arith.cmpi ne, %1, %c0_i32_0 : i32
    scf.if %2 {
      %cst_10 = arith.constant 0.000000e+00 : f32
      %12 = vector.broadcast %cst_10 : f32 to vector<32x128xf32>
      %c0_11 = arith.constant 0 : index
      %c0_12 = arith.constant 0 : index
      %13 = vector.load %arg7[%c0_11, %c0_12] : memref<32x128xf32, #tpu.memory_space<vmem>>, vector<32x128xf32>
      tpu.vector_store %arg7[%c0_11, %c0_12], %12 {strides = array<i32>} : memref<32x128xf32, #tpu.memory_space<vmem>>, vector<32x128xf32>,
    } else {
    }
    %c0 = arith.constant 0 : index
    %c0_1 = arith.constant 0 : index
    %3 = vector.load %arg7[%c0, %c0_1] : memref<32x128xf32, #tpu.memory_space<vmem>>, vector<32x128xf32>
    %c0_2 = arith.constant 0 : index
    %c0_3 = arith.constant 0 : index
    %4 = vector.load %arg3[%c0_2, %c0_3] : memref<32x640xbf16, #tpu.memory_space<vmem>>, vector<32x640xbf16>
    %c0_4 = arith.constant 0 : index
    %c0_5 = arith.constant 0 : index
    %5 = vector.load %arg4[%c0_4, %c0_5] : memref<640x128xbf16, #tpu.memory_space<vmem>>, vector<640x128xbf16>
    %cst = arith.constant dense<0.000000e+00> : vector<32x128xf32>
    %6 = tpu.matmul %4, %5, %cst {dimension_numbers = #tpu.dot_dimension_numbers<[1], [0], [0], [1], [0, 0, 1, 1], [], []>} : vector<32x640xbf16>, vector<640x128xbf16>, vector<32x128xf32> -> vector<32x128xf32>
    %7 = arith.addf %3, %6 : vector<32x128xf32>
    %c0_6 = arith.constant 0 : index
    %c0_7 = arith.constant 0 : index
    %8 = vector.load %arg7[%c0_6, %c0_7] : memref<32x128xf32, #tpu.memory_space<vmem>>, vector<32x128xf32>
    tpu.vector_store %arg7[%c0_6, %c0_7], %7 {strides = array<i32>} : memref<32x128xf32, #tpu.memory_space<vmem>>, vector<32x128xf32>,
    %c0_i32_8 = arith.constant 0 : i32
    %9 = arith.cmpi eq, %arg2, %c0_i32_8 : i32
    %10 = arith.extui %9 : i1 to i32
    %c0_i32_9 = arith.constant 0 : i32
    %11 = arith.cmpi ne, %10, %c0_i32_9 : i32
    scf.if %11 {
      %c0_10 = arith.constant 0 : index
      %c0_11 = arith.constant 0 : index
      %12 = vector.load %arg7[%c0_10, %c0_11] : memref<32x128xf32, #tpu.memory_space<vmem>>, vector<32x128xf32>
      %c0_12 = arith.constant 0 : index
      %c0_13 = arith.constant 0 : index
      %13 = vector.load %arg5[%c0_12, %c0_13] : memref<8x128xf32, #tpu.memory_space<vmem>>, vector<1x128xf32>
      %14 = vector.broadcast %13 : vector<1x128xf32> to vector<32x128xf32>
      %15 = arith.addf %12, %14 : vector<32x128xf32>
      %cst_14 = arith.constant 0.000000e+00 : f32
      %16 = vector.broadcast %cst_14 : f32 to vector<32x128xf32>
      %17 = arith.maximumf %15, %16 : vector<32x128xf32>
      %18 = arith.truncf %17 : vector<32x128xf32> to vector<32x128xbf16>
      %c0_15 = arith.constant 0 : index
      %c0_16 = arith.constant 0 : index
      %19 = vector.load %arg6[%c0_15, %c0_16] : memref<32x128xbf16, #tpu.memory_space<vmem>>, vector<32x128xbf16>
      tpu.vector_store %arg6[%c0_15, %c0_16], %18 {strides = array<i32>} : memref<32x128xbf16, #tpu.memory_space<vmem>>, vector<32x128xbf16>,
    } else {
    }
    return
  }
  func.func @transform_0(%arg0: i32, %arg1: i32, %arg2: i32) -> (i32, i32) {
    %c0_i32 = arith.constant 0 : i32
    return %arg0, %arg2 : i32, i32
  }
  func.func @transform_1(%arg0: i32, %arg1: i32, %arg2: i32) -> (i32, i32) {
    %c0_i32 = arith.constant 0 : i32
    return %arg2, %arg1 : i32, i32
  }
  func.func @transform_2(%arg0: i32, %arg1: i32, %arg2: i32) -> (i32, i32) {
    %c0_i32 = arith.constant 0 : i32
    %c0_i32_0 = arith.constant 0 : i32
    return %c0_i32, %arg1 : i32, i32
  }
  func.func @transform_3(%arg0: i32, %arg1: i32, %arg2: i32) -> (i32, i32) {
    %c0_i32 = arith.constant 0 : i32
    return %arg0, %arg1 : i32, i32
  }
}

module attributes {stable_mosaic.version = 11 : i64} {
  func.func @_maxpool_kernel(%arg0: i32, %arg1: memref<1x4x2x128xbf16, #tpu.memory_space<vmem>>, %arg2: memref<1x2x2x64xbf16, #tpu.memory_space<vmem>>) attributes {dimension_semantics = [#tpu.dimension_semantics<parallel>], iteration_bounds = array<i64: 2>, scalar_prefetch = 0 : i64, scratch_operands = 0 : i64, tpu.core_type = #tpu.core_type<tc>, window_params = [{transform_indices = @transform_0, window_bounds = array<i64: 1, 4, 2, 128>}, {transform_indices = @transform_1, window_bounds = array<i64: 1, 2, 2, 64>}]} {
    %c0 = arith.constant 0 : index
    %c0_0 = arith.constant 0 : index
    %c0_1 = arith.constant 0 : index
    %c0_2 = arith.constant 0 : index
    %0 = vector.load %arg1[%c0, %c0_0, %c0_1, %c0_2] : memref<1x4x2x128xbf16, #tpu.memory_space<vmem>>, vector<1x4x2x128xbf16>
    %1 = vector.shape_cast %0 : vector<1x4x2x128xbf16> to vector<4x2x128xbf16>
    %2 = vector.extract_strided_slice %1 {offsets = [0, 0, 0], sizes = [4, 2, 64], strides = [1, 1, 1]} : vector<4x2x128xbf16> to vector<4x2x64xbf16>
    %3 = vector.extract_strided_slice %1 {offsets = [0, 0, 64], sizes = [4, 2, 64], strides = [1, 1, 1]} : vector<4x2x128xbf16> to vector<4x2x64xbf16>
    %4 = arith.maximumf %2, %3 : vector<4x2x64xbf16>
    %5 = vector.shape_cast %4 : vector<4x2x64xbf16> to vector<2x2x2x64xbf16>
    %6 = vector.extract_strided_slice %5 {offsets = [0, 0, 0, 0], sizes = [2, 1, 2, 64], strides = [1, 1, 1, 1]} : vector<2x2x2x64xbf16> to vector<2x1x2x64xbf16>
    %7 = vector.shape_cast %6 : vector<2x1x2x64xbf16> to vector<2x2x64xbf16>
    %8 = vector.extract_strided_slice %5 {offsets = [0, 1, 0, 0], sizes = [2, 1, 2, 64], strides = [1, 1, 1, 1]} : vector<2x2x2x64xbf16> to vector<2x1x2x64xbf16>
    %9 = vector.shape_cast %8 : vector<2x1x2x64xbf16> to vector<2x2x64xbf16>
    %10 = arith.maximumf %7, %9 : vector<2x2x64xbf16>
    %c0_3 = arith.constant 0 : index
    %c0_4 = arith.constant 0 : index
    %c0_5 = arith.constant 0 : index
    %c0_6 = arith.constant 0 : index
    %11 = vector.load %arg2[%c0_3, %c0_4, %c0_5, %c0_6] : memref<1x2x2x64xbf16, #tpu.memory_space<vmem>>, vector<1x2x2x64xbf16>
    %12 = vector.shape_cast %11 : vector<1x2x2x64xbf16> to vector<2x2x64xbf16>
    %13 = vector.shape_cast %10 : vector<2x2x64xbf16> to vector<1x2x2x64xbf16>
    tpu.vector_store %arg2[%c0_3, %c0_4, %c0_5, %c0_6], %13 {strides = array<i32>} : memref<1x2x2x64xbf16, #tpu.memory_space<vmem>>, vector<1x2x2x64xbf16>,
    return
  }
  func.func @transform_0(%arg0: i32) -> (i32, i32, i32, i32) {
    %c0_i32 = arith.constant 0 : i32
    %c0_i32_0 = arith.constant 0 : i32
    %c0_i32_1 = arith.constant 0 : i32
    %c0_i32_2 = arith.constant 0 : i32
    return %arg0, %c0_i32, %c0_i32_0, %c0_i32_1 : i32, i32, i32, i32
  }
  func.func @transform_1(%arg0: i32) -> (i32, i32, i32, i32) {
    %c0_i32 = arith.constant 0 : i32
    %c0_i32_0 = arith.constant 0 : i32
    %c0_i32_1 = arith.constant 0 : i32
    %c0_i32_2 = arith.constant 0 : i32
    return %arg0, %c0_i32, %c0_i32_0, %c0_i32_1 : i32, i32, i32, i32
  }
}

module attributes {stable_mosaic.version = 11 : i64} {
  func.func @_head_kernel(%arg0: i32, %arg1: i32, %arg2: memref<8x256xbf16, #tpu.memory_space<vmem>>, %arg3: memref<256x512xbf16, #tpu.memory_space<vmem>>, %arg4: memref<8x512xf32, #tpu.memory_space<vmem>>, %arg5: memref<512x128xbf16, #tpu.memory_space<vmem>>, %arg6: memref<8x128xf32, #tpu.memory_space<vmem>>, %arg7: memref<8x512xf32, #tpu.memory_space<vmem>>, %arg8: memref<8x128xf32, #tpu.memory_space<vmem>>, %arg9: memref<8x512xf32, #tpu.memory_space<vmem>>) attributes {dimension_semantics = [#tpu.dimension_semantics<parallel>, #tpu.dimension_semantics<arbitrary>], iteration_bounds = array<i64: 1, 1>, scalar_prefetch = 0 : i64, scratch_operands = 1 : i64, tpu.core_type = #tpu.core_type<tc>, window_params = [{transform_indices = @transform_0, window_bounds = array<i64: 8, 256>}, {transform_indices = @transform_1, window_bounds = array<i64: 256, 512>}, {pipeline_mode = #tpu.pipeline_mode<synchronous>, transform_indices = @transform_2, window_bounds = array<i64: 8, 512>}, {pipeline_mode = #tpu.pipeline_mode<synchronous>, transform_indices = @transform_3, window_bounds = array<i64: 512, 128>}, {pipeline_mode = #tpu.pipeline_mode<synchronous>, transform_indices = @transform_4, window_bounds = array<i64: 8, 128>}, {transform_indices = @transform_5, window_bounds = array<i64: 8, 512>}, {transform_indices = @transform_6, window_bounds = array<i64: 8, 128>}]} {
    %c0_i32 = arith.constant 0 : i32
    %0 = arith.cmpi eq, %arg1, %c0_i32 : i32
    %1 = arith.extui %0 : i1 to i32
    %c0_i32_0 = arith.constant 0 : i32
    %2 = arith.cmpi ne, %1, %c0_i32_0 : i32
    scf.if %2 {
      %cst_10 = arith.constant 0.000000e+00 : f32
      %12 = vector.broadcast %cst_10 : f32 to vector<8x512xf32>
      %c0_11 = arith.constant 0 : index
      %c0_12 = arith.constant 0 : index
      %13 = vector.load %arg9[%c0_11, %c0_12] : memref<8x512xf32, #tpu.memory_space<vmem>>, vector<8x512xf32>
      tpu.vector_store %arg9[%c0_11, %c0_12], %12 {strides = array<i32>} : memref<8x512xf32, #tpu.memory_space<vmem>>, vector<8x512xf32>,
    } else {
    }
    %c0 = arith.constant 0 : index
    %c0_1 = arith.constant 0 : index
    %3 = vector.load %arg9[%c0, %c0_1] : memref<8x512xf32, #tpu.memory_space<vmem>>, vector<8x512xf32>
    %c0_2 = arith.constant 0 : index
    %c0_3 = arith.constant 0 : index
    %4 = vector.load %arg2[%c0_2, %c0_3] : memref<8x256xbf16, #tpu.memory_space<vmem>>, vector<8x256xbf16>
    %c0_4 = arith.constant 0 : index
    %c0_5 = arith.constant 0 : index
    %5 = vector.load %arg3[%c0_4, %c0_5] : memref<256x512xbf16, #tpu.memory_space<vmem>>, vector<256x512xbf16>
    %cst = arith.constant dense<0.000000e+00> : vector<8x512xf32>
    %6 = tpu.matmul %4, %5, %cst {dimension_numbers = #tpu.dot_dimension_numbers<[1], [0], [0], [1], [0, 0, 1, 1], [], []>} : vector<8x256xbf16>, vector<256x512xbf16>, vector<8x512xf32> -> vector<8x512xf32>
    %7 = arith.addf %3, %6 : vector<8x512xf32>
    %c0_6 = arith.constant 0 : index
    %c0_7 = arith.constant 0 : index
    %8 = vector.load %arg9[%c0_6, %c0_7] : memref<8x512xf32, #tpu.memory_space<vmem>>, vector<8x512xf32>
    tpu.vector_store %arg9[%c0_6, %c0_7], %7 {strides = array<i32>} : memref<8x512xf32, #tpu.memory_space<vmem>>, vector<8x512xf32>,
    %c0_i32_8 = arith.constant 0 : i32
    %9 = arith.cmpi eq, %arg1, %c0_i32_8 : i32
    %10 = arith.extui %9 : i1 to i32
    %c0_i32_9 = arith.constant 0 : i32
    %11 = arith.cmpi ne, %10, %c0_i32_9 : i32
    scf.if %11 {
      %c0_10 = arith.constant 0 : index
      %c0_11 = arith.constant 0 : index
      %12 = vector.load %arg9[%c0_10, %c0_11] : memref<8x512xf32, #tpu.memory_space<vmem>>, vector<8x512xf32>
      %c0_12 = arith.constant 0 : index
      %c0_13 = arith.constant 0 : index
      %13 = vector.load %arg4[%c0_12, %c0_13] : memref<8x512xf32, #tpu.memory_space<vmem>>, vector<1x512xf32>
      %14 = vector.broadcast %13 : vector<1x512xf32> to vector<8x512xf32>
      %15 = arith.addf %12, %14 : vector<8x512xf32>
      %c0_14 = arith.constant 0 : index
      %c0_15 = arith.constant 0 : index
      %16 = vector.load %arg7[%c0_14, %c0_15] : memref<8x512xf32, #tpu.memory_space<vmem>>, vector<8x512xf32>
      tpu.vector_store %arg7[%c0_14, %c0_15], %15 {strides = array<i32>} : memref<8x512xf32, #tpu.memory_space<vmem>>, vector<8x512xf32>,
      %17 = arith.truncf %15 : vector<8x512xf32> to vector<8x512xbf16>
      %c0_16 = arith.constant 0 : index
      %c0_17 = arith.constant 0 : index
      %18 = vector.load %arg5[%c0_16, %c0_17] : memref<512x128xbf16, #tpu.memory_space<vmem>>, vector<512x128xbf16>
      %cst_18 = arith.constant dense<0.000000e+00> : vector<8x128xf32>
      %19 = tpu.matmul %17, %18, %cst_18 {dimension_numbers = #tpu.dot_dimension_numbers<[1], [0], [0], [1], [0, 0, 1, 1], [], []>} : vector<8x512xbf16>, vector<512x128xbf16>, vector<8x128xf32> -> vector<8x128xf32>
      %c0_19 = arith.constant 0 : index
      %c0_20 = arith.constant 0 : index
      %20 = vector.load %arg6[%c0_19, %c0_20] : memref<8x128xf32, #tpu.memory_space<vmem>>, vector<1x128xf32>
      %21 = vector.broadcast %20 : vector<1x128xf32> to vector<8x128xf32>
      %22 = arith.addf %19, %21 : vector<8x128xf32>
      %c0_21 = arith.constant 0 : index
      %c0_22 = arith.constant 0 : index
      %23 = vector.load %arg8[%c0_21, %c0_22] : memref<8x128xf32, #tpu.memory_space<vmem>>, vector<8x128xf32>
      tpu.vector_store %arg8[%c0_21, %c0_22], %22 {strides = array<i32>} : memref<8x128xf32, #tpu.memory_space<vmem>>, vector<8x128xf32>,
    } else {
    }
    return
  }
  func.func @transform_0(%arg0: i32, %arg1: i32) -> (i32, i32) {
    %c0_i32 = arith.constant 0 : i32
    return %arg0, %arg1 : i32, i32
  }
  func.func @transform_1(%arg0: i32, %arg1: i32) -> (i32, i32) {
    %c0_i32 = arith.constant 0 : i32
    %c0_i32_0 = arith.constant 0 : i32
    return %arg1, %c0_i32 : i32, i32
  }
  func.func @transform_2(%arg0: i32, %arg1: i32) -> (i32, i32) {
    %c0_i32 = arith.constant 0 : i32
    %c0_i32_0 = arith.constant 0 : i32
    %c0_i32_1 = arith.constant 0 : i32
    return %c0_i32, %c0_i32_0 : i32, i32
  }
  func.func @transform_3(%arg0: i32, %arg1: i32) -> (i32, i32) {
    %c0_i32 = arith.constant 0 : i32
    %c0_i32_0 = arith.constant 0 : i32
    %c0_i32_1 = arith.constant 0 : i32
    return %c0_i32, %c0_i32_0 : i32, i32
  }
  func.func @transform_4(%arg0: i32, %arg1: i32) -> (i32, i32) {
    %c0_i32 = arith.constant 0 : i32
    %c0_i32_0 = arith.constant 0 : i32
    %c0_i32_1 = arith.constant 0 : i32
    return %c0_i32, %c0_i32_0 : i32, i32
  }
  func.func @transform_5(%arg0: i32, %arg1: i32) -> (i32, i32) {
    %c0_i32 = arith.constant 0 : i32
    %c0_i32_0 = arith.constant 0 : i32
    return %arg0, %c0_i32 : i32, i32
  }
  func.func @transform_6(%arg0: i32, %arg1: i32) -> (i32, i32) {
    %c0_i32 = arith.constant 0 : i32
    %c0_i32_0 = arith.constant 0 : i32
    return %arg0, %c0_i32 : i32, i32
  }
}

</mosaic_0001>

<bundles_post_ra>
// kernel: cnn_distillation_forward.12
= control target key start
LH: loop header
LB: loop body
LE: loop exit
PB: predicated region body
PF: predicated region fallthrough
CT: control target
= control target key end

     0   :  { %8 = vsyncpa [#allocation4], 0  ;;  %s1077_s12 = smov 0   ;;  %s1079_s13 = smov 0   ;;  %s1165_s0 = inlined_call_operand.vmem [shape: bf16[1800,128], index: 0, kind: input, shape index: {}]   ;;  %s1166_s1 = inlined_call_operand.hbm [shape: bf16[128,128], index: 1, kind: input, shape index: {}]   ;;  %s1167_s2 = inlined_call_operand.vmem [shape: f32[8,128], index: 2, kind: input, shape index: {}]   ;;  %s1168_s3 = inlined_call_operand.vmem [shape: bf16[1800,128], index: 3, kind: output, shape index: {}]  }
   0x1   :  { %s1081_s14 = smov 0  }
   0x2 LB: > { %s783_s15 = sadd.s32 4294967295, %s1052_s14   ;;  %s33_s16 = sadd.s32 1, %s1048_s13  ;;  %s1052_s14 = sphi %s1081_s14, %s14_s14   ;;  %s1048_s13 = sphi %s1079_s13, %s1172_s13   ;;  %s1044_s12 = sphi %s1077_s12, %s1171_s12  }
   0x3   : > { %p35_p0 = scmp.ge.s32.totalorder %s33_s16, 15  ;;  %p785_p1 = scmp.ge.s32.totalorder %s1052_s14, 1 }
   0x4   : > { %p148_p2 = scmp.lt.s32.totalorder %s1052_s14, 16  ;;  %p1102_p4 = scmp.eq.s32.totalorder %s783_s15, 0 }
   0x5   : > { %s1174_s16 = smov (%p35_p0, %s33_s16), 0  ;;  %s1054_s19 = smov [#allocation3]  }
   0x6   : > { %p1098_p3 = pnand %p785_p1, %p148_p2  ;;  %s164_s20 = sshll.u32 %s1054_s19, 4  ;;  %s165_s20 = int_to_ptr.vmem [resolvable:$true] %s164_s20 }
   0x7   : > { %s1011_s21 = scalar_lea.vmem %s165_s20, 1024  ;;  %p1019_p11 = scmp.lt.s32.totalorder %s165_s20, %s165_s20 }
   0x8   : > { %p951_p5 = pneg %p1098_p3  ;;  %p1012_p8 = scmp.ne.s32.totalorder %s165_s20, %s1011_s21 }
   0x9   : > { %p1020_p12 = scmp.lt.s32.totalorder %s1011_s21, %s1011_s21 }
   0xa   : > { %p952_p6 = pnand %p1102_p4, %p951_p5 }
   0xb   : > { %p1021_p13 = por %p1020_p12, %p1019_p11 }
   0xc   : > { %p1002_p7 = pneg %p952_p6 }
   0xe   : > { %p1014_p9 = pnand %p1012_p8, %p1002_p7 }
  0x10   : > { %p1015_p10 = pneg %p1014_p9 }
  0x12   : > { %p1022_p0 = pnand %p1021_p13, %p1015_p10 }
  0x14   : > { %1025 = shalt.err (!%p1022_p0)
}
  0x15   : > { %s1055_s22 = smov 64   ;;  %s1056_s23 = smov 4  }
  0x16   : > { %954 = dma.hbm_to_vmem [thread:$0]  (!%p952_p6), %s1166_s1, 1024, %s165_s20, [#allocation4], %s1055_s22, %s1055_s22, %s1056_s23  }
  0x17   : > { %199 = sbr.rel (%p1098_p3) target bundleno = 276 (0x114), region = 32 }
  0x1c   : > { %1039 = dma.done.wait (%p1102_p4), [#allocation4], 1024  }
  0x1d   : > { %1041 = vsyncadd (%p1102_p4), [#allocation4], 4294966272  ;;  %s233_s26 = smul.u32 15, %s1044_s12  ;;  %v984_v0 = vld [vmem:[#allocation3 + $0x38] sm:$0xff]   ;;  %v985_v1 = vld [vmem:[#allocation3 + $0x30] sm:$0xff]  }
  0x1e   : > { %899 = vmatprep.subr.bf16.mxu0 %v984_v0  ;;  %931 = vmatprep.subr.bf16.mxu1 %v984_v0  ;;  %v986_v2 = vld [vmem:[#allocation3 + $0x28] sm:$0xff]   ;;  %v987_v3 = vld [vmem:[#allocation3 + $0x20] sm:$0xff]   ;;  %v988_v6 = vld [vmem:[#allocation3 + $0x18] sm:$0xff]  }
  0x1f   : > { %p234_p1 = scmp.lt.s32.totalorder %s233_s26, 224  ;;  %900 = vmatpush3.bf16.msra.mxu0 %v984_v0  ;;  %939 = vmatpush3.bf16.msra.mxu1 %v984_v0  ;;  %v989_v7 = vld [vmem:[#allocation3 + $0x10] sm:$0xff]   ;;  %v990_v8 = vld [vmem:[#allocation3 + $0x8] sm:$0xff]   ;;  %v991_v9 = vld [vmem:[#allocation3] sm:$0xff]  }
  0x20   : > { %901 = vmatprep.subr.bf16.mxu0 %v985_v1  ;;  %932 = vmatprep.subr.bf16.mxu1 %v985_v1  ;;  %v809_v16 = vld [vmem:[%s1167_s2] ss:$0 sm:$0xff] }
  0x21   : > { %s1176_s26 = smov (!%p234_p1, %s233_s26), 224 }
  0x22   : > { %s791_s27 = sshll.u32 %s1176_s26, 2 }
  0x23   : > { %s1128_s30 = scalar_lea.vmem %s1165_s0, %s791_s27  ;;  %902 = vmatpush3.bf16.msra.mxu0 %v985_v1  ;;  %940 = vmatpush3.bf16.msra.mxu1 %v985_v1  ;;  %s1146_s8 = scalar_lea.vmem %s1168_s3, %s791_s27 }
  0x24   : > { %903 = vmatprep.subr.bf16.mxu0 %v986_v2  ;;  %933 = vmatprep.subr.bf16.mxu1 %v986_v2  ;;  %v992_v4 = vld [vmem:[%s1128_s30] sm:$0xff]   ;;  %v994_v10 = vld [vmem:[%s1128_s30 + $0x8] sm:$0xff]   ;;  %v996_v12 = vld [vmem:[%s1128_s30 + $0x10] sm:$0xff]  }
  0x25   : > { %v993_v5 = vld [vmem:[%s1128_s30 + $0x20] sm:$0xff]   ;;  %915 = vmatprep.mubr.bf16.mxu0 %v992_v4  ;;  %v995_v11 = vld [vmem:[%s1128_s30 + $0x28] sm:$0xff]   ;;  %v997_v13 = vld [vmem:[%s1128_s30 + $0x30] sm:$0xff]  }
  0x26   : > { %923 = vmatprep.mubr.bf16.mxu1 %v993_v5  ;;  %v998_v14 = vld [vmem:[%s1128_s30 + $0x18] sm:$0xff]  }
  0x27   : > { %904 = vmatpush3.bf16.msra.mxu0 %v986_v2  ;;  %941 = vmatpush3.bf16.msra.mxu1 %v986_v2  ;;  %v999_v15 = vld [vmem:[%s1128_s30 + $0x38] ss:$0 sps:$4 sm:$0xff]  }
  0x28   : > { %905 = vmatprep.subr.bf16.mxu0 %v987_v3  ;;  %934 = vmatprep.subr.bf16.mxu1 %v987_v3 }
  0x2b   : > { %906 = vmatpush3.bf16.msra.mxu0 %v987_v3  ;;  %942 = vmatpush3.bf16.msra.mxu1 %v987_v3 }
  0x2c   : > { %907 = vmatprep.subr.bf16.mxu0 %v988_v6  ;;  %935 = vmatprep.subr.bf16.mxu1 %v988_v6 }
  0x2f   : > { %908 = vmatpush3.bf16.msra.mxu0 %v988_v6  ;;  %943 = vmatpush3.bf16.msra.mxu1 %v988_v6 }
  0x30   : > { %909 = vmatprep.subr.bf16.mxu0 %v989_v7  ;;  %936 = vmatprep.subr.bf16.mxu1 %v989_v7 }
  0x33   : > { %910 = vmatpush3.bf16.msra.mxu0 %v989_v7  ;;  %944 = vmatpush3.bf16.msra.mxu1 %v989_v7 }
  0x34   : > { %911 = vmatprep.subr.bf16.mxu0 %v990_v8  ;;  %937 = vmatprep.subr.bf16.mxu1 %v990_v8 }
  0x37   : > { %912 = vmatpush3.bf16.msra.mxu0 %v990_v8  ;;  %945 = vmatpush3.bf16.msra.mxu1 %v990_v8 }
  0x38   : > { %913 = vmatprep.subr.bf16.mxu0 %v991_v9  ;;  %938 = vmatprep.subr.bf16.mxu1 %v991_v9 }
  0x3b   : > { %914 = vmatpush3.bf16.msra.mxu0 %v991_v9  ;;  %946 = vmatpush3.bf16.msra.mxu1 %v991_v9 }
  0x3e   : > { %916 = vmatmul.mubr.bf16.vlgmr.msra.gmra.mxu0 %v994_v10  ;;  %924 = vmatmul.mubr.bf16.vlgmr.msra.gmra.mxu1 %v995_v11 }
  0x3f   : > { %919 = vmatprep.mubr.bf16.mxu0 %v996_v12  ;;  %927 = vmatprep.mubr.bf16.mxu1 %v997_v13 }
  0x46   : > { %920 = vmatmul.mubr.bf16.gmra.mxu0 %v998_v14  ;;  %928 = vmatmul.mubr.bf16.gmra.mxu1 %v999_v15 }
  0xfe   : > { %v917_v17 = vpop.f32.mrf.mxu0  ;;  %v925_v18 = vpop.f32.mrf.mxu1 }
  0xff   : > { %v567_v19 = vadd.f32 %v917_v17, %v809_v16  ;;  %v575_v20 = vadd.f32 %v925_v18, %v809_v16 }
 0x100   : > { %v450_v21 = vpop.f32.mrf.mxu0  ;;  %v482_v22 = vpop.f32.mrf.mxu1 }
 0x101   : > { %v565_v23 = vadd.f32 %v809_v16, %v450_v21  ;;  %v573_v24 = vadd.f32 %v809_v16, %v482_v22  ;;  %v582_v29 = vmax.f32 %v567_v19, 0.0  ;;  %v590_v30 = vmax.f32 %v575_v20, 0.0 }
 0x102   : > { %v918_v25 = vpop.f32.mrf.mxu0  ;;  %v926_v26 = vpop.f32.mrf.mxu1 }
 0x103   : > { %v568_v27 = vadd.f32 %v918_v25, %v809_v16  ;;  %v576_v28 = vadd.f32 %v926_v26, %v809_v16  ;;  %v580_v37 = vmax.f32 %v565_v23, 0.0  ;;  %v588_v38 = vmax.f32 %v573_v24, 0.0 }
 0x104   : > { %v453_v31 = vpop.f32.mrf.mxu0  ;;  %v485_v32 = vpop.f32.mrf.mxu1 }
 0x105   : > { %v583_v33 = vmax.f32 %v568_v27, 0.0  ;;  %v591_v34 = vmax.f32 %v576_v28, 0.0  ;;  %v566_v35 = vadd.f32 %v809_v16, %v453_v31  ;;  %v574_v36 = vadd.f32 %v809_v16, %v485_v32 }
 0x106   : > { %v921_v39 = vpop.f32.mrf.mxu0  ;;  %v929_v40 = vpop.f32.mrf.mxu1 }
 0x107   : > { %v850_v41 = vpack.c.bf16 %v583_v33, %v582_v29  ;;  %v870_v42 = vpack.c.bf16 %v591_v34, %v590_v30  ;;  %v581_v43 = vmax.f32 %v566_v35, 0.0  ;;  %v589_v44 = vmax.f32 %v574_v36, 0.0 }
 0x108   : > { %v579_v45 = vadd.f32 %v929_v40, %v809_v16  ;;  %v466_v46 = vpop.f32.mrf.mxu0  ;;  %v498_v47 = vpop.f32.mrf.mxu1  ;;  %v571_v50 = vadd.f32 %v921_v39, %v809_v16 }
 0x109   : > { %877 = vst [vmem:[%s1146_s8 + $0x8] sm:$0xff] %v850_v41   ;;  %881 = vst [vmem:[%s1146_s8 + $0x28] sm:$0xff] %v870_v42   ;;  %v845_v48 = vpack.c.bf16 %v581_v43, %v580_v37  ;;  %v865_v49 = vpack.c.bf16 %v589_v44, %v588_v38  ;;  %v569_v52 = vadd.f32 %v809_v16, %v466_v46 }
 0x10a   : > { %v594_v51 = vmax.f32 %v579_v45, 0.0  ;;  %v922_v53 = vpop.f32.mrf.mxu0  ;;  %v930_v54 = vpop.f32.mrf.mxu1  ;;  %v577_v55 = vadd.f32 %v809_v16, %v498_v47  ;;  %v586_v60 = vmax.f32 %v571_v50, 0.0 }
 0x10b   : > { %846 = vst [vmem:[%s1146_s8] sm:$0xff] %v845_v48   ;;  %880 = vst [vmem:[%s1146_s8 + $0x20] sm:$0xff] %v865_v49   ;;  %v572_v56 = vadd.f32 %v922_v53, %v809_v16  ;;  %v584_v0 = vmax.f32 %v569_v52, 0.0 }
 0x10c   : > { %v841_v57 = vpack.c.bf16 %v594_v51, %v594_v51  ;;  %v469_v58 = vpop.f32.mrf.mxu0  ;;  %v501_v59 = vpop.f32.mrf.mxu1  ;;  %v592_v1 = vmax.f32 %v577_v55, 0.0 }
 0x10d   : > { %v587_v61 = vmax.f32 %v572_v56, 0.0  ;;  %v570_v62 = vadd.f32 %v809_v16, %v469_v58  ;;  %v578_v63 = vadd.f32 %v809_v16, %v501_v59 }
 0x10e   : > { %670 = vst [vmem:[%s1146_s8 + $0x38] sm:$0xf] %v841_v57 }
 0x10f   : > { %v860_v2 = vpack.c.bf16 %v587_v61, %v586_v60  ;;  %v585_v3 = vmax.f32 %v570_v62, 0.0  ;;  %v593_v4 = vmax.f32 %v578_v63, 0.0 }
 0x111   : > { %879 = vst [vmem:[%s1146_s8 + $0x18] sm:$0xff] %v860_v2   ;;  %v855_v5 = vpack.c.bf16 %v585_v3, %v584_v0  ;;  %v875_v6 = vpack.c.bf16 %v593_v4, %v592_v1 }
 0x113   : > { %878 = vst [vmem:[%s1146_s8 + $0x10] sm:$0xff] %v855_v5   ;;  %882 = vst [vmem:[%s1146_s8 + $0x30] sm:$0xff] %v875_v6  }
 0x114 PF: > { %s14_s14 = sadd.s32 1, %s1052_s14   ;;  %s1171_s12 = smov %s1048_s13 }
 0x115   : > { %p11_p2 = scmp.ge.s32.totalorder %s14_s14, 17   ;;  %s1172_s13 = smov %s1174_s16 }
 0x117   :  { %13 = sbr.rel (!%p11_p2) target bundleno = 2 (0x2), region = 79 }
 0x11c   :  { %699 = vsyncpa [#allocation4], 1 }
 0x11d   :  { %701 = vsyncpa [#allocation4 + $0x1], 1 }

// kernel: cnn_distillation_forward.13
= control target key start
LH: loop header
LB: loop body
LE: loop exit
PB: predicated region body
PF: predicated region fallthrough
CT: control target
= control target key end

     0   :  { %s665_s6 = smov 0   ;;  %s1148_s0 = inlined_call_operand.vmem [shape: bf16[2,30,15,64], index: 0, kind: input, shape index: {}]   ;;  %s1149_s1 = inlined_call_operand.vmem [shape: bf16[2,15,15,32], index: 1, kind: output, shape index: {}]  }
   0x1 LB: > { %s626_s7 = sadd.s32 4294967295, %s652_s6   ;;  %p630_p0 = scmp.ge.s32.totalorder %s652_s6, 1  ;;  %s652_s6 = sphi %s665_s6, %s11_s6  }
   0x2   : > { %p87_p1 = scmp.lt.s32.totalorder %s652_s6, 3 }
   0x4   : > { %p88_p2 = pnand %p630_p0, %p87_p1 }
   0x6   : > { %91 = sbr.rel (%p88_p2) target bundleno = 254 (0xfe), region = 24 }
   0xb   : > { %p107_p3 = scmp.lt.s32.totalorder %s626_s7, 1  ;;  %s654_s12 = smov 96   ;;  %vm507_vm0 = vcmask 257024   ;;  %vm510_vm1 = vsmask.f32 3328 }
   0xc   : > { %vm994_vm2 = vmand %vm507_vm0, %vm510_vm1 }
   0xd   : > { %s1180_s7 = smov (!%p107_p3, %s626_s7), 1 }
   0xe   : > { %s635_s8 = smul.u32 240, %s1180_s7 }
   0xf   : > { %s636_s13 = smul.u32 120, %s1180_s7 }
  0x10   : > { %s679_s11 = scalar_lea.vmem %s1148_s0, %s635_s8 }
  0x11   : > { %v682_v0 = vld [vmem:[%s679_s11 + $0x8] sm:$0xf]  ;;  %v685_v1 = vld [vmem:[%s679_s11] sm:$0xf]  ;;  %v692_v2 = vld [vmem:[%s679_s11 + $0xc] sm:$0xf]  ;;  %s983_s16 = scalar_lea.vmem %s1149_s1, %s636_s13 }
  0x12   : > { %241 = vrot.lane.b32.xlu1 %v682_v0, %s654_s12  ;;  %237 = vrot.lane.b32.xlu0 %v685_v1, %s654_s12  ;;  %v695_v3 = vld [vmem:[%s679_s11 + $0x4] sm:$0xf]  ;;  %v702_v4 = vld [vmem:[%s679_s11 + $0x14] sm:$0xf] }
  0x13   : > { %v705_v5 = vld [vmem:[%s679_s11 + $0x10] sm:$0xf]  ;;  %v712_v6 = vld [vmem:[%s679_s11 + $0x1c] sm:$0xf]  ;;  %v715_v7 = vld [vmem:[%s679_s11 + $0x18] sm:$0xf] }
  0x14   : > { %v722_v8 = vld [vmem:[%s679_s11 + $0x24] sm:$0xf]  ;;  %v725_v9 = vld [vmem:[%s679_s11 + $0x20] sm:$0xf]  ;;  %v732_v10 = vld [vmem:[%s679_s11 + $0x2c] sm:$0xf] }
  0x15   : > { %v735_v11 = vld [vmem:[%s679_s11 + $0x28] sm:$0xf]  ;;  %v742_v12 = vld [vmem:[%s679_s11 + $0x34] sm:$0xf]  ;;  %v745_v13 = vld [vmem:[%s679_s11 + $0x30] sm:$0xf] }
  0x16   : > { %243 = vrot.lane.b32.xlu1 %v692_v2, %s654_s12  ;;  %239 = vrot.lane.b32.xlu0 %v695_v3, %s654_s12  ;;  %v752_v14 = vld [vmem:[%s679_s11 + $0x3c] sm:$0xf]  ;;  %v755_v15 = vld [vmem:[%s679_s11 + $0x38] sm:$0xf] }
  0x17   : > { %v762_v16 = vld [vmem:[%s679_s11 + $0x44] sm:$0xf]  ;;  %v765_v17 = vld [vmem:[%s679_s11 + $0x40] sm:$0xf]  ;;  %v772_v18 = vld [vmem:[%s679_s11 + $0x4c] sm:$0xf] }
  0x18   : > { %v775_v19 = vld [vmem:[%s679_s11 + $0x48] sm:$0xf]  ;;  %v782_v20 = vld [vmem:[%s679_s11 + $0x54] sm:$0xf]  ;;  %v785_v21 = vld [vmem:[%s679_s11 + $0x50] sm:$0xf] }
  0x19   : > { %v792_v22 = vld [vmem:[%s679_s11 + $0x5c] sm:$0xf]  ;;  %v795_v23 = vld [vmem:[%s679_s11 + $0x58] sm:$0xf]  ;;  %v802_v24 = vld [vmem:[%s679_s11 + $0x64] sm:$0xf] }
  0x1a   : > { %247 = vrot.lane.b32.xlu1 %v702_v4, %s654_s12  ;;  %245 = vrot.lane.b32.xlu0 %v705_v5, %s654_s12  ;;  %v805_v25 = vld [vmem:[%s679_s11 + $0x60] sm:$0xf]  ;;  %v812_v26 = vld [vmem:[%s679_s11 + $0x6c] sm:$0xf] }
  0x1b   : > { %v815_v27 = vld [vmem:[%s679_s11 + $0x68] sm:$0xf]  ;;  %v822_v28 = vld [vmem:[%s679_s11 + $0x74] sm:$0xf]  ;;  %v825_v29 = vld [vmem:[%s679_s11 + $0x70] sm:$0xf] }
  0x1c   : > { %v832_v30 = vld [vmem:[%s679_s11 + $0x84] sm:$0xf]  ;;  %v835_v31 = vld [vmem:[%s679_s11 + $0x7c] sm:$0xf]  ;;  %v842_v32 = vld [vmem:[%s679_s11 + $0x94] sm:$0xf] }
  0x1d   : > { %v845_v33 = vld [vmem:[%s679_s11 + $0x8c] sm:$0xf]  ;;  %v852_v34 = vld [vmem:[%s679_s11 + $0xa4] sm:$0xf]  ;;  %v855_v35 = vld [vmem:[%s679_s11 + $0x9c] sm:$0xf] }
  0x1e   : > { %251 = vrot.lane.b32.xlu1 %v712_v6, %s654_s12  ;;  %249 = vrot.lane.b32.xlu0 %v715_v7, %s654_s12  ;;  %v862_v36 = vld [vmem:[%s679_s11 + $0xb4] sm:$0xf]  ;;  %v865_v37 = vld [vmem:[%s679_s11 + $0xac] sm:$0xf] }
  0x1f   : > { %v872_v38 = vld [vmem:[%s679_s11 + $0xc4] sm:$0xf]  ;;  %v875_v39 = vld [vmem:[%s679_s11 + $0xbc] sm:$0xf]  ;;  %v882_v40 = vld [vmem:[%s679_s11 + $0xd4] sm:$0xf] }
  0x20   : > { %v885_v41 = vld [vmem:[%s679_s11 + $0xcc] sm:$0xf]  ;;  %v892_v42 = vld [vmem:[%s679_s11 + $0xe4] sm:$0xf]  ;;  %v895_v43 = vld [vmem:[%s679_s11 + $0xdc] sm:$0xf] }
  0x21   : > { %v902_v44 = vld [vmem:[%s679_s11 + $0x78] sm:$0xf]  ;;  %v905_v45 = vld [vmem:[%s679_s11 + $0xec] sm:$0xf]  ;;  %v912_v46 = vld [vmem:[%s679_s11 + $0x88] sm:$0xf] }
  0x22   : > { %255 = vrot.lane.b32.xlu1 %v722_v8, %s654_s12  ;;  %253 = vrot.lane.b32.xlu0 %v725_v9, %s654_s12  ;;  %v915_v47 = vld [vmem:[%s679_s11 + $0x80] sm:$0xf]  ;;  %v922_v48 = vld [vmem:[%s679_s11 + $0x98] sm:$0xf] }
  0x23   : > { %v925_v49 = vld [vmem:[%s679_s11 + $0x90] sm:$0xf]  ;;  %v932_v50 = vld [vmem:[%s679_s11 + $0xa8] sm:$0xf]  ;;  %v935_v51 = vld [vmem:[%s679_s11 + $0xa0] sm:$0xf] }
  0x24   : > { %1159 = vst [vmem:[#allocation2_spill] sm:$0xff] %v935_v51  ;;  %v942_v52 = vld [vmem:[%s679_s11 + $0xb8] sm:$0xf]  ;;  %v945_v53 = vld [vmem:[%s679_s11 + $0xb0] sm:$0xf] }
  0x25   : > { %1160 = vst [vmem:[#allocation3_spill] sm:$0xff] %v942_v52  ;;  %1161 = vst [vmem:[#allocation4_spill] sm:$0xff] %v945_v53  ;;  %v952_v54 = vld [vmem:[%s679_s11 + $0xc8] sm:$0xf]  ;;  %v955_v55 = vld [vmem:[%s679_s11 + $0xc0] sm:$0xf] }
  0x26   : > { %259 = vrot.lane.b32.xlu1 %v732_v10, %s654_s12  ;;  %257 = vrot.lane.b32.xlu0 %v735_v11, %s654_s12  ;;  %1162 = vst [vmem:[#allocation5_spill] sm:$0xff] %v952_v54  ;;  %1163 = vst [vmem:[#allocation6_spill] sm:$0xff] %v955_v55  ;;  %v962_v56 = vld [vmem:[%s679_s11 + $0xd8] sm:$0xf]  ;;  %v965_v57 = vld [vmem:[%s679_s11 + $0xd0] sm:$0xf] }
  0x27   : > { %1164 = vst [vmem:[#allocation7_spill] sm:$0xff] %v962_v56  ;;  %1165 = vst [vmem:[#allocation8_spill] sm:$0xff] %v965_v57  ;;  %v973_v58 = vld [vmem:[%s679_s11 + $0xe8] sm:$0xf]  ;;  %v976_v59 = vld [vmem:[%s679_s11 + $0xe0] sm:$0xf] }
  0x28   : > { %1166 = vst [vmem:[#allocation9_spill] sm:$0xff] %v973_v58  ;;  %1167 = vst [vmem:[#allocation10_spill] sm:$0xff] %v976_v59 }
  0x2a   : > { %263 = vrot.lane.b32.xlu1 %v742_v12, %s654_s12  ;;  %261 = vrot.lane.b32.xlu0 %v745_v13, %s654_s12 }
  0x2e   : > { %267 = vrot.lane.b32.xlu1 %v752_v14, %s654_s12  ;;  %265 = vrot.lane.b32.xlu0 %v755_v15, %s654_s12 }
  0x32   : > { %271 = vrot.lane.b32.xlu1 %v762_v16, %s654_s12  ;;  %269 = vrot.lane.b32.xlu0 %v765_v17, %s654_s12 }
  0x36   : > { %275 = vrot.lane.b32.xlu1 %v772_v18, %s654_s12  ;;  %273 = vrot.lane.b32.xlu0 %v775_v19, %s654_s12 }
  0x3a   : > { %279 = vrot.lane.b32.xlu1 %v782_v20, %s654_s12  ;;  %277 = vrot.lane.b32.xlu0 %v785_v21, %s654_s12 }
  0x3e   : > { %283 = vrot.lane.b32.xlu1 %v792_v22, %s654_s12  ;;  %281 = vrot.lane.b32.xlu0 %v795_v23, %s654_s12 }
  0x42   : > { %287 = vrot.lane.b32.xlu1 %v802_v24, %s654_s12  ;;  %285 = vrot.lane.b32.xlu0 %v805_v25, %s654_s12 }
  0x46   : > { %291 = vrot.lane.b32.xlu1 %v812_v26, %s654_s12  ;;  %289 = vrot.lane.b32.xlu0 %v815_v27, %s654_s12 }
  0x4a   : > { %295 = vrot.lane.b32.xlu1 %v822_v28, %s654_s12  ;;  %293 = vrot.lane.b32.xlu0 %v825_v29, %s654_s12 }
  0x4e   : > { %303 = vrot.lane.b32.xlu1 %v832_v30, %s654_s12  ;;  %299 = vrot.lane.b32.xlu0 %v835_v31, %s654_s12 }
  0x52   : > { %311 = vrot.lane.b32.xlu1 %v842_v32, %s654_s12  ;;  %307 = vrot.lane.b32.xlu0 %v845_v33, %s654_s12 }
  0x56   : > { %319 = vrot.lane.b32.xlu1 %v852_v34, %s654_s12  ;;  %315 = vrot.lane.b32.xlu0 %v855_v35, %s654_s12 }
  0x5a   : > { %327 = vrot.lane.b32.xlu1 %v862_v36, %s654_s12  ;;  %323 = vrot.lane.b32.xlu0 %v865_v37, %s654_s12 }
  0x5e   : > { %335 = vrot.lane.b32.xlu1 %v872_v38, %s654_s12  ;;  %331 = vrot.lane.b32.xlu0 %v875_v39, %s654_s12 }
  0x62   : > { %343 = vrot.lane.b32.xlu1 %v882_v40, %s654_s12  ;;  %339 = vrot.lane.b32.xlu0 %v885_v41, %s654_s12 }
  0x66   : > { %351 = vrot.lane.b32.xlu1 %v892_v42, %s654_s12  ;;  %347 = vrot.lane.b32.xlu0 %v895_v43, %s654_s12 }
  0x6a   : > { %297 = vrot.lane.b32.xlu1 %v902_v44, %s654_s12  ;;  %355 = vrot.lane.b32.xlu0 %v905_v45, %s654_s12 }
  0x6e   : > { %305 = vrot.lane.b32.xlu1 %v912_v46, %s654_s12  ;;  %301 = vrot.lane.b32.xlu0 %v915_v47, %s654_s12 }
  0x72   : > { %313 = vrot.lane.b32.xlu1 %v922_v48, %s654_s12  ;;  %309 = vrot.lane.b32.xlu0 %v925_v49, %s654_s12 }
  0x76   : > { %321 = vrot.lane.b32.xlu1 %v932_v50, %s654_s12  ;;  %317 = vrot.lane.b32.xlu0 %v935_v51, %s654_s12 }
  0x7a   : > { %329 = vrot.lane.b32.xlu1 %v942_v52, %s654_s12  ;;  %325 = vrot.lane.b32.xlu0 %v945_v53, %s654_s12 }
  0x7e   : > { %337 = vrot.lane.b32.xlu1 %v952_v54, %s654_s12  ;;  %333 = vrot.lane.b32.xlu0 %v955_v55, %s654_s12 }
  0x82   : > { %345 = vrot.lane.b32.xlu1 %v962_v56, %s654_s12  ;;  %341 = vrot.lane.b32.xlu0 %v965_v57, %s654_s12 }
  0x84   : > { %v242_v60 = vpop.permute.xlu1 %241  ;;  %v238_v61 = vpop.permute.xlu0 %237 }
  0x85   : > { %v419_v62 = vmax.bf16 %v242_v60, %v682_v0  ;;  %v417_v63 = vmax.bf16 %v238_v61, %v685_v1 }
  0x86   : > { %353 = vrot.lane.b32.xlu1 %v973_v58, %s654_s12  ;;  %349 = vrot.lane.b32.xlu0 %v976_v59, %s654_s12  ;;  %v512_v58 = vld [vmem:[%s983_s16 + $0x4] sm:$0xf] }
  0x87   : > { %v477_v57 = vmax.bf16 %v419_v62, %v417_v63 }
  0x88   : > { %v244_v0 = vpop.permute.xlu1 %243  ;;  %v240_v60 = vpop.permute.xlu0 %239 }
  0x89   : > { %508 = vst.msk [vmem:[%s983_s16] sm:$0xf] %vm507_vm0, %v477_v57  ;;  %v420_v1 = vmax.bf16 %v244_v0, %v692_v2  ;;  %v418_v61 = vmax.bf16 %v240_v60, %v695_v3 }
  0x8b   : > { %v478_v55 = vmax.bf16 %v420_v1, %v418_v61  ;;  %v516_v1 = vld [vmem:[%s983_s16 + $0xc] sm:$0xf] }
  0x8c   : > { %v248_v54 = vpop.permute.xlu1 %247  ;;  %v246_v62 = vpop.permute.xlu0 %245 }
  0x8d   : > { %v513_v63 = vsel %vm994_vm2, %v478_v55, %v512_v58  ;;  %v422_v2 = vmax.bf16 %v248_v54, %v702_v4  ;;  %v421_v3 = vmax.bf16 %v246_v62, %v705_v5 }
  0x8e   : > { %514 = vst [vmem:[%s983_s16 + $0x4] sm:$0xf] %v513_v63 }
  0x90   : > { %v252_v57 = vpop.permute.xlu1 %251  ;;  %v250_v59 = vpop.permute.xlu0 %249 }
  0x91   : > { %v424_v0 = vmax.bf16 %v252_v57, %v712_v6  ;;  %v423_v60 = vmax.bf16 %v250_v59, %v715_v7  ;;  %v520_v59 = vld [vmem:[%s983_s16 + $0x14] sm:$0xf] }
  0x93   : > { %v480_v61 = vmax.bf16 %v424_v0, %v422_v2  ;;  %v479_v53 = vmax.bf16 %v423_v60, %v421_v3  ;;  %v524_v3 = vld [vmem:[%s983_s16 + $0x1c] sm:$0xf] }
  0x94   : > { %v256_v52 = vpop.permute.xlu1 %255  ;;  %v254_v51 = vpop.permute.xlu0 %253 }
  0x95   : > { %v517_v55 = vsel %vm994_vm2, %v480_v61, %v516_v1  ;;  %515 = vst.msk [vmem:[%s983_s16 + $0x8] sm:$0xf] %vm507_vm0, %v479_v53  ;;  %v426_v6 = vmax.bf16 %v256_v52, %v722_v8  ;;  %v425_v54 = vmax.bf16 %v254_v51, %v725_v9 }
  0x96   : > { %518 = vst [vmem:[%s983_s16 + $0xc] sm:$0xf] %v517_v55 }
  0x98   : > { %v260_v4 = vpop.permute.xlu1 %259  ;;  %v258_v5 = vpop.permute.xlu0 %257 }
  0x99   : > { %v428_v7 = vmax.bf16 %v260_v4, %v732_v10  ;;  %v427_v58 = vmax.bf16 %v258_v5, %v735_v11 }
  0x9b   : > { %v482_v62 = vmax.bf16 %v428_v7, %v426_v6  ;;  %v481_v63 = vmax.bf16 %v427_v58, %v425_v54  ;;  %v528_v6 = vld [vmem:[%s983_s16 + $0x24] sm:$0xf] }
  0x9c   : > { %v264_v57 = vpop.permute.xlu1 %263  ;;  %v262_v2 = vpop.permute.xlu0 %261 }
  0x9d   : > { %v521_v53 = vsel %vm994_vm2, %v482_v62, %v520_v59  ;;  %519 = vst.msk [vmem:[%s983_s16 + $0x10] sm:$0xf] %vm507_vm0, %v481_v63  ;;  %v430_v10 = vmax.bf16 %v264_v57, %v742_v12  ;;  %v429_v51 = vmax.bf16 %v262_v2, %v745_v13  ;;  %v532_v2 = vld [vmem:[%s983_s16 + $0x2c] sm:$0xf] }
  0x9e   : > { %522 = vst [vmem:[%s983_s16 + $0x14] sm:$0xf] %v521_v53 }
  0xa0   : > { %v268_v8 = vpop.permute.xlu1 %267  ;;  %v266_v9 = vpop.permute.xlu0 %265 }
  0xa1   : > { %v432_v11 = vmax.bf16 %v268_v8, %v752_v14  ;;  %v431_v52 = vmax.bf16 %v266_v9, %v755_v15 }
  0xa3   : > { %v484_v0 = vmax.bf16 %v432_v11, %v430_v10  ;;  %v483_v60 = vmax.bf16 %v431_v52, %v429_v51 }
  0xa4   : > { %v272_v1 = vpop.permute.xlu1 %271  ;;  %v270_v61 = vpop.permute.xlu0 %269 }
  0xa5   : > { %v525_v55 = vsel %vm994_vm2, %v484_v0, %v524_v3  ;;  %523 = vst.msk [vmem:[%s983_s16 + $0x18] sm:$0xf] %vm507_vm0, %v483_v60  ;;  %v434_v14 = vmax.bf16 %v272_v1, %v762_v16  ;;  %v433_v4 = vmax.bf16 %v270_v61, %v765_v17  ;;  %v536_v3 = vld [vmem:[%s983_s16 + $0x34] sm:$0xf] }
  0xa6   : > { %526 = vst [vmem:[%s983_s16 + $0x1c] sm:$0xf] %v525_v55 }
  0xa8   : > { %v276_v12 = vpop.permute.xlu1 %275  ;;  %v274_v13 = vpop.permute.xlu0 %273 }
  0xa9   : > { %v436_v15 = vmax.bf16 %v276_v12, %v772_v18  ;;  %v435_v5 = vmax.bf16 %v274_v13, %v775_v19  ;;  %v540_v12 = vld [vmem:[%s983_s16 + $0x3c] sm:$0xf] }
  0xab   : > { %v486_v54 = vmax.bf16 %v436_v15, %v434_v14  ;;  %v485_v7 = vmax.bf16 %v435_v5, %v433_v4 }
  0xac   : > { %v280_v58 = vpop.permute.xlu1 %279  ;;  %v278_v59 = vpop.permute.xlu0 %277 }
  0xad   : > { %v529_v62 = vsel %vm994_vm2, %v486_v54, %v528_v6  ;;  %527 = vst.msk [vmem:[%s983_s16 + $0x20] sm:$0xf] %vm507_vm0, %v485_v7  ;;  %v438_v18 = vmax.bf16 %v280_v58, %v782_v20  ;;  %v437_v63 = vmax.bf16 %v278_v59, %v785_v21  ;;  %v544_v54 = vld [vmem:[%s983_s16 + $0x44] sm:$0xf] }
  0xae   : > { %530 = vst [vmem:[%s983_s16 + $0x24] sm:$0xf] %v529_v62 }
  0xb0   : > { %v284_v16 = vpop.permute.xlu1 %283  ;;  %v282_v17 = vpop.permute.xlu0 %281 }
  0xb1   : > { %v440_v19 = vmax.bf16 %v284_v16, %v792_v22  ;;  %v439_v57 = vmax.bf16 %v282_v17, %v795_v23 }
  0xb3   : > { %v488_v53 = vmax.bf16 %v440_v19, %v438_v18  ;;  %v487_v8 = vmax.bf16 %v439_v57, %v437_v63 }
  0xb4   : > { %v288_v9 = vpop.permute.xlu1 %287  ;;  %v286_v10 = vpop.permute.xlu0 %285 }
  0xb5   : > { %v533_v51 = vsel %vm994_vm2, %v488_v53, %v532_v2  ;;  %531 = vst.msk [vmem:[%s983_s16 + $0x28] sm:$0xf] %vm507_vm0, %v487_v8  ;;  %v442_v22 = vmax.bf16 %v288_v9, %v802_v24  ;;  %v441_v23 = vmax.bf16 %v286_v10, %v805_v25 }
  0xb6   : > { %534 = vst [vmem:[%s983_s16 + $0x2c] sm:$0xf] %v533_v51 }
  0xb8   : > { %v292_v20 = vpop.permute.xlu1 %291  ;;  %v290_v21 = vpop.permute.xlu0 %289 }
  0xb9   : > { %v444_v11 = vmax.bf16 %v292_v20, %v812_v26  ;;  %v443_v52 = vmax.bf16 %v290_v21, %v815_v27 }
  0xbb   : > { %v490_v0 = vmax.bf16 %v444_v11, %v442_v22  ;;  %v489_v60 = vmax.bf16 %v443_v52, %v441_v23 }
  0xbc   : > { %v296_v1 = vpop.permute.xlu1 %295  ;;  %v1057_v61 = vpop.permute.xlu0 %293 }
  0xbd   : > { %v537_v55 = vsel %vm994_vm2, %v490_v0, %v536_v3  ;;  %535 = vst.msk [vmem:[%s983_s16 + $0x30] sm:$0xf] %vm507_vm0, %v489_v60  ;;  %v446_v26 = vmax.bf16 %v296_v1, %v822_v28 }
  0xbe   : > { %538 = vst [vmem:[%s983_s16 + $0x34] sm:$0xf] %v537_v55 }
  0xc0   : > { %v304_v24 = vpop.permute.xlu1 %303  ;;  %v300_v25 = vpop.permute.xlu0 %299 }
  0xc1   : > { %v448_v27 = vmax.bf16 %v300_v25, %v835_v31  ;;  %v450_v15 = vmax.bf16 %v304_v24, %v832_v30  ;;  %v548_v30 = vld [vmem:[%s983_s16 + $0x4c] sm:$0xf] }
  0xc3   : > { %v492_v13 = vmax.bf16 %v448_v27, %v446_v26  ;;  %v568_v26 = vld [vmem:[%s983_s16 + $0x74] sm:$0xf] }
  0xc4   : > { %v312_v14 = vpop.permute.xlu1 %311  ;;  %v308_v4 = vpop.permute.xlu0 %307 }
  0xc5   : > { %v541_v5 = vsel %vm994_vm2, %v492_v13, %v540_v12  ;;  %v452_v6 = vmax.bf16 %v308_v4, %v845_v33  ;;  %v454_v58 = vmax.bf16 %v312_v14, %v842_v32  ;;  %v552_v32 = vld [vmem:[%s983_s16 + $0x54] sm:$0xf] }
  0xc6   : > { %542 = vst [vmem:[%s983_s16 + $0x3c] sm:$0xf] %v541_v5 }
  0xc7   : > { %v494_v28 = vmax.bf16 %v452_v6, %v450_v15 }
  0xc8   : > { %v320_v7 = vpop.permute.xlu1 %319  ;;  %v316_v31 = vpop.permute.xlu0 %315 }
  0xc9   : > { %v545_v59 = vsel %vm994_vm2, %v494_v28, %v544_v54  ;;  %v456_v62 = vmax.bf16 %v316_v31, %v855_v35  ;;  %v458_v18 = vmax.bf16 %v320_v7, %v852_v34  ;;  %v556_v34 = vld [vmem:[%s983_s16 + $0x5c] sm:$0xf] }
  0xca   : > { %546 = vst [vmem:[%s983_s16 + $0x44] sm:$0xf] %v545_v59  ;;  %v1171_v59 = vld [vmem:[#allocation3_spill] sm:$0xff] }
  0xcb   : > { %v496_v16 = vmax.bf16 %v456_v62, %v454_v58  ;;  %v1172_v62 = vld [vmem:[#allocation4_spill] sm:$0xff] }
  0xcc   : > { %v328_v33 = vpop.permute.xlu1 %327  ;;  %v324_v17 = vpop.permute.xlu0 %323 }
  0xcd   : > { %v549_v63 = vsel %vm994_vm2, %v496_v16, %v548_v30  ;;  %v460_v19 = vmax.bf16 %v324_v17, %v865_v37  ;;  %v462_v53 = vmax.bf16 %v328_v33, %v862_v36  ;;  %v560_v36 = vld [vmem:[%s983_s16 + $0x64] sm:$0xf]  ;;  %v1173_v17 = vld [vmem:[#allocation5_spill] sm:$0xff] }
  0xce   : > { %550 = vst [vmem:[%s983_s16 + $0x4c] sm:$0xf] %v549_v63 }
  0xcf   : > { %v498_v57 = vmax.bf16 %v460_v19, %v458_v18  ;;  %v1174_v18 = vld [vmem:[#allocation6_spill] sm:$0xff] }
  0xd0   : > { %v336_v35 = vpop.permute.xlu1 %335  ;;  %v332_v2 = vpop.permute.xlu0 %331 }
  0xd1   : > { %v553_v8 = vsel %vm994_vm2, %v498_v57, %v552_v32  ;;  %v464_v9 = vmax.bf16 %v332_v2, %v875_v39  ;;  %v466_v20 = vmax.bf16 %v336_v35, %v872_v38  ;;  %v564_v38 = vld [vmem:[%s983_s16 + $0x6c] sm:$0xf] }
  0xd2   : > { %554 = vst [vmem:[%s983_s16 + $0x54] sm:$0xf] %v553_v8  ;;  %v1175_v35 = vld [vmem:[#allocation7_spill] sm:$0xff] }
  0xd3   : > { %v500_v10 = vmax.bf16 %v464_v9, %v462_v53  ;;  %v1176_v53 = vld [vmem:[#allocation8_spill] sm:$0xff] }
  0xd4   : > { %v344_v37 = vpop.permute.xlu1 %343  ;;  %v340_v51 = vpop.permute.xlu0 %339 }
  0xd5   : > { %v557_v21 = vsel %vm994_vm2, %v500_v10, %v556_v34  ;;  %v468_v22 = vmax.bf16 %v340_v51, %v885_v41  ;;  %v470_v52 = vmax.bf16 %v344_v37, %v882_v40  ;;  %v445_v41 = vmax.bf16 %v1057_v61, %v825_v29  ;;  %v1177_v37 = vld [vmem:[#allocation9_spill] sm:$0xff] }
  0xd6   : > { %558 = vst [vmem:[%s983_s16 + $0x5c] sm:$0xf] %v557_v21 }
  0xd7   : > { %v502_v23 = vmax.bf16 %v468_v22, %v466_v20  ;;  %v1178_v20 = vld [vmem:[#allocation10_spill] sm:$0xff] }
  0xd8   : > { %v352_v11 = vpop.permute.xlu1 %351  ;;  %v348_v39 = vpop.permute.xlu0 %347 }
  0xd9   : > { %v561_v3 = vsel %vm994_vm2, %v502_v23, %v560_v36  ;;  %v472_v0 = vmax.bf16 %v348_v39, %v895_v43  ;;  %v474_v24 = vmax.bf16 %v352_v11, %v892_v42 }
  0xda   : > { %562 = vst [vmem:[%s983_s16 + $0x64] sm:$0xf] %v561_v3 }
  0xdb   : > { %v504_v60 = vmax.bf16 %v472_v0, %v470_v52 }
  0xdc   : > { %v298_v1 = vpop.permute.xlu1 %297  ;;  %v356_v55 = vpop.permute.xlu0 %355 }
  0xdd   : > { %v565_v40 = vsel %vm994_vm2, %v504_v60, %v564_v38  ;;  %v447_v25 = vmax.bf16 %v298_v1, %v902_v44  ;;  %v476_v43 = vmax.bf16 %v356_v55, %v905_v45 }
  0xde   : > { %566 = vst [vmem:[%s983_s16 + $0x6c] sm:$0xf] %v565_v40 }
  0xdf   : > { %v491_v27 = vmax.bf16 %v447_v25, %v445_v41  ;;  %v506_v12 = vmax.bf16 %v476_v43, %v474_v24 }
  0xe0   : > { %v306_v13 = vpop.permute.xlu1 %305  ;;  %v302_v29 = vpop.permute.xlu0 %301 }
  0xe1   : > { %539 = vst.msk [vmem:[%s983_s16 + $0x38] sm:$0xf] %vm507_vm0, %v491_v27  ;;  %v569_v42 = vsel %vm994_vm2, %v506_v12, %v568_v26  ;;  %v451_v61 = vmax.bf16 %v306_v13, %v912_v46  ;;  %v449_v14 = vmax.bf16 %v302_v29, %v915_v47  ;;  %v1170_v47 = vld [vmem:[#allocation2_spill] sm:$0xff] }
  0xe2   : > { %570 = vst [vmem:[%s983_s16 + $0x74] sm:$0xf] %v569_v42 }
  0xe3   : > { %v493_v44 = vmax.bf16 %v451_v61, %v449_v14 }
  0xe4   : > { %v314_v45 = vpop.permute.xlu1 %313  ;;  %v310_v4 = vpop.permute.xlu0 %309 }
  0xe5   : > { %543 = vst.msk [vmem:[%s983_s16 + $0x40] sm:$0xf] %vm507_vm0, %v493_v44  ;;  %v455_v15 = vmax.bf16 %v314_v45, %v922_v48  ;;  %v453_v5 = vmax.bf16 %v310_v4, %v925_v49 }
  0xe7   : > { %v495_v6 = vmax.bf16 %v455_v15, %v453_v5 }
  0xe8   : > { %v322_v54 = vpop.permute.xlu1 %321  ;;  %v318_v56 = vpop.permute.xlu0 %317 }
  0xe9   : > { %547 = vst.msk [vmem:[%s983_s16 + $0x48] sm:$0xf] %vm507_vm0, %v495_v6  ;;  %v459_v46 = vmax.bf16 %v322_v54, %v932_v50  ;;  %v457_v28 = vmax.bf16 %v318_v56, %v1170_v47 }
  0xeb   : > { %v497_v7 = vmax.bf16 %v459_v46, %v457_v28 }
  0xec   : > { %v330_v31 = vpop.permute.xlu1 %329  ;;  %v326_v58 = vpop.permute.xlu0 %325 }
  0xed   : > { %551 = vst.msk [vmem:[%s983_s16 + $0x50] sm:$0xf] %vm507_vm0, %v497_v7  ;;  %v463_v48 = vmax.bf16 %v330_v31, %v1171_v59  ;;  %v461_v49 = vmax.bf16 %v326_v58, %v1172_v62 }
  0xef   : > { %v499_v30 = vmax.bf16 %v463_v48, %v461_v49 }
  0xf0   : > { %v338_v16 = vpop.permute.xlu1 %337  ;;  %v334_v33 = vpop.permute.xlu0 %333 }
  0xf1   : > { %555 = vst.msk [vmem:[%s983_s16 + $0x58] sm:$0xf] %vm507_vm0, %v499_v30  ;;  %v467_v50 = vmax.bf16 %v338_v16, %v1173_v17  ;;  %v465_v63 = vmax.bf16 %v334_v33, %v1174_v18 }
  0xf3   : > { %v501_v19 = vmax.bf16 %v467_v50, %v465_v63 }
  0xf4   : > { %v346_v32 = vpop.permute.xlu1 %345  ;;  %v342_v57 = vpop.permute.xlu0 %341 }
  0xf5   : > { %559 = vst.msk [vmem:[%s983_s16 + $0x60] sm:$0xf] %vm507_vm0, %v501_v19  ;;  %v471_v2 = vmax.bf16 %v346_v32, %v1175_v35  ;;  %v469_v8 = vmax.bf16 %v342_v57, %v1176_v53 }
  0xf7   : > { %v503_v9 = vmax.bf16 %v471_v2, %v469_v8 }
  0xf8   : > { %v354_v34 = vpop.permute.xlu1 %353  ;;  %v350_v10 = vpop.permute.xlu0 %349 }
  0xf9   : > { %563 = vst.msk [vmem:[%s983_s16 + $0x68] sm:$0xf] %vm507_vm0, %v503_v9  ;;  %v475_v51 = vmax.bf16 %v354_v34, %v1177_v37  ;;  %v473_v21 = vmax.bf16 %v350_v10, %v1178_v20 }
  0xfb   : > { %v505_v22 = vmax.bf16 %v475_v51, %v473_v21 }
  0xfd   : > { %567 = vst.msk [vmem:[%s983_s16 + $0x70] sm:$0xf] %vm507_vm0, %v505_v22 }
  0xfe PF: > { %s11_s6 = sadd.s32 1, %s652_s6  }
  0xff   : > { %p8_p4 = scmp.ge.s32.totalorder %s11_s6, 4  }
 0x101   :  { %10 = sbr.rel (!%p8_p4) target bundleno = 1 (0x1), region = 54 }

// kernel: cnn_distillation_forward.15
= control target key start
LH: loop header
LB: loop body
LE: loop exit
PB: predicated region body
PF: predicated region fallthrough
CT: control target
= control target key end

     0   :  { %s1063_s12 = smov 0   ;;  %s1065_s13 = smov 0   ;;  %s1150_s0 = inlined_call_operand.vmem [shape: bf16[2048,128], index: 0, kind: input, shape index: {}]   ;;  %s1151_s1 = inlined_call_operand.vmem [shape: bf16[128,128], index: 1, kind: input, shape index: {}]   ;;  %s1152_s2 = inlined_call_operand.vmem [shape: f32[8,128], index: 2, kind: input, shape index: {}]   ;;  %s1153_s3 = inlined_call_operand.vmem [shape: bf16[2048,128], index: 3, kind: output, shape index: {}]  }
   0x1   :  { %s1067_s14 = smov 0  }
   0x2 LB: > { %s32_s15 = sadd.s32 1, %s1037_s13  ;;  %p812_p0 = scmp.ge.s32.totalorder %s1041_s14, 1  ;;  %s1041_s14 = sphi %s1067_s14, %s13_s14   ;;  %s1037_s13 = sphi %s1065_s13, %s1155_s13   ;;  %s1033_s12 = sphi %s1063_s12, %s1154_s12  }
   0x3   : > { %p34_p1 = scmp.ge.s32.totalorder %s32_s15, 16  ;;  %p189_p2 = scmp.lt.s32.totalorder %s1041_s14, 17 }
   0x5   : > { %s1157_s15 = smov (%p34_p1, %s32_s15), 0  ;;  %p190_p3 = pnand %p812_p0, %p189_p2 }
   0x6   : > { %s813_s18 = sshll.u32 (!%p190_p3), %s1033_s12, 4 }
   0x7   : > { %193 = sbr.rel (%p190_p3) target bundleno = 259 (0x103), region = 32  ;;  %p232_p4 = scmp.lt.s32.totalorder (!%p190_p3), %s813_s18, 255 }
   0xc   : > { %v1003_v0 = vld [vmem:[%s1151_s1 + $0x38] sm:$0xff]   ;;  %v1004_v1 = vld [vmem:[%s1151_s1 + $0x30] sm:$0xff]   ;;  %s1159_s18 = smov (!%p232_p4, %s813_s18), 255  ;;  %v1005_v2 = vld [vmem:[%s1151_s1 + $0x28] sm:$0xff]  }
   0xd   : > { %931 = vmatprep.subr.bf16.mxu0 %v1003_v0  ;;  %963 = vmatprep.subr.bf16.mxu1 %v1003_v0  ;;  %s814_s23 = sshll.u32 %s1159_s18, 2  ;;  %v1006_v3 = vld [vmem:[%s1151_s1 + $0x20] sm:$0xff]   ;;  %v1007_v6 = vld [vmem:[%s1151_s1 + $0x18] sm:$0xff]   ;;  %v1008_v7 = vld [vmem:[%s1151_s1 + $0x10] sm:$0xff]  }
   0xe   : > { %932 = vmatpush3.bf16.msra.mxu0 %v1003_v0  ;;  %971 = vmatpush3.bf16.msra.mxu1 %v1003_v0  ;;  %s1098_s26 = scalar_lea.vmem %s1150_s0, %s814_s23  ;;  %v1009_v8 = vld [vmem:[%s1151_s1 + $0x8] sm:$0xff]   ;;  %v1010_v9 = vld [vmem:[%s1151_s1] sm:$0xff]   ;;  %s1131_s17 = scalar_lea.vmem %s1153_s3, %s814_s23 }
   0xf   : > { %933 = vmatprep.subr.bf16.mxu0 %v1004_v1  ;;  %964 = vmatprep.subr.bf16.mxu1 %v1004_v1  ;;  %v1011_v4 = vld [vmem:[%s1098_s26] sm:$0xff]   ;;  %v1013_v10 = vld [vmem:[%s1098_s26 + $0x8] sm:$0xff]   ;;  %v1015_v12 = vld [vmem:[%s1098_s26 + $0x10] sm:$0xff]  }
  0x10   : > { %v1012_v5 = vld [vmem:[%s1098_s26 + $0x20] sm:$0xff]   ;;  %947 = vmatprep.mubr.bf16.mxu0 %v1011_v4  ;;  %v1014_v11 = vld [vmem:[%s1098_s26 + $0x28] sm:$0xff]   ;;  %v1016_v13 = vld [vmem:[%s1098_s26 + $0x30] sm:$0xff]  }
  0x11   : > { %955 = vmatprep.mubr.bf16.mxu1 %v1012_v5  ;;  %v1017_v14 = vld [vmem:[%s1098_s26 + $0x18] sm:$0xff]   ;;  %v833_v16 = vld [vmem:[%s1152_s2] ss:$0 sm:$0xff] }
  0x12   : > { %934 = vmatpush3.bf16.msra.mxu0 %v1004_v1  ;;  %972 = vmatpush3.bf16.msra.mxu1 %v1004_v1  ;;  %v1018_v15 = vld [vmem:[%s1098_s26 + $0x38] sm:$0xff]  }
  0x13   : > { %935 = vmatprep.subr.bf16.mxu0 %v1005_v2  ;;  %965 = vmatprep.subr.bf16.mxu1 %v1005_v2 }
  0x16   : > { %936 = vmatpush3.bf16.msra.mxu0 %v1005_v2  ;;  %973 = vmatpush3.bf16.msra.mxu1 %v1005_v2 }
  0x17   : > { %937 = vmatprep.subr.bf16.mxu0 %v1006_v3  ;;  %966 = vmatprep.subr.bf16.mxu1 %v1006_v3 }
  0x1a   : > { %938 = vmatpush3.bf16.msra.mxu0 %v1006_v3  ;;  %974 = vmatpush3.bf16.msra.mxu1 %v1006_v3 }
  0x1b   : > { %939 = vmatprep.subr.bf16.mxu0 %v1007_v6  ;;  %967 = vmatprep.subr.bf16.mxu1 %v1007_v6 }
  0x1e   : > { %940 = vmatpush3.bf16.msra.mxu0 %v1007_v6  ;;  %975 = vmatpush3.bf16.msra.mxu1 %v1007_v6 }
  0x1f   : > { %941 = vmatprep.subr.bf16.mxu0 %v1008_v7  ;;  %968 = vmatprep.subr.bf16.mxu1 %v1008_v7 }
  0x22   : > { %942 = vmatpush3.bf16.msra.mxu0 %v1008_v7  ;;  %976 = vmatpush3.bf16.msra.mxu1 %v1008_v7 }
  0x23   : > { %943 = vmatprep.subr.bf16.mxu0 %v1009_v8  ;;  %969 = vmatprep.subr.bf16.mxu1 %v1009_v8 }
  0x26   : > { %944 = vmatpush3.bf16.msra.mxu0 %v1009_v8  ;;  %977 = vmatpush3.bf16.msra.mxu1 %v1009_v8 }
  0x27   : > { %945 = vmatprep.subr.bf16.mxu0 %v1010_v9  ;;  %970 = vmatprep.subr.bf16.mxu1 %v1010_v9 }
  0x2a   : > { %946 = vmatpush3.bf16.msra.mxu0 %v1010_v9  ;;  %978 = vmatpush3.bf16.msra.mxu1 %v1010_v9 }
  0x2d   : > { %948 = vmatmul.mubr.bf16.vlgmr.msra.gmra.mxu0 %v1013_v10  ;;  %956 = vmatmul.mubr.bf16.vlgmr.msra.gmra.mxu1 %v1014_v11 }
  0x2e   : > { %951 = vmatprep.mubr.bf16.mxu0 %v1015_v12  ;;  %959 = vmatprep.mubr.bf16.mxu1 %v1016_v13 }
  0x35   : > { %952 = vmatmul.mubr.bf16.gmra.mxu0 %v1017_v14  ;;  %960 = vmatmul.mubr.bf16.gmra.mxu1 %v1018_v15 }
  0xed   : > { %v949_v17 = vpop.f32.mrf.mxu0  ;;  %v957_v18 = vpop.f32.mrf.mxu1 }
  0xee   : > { %v582_v19 = vadd.f32 %v949_v17, %v833_v16  ;;  %v590_v20 = vadd.f32 %v957_v18, %v833_v16 }
  0xef   : > { %v461_v21 = vpop.f32.mrf.mxu0  ;;  %v493_v22 = vpop.f32.mrf.mxu1 }
  0xf0   : > { %v580_v23 = vadd.f32 %v833_v16, %v461_v21  ;;  %v588_v24 = vadd.f32 %v833_v16, %v493_v22  ;;  %v598_v29 = vmax.f32 %v582_v19, 0.0  ;;  %v606_v30 = vmax.f32 %v590_v20, 0.0 }
  0xf1   : > { %v950_v25 = vpop.f32.mrf.mxu0  ;;  %v958_v26 = vpop.f32.mrf.mxu1 }
  0xf2   : > { %v583_v27 = vadd.f32 %v950_v25, %v833_v16  ;;  %v591_v28 = vadd.f32 %v958_v26, %v833_v16  ;;  %v596_v37 = vmax.f32 %v580_v23, 0.0  ;;  %v604_v38 = vmax.f32 %v588_v24, 0.0 }
  0xf3   : > { %v464_v31 = vpop.f32.mrf.mxu0  ;;  %v496_v32 = vpop.f32.mrf.mxu1 }
  0xf4   : > { %v599_v33 = vmax.f32 %v583_v27, 0.0  ;;  %v607_v34 = vmax.f32 %v591_v28, 0.0  ;;  %v581_v35 = vadd.f32 %v833_v16, %v464_v31  ;;  %v589_v36 = vadd.f32 %v833_v16, %v496_v32 }
  0xf5   : > { %v953_v39 = vpop.f32.mrf.mxu0  ;;  %v961_v40 = vpop.f32.mrf.mxu1 }
  0xf6   : > { %v876_v41 = vpack.c.bf16 %v599_v33, %v598_v29  ;;  %v896_v42 = vpack.c.bf16 %v607_v34, %v606_v30  ;;  %v597_v43 = vmax.f32 %v581_v35, 0.0  ;;  %v605_v44 = vmax.f32 %v589_v36, 0.0 }
  0xf7   : > { %v586_v45 = vadd.f32 %v953_v39, %v833_v16  ;;  %v594_v46 = vadd.f32 %v961_v40, %v833_v16  ;;  %v477_v47 = vpop.f32.mrf.mxu0  ;;  %v509_v48 = vpop.f32.mrf.mxu1 }
  0xf8   : > { %908 = vst [vmem:[%s1131_s17 + $0x8] sm:$0xff] %v876_v41   ;;  %912 = vst [vmem:[%s1131_s17 + $0x28] sm:$0xff] %v896_v42   ;;  %v871_v49 = vpack.c.bf16 %v597_v43, %v596_v37  ;;  %v891_v50 = vpack.c.bf16 %v605_v44, %v604_v38  ;;  %v584_v51 = vadd.f32 %v833_v16, %v477_v47 }
  0xf9   : > { %v592_v52 = vadd.f32 %v833_v16, %v509_v48  ;;  %v954_v53 = vpop.f32.mrf.mxu0  ;;  %v962_v54 = vpop.f32.mrf.mxu1  ;;  %v602_v57 = vmax.f32 %v586_v45, 0.0  ;;  %v610_v58 = vmax.f32 %v594_v46, 0.0 }
  0xfa   : > { %872 = vst [vmem:[%s1131_s17] sm:$0xff] %v871_v49   ;;  %911 = vst [vmem:[%s1131_s17 + $0x20] sm:$0xff] %v891_v50   ;;  %v587_v55 = vadd.f32 %v954_v53, %v833_v16  ;;  %v595_v56 = vadd.f32 %v962_v54, %v833_v16  ;;  %v600_v1 = vmax.f32 %v584_v51, 0.0 }
  0xfb   : > { %v480_v59 = vpop.f32.mrf.mxu0  ;;  %v512_v60 = vpop.f32.mrf.mxu1  ;;  %v608_v2 = vmax.f32 %v592_v52, 0.0 }
  0xfc   : > { %v603_v61 = vmax.f32 %v587_v55, 0.0  ;;  %v611_v62 = vmax.f32 %v595_v56, 0.0  ;;  %v585_v63 = vadd.f32 %v833_v16, %v480_v59  ;;  %v593_v0 = vadd.f32 %v833_v16, %v512_v60 }
  0xfe   : > { %v886_v3 = vpack.c.bf16 %v603_v61, %v602_v57  ;;  %v906_v4 = vpack.c.bf16 %v611_v62, %v610_v58  ;;  %v601_v5 = vmax.f32 %v585_v63, 0.0  ;;  %v609_v6 = vmax.f32 %v593_v0, 0.0 }
 0x100   : > { %910 = vst [vmem:[%s1131_s17 + $0x18] sm:$0xff] %v886_v3   ;;  %914 = vst [vmem:[%s1131_s17 + $0x38] sm:$0xff] %v906_v4   ;;  %v881_v7 = vpack.c.bf16 %v601_v5, %v600_v1  ;;  %v901_v8 = vpack.c.bf16 %v609_v6, %v608_v2 }
 0x102   : > { %909 = vst [vmem:[%s1131_s17 + $0x10] sm:$0xff] %v881_v7   ;;  %913 = vst [vmem:[%s1131_s17 + $0x30] sm:$0xff] %v901_v8  }
 0x103 PF: > { %s13_s14 = sadd.s32 1, %s1041_s14   ;;  %s1154_s12 = smov %s1037_s13 }
 0x104   : > { %p10_p5 = scmp.ge.s32.totalorder %s13_s14, 18   ;;  %s1155_s13 = smov %s1157_s15 }
 0x106   :  { %12 = sbr.rel (!%p10_p5) target bundleno = 2 (0x2), region = 76 }

// kernel: cnn_distillation_forward.16
= control target key start
LH: loop header
LB: loop body
LE: loop exit
PB: predicated region body
PF: predicated region fallthrough
CT: control target
= control target key end

     0   :  { %s662_s6 = smov 0   ;;  %s1135_s0 = inlined_call_operand.vmem [shape: bf16[2,32,16,64], index: 0, kind: input, shape index: {}]   ;;  %s1136_s1 = inlined_call_operand.vmem [shape: bf16[2,16,16,32], index: 1, kind: output, shape index: {}]  }
   0x1 LB: > { %s621_s7 = sadd.s32 4294967295, %s649_s6   ;;  %p625_p0 = scmp.ge.s32.totalorder %s649_s6, 1  ;;  %s649_s6 = sphi %s662_s6, %s11_s6  }
   0x2   : > { %p87_p1 = scmp.lt.s32.totalorder %s649_s6, 3 }
   0x4   : > { %p88_p2 = pnand %p625_p0, %p87_p1 }
   0x6   : > { %91 = sbr.rel (%p88_p2) target bundleno = 261 (0x105), region = 24 }
   0xb   : > { %p107_p3 = scmp.lt.s32.totalorder %s621_s7, 1  ;;  %s651_s12 = smov 96   ;;  %vm533_vm0 = vcmask 257024  }
   0xd   : > { %s1168_s7 = smov (!%p107_p3, %s621_s7), 1 }
   0xe   : > { %s632_s8 = sshll.u32 %s1168_s7, 8  ;;  %s633_s13 = sshll.u32 %s1168_s7, 7 }
   0xf   : > { %s676_s11 = scalar_lea.vmem %s1135_s0, %s632_s8  ;;  %s980_s16 = scalar_lea.vmem %s1136_s1, %s633_s13 }
  0x10   : > { %v679_v0 = vld [vmem:[%s676_s11 + $0x8] sm:$0xf]  ;;  %v682_v1 = vld [vmem:[%s676_s11] sm:$0xf]  ;;  %v689_v2 = vld [vmem:[%s676_s11 + $0xc] sm:$0xf] }
  0x11   : > { %249 = vrot.lane.b32.xlu1 %v679_v0, %s651_s12  ;;  %245 = vrot.lane.b32.xlu0 %v682_v1, %s651_s12  ;;  %v692_v3 = vld [vmem:[%s676_s11 + $0x4] sm:$0xf]  ;;  %v699_v4 = vld [vmem:[%s676_s11 + $0x14] sm:$0xf] }
  0x12   : > { %v702_v5 = vld [vmem:[%s676_s11 + $0x10] sm:$0xf]  ;;  %v709_v6 = vld [vmem:[%s676_s11 + $0x1c] sm:$0xf]  ;;  %v712_v7 = vld [vmem:[%s676_s11 + $0x18] sm:$0xf] }
  0x13   : > { %v719_v8 = vld [vmem:[%s676_s11 + $0x24] sm:$0xf]  ;;  %v722_v9 = vld [vmem:[%s676_s11 + $0x20] sm:$0xf]  ;;  %v729_v10 = vld [vmem:[%s676_s11 + $0x2c] sm:$0xf] }
  0x14   : > { %v732_v11 = vld [vmem:[%s676_s11 + $0x28] sm:$0xf]  ;;  %v739_v12 = vld [vmem:[%s676_s11 + $0x34] sm:$0xf]  ;;  %v742_v13 = vld [vmem:[%s676_s11 + $0x30] sm:$0xf] }
  0x15   : > { %251 = vrot.lane.b32.xlu1 %v689_v2, %s651_s12  ;;  %247 = vrot.lane.b32.xlu0 %v692_v3, %s651_s12  ;;  %v749_v14 = vld [vmem:[%s676_s11 + $0x3c] sm:$0xf]  ;;  %v752_v15 = vld [vmem:[%s676_s11 + $0x38] sm:$0xf] }
  0x16   : > { %v759_v16 = vld [vmem:[%s676_s11 + $0x44] sm:$0xf]  ;;  %v762_v17 = vld [vmem:[%s676_s11 + $0x40] sm:$0xf]  ;;  %v769_v18 = vld [vmem:[%s676_s11 + $0x4c] sm:$0xf] }
  0x17   : > { %v772_v19 = vld [vmem:[%s676_s11 + $0x48] sm:$0xf]  ;;  %v779_v20 = vld [vmem:[%s676_s11 + $0x54] sm:$0xf]  ;;  %v782_v21 = vld [vmem:[%s676_s11 + $0x50] sm:$0xf] }
  0x18   : > { %v789_v22 = vld [vmem:[%s676_s11 + $0x5c] sm:$0xf]  ;;  %v792_v23 = vld [vmem:[%s676_s11 + $0x58] sm:$0xf]  ;;  %v799_v24 = vld [vmem:[%s676_s11 + $0x64] sm:$0xf] }
  0x19   : > { %255 = vrot.lane.b32.xlu1 %v699_v4, %s651_s12  ;;  %253 = vrot.lane.b32.xlu0 %v702_v5, %s651_s12  ;;  %v802_v25 = vld [vmem:[%s676_s11 + $0x60] sm:$0xf]  ;;  %v809_v26 = vld [vmem:[%s676_s11 + $0x6c] sm:$0xf] }
  0x1a   : > { %v812_v27 = vld [vmem:[%s676_s11 + $0x68] sm:$0xf]  ;;  %v819_v28 = vld [vmem:[%s676_s11 + $0x74] sm:$0xf]  ;;  %v822_v29 = vld [vmem:[%s676_s11 + $0x70] sm:$0xf] }
  0x1b   : > { %v829_v30 = vld [vmem:[%s676_s11 + $0x7c] sm:$0xf]  ;;  %v832_v31 = vld [vmem:[%s676_s11 + $0x78] sm:$0xf]  ;;  %v839_v32 = vld [vmem:[%s676_s11 + $0x84] sm:$0xf] }
  0x1c   : > { %v842_v33 = vld [vmem:[%s676_s11 + $0x80] sm:$0xf]  ;;  %v849_v34 = vld [vmem:[%s676_s11 + $0x8c] sm:$0xf]  ;;  %v852_v35 = vld [vmem:[%s676_s11 + $0x88] sm:$0xf] }
  0x1d   : > { %259 = vrot.lane.b32.xlu1 %v709_v6, %s651_s12  ;;  %257 = vrot.lane.b32.xlu0 %v712_v7, %s651_s12  ;;  %v859_v36 = vld [vmem:[%s676_s11 + $0x94] sm:$0xf]  ;;  %v862_v37 = vld [vmem:[%s676_s11 + $0x90] sm:$0xf] }
  0x1e   : > { %v869_v38 = vld [vmem:[%s676_s11 + $0x9c] sm:$0xf]  ;;  %v872_v39 = vld [vmem:[%s676_s11 + $0x98] sm:$0xf]  ;;  %v879_v40 = vld [vmem:[%s676_s11 + $0xa4] sm:$0xf] }
  0x1f   : > { %v882_v41 = vld [vmem:[%s676_s11 + $0xa0] sm:$0xf]  ;;  %v889_v42 = vld [vmem:[%s676_s11 + $0xac] sm:$0xf]  ;;  %v892_v43 = vld [vmem:[%s676_s11 + $0xa8] sm:$0xf] }
  0x20   : > { %v899_v44 = vld [vmem:[%s676_s11 + $0xb4] sm:$0xf]  ;;  %v902_v45 = vld [vmem:[%s676_s11 + $0xb0] sm:$0xf]  ;;  %v909_v46 = vld [vmem:[%s676_s11 + $0xbc] sm:$0xf] }
  0x21   : > { %263 = vrot.lane.b32.xlu1 %v719_v8, %s651_s12  ;;  %261 = vrot.lane.b32.xlu0 %v722_v9, %s651_s12  ;;  %v912_v47 = vld [vmem:[%s676_s11 + $0xb8] sm:$0xf]  ;;  %v919_v48 = vld [vmem:[%s676_s11 + $0xc4] sm:$0xf] }
  0x22   : > { %v922_v49 = vld [vmem:[%s676_s11 + $0xc0] sm:$0xf]  ;;  %v929_v50 = vld [vmem:[%s676_s11 + $0xcc] sm:$0xf]  ;;  %v932_v51 = vld [vmem:[%s676_s11 + $0xc8] sm:$0xf] }
  0x23   : > { %v939_v52 = vld [vmem:[%s676_s11 + $0xd4] sm:$0xf]  ;;  %v942_v53 = vld [vmem:[%s676_s11 + $0xd0] sm:$0xf]  ;;  %v949_v54 = vld [vmem:[%s676_s11 + $0xdc] sm:$0xf] }
  0x24   : > { %1147 = vst [vmem:[#allocation2_spill] sm:$0xff] %v949_v54  ;;  %v952_v55 = vld [vmem:[%s676_s11 + $0xd8] sm:$0xf]  ;;  %v959_v56 = vld [vmem:[%s676_s11 + $0xe4] sm:$0xf] }
  0x25   : > { %267 = vrot.lane.b32.xlu1 %v729_v10, %s651_s12  ;;  %265 = vrot.lane.b32.xlu0 %v732_v11, %s651_s12  ;;  %1148 = vst [vmem:[#allocation3_spill] sm:$0xff] %v952_v55  ;;  %1149 = vst [vmem:[#allocation4_spill] sm:$0xff] %v959_v56  ;;  %v962_v57 = vld [vmem:[%s676_s11 + $0xe0] sm:$0xf]  ;;  %v970_v58 = vld [vmem:[%s676_s11 + $0xec] sm:$0xf] }
  0x26   : > { %1150 = vst [vmem:[#allocation5_spill] sm:$0xff] %v962_v57  ;;  %1151 = vst [vmem:[#allocation6_spill] sm:$0xff] %v970_v58  ;;  %v973_v59 = vld [vmem:[%s676_s11 + $0xe8] sm:$0xf] }
  0x27   : > { %1152 = vst [vmem:[#allocation7_spill] sm:$0xff] %v973_v59 }
  0x29   : > { %271 = vrot.lane.b32.xlu1 %v739_v12, %s651_s12  ;;  %269 = vrot.lane.b32.xlu0 %v742_v13, %s651_s12 }
  0x2d   : > { %275 = vrot.lane.b32.xlu1 %v749_v14, %s651_s12  ;;  %273 = vrot.lane.b32.xlu0 %v752_v15, %s651_s12 }
  0x31   : > { %279 = vrot.lane.b32.xlu1 %v759_v16, %s651_s12  ;;  %277 = vrot.lane.b32.xlu0 %v762_v17, %s651_s12 }
  0x35   : > { %283 = vrot.lane.b32.xlu1 %v769_v18, %s651_s12  ;;  %281 = vrot.lane.b32.xlu0 %v772_v19, %s651_s12 }
  0x39   : > { %287 = vrot.lane.b32.xlu1 %v779_v20, %s651_s12  ;;  %285 = vrot.lane.b32.xlu0 %v782_v21, %s651_s12 }
  0x3d   : > { %291 = vrot.lane.b32.xlu1 %v789_v22, %s651_s12  ;;  %289 = vrot.lane.b32.xlu0 %v792_v23, %s651_s12 }
  0x41   : > { %295 = vrot.lane.b32.xlu1 %v799_v24, %s651_s12  ;;  %293 = vrot.lane.b32.xlu0 %v802_v25, %s651_s12 }
  0x45   : > { %299 = vrot.lane.b32.xlu1 %v809_v26, %s651_s12  ;;  %297 = vrot.lane.b32.xlu0 %v812_v27, %s651_s12 }
  0x49   : > { %303 = vrot.lane.b32.xlu1 %v819_v28, %s651_s12  ;;  %301 = vrot.lane.b32.xlu0 %v822_v29, %s651_s12 }
  0x4d   : > { %307 = vrot.lane.b32.xlu1 %v829_v30, %s651_s12  ;;  %305 = vrot.lane.b32.xlu0 %v832_v31, %s651_s12 }
  0x51   : > { %311 = vrot.lane.b32.xlu1 %v839_v32, %s651_s12  ;;  %309 = vrot.lane.b32.xlu0 %v842_v33, %s651_s12 }
  0x55   : > { %315 = vrot.lane.b32.xlu1 %v849_v34, %s651_s12  ;;  %313 = vrot.lane.b32.xlu0 %v852_v35, %s651_s12 }
  0x59   : > { %319 = vrot.lane.b32.xlu1 %v859_v36, %s651_s12  ;;  %317 = vrot.lane.b32.xlu0 %v862_v37, %s651_s12 }
  0x5d   : > { %323 = vrot.lane.b32.xlu1 %v869_v38, %s651_s12  ;;  %321 = vrot.lane.b32.xlu0 %v872_v39, %s651_s12 }
  0x61   : > { %327 = vrot.lane.b32.xlu1 %v879_v40, %s651_s12  ;;  %325 = vrot.lane.b32.xlu0 %v882_v41, %s651_s12 }
  0x65   : > { %331 = vrot.lane.b32.xlu1 %v889_v42, %s651_s12  ;;  %329 = vrot.lane.b32.xlu0 %v892_v43, %s651_s12 }
  0x69   : > { %335 = vrot.lane.b32.xlu1 %v899_v44, %s651_s12  ;;  %333 = vrot.lane.b32.xlu0 %v902_v45, %s651_s12 }
  0x6d   : > { %339 = vrot.lane.b32.xlu1 %v909_v46, %s651_s12  ;;  %337 = vrot.lane.b32.xlu0 %v912_v47, %s651_s12 }
  0x71   : > { %343 = vrot.lane.b32.xlu1 %v919_v48, %s651_s12  ;;  %341 = vrot.lane.b32.xlu0 %v922_v49, %s651_s12 }
  0x75   : > { %347 = vrot.lane.b32.xlu1 %v929_v50, %s651_s12  ;;  %345 = vrot.lane.b32.xlu0 %v932_v51, %s651_s12 }
  0x79   : > { %351 = vrot.lane.b32.xlu1 %v939_v52, %s651_s12  ;;  %349 = vrot.lane.b32.xlu0 %v942_v53, %s651_s12 }
  0x7d   : > { %355 = vrot.lane.b32.xlu1 %v949_v54, %s651_s12  ;;  %353 = vrot.lane.b32.xlu0 %v952_v55, %s651_s12 }
  0x81   : > { %359 = vrot.lane.b32.xlu1 %v959_v56, %s651_s12  ;;  %357 = vrot.lane.b32.xlu0 %v962_v57, %s651_s12 }
  0x83   : > { %v250_v60 = vpop.permute.xlu1 %249  ;;  %v246_v61 = vpop.permute.xlu0 %245 }
  0x84   : > { %v439_v62 = vmax.bf16 %v250_v60, %v679_v0  ;;  %v437_v63 = vmax.bf16 %v246_v61, %v682_v1  ;;  %v987_v0 = vld [vmem:[%s676_s11 + $0xf4] sm:$0xf]  ;;  %v990_v1 = vld [vmem:[%s676_s11 + $0xf0] sm:$0xf] }
  0x85   : > { %363 = vrot.lane.b32.xlu1 %v970_v58, %s651_s12  ;;  %361 = vrot.lane.b32.xlu0 %v973_v59, %s651_s12  ;;  %1153 = vst [vmem:[#allocation8_spill] sm:$0xff] %v987_v0  ;;  %1154 = vst [vmem:[#allocation9_spill] sm:$0xff] %v990_v1 }
  0x86   : > { %v501_v57 = vmax.bf16 %v439_v62, %v437_v63  ;;  %v1001_v62 = vld [vmem:[%s676_s11 + $0xfc] sm:$0xf]  ;;  %v1004_v63 = vld [vmem:[%s676_s11 + $0xf8] sm:$0xf] }
  0x87   : > { %v252_v60 = vpop.permute.xlu1 %251  ;;  %v248_v61 = vpop.permute.xlu0 %247  ;;  %1155 = vst [vmem:[#allocation10_spill] sm:$0xff] %v1001_v62  ;;  %1156 = vst [vmem:[#allocation11_spill] sm:$0xff] %v1004_v63 }
  0x88   : > { %534 = vst.msk [vmem:[%s980_s16] sm:$0xf] %vm533_vm0, %v501_v57  ;;  %v440_v56 = vmax.bf16 %v252_v60, %v689_v2  ;;  %v438_v55 = vmax.bf16 %v248_v61, %v692_v3 }
  0x89   : > { %367 = vrot.lane.b32.xlu1 %v987_v0, %s651_s12  ;;  %365 = vrot.lane.b32.xlu0 %v990_v1, %s651_s12 }
  0x8a   : > { %v502_v59 = vmax.bf16 %v440_v56, %v438_v55 }
  0x8b   : > { %v256_v58 = vpop.permute.xlu1 %255  ;;  %v254_v54 = vpop.permute.xlu0 %253 }
  0x8c   : > { %535 = vst.msk [vmem:[%s980_s16 + $0x4] sm:$0xf] %vm533_vm0, %v502_v59  ;;  %v442_v55 = vmax.bf16 %v256_v58, %v699_v4  ;;  %v441_v56 = vmax.bf16 %v254_v54, %v702_v5 }
  0x8d   : > { %371 = vrot.lane.b32.xlu1 %v1001_v62, %s651_s12  ;;  %369 = vrot.lane.b32.xlu0 %v1004_v63, %s651_s12 }
  0x8f   : > { %v260_v2 = vpop.permute.xlu1 %259  ;;  %v258_v3 = vpop.permute.xlu0 %257 }
  0x90   : > { %v444_v57 = vmax.bf16 %v260_v2, %v709_v6  ;;  %v443_v60 = vmax.bf16 %v258_v3, %v712_v7 }
  0x92   : > { %v504_v61 = vmax.bf16 %v444_v57, %v442_v55  ;;  %v503_v1 = vmax.bf16 %v443_v60, %v441_v56 }
  0x93   : > { %v264_v59 = vpop.permute.xlu1 %263  ;;  %v262_v0 = vpop.permute.xlu0 %261 }
  0x94   : > { %537 = vst.msk [vmem:[%s980_s16 + $0xc] sm:$0xf] %vm533_vm0, %v504_v61  ;;  %536 = vst.msk [vmem:[%s980_s16 + $0x8] sm:$0xf] %vm533_vm0, %v503_v1  ;;  %v446_v4 = vmax.bf16 %v264_v59, %v719_v8  ;;  %v445_v5 = vmax.bf16 %v262_v0, %v722_v9 }
  0x97   : > { %v268_v63 = vpop.permute.xlu1 %267  ;;  %v266_v62 = vpop.permute.xlu0 %265 }
  0x98   : > { %v448_v6 = vmax.bf16 %v268_v63, %v729_v10  ;;  %v447_v7 = vmax.bf16 %v266_v62, %v732_v11 }
  0x9a   : > { %v506_v54 = vmax.bf16 %v448_v6, %v446_v4  ;;  %v505_v58 = vmax.bf16 %v447_v7, %v445_v5 }
  0x9b   : > { %v272_v2 = vpop.permute.xlu1 %271  ;;  %v270_v3 = vpop.permute.xlu0 %269 }
  0x9c   : > { %539 = vst.msk [vmem:[%s980_s16 + $0x14] sm:$0xf] %vm533_vm0, %v506_v54  ;;  %538 = vst.msk [vmem:[%s980_s16 + $0x10] sm:$0xf] %vm533_vm0, %v505_v58  ;;  %v450_v8 = vmax.bf16 %v272_v2, %v739_v12  ;;  %v449_v9 = vmax.bf16 %v270_v3, %v742_v13 }
  0x9f   : > { %v276_v1 = vpop.permute.xlu1 %275  ;;  %v274_v55 = vpop.permute.xlu0 %273 }
  0xa0   : > { %v452_v10 = vmax.bf16 %v276_v1, %v749_v14  ;;  %v451_v11 = vmax.bf16 %v274_v55, %v752_v15 }
  0xa2   : > { %v508_v0 = vmax.bf16 %v452_v10, %v450_v8  ;;  %v507_v62 = vmax.bf16 %v451_v11, %v449_v9 }
  0xa3   : > { %v280_v63 = vpop.permute.xlu1 %279  ;;  %v278_v56 = vpop.permute.xlu0 %277 }
  0xa4   : > { %541 = vst.msk [vmem:[%s980_s16 + $0x1c] sm:$0xf] %vm533_vm0, %v508_v0  ;;  %540 = vst.msk [vmem:[%s980_s16 + $0x18] sm:$0xf] %vm533_vm0, %v507_v62  ;;  %v454_v12 = vmax.bf16 %v280_v63, %v759_v16  ;;  %v453_v13 = vmax.bf16 %v278_v56, %v762_v17 }
  0xa7   : > { %v284_v57 = vpop.permute.xlu1 %283  ;;  %v282_v60 = vpop.permute.xlu0 %281 }
  0xa8   : > { %v456_v14 = vmax.bf16 %v284_v57, %v769_v18  ;;  %v455_v15 = vmax.bf16 %v282_v60, %v772_v19 }
  0xaa   : > { %v510_v61 = vmax.bf16 %v456_v14, %v454_v12  ;;  %v509_v59 = vmax.bf16 %v455_v15, %v453_v13 }
  0xab   : > { %v288_v4 = vpop.permute.xlu1 %287  ;;  %v286_v5 = vpop.permute.xlu0 %285 }
  0xac   : > { %543 = vst.msk [vmem:[%s980_s16 + $0x24] sm:$0xf] %vm533_vm0, %v510_v61  ;;  %542 = vst.msk [vmem:[%s980_s16 + $0x20] sm:$0xf] %vm533_vm0, %v509_v59  ;;  %v458_v16 = vmax.bf16 %v288_v4, %v779_v20  ;;  %v457_v17 = vmax.bf16 %v286_v5, %v782_v21 }
  0xaf   : > { %v292_v6 = vpop.permute.xlu1 %291  ;;  %v290_v7 = vpop.permute.xlu0 %289 }
  0xb0   : > { %v460_v18 = vmax.bf16 %v292_v6, %v789_v22  ;;  %v459_v19 = vmax.bf16 %v290_v7, %v792_v23 }
  0xb2   : > { %v512_v54 = vmax.bf16 %v460_v18, %v458_v16  ;;  %v511_v58 = vmax.bf16 %v459_v19, %v457_v17 }
  0xb3   : > { %v296_v2 = vpop.permute.xlu1 %295  ;;  %v294_v3 = vpop.permute.xlu0 %293 }
  0xb4   : > { %545 = vst.msk [vmem:[%s980_s16 + $0x2c] sm:$0xf] %vm533_vm0, %v512_v54  ;;  %544 = vst.msk [vmem:[%s980_s16 + $0x28] sm:$0xf] %vm533_vm0, %v511_v58  ;;  %v462_v20 = vmax.bf16 %v296_v2, %v799_v24  ;;  %v461_v21 = vmax.bf16 %v294_v3, %v802_v25 }
  0xb7   : > { %v300_v1 = vpop.permute.xlu1 %299  ;;  %v298_v55 = vpop.permute.xlu0 %297 }
  0xb8   : > { %v464_v22 = vmax.bf16 %v300_v1, %v809_v26  ;;  %v463_v23 = vmax.bf16 %v298_v55, %v812_v27 }
  0xba   : > { %v514_v8 = vmax.bf16 %v464_v22, %v462_v20  ;;  %v513_v9 = vmax.bf16 %v463_v23, %v461_v21 }
  0xbb   : > { %v304_v10 = vpop.permute.xlu1 %303  ;;  %v302_v11 = vpop.permute.xlu0 %301 }
  0xbc   : > { %547 = vst.msk [vmem:[%s980_s16 + $0x34] sm:$0xf] %vm533_vm0, %v514_v8  ;;  %546 = vst.msk [vmem:[%s980_s16 + $0x30] sm:$0xf] %vm533_vm0, %v513_v9  ;;  %v466_v24 = vmax.bf16 %v304_v10, %v819_v28  ;;  %v465_v25 = vmax.bf16 %v302_v11, %v822_v29 }
  0xbf   : > { %v308_v0 = vpop.permute.xlu1 %307  ;;  %v306_v62 = vpop.permute.xlu0 %305 }
  0xc0   : > { %v468_v26 = vmax.bf16 %v308_v0, %v829_v30  ;;  %v467_v27 = vmax.bf16 %v306_v62, %v832_v31 }
  0xc2   : > { %v516_v63 = vmax.bf16 %v468_v26, %v466_v24  ;;  %v515_v56 = vmax.bf16 %v467_v27, %v465_v25  ;;  %v1157_v26 = vld [vmem:[#allocation2_spill] sm:$0xff]  ;;  %v1158_v27 = vld [vmem:[#allocation3_spill] sm:$0xff] }
  0xc3   : > { %v312_v57 = vpop.permute.xlu1 %311  ;;  %v310_v60 = vpop.permute.xlu0 %309 }
  0xc4   : > { %549 = vst.msk [vmem:[%s980_s16 + $0x3c] sm:$0xf] %vm533_vm0, %v516_v63  ;;  %548 = vst.msk [vmem:[%s980_s16 + $0x38] sm:$0xf] %vm533_vm0, %v515_v56  ;;  %v470_v28 = vmax.bf16 %v312_v57, %v839_v32  ;;  %v469_v29 = vmax.bf16 %v310_v60, %v842_v33 }
  0xc7   : > { %v316_v12 = vpop.permute.xlu1 %315  ;;  %v314_v13 = vpop.permute.xlu0 %313 }
  0xc8   : > { %v472_v30 = vmax.bf16 %v316_v12, %v849_v34  ;;  %v471_v31 = vmax.bf16 %v314_v13, %v852_v35 }
  0xca   : > { %v518_v14 = vmax.bf16 %v472_v30, %v470_v28  ;;  %v517_v15 = vmax.bf16 %v471_v31, %v469_v29  ;;  %v1159_v28 = vld [vmem:[#allocation4_spill] sm:$0xff]  ;;  %v1160_v29 = vld [vmem:[#allocation5_spill] sm:$0xff]  ;;  %v1161_v30 = vld [vmem:[#allocation6_spill] sm:$0xff] }
  0xcb   : > { %v320_v61 = vpop.permute.xlu1 %319  ;;  %v318_v59 = vpop.permute.xlu0 %317 }
  0xcc   : > { %551 = vst.msk [vmem:[%s980_s16 + $0x44] sm:$0xf] %vm533_vm0, %v518_v14  ;;  %550 = vst.msk [vmem:[%s980_s16 + $0x40] sm:$0xf] %vm533_vm0, %v517_v15  ;;  %v474_v32 = vmax.bf16 %v320_v61, %v859_v36  ;;  %v473_v33 = vmax.bf16 %v318_v59, %v862_v37  ;;  %v1162_v14 = vld [vmem:[#allocation7_spill] sm:$0xff] }
  0xcf   : > { %v324_v4 = vpop.permute.xlu1 %323  ;;  %v322_v5 = vpop.permute.xlu0 %321 }
  0xd0   : > { %v476_v34 = vmax.bf16 %v324_v4, %v869_v38  ;;  %v475_v35 = vmax.bf16 %v322_v5, %v872_v39 }
  0xd2   : > { %v520_v6 = vmax.bf16 %v476_v34, %v474_v32  ;;  %v519_v7 = vmax.bf16 %v475_v35, %v473_v33  ;;  %v1163_v34 = vld [vmem:[#allocation8_spill] sm:$0xff] }
  0xd3   : > { %v328_v16 = vpop.permute.xlu1 %327  ;;  %v326_v17 = vpop.permute.xlu0 %325 }
  0xd4   : > { %553 = vst.msk [vmem:[%s980_s16 + $0x4c] sm:$0xf] %vm533_vm0, %v520_v6  ;;  %552 = vst.msk [vmem:[%s980_s16 + $0x48] sm:$0xf] %vm533_vm0, %v519_v7  ;;  %v478_v36 = vmax.bf16 %v328_v16, %v879_v40  ;;  %v477_v37 = vmax.bf16 %v326_v17, %v882_v41  ;;  %v1164_v6 = vld [vmem:[#allocation9_spill] sm:$0xff]  ;;  %v1165_v16 = vld [vmem:[#allocation10_spill] sm:$0xff] }
  0xd7   : > { %v332_v18 = vpop.permute.xlu1 %331  ;;  %v330_v19 = vpop.permute.xlu0 %329 }
  0xd8   : > { %v480_v38 = vmax.bf16 %v332_v18, %v889_v42  ;;  %v479_v39 = vmax.bf16 %v330_v19, %v892_v43  ;;  %v1166_v18 = vld [vmem:[#allocation11_spill] sm:$0xff] }
  0xda   : > { %v522_v54 = vmax.bf16 %v480_v38, %v478_v36  ;;  %v521_v58 = vmax.bf16 %v479_v39, %v477_v37 }
  0xdb   : > { %v336_v2 = vpop.permute.xlu1 %335  ;;  %v334_v3 = vpop.permute.xlu0 %333 }
  0xdc   : > { %555 = vst.msk [vmem:[%s980_s16 + $0x54] sm:$0xf] %vm533_vm0, %v522_v54  ;;  %554 = vst.msk [vmem:[%s980_s16 + $0x50] sm:$0xf] %vm533_vm0, %v521_v58  ;;  %v482_v40 = vmax.bf16 %v336_v2, %v899_v44  ;;  %v481_v41 = vmax.bf16 %v334_v3, %v902_v45 }
  0xdf   : > { %v340_v1 = vpop.permute.xlu1 %339  ;;  %v338_v55 = vpop.permute.xlu0 %337 }
  0xe0   : > { %v484_v42 = vmax.bf16 %v340_v1, %v909_v46  ;;  %v483_v43 = vmax.bf16 %v338_v55, %v912_v47 }
  0xe2   : > { %v524_v20 = vmax.bf16 %v484_v42, %v482_v40  ;;  %v523_v21 = vmax.bf16 %v483_v43, %v481_v41 }
  0xe3   : > { %v344_v22 = vpop.permute.xlu1 %343  ;;  %v342_v23 = vpop.permute.xlu0 %341 }
  0xe4   : > { %557 = vst.msk [vmem:[%s980_s16 + $0x5c] sm:$0xf] %vm533_vm0, %v524_v20  ;;  %556 = vst.msk [vmem:[%s980_s16 + $0x58] sm:$0xf] %vm533_vm0, %v523_v21  ;;  %v486_v44 = vmax.bf16 %v344_v22, %v919_v48  ;;  %v485_v45 = vmax.bf16 %v342_v23, %v922_v49 }
  0xe7   : > { %v348_v8 = vpop.permute.xlu1 %347  ;;  %v346_v9 = vpop.permute.xlu0 %345 }
  0xe8   : > { %v488_v46 = vmax.bf16 %v348_v8, %v929_v50  ;;  %v487_v47 = vmax.bf16 %v346_v9, %v932_v51 }
  0xea   : > { %v526_v10 = vmax.bf16 %v488_v46, %v486_v44  ;;  %v525_v11 = vmax.bf16 %v487_v47, %v485_v45 }
  0xeb   : > { %v352_v0 = vpop.permute.xlu1 %351  ;;  %v350_v62 = vpop.permute.xlu0 %349 }
  0xec   : > { %559 = vst.msk [vmem:[%s980_s16 + $0x64] sm:$0xf] %vm533_vm0, %v526_v10  ;;  %558 = vst.msk [vmem:[%s980_s16 + $0x60] sm:$0xf] %vm533_vm0, %v525_v11  ;;  %v490_v48 = vmax.bf16 %v352_v0, %v939_v52  ;;  %v489_v49 = vmax.bf16 %v350_v62, %v942_v53 }
  0xef   : > { %v356_v24 = vpop.permute.xlu1 %355  ;;  %v354_v25 = vpop.permute.xlu0 %353 }
  0xf0   : > { %v492_v50 = vmax.bf16 %v356_v24, %v1157_v26  ;;  %v491_v51 = vmax.bf16 %v354_v25, %v1158_v27 }
  0xf2   : > { %v528_v63 = vmax.bf16 %v492_v50, %v490_v48  ;;  %v527_v56 = vmax.bf16 %v491_v51, %v489_v49 }
  0xf3   : > { %v360_v57 = vpop.permute.xlu1 %359  ;;  %v358_v60 = vpop.permute.xlu0 %357 }
  0xf4   : > { %561 = vst.msk [vmem:[%s980_s16 + $0x6c] sm:$0xf] %vm533_vm0, %v528_v63  ;;  %560 = vst.msk [vmem:[%s980_s16 + $0x68] sm:$0xf] %vm533_vm0, %v527_v56  ;;  %v494_v52 = vmax.bf16 %v360_v57, %v1159_v28  ;;  %v493_v53 = vmax.bf16 %v358_v60, %v1160_v29 }
  0xf7   : > { %v364_v12 = vpop.permute.xlu1 %363  ;;  %v362_v13 = vpop.permute.xlu0 %361 }
  0xf8   : > { %v496_v31 = vmax.bf16 %v364_v12, %v1161_v30  ;;  %v495_v15 = vmax.bf16 %v362_v13, %v1162_v14 }
  0xfa   : > { %v530_v61 = vmax.bf16 %v496_v31, %v494_v52  ;;  %v529_v59 = vmax.bf16 %v495_v15, %v493_v53 }
  0xfb   : > { %v368_v4 = vpop.permute.xlu1 %367  ;;  %v366_v5 = vpop.permute.xlu0 %365 }
  0xfc   : > { %563 = vst.msk [vmem:[%s980_s16 + $0x74] sm:$0xf] %vm533_vm0, %v530_v61  ;;  %562 = vst.msk [vmem:[%s980_s16 + $0x70] sm:$0xf] %vm533_vm0, %v529_v59  ;;  %v498_v35 = vmax.bf16 %v368_v4, %v1163_v34  ;;  %v497_v7 = vmax.bf16 %v366_v5, %v1164_v6 }
  0xff   : > { %v372_v32 = vpop.permute.xlu1 %371  ;;  %v370_v33 = vpop.permute.xlu0 %369 }
 0x100   : > { %v500_v17 = vmax.bf16 %v372_v32, %v1165_v16  ;;  %v499_v19 = vmax.bf16 %v370_v33, %v1166_v18 }
 0x102   : > { %v532_v36 = vmax.bf16 %v500_v17, %v498_v35  ;;  %v531_v37 = vmax.bf16 %v499_v19, %v497_v7 }
 0x104   : > { %565 = vst.msk [vmem:[%s980_s16 + $0x7c] sm:$0xf] %vm533_vm0, %v532_v36  ;;  %564 = vst.msk [vmem:[%s980_s16 + $0x78] sm:$0xf] %vm533_vm0, %v531_v37 }
 0x105 PF: > { %s11_s6 = sadd.s32 1, %s649_s6  }
 0x106   : > { %p8_p4 = scmp.ge.s32.totalorder %s11_s6, 4  }
 0x108   :  { %10 = sbr.rel (!%p8_p4) target bundleno = 1 (0x1), region = 54 }

// kernel: cnn_distillation_forward.14
= control target key start
LH: loop header
LB: loop body
LE: loop exit
PB: predicated region body
PF: predicated region fallthrough
CT: control target
= control target key end

     0   :  { %12 = vsyncpa [#allocation4], 0  ;;  %s8266_s0 = inlined_call_operand.vmem [shape: bf16[8,7296], index: 0, kind: input, shape index: {}]   ;;  %s8267_s1 = inlined_call_operand.hbm [shape: bf16[7296,512], index: 1, kind: input, shape index: {}]   ;;  %s8268_s2 = inlined_call_operand.vmem [shape: f32[8,512], index: 2, kind: input, shape index: {}]   ;;  %s8269_s3 = inlined_call_operand.hbm [shape: bf16[512,128], index: 3, kind: input, shape index: {}]   ;;  %s8270_s4 = inlined_call_operand.vmem [shape: f32[8,128], index: 4, kind: input, shape index: {}]   ;;  %s8271_s5 = inlined_call_operand.vmem [shape: f32[8,512], index: 5, kind: output, shape index: {0}]   ;;  %s8272_s6 = inlined_call_operand.vmem [shape: f32[8,128], index: 6, kind: output, shape index: {1}]  }
   0x1   :  { %14 = vsyncpa [#allocation4 + $0x1], 0 }
   0x2   :  { %15 = vsyncpa [#allocation6], 0  ;;  %s7339_s21 = smov 0   ;;  %s7341_s22 = smov 0  }
   0x3   :  { %s7343_s23 = smov 0   ;;  %s7345_s24 = smov 0  }
   0x4   :  { %s7347_s25 = smov 0   ;;  %s7349_s26 = smov 0  }
   0x5 LB: > { %s5426_s27 = sadd.s32 4294967295, %s7294_s26   ;;  %p81_p0 = scmp.ne.s32.totalorder %s7278_s22, %s7274_s21  ;;  %s7294_s26 = sphi %s7349_s26, %s21_s26   ;;  %s7290_s25 = sphi %s7347_s25, %s8283_s25   ;;  %s7286_s24 = sphi %s7345_s24, %s8282_s24   ;;  %s7282_s23 = sphi %s7343_s23, %s8281_s23   ;;  %s7278_s22 = sphi %s7341_s22, %s8280_s22   ;;  %s7274_s21 = sphi %s7339_s21, %s8279_s21  }
   0x6   : > { %p7369_p1 = scmp.eq.s32.totalorder %s5426_s27, 0  ;;  %p5427_p2 = scmp.ge.s32.totalorder %s7294_s26, 1 }
   0x7   : > { %p207_p3 = scmp.lt.s32.totalorder %s7294_s26, 4  ;;  %s7296_s7 = smov [#allocation5]  }
   0x8   : > { %p7377_p4 = por %p7369_p1, %p81_p0  ;;  %s222_s8 = sshll.u32 %s7296_s7, 4  ;;  %s223_s8 = int_to_ptr.vmem [resolvable:$true] %s222_s8 }
   0x9   : > { %p7381_p5 = pnand %p5427_p2, %p207_p3  ;;  %s30_s10 = sadd.s32 1, %s7290_s25 }
   0xa   : > { %s7197_s11 = scalar_lea.vmem %s223_s8, 4096  ;;  %p7205_p12 = scmp.lt.s32.totalorder %s223_s8, %s223_s8 }
   0xb   : > { %p6156_p6 = pneg %p7381_p5  ;;  %p7198_p9 = scmp.ne.s32.totalorder %s223_s8, %s7197_s11 }
   0xc   : > { %p7206_p13 = scmp.lt.s32.totalorder %s7197_s11, %s7197_s11 }
   0xd   : > { %p7389_p7 = pnand %p6156_p6, %p7369_p1 }
   0xe   : > { %p7207_p0 = por %p7206_p13, %p7205_p12 }
   0xf   : > { %p7188_p8 = pneg %p7389_p7 }
  0x11   : > { %p7200_p10 = pnand %p7198_p9, %p7188_p8 }
  0x13   : > { %p7201_p11 = pneg %p7200_p10 }
  0x15   : > { %p7208_p2 = pnand %p7207_p0, %p7201_p11 }
  0x17   : > { %7211 = shalt.err (!%p7208_p2)
}
  0x18   : > { %s7297_s12 = smov 64   ;;  %s7298_s13 = smov 4  }
  0x19   : > { %6159 = dma.hbm_to_vmem [thread:$0]  (!%p7389_p7), %s8269_s3, 4096, %s223_s8, [#allocation6], %s7297_s12, %s7297_s12, %s7298_s13  }
  0x1a   : > { %p31_p3 = scmp.ge.s32.totalorder %s30_s10, 3  ;;  %s68_s16 = sadd.s32 1, %s7282_s23 }
  0x1b   : > { %p75_p6 = scmp.ne.s32.totalorder %s7282_s23, %s7278_s22  ;;  %p76_p8 = scmp.eq.s32.totalorder %s7294_s26, 0 }
  0x1c   : > { %s8285_s10 = smov (%p31_p3, %s30_s10), 0  ;;  %p6165_p10 = scmp.lt.s32.totalorder %s7294_s26, 3 }
  0x1d   : > { %p77_p9 = por %p76_p8, %p75_p6  ;;  %s65_s17 = ssub.s32 %s7290_s25, %s8285_s10 }
  0x1e   : > { %s252_s18 = sand.u32 1, %s7282_s23   ;;  %p66_p11 = scmp.eq.s32.totalorder %s65_s17, 0 }
  0x1f   : > { %s6148_s19 = smul.u32 4864, %s252_s18  ;;  %p7411_p12 = pnand %p6165_p10, %p77_p9 }
  0x20   : > { %s7416_s21 = scalar_select %p66_p11, %s7282_s23, %s68_s16  }
  0x21   : > { %s6103_s27 = smul.u32 77824, %s7290_s25  ;;  %s256_s7 = scalar_lea.vmem [#allocation3], %s6148_s19 }
  0x22   : > { %s264_s8 = sshll.u32 %s256_s7, 4  ;;  %s253_s13 = scalar_lea.sflag [#allocation4], %s252_s18  ;;  %s265_s8 = int_to_ptr.vmem [resolvable:$true] %s264_s8 }
  0x23   : > { %s263_s12 = scalar_lea.hbm %s8267_s1, %s6103_s27  ;;  %p7214_p7 = pneg %p7411_p12 }
  0x24   : > { %s7225_s14 = scalar_lea.vmem %s265_s8, 77824  ;;  %s7299_s15 = smov [#allocation3]  }
  0x25   : > { %p7226_p13 = scmp.ne.s32.totalorder %s265_s8, %s7225_s14  ;;  %s7230_s17 = sshll.u32 %s7299_s15, 4  ;;  %s7231_s17 = int_to_ptr.vmem [resolvable:$false] %s7230_s17 }
  0x26   : > { %s7232_s16 = scalar_lea.vmem %s7231_s17, 155648  ;;  %p7233_p3 = scmp.lt.s32.totalorder %s265_s8, %s7231_s17 }
  0x27   : > { %p7228_p0 = pnand %p7226_p13, %p7214_p7  ;;  %p7234_p6 = scmp.lt.s32.totalorder %s7232_s16, %s7225_s14 }
  0x29   : > { %p7229_p2 = pneg %p7228_p0  ;;  %p7235_p8 = por %p7234_p6, %p7233_p3 }
  0x2b   : > { %p7236_p9 = pnand %p7235_p8, %p7229_p2 }
  0x2d   : > { %7239 = shalt.err (!%p7236_p9)
}
  0x2e   : > { %s7300_s19 = smov 256   ;;  %s7301_s27 = smov 16  }
  0x2f   : > { %6163 = dma.hbm_to_vmem [thread:$0]  (!%p7411_p12), %s263_s12, 77824, %s265_s8, %s253_s13, %s7300_s19, %s7300_s19, %s7301_s27  }
  0x30   : > { %276 = sbr.rel (%p7381_p5) target bundleno = 1114 (0x45a), region = 40  ;;  %s278_s18 = sand.u32 (!%p7381_p5), 1, %s7278_s22  }
  0x31   : > { %s6149_s7 = smul.u32 (!%p7381_p5), 4864, %s278_s18  ;;  %s279_s9 = scalar_lea.sflag (!%p7381_p5), [#allocation4], %s278_s18 }
  0x33   : > { %s7429_s11 = scalar_lea.vmem (!%p7381_p5), [#allocation3], %s6149_s7 }
  0x35   : > { %7265 = dma.done.wait (%p7377_p4), %s279_s9, 77824  }
  0x36   : > { %7267 = vsyncadd (%p7377_p4), %s279_s9, 4294889472 }
  0x37   : > { %7269 = dma.done.wait (%p7369_p1), [#allocation6], 4096  }
  0x38   : > { %7271 = vsyncadd (%p7369_p1), [#allocation6], 4294963200  ;;  %s328_s30 = smul.u32 19, %s7286_s24  ;;  %p5435_p10 = scmp.ne.s32.totalorder %s7286_s24, 0 }
  0x3a   : > { %p331_p5 = scmp.lt.s32.totalorder %s328_s30, 56  ;;  %352 = sbr.rel (%p5435_p10) target bundleno = 66 (0x42), region = 52 }
  0x3c   : > { %s8287_s30 = smov (!%p331_p5, %s328_s30), 56 }
  0x3d   : > { %s5434_s20 = sshll.u32 %s8287_s30, 2 }
  0x3e   : > { %s7443_s13 = scalar_lea.vmem %s8266_s0, %s5434_s20 }
  0x3f   : > { %v7302_v0 = vmov 0.0  }
  0x40   : > { %353 = vst [vmem:[#allocation2 + $0x10] sm:$0xff] %v7302_v0  ;;  %354 = vst [vmem:[#allocation2] sm:$0xff] %v7302_v0 }
  0x41   : > { %355 = vst [vmem:[#allocation2 + $0x18] sm:$0xff] %v7302_v0  ;;  %356 = vst [vmem:[#allocation2 + $0x8] sm:$0xff] %v7302_v0 }
  0x42 PF: > { %v6222_v1 = vld [vmem:[%s7429_s11 + $0xe4] ss:$16 sps:$4 sm:$0xff]   ;;  %v6226_v3 = vld [vmem:[%s7429_s11 + $0xe0] ss:$16 sps:$4 sm:$0xff]   ;;  %v362_v49 = vld [vmem:[%s7443_s13 + $0x8] sm:$0xff]  ;;  %p6063_p1 = scmp.ne.s32.totalorder %s7286_s24, 2 }
  0x43   : > { %v6224_v2 = vld [vmem:[%s7429_s11 + $0x2e4] ss:$16 sps:$4 sm:$0xff]   ;;  %4086 = vmatprep.subr.bf16.mxu0 %v6222_v1  ;;  %v6227_v4 = vld [vmem:[%s7429_s11 + $0x2e0] ss:$16 sps:$4 sm:$0xff]   ;;  %v7498_v52 = vcombine.high %v362_v49, %v362_v49 }
  0x44   : > { %4127 = vmatprep.subr.bf16.mxu1 %v6224_v2  ;;  %v6228_v5 = vld [vmem:[%s7429_s11 + $0xc4] ss:$16 sps:$4 sm:$0xff]   ;;  %4087 = vmatpush1.bf16.msra.mxu0 %v6226_v3  ;;  %v6232_v7 = vld [vmem:[%s7429_s11 + $0xc0] ss:$16 sps:$4 sm:$0xff]  }
  0x45   : > { %4128 = vmatpush1.bf16.msra.mxu1 %v6227_v4  ;;  %v6230_v6 = vld [vmem:[%s7429_s11 + $0x2c4] ss:$16 sps:$4 sm:$0xff]   ;;  %4088 = vmatprep.subr.bf16.mxu0 %v6228_v5  ;;  %v6233_v8 = vld [vmem:[%s7429_s11 + $0x2c0] ss:$16 sps:$4 sm:$0xff]  }
  0x46   : > { %4129 = vmatprep.subr.bf16.mxu1 %v6230_v6  ;;  %v6234_v9 = vld [vmem:[%s7429_s11 + $0xa4] ss:$16 sps:$4 sm:$0xff]   ;;  %v6238_v11 = vld [vmem:[%s7429_s11 + $0xa0] ss:$16 sps:$4 sm:$0xff]   ;;  %4159 = vmatprep.mubr.bf16.mxu1 %v7498_v52 }
  0x47   : > { %v6236_v10 = vld [vmem:[%s7429_s11 + $0x2a4] ss:$16 sps:$4 sm:$0xff]   ;;  %v6239_v12 = vld [vmem:[%s7429_s11 + $0x2a0] ss:$16 sps:$4 sm:$0xff]  }
  0x48   : > { %4089 = vmatpush1.bf16.msra.mxu0 %v6232_v7  ;;  %v6240_v13 = vld [vmem:[%s7429_s11 + $0x84] ss:$16 sps:$4 sm:$0xff]   ;;  %v6244_v15 = vld [vmem:[%s7429_s11 + $0x80] ss:$16 sps:$4 sm:$0xff]  }
  0x49   : > { %4130 = vmatpush1.bf16.msra.mxu1 %v6233_v8  ;;  %4090 = vmatprep.subr.bf16.mxu0 %v6234_v9  ;;  %v6242_v14 = vld [vmem:[%s7429_s11 + $0x284] ss:$16 sps:$4 sm:$0xff]   ;;  %v6245_v16 = vld [vmem:[%s7429_s11 + $0x280] ss:$16 sps:$4 sm:$0xff]   ;;  %v7522_v8 = vcombine.low %v362_v49, %v362_v49 }
  0x4a   : > { %4131 = vmatprep.subr.bf16.mxu1 %v6236_v10  ;;  %v6246_v17 = vld [vmem:[%s7429_s11 + $0x64] ss:$16 sps:$4 sm:$0xff]   ;;  %v6250_v19 = vld [vmem:[%s7429_s11 + $0x60] ss:$16 sps:$4 sm:$0xff]  }
  0x4b   : > { %v6248_v18 = vld [vmem:[%s7429_s11 + $0x264] ss:$16 sps:$4 sm:$0xff]   ;;  %v6251_v20 = vld [vmem:[%s7429_s11 + $0x260] ss:$16 sps:$4 sm:$0xff]  }
  0x4c   : > { %4091 = vmatpush1.bf16.msra.mxu0 %v6238_v11  ;;  %v6252_v21 = vld [vmem:[%s7429_s11 + $0x44] ss:$16 sps:$4 sm:$0xff]   ;;  %v6256_v23 = vld [vmem:[%s7429_s11 + $0x40] ss:$16 sps:$4 sm:$0xff]  }
  0x4d   : > { %4132 = vmatpush1.bf16.msra.mxu1 %v6239_v12  ;;  %4092 = vmatprep.subr.bf16.mxu0 %v6240_v13  ;;  %v6254_v22 = vld [vmem:[%s7429_s11 + $0x244] ss:$16 sps:$4 sm:$0xff]   ;;  %v6257_v24 = vld [vmem:[%s7429_s11 + $0x240] ss:$16 sps:$4 sm:$0xff]  }
  0x4e   : > { %4133 = vmatprep.subr.bf16.mxu1 %v6242_v14  ;;  %v6258_v25 = vld [vmem:[%s7429_s11 + $0x24] ss:$16 sps:$4 sm:$0xff]   ;;  %v6262_v27 = vld [vmem:[%s7429_s11 + $0x20] ss:$16 sps:$4 sm:$0xff]  }
  0x4f   : > { %v6260_v26 = vld [vmem:[%s7429_s11 + $0x224] ss:$16 sps:$4 sm:$0xff]   ;;  %v6263_v28 = vld [vmem:[%s7429_s11 + $0x220] ss:$16 sps:$4 sm:$0xff]  }
  0x50   : > { %4093 = vmatpush1.bf16.msra.mxu0 %v6244_v15  ;;  %v6264_v29 = vld [vmem:[%s7429_s11 + $0x4] ss:$16 sps:$4 sm:$0xff]   ;;  %v6268_v31 = vld [vmem:[%s7429_s11] ss:$16 sps:$4 sm:$0xff]  }
  0x51   : > { %4134 = vmatpush1.bf16.msra.mxu1 %v6245_v16  ;;  %4094 = vmatprep.subr.bf16.mxu0 %v6246_v17  ;;  %v6266_v30 = vld [vmem:[%s7429_s11 + $0x204] ss:$16 sps:$4 sm:$0xff]   ;;  %v6269_v32 = vld [vmem:[%s7429_s11 + $0x200] ss:$16 sps:$4 sm:$0xff]  }
  0x52   : > { %4135 = vmatprep.subr.bf16.mxu1 %v6248_v18  ;;  %v6270_v33 = vld [vmem:[%s7429_s11 + $0x1e4] ss:$16 sps:$4 sm:$0xff]   ;;  %v6274_v35 = vld [vmem:[%s7429_s11 + $0x1e0] ss:$16 sps:$4 sm:$0xff]  }
  0x53   : > { %v6272_v34 = vld [vmem:[%s7429_s11 + $0x3e4] ss:$16 sps:$4 sm:$0xff]   ;;  %v6275_v36 = vld [vmem:[%s7429_s11 + $0x3e0] ss:$16 sps:$4 sm:$0xff]  }
  0x54   : > { %4095 = vmatpush1.bf16.msra.mxu0 %v6250_v19  ;;  %v6276_v37 = vld [vmem:[%s7429_s11 + $0x1c4] ss:$16 sps:$4 sm:$0xff]   ;;  %v6280_v39 = vld [vmem:[%s7429_s11 + $0x1c0] ss:$16 sps:$4 sm:$0xff]  }
  0x55   : > { %4136 = vmatpush1.bf16.msra.mxu1 %v6251_v20  ;;  %4096 = vmatprep.subr.bf16.mxu0 %v6252_v21  ;;  %v6278_v38 = vld [vmem:[%s7429_s11 + $0x3c4] ss:$16 sps:$4 sm:$0xff]   ;;  %v6281_v40 = vld [vmem:[%s7429_s11 + $0x3c0] ss:$16 sps:$4 sm:$0xff]  }
  0x56   : > { %4137 = vmatprep.subr.bf16.mxu1 %v6254_v22  ;;  %v6282_v41 = vld [vmem:[%s7429_s11 + $0x1a4] ss:$16 sps:$4 sm:$0xff]   ;;  %v6286_v43 = vld [vmem:[%s7429_s11 + $0x1a0] ss:$16 sps:$4 sm:$0xff]  }
  0x57   : > { %v6284_v42 = vld [vmem:[%s7429_s11 + $0x3a4] ss:$16 sps:$4 sm:$0xff]   ;;  %v6287_v44 = vld [vmem:[%s7429_s11 + $0x3a0] ss:$16 sps:$4 sm:$0xff]  }
  0x58   : > { %4097 = vmatpush1.bf16.msra.mxu0 %v6256_v23  ;;  %v6288_v45 = vld [vmem:[%s7429_s11 + $0x184] ss:$16 sps:$4 sm:$0xff]   ;;  %v6292_v50 = vld [vmem:[%s7429_s11 + $0x180] ss:$16 sps:$4 sm:$0xff]  }
  0x59   : > { %4138 = vmatpush1.bf16.msra.mxu1 %v6257_v24  ;;  %4098 = vmatprep.subr.bf16.mxu0 %v6258_v25  ;;  %v6290_v46 = vld [vmem:[%s7429_s11 + $0x384] ss:$16 sps:$4 sm:$0xff]   ;;  %v6293_v51 = vld [vmem:[%s7429_s11 + $0x380] ss:$16 sps:$4 sm:$0xff]  }
  0x5a   : > { %4139 = vmatprep.subr.bf16.mxu1 %v6260_v26  ;;  %v361_v47 = vld [vmem:[%s7443_s13] sm:$0xff] }
  0x5b   : > { %v7493_v48 = vcombine.high %v361_v47, %v361_v47  ;;  %v6294_v53 = vld [vmem:[%s7429_s11 + $0x164] ss:$16 sps:$4 sm:$0xff]   ;;  %v6298_v55 = vld [vmem:[%s7429_s11 + $0x160] ss:$16 sps:$4 sm:$0xff]   ;;  %v7520_v7 = vcombine.low %v361_v47, %v361_v47 }
  0x5c   : > { %4099 = vmatpush1.bf16.msra.mxu0 %v6262_v27  ;;  %v6296_v54 = vld [vmem:[%s7429_s11 + $0x364] ss:$16 sps:$4 sm:$0xff]   ;;  %v6299_v56 = vld [vmem:[%s7429_s11 + $0x360] ss:$16 sps:$4 sm:$0xff]  }
  0x5d   : > { %4140 = vmatpush1.bf16.msra.mxu1 %v6263_v28  ;;  %4100 = vmatprep.subr.bf16.mxu0 %v6264_v29  ;;  %v6300_v57 = vld [vmem:[%s7429_s11 + $0x144] ss:$16 sps:$4 sm:$0xff]   ;;  %v6304_v59 = vld [vmem:[%s7429_s11 + $0x140] ss:$16 sps:$4 sm:$0xff]  }
  0x5e   : > { %4141 = vmatprep.subr.bf16.mxu1 %v6266_v30  ;;  %4118 = vmatprep.mubr.bf16.mxu0 %v7493_v48  ;;  %v6302_v58 = vld [vmem:[%s7429_s11 + $0x344] ss:$16 sps:$4 sm:$0xff]   ;;  %v6305_v60 = vld [vmem:[%s7429_s11 + $0x340] ss:$16 sps:$4 sm:$0xff]  }
  0x5f   : > { %v6306_v61 = vld [vmem:[%s7429_s11 + $0x124] ss:$16 sps:$4 sm:$0xff]   ;;  %v6310_v63 = vld [vmem:[%s7429_s11 + $0x120] ss:$16 sps:$4 sm:$0xff]  }
  0x60   : > { %4101 = vmatpush1.bf16.msra.mxu0 %v6268_v31  ;;  %v6308_v62 = vld [vmem:[%s7429_s11 + $0x324] ss:$16 sps:$4 sm:$0xff]   ;;  %v6311_v0 = vld [vmem:[%s7429_s11 + $0x320] ss:$16 sps:$4 sm:$0xff]  }
  0x61   : > { %4142 = vmatpush1.bf16.msra.mxu1 %v6269_v32  ;;  %4102 = vmatprep.subr.bf16.mxu0 %v6270_v33  ;;  %v6312_v1 = vld [vmem:[%s7429_s11 + $0x104] ss:$16 sps:$4 sm:$0xff]   ;;  %v6316_v3 = vld [vmem:[%s7429_s11 + $0x100] ss:$16 sps:$4 sm:$0xff]  }
  0x62   : > { %4143 = vmatprep.subr.bf16.mxu1 %v6272_v34  ;;  %v6314_v2 = vld [vmem:[%s7429_s11 + $0x304] ss:$16 sps:$4 sm:$0xff]   ;;  %v6317_v4 = vld [vmem:[%s7429_s11 + $0x300] ss:$16 sps:$4 sm:$0xff]   ;;  %v7554_v34 = vld [vmem:[%s7443_s13 + $0x18] sm:$0xff] }
  0x63   : > { %v6324_v5 = vld [vmem:[%s7429_s11 + $0x4e4] ss:$16 sps:$4 sm:$0xff]   ;;  %v6322_v9 = vld [vmem:[%s7429_s11 + $0x4e0] ss:$16 sps:$4 sm:$0xff]  }
  0x64   : > { %4103 = vmatpush2.bf16.msra.mxu0 %v6274_v35  ;;  %v6327_v6 = vld [vmem:[%s7429_s11 + $0x6e4] ss:$16 sps:$4 sm:$0xff]   ;;  %v6325_v10 = vld [vmem:[%s7429_s11 + $0x6e0] ss:$16 sps:$4 sm:$0xff]  }
  0x65   : > { %4144 = vmatpush2.bf16.msra.mxu1 %v6275_v36  ;;  %4104 = vmatprep.subr.bf16.mxu0 %v6276_v37  ;;  %v6330_v11 = vld [vmem:[%s7429_s11 + $0x4c4] ss:$16 sps:$4 sm:$0xff]   ;;  %v6328_v13 = vld [vmem:[%s7429_s11 + $0x4c0] ss:$16 sps:$4 sm:$0xff]  }
  0x66   : > { %4145 = vmatprep.subr.bf16.mxu1 %v6278_v38  ;;  %v6333_v12 = vld [vmem:[%s7429_s11 + $0x6c4] ss:$16 sps:$4 sm:$0xff]   ;;  %v6331_v14 = vld [vmem:[%s7429_s11 + $0x6c0] ss:$16 sps:$4 sm:$0xff]   ;;  %v7564_v38 = vcombine.high %v7554_v34, %v7554_v34 }
  0x67   : > { %v6336_v15 = vld [vmem:[%s7429_s11 + $0x4a4] ss:$16 sps:$4 sm:$0xff]   ;;  %v6334_v17 = vld [vmem:[%s7429_s11 + $0x4a0] ss:$16 sps:$4 sm:$0xff]  }
  0x68   : > { %4105 = vmatpush2.bf16.msra.mxu0 %v6280_v39  ;;  %v6339_v16 = vld [vmem:[%s7429_s11 + $0x6a4] ss:$16 sps:$4 sm:$0xff]   ;;  %v6337_v18 = vld [vmem:[%s7429_s11 + $0x6a0] ss:$16 sps:$4 sm:$0xff]  }
  0x69   : > { %4146 = vmatpush2.bf16.msra.mxu1 %v6281_v40  ;;  %4106 = vmatprep.subr.bf16.mxu0 %v6282_v41  ;;  %v6342_v19 = vld [vmem:[%s7429_s11 + $0x484] ss:$16 sps:$4 sm:$0xff]   ;;  %v6340_v21 = vld [vmem:[%s7429_s11 + $0x480] ss:$16 sps:$4 sm:$0xff]  }
  0x6a   : > { %4147 = vmatprep.subr.bf16.mxu1 %v6284_v42  ;;  %v6345_v20 = vld [vmem:[%s7429_s11 + $0x684] ss:$16 sps:$4 sm:$0xff]   ;;  %v6343_v22 = vld [vmem:[%s7429_s11 + $0x680] ss:$16 sps:$4 sm:$0xff]  }
  0x6b   : > { %v6348_v23 = vld [vmem:[%s7429_s11 + $0x464] ss:$16 sps:$4 sm:$0xff]   ;;  %v6346_v25 = vld [vmem:[%s7429_s11 + $0x460] ss:$16 sps:$4 sm:$0xff]  }
  0x6c   : > { %4107 = vmatpush2.bf16.msra.mxu0 %v6286_v43  ;;  %v6351_v24 = vld [vmem:[%s7429_s11 + $0x664] ss:$16 sps:$4 sm:$0xff]   ;;  %v6349_v26 = vld [vmem:[%s7429_s11 + $0x660] ss:$16 sps:$4 sm:$0xff]  }
  0x6d   : > { %4148 = vmatpush2.bf16.msra.mxu1 %v6287_v44  ;;  %4108 = vmatprep.subr.bf16.mxu0 %v6288_v45  ;;  %v6354_v27 = vld [vmem:[%s7429_s11 + $0x444] ss:$16 sps:$4 sm:$0xff]   ;;  %v6352_v29 = vld [vmem:[%s7429_s11 + $0x440] ss:$16 sps:$4 sm:$0xff]  }
  0x6e   : > { %4149 = vmatprep.subr.bf16.mxu1 %v6290_v46  ;;  %v6357_v28 = vld [vmem:[%s7429_s11 + $0x644] ss:$16 sps:$4 sm:$0xff]   ;;  %v6355_v30 = vld [vmem:[%s7429_s11 + $0x640] ss:$16 sps:$4 sm:$0xff]  }
  0x6f   : > { %v6360_v31 = vld [vmem:[%s7429_s11 + $0x424] ss:$16 sps:$4 sm:$0xff]   ;;  %v6358_v35 = vld [vmem:[%s7429_s11 + $0x420] ss:$16 sps:$4 sm:$0xff]  }
  0x70   : > { %4109 = vmatpush2.bf16.msra.mxu0 %v6292_v50  ;;  %v6363_v32 = vld [vmem:[%s7429_s11 + $0x624] ss:$16 sps:$4 sm:$0xff]   ;;  %v6361_v36 = vld [vmem:[%s7429_s11 + $0x620] ss:$16 sps:$4 sm:$0xff]  }
  0x71   : > { %4150 = vmatpush2.bf16.msra.mxu1 %v6293_v51  ;;  %4110 = vmatprep.subr.bf16.mxu0 %v6294_v53  ;;  %v7551_v33 = vld [vmem:[%s7443_s13 + $0x10] sm:$0xff] }
  0x72   : > { %4151 = vmatprep.subr.bf16.mxu1 %v6296_v54  ;;  %v7560_v37 = vcombine.high %v7551_v33, %v7551_v33  ;;  %v6366_v39 = vld [vmem:[%s7429_s11 + $0x404] ss:$16 sps:$4 sm:$0xff]   ;;  %v6364_v41 = vld [vmem:[%s7429_s11 + $0x400] ss:$16 sps:$4 sm:$0xff]  }
  0x73   : > { %v6369_v40 = vld [vmem:[%s7429_s11 + $0x604] ss:$16 sps:$4 sm:$0xff]   ;;  %v6367_v42 = vld [vmem:[%s7429_s11 + $0x600] ss:$16 sps:$4 sm:$0xff]  }
  0x74   : > { %4111 = vmatpush2.bf16.msra.mxu0 %v6298_v55  ;;  %v6372_v43 = vld [vmem:[%s7429_s11 + $0x5e4] ss:$16 sps:$4 sm:$0xff]   ;;  %v6370_v45 = vld [vmem:[%s7429_s11 + $0x5e0] ss:$16 sps:$4 sm:$0xff]  }
  0x75   : > { %4152 = vmatpush2.bf16.msra.mxu1 %v6299_v56  ;;  %4112 = vmatprep.subr.bf16.mxu0 %v6300_v57  ;;  %v6375_v44 = vld [vmem:[%s7429_s11 + $0x7e4] ss:$16 sps:$4 sm:$0xff]   ;;  %v6373_v46 = vld [vmem:[%s7429_s11 + $0x7e0] ss:$16 sps:$4 sm:$0xff]  }
  0x76   : > { %4153 = vmatprep.subr.bf16.mxu1 %v6302_v58  ;;  %v6378_v47 = vld [vmem:[%s7429_s11 + $0x5c4] ss:$16 sps:$4 sm:$0xff]   ;;  %v6376_v50 = vld [vmem:[%s7429_s11 + $0x5c0] ss:$16 sps:$4 sm:$0xff]  }
  0x77   : > { %v6381_v49 = vld [vmem:[%s7429_s11 + $0x7c4] ss:$16 sps:$4 sm:$0xff]   ;;  %v6379_v51 = vld [vmem:[%s7429_s11 + $0x7c0] ss:$16 sps:$4 sm:$0xff]  }
  0x78   : > { %4113 = vmatpush2.bf16.msra.mxu0 %v6304_v59  ;;  %v6384_v53 = vld [vmem:[%s7429_s11 + $0x5a4] ss:$16 sps:$4 sm:$0xff]   ;;  %v6382_v55 = vld [vmem:[%s7429_s11 + $0x5a0] ss:$16 sps:$4 sm:$0xff]  }
  0x79   : > { %4154 = vmatpush2.bf16.msra.mxu1 %v6305_v60  ;;  %4114 = vmatprep.subr.bf16.mxu0 %v6306_v61  ;;  %v6387_v54 = vld [vmem:[%s7429_s11 + $0x7a4] ss:$16 sps:$4 sm:$0xff]   ;;  %v6385_v56 = vld [vmem:[%s7429_s11 + $0x7a0] ss:$16 sps:$4 sm:$0xff]  }
  0x7a   : > { %4155 = vmatprep.subr.bf16.mxu1 %v6308_v62  ;;  %v6390_v57 = vld [vmem:[%s7429_s11 + $0x584] ss:$16 sps:$4 sm:$0xff]   ;;  %v6388_v59 = vld [vmem:[%s7429_s11 + $0x580] ss:$16 sps:$4 sm:$0xff]  }
  0x7b   : > { %v6393_v58 = vld [vmem:[%s7429_s11 + $0x784] ss:$16 sps:$4 sm:$0xff]   ;;  %v6391_v60 = vld [vmem:[%s7429_s11 + $0x780] ss:$16 sps:$4 sm:$0xff]  }
  0x7c   : > { %4115 = vmatpush2.bf16.msra.mxu0 %v6310_v63  ;;  %v6396_v61 = vld [vmem:[%s7429_s11 + $0x564] ss:$16 sps:$4 sm:$0xff]   ;;  %v6394_v63 = vld [vmem:[%s7429_s11 + $0x560] ss:$16 sps:$4 sm:$0xff]  }
  0x7d   : > { %4156 = vmatpush2.bf16.msra.mxu1 %v6311_v0  ;;  %4116 = vmatprep.subr.bf16.mxu0 %v6312_v1  ;;  %v6399_v62 = vld [vmem:[%s7429_s11 + $0x764] ss:$16 sps:$4 sm:$0xff]   ;;  %v6397_v0 = vld [vmem:[%s7429_s11 + $0x760] ss:$16 sps:$4 sm:$0xff]  }
  0x7e   : > { %4157 = vmatprep.subr.bf16.mxu1 %v6314_v2  ;;  %v6402_v1 = vld [vmem:[%s7429_s11 + $0x544] ss:$16 sps:$4 sm:$0xff]  }
  0x7f   : > { %v6405_v2 = vld [vmem:[%s7429_s11 + $0x744] ss:$16 sps:$4 sm:$0xff]  }
  0x80   : > { %4117 = vmatpush2.bf16.msra.mxu0 %v6316_v3  ;;  %v6400_v3 = vld [vmem:[%s7429_s11 + $0x540] ss:$16 sps:$4 sm:$0xff]  }
  0x81   : > { %4158 = vmatpush2.bf16.msra.mxu1 %v6317_v4  ;;  %4168 = vmatprep.subr.bf16.mxu0 %v6324_v5  ;;  %v6403_v4 = vld [vmem:[%s7429_s11 + $0x740] ss:$16 sps:$4 sm:$0xff]   ;;  %v6408_v5 = vld [vmem:[%s7429_s11 + $0x524] ss:$16 sps:$4 sm:$0xff]  }
  0x82   : > { %4209 = vmatprep.subr.bf16.mxu1 %v6327_v6  ;;  %v6411_v6 = vld [vmem:[%s7429_s11 + $0x724] ss:$16 sps:$4 sm:$0xff]  }
  0x83   : > { %4119 = vmatmul.mubr.bf16.vlgmr.msra.gmra.mxu0 %v7520_v7 }
  0x84   : > { %4160 = vmatmul.mubr.bf16.vlgmr.msra.gmra.mxu1 %v7522_v8  ;;  %4169 = vmatpush1.bf16.msra.mxu0 %v6322_v9  ;;  %v6406_v9 = vld [vmem:[%s7429_s11 + $0x520] ss:$16 sps:$4 sm:$0xff]  }
  0x85   : > { %4210 = vmatpush1.bf16.msra.mxu1 %v6325_v10  ;;  %4170 = vmatprep.subr.bf16.mxu0 %v6330_v11  ;;  %v6409_v10 = vld [vmem:[%s7429_s11 + $0x720] ss:$16 sps:$4 sm:$0xff]   ;;  %v6414_v11 = vld [vmem:[%s7429_s11 + $0x504] ss:$16 sps:$4 sm:$0xff]  }
  0x86   : > { %4211 = vmatprep.subr.bf16.mxu1 %v6333_v12  ;;  %4200 = vmatprep.mubr.bf16.mxu0 %v7560_v37  ;;  %v6417_v12 = vld [vmem:[%s7429_s11 + $0x704] ss:$16 sps:$4 sm:$0xff]  }
  0x87   : > { %4241 = vmatprep.mubr.bf16.mxu1 %v7564_v38 }
  0x88   : > { %4171 = vmatpush1.bf16.msra.mxu0 %v6328_v13  ;;  %v6412_v13 = vld [vmem:[%s7429_s11 + $0x500] ss:$16 sps:$4 sm:$0xff]  }
  0x89   : > { %4212 = vmatpush1.bf16.msra.mxu1 %v6331_v14  ;;  %4172 = vmatprep.subr.bf16.mxu0 %v6336_v15  ;;  %v6415_v14 = vld [vmem:[%s7429_s11 + $0x700] ss:$16 sps:$4 sm:$0xff]   ;;  %v6424_v15 = vld [vmem:[%s7429_s11 + $0x8e4] ss:$16 sps:$4 sm:$0xff]  }
  0x8a   : > { %4213 = vmatprep.subr.bf16.mxu1 %v6339_v16  ;;  %v6427_v16 = vld [vmem:[%s7429_s11 + $0xae4] ss:$16 sps:$4 sm:$0xff]  }
  0x8c   : > { %4173 = vmatpush1.bf16.msra.mxu0 %v6334_v17  ;;  %v7608_v17 = vcombine.low %v7551_v33, %v7551_v33  ;;  %v6442_v33 = vld [vmem:[%s7429_s11 + $0x884] ss:$16 sps:$4 sm:$0xff]  }
  0x8d   : > { %4214 = vmatpush1.bf16.msra.mxu1 %v6337_v18  ;;  %4174 = vmatprep.subr.bf16.mxu0 %v6342_v19  ;;  %v7612_v18 = vcombine.low %v7554_v34, %v7554_v34  ;;  %v6422_v19 = vld [vmem:[%s7429_s11 + $0x8e0] ss:$16 sps:$4 sm:$0xff]   ;;  %v6445_v34 = vld [vmem:[%s7429_s11 + $0xa84] ss:$16 sps:$4 sm:$0xff]  }
  0x8e   : > { %4215 = vmatprep.subr.bf16.mxu1 %v6345_v20  ;;  %v6425_v20 = vld [vmem:[%s7429_s11 + $0xae0] ss:$16 sps:$4 sm:$0xff]  }
  0x90   : > { %4175 = vmatpush1.bf16.msra.mxu0 %v6340_v21  ;;  %v6430_v21 = vld [vmem:[%s7429_s11 + $0x8c4] ss:$16 sps:$4 sm:$0xff]  }
  0x91   : > { %4216 = vmatpush1.bf16.msra.mxu1 %v6343_v22  ;;  %4176 = vmatprep.subr.bf16.mxu0 %v6348_v23  ;;  %v6433_v22 = vld [vmem:[%s7429_s11 + $0xac4] ss:$16 sps:$4 sm:$0xff]  }
  0x92   : > { %4217 = vmatprep.subr.bf16.mxu1 %v6351_v24  ;;  %v7619_v23 = vld [vmem:[%s7443_s13 + $0x20] sm:$0xff]  ;;  %v7622_v24 = vld [vmem:[%s7443_s13 + $0x28] sm:$0xff] }
  0x94   : > { %4177 = vmatpush1.bf16.msra.mxu0 %v6346_v25  ;;  %v7626_v25 = vcombine.high %v7619_v23, %v7619_v23 }
  0x95   : > { %4218 = vmatpush1.bf16.msra.mxu1 %v6349_v26  ;;  %4178 = vmatprep.subr.bf16.mxu0 %v6354_v27  ;;  %v7630_v26 = vcombine.high %v7622_v24, %v7622_v24  ;;  %v6428_v27 = vld [vmem:[%s7429_s11 + $0x8c0] ss:$16 sps:$4 sm:$0xff]  }
  0x96   : > { %4219 = vmatprep.subr.bf16.mxu1 %v6357_v28  ;;  %v6431_v28 = vld [vmem:[%s7429_s11 + $0xac0] ss:$16 sps:$4 sm:$0xff]  }
  0x98   : > { %4179 = vmatpush1.bf16.msra.mxu0 %v6352_v29  ;;  %v6436_v29 = vld [vmem:[%s7429_s11 + $0x8a4] ss:$16 sps:$4 sm:$0xff]  }
  0x99   : > { %4220 = vmatpush1.bf16.msra.mxu1 %v6355_v30  ;;  %4180 = vmatprep.subr.bf16.mxu0 %v6360_v31  ;;  %v6439_v30 = vld [vmem:[%s7429_s11 + $0xaa4] ss:$16 sps:$4 sm:$0xff]   ;;  %v6434_v31 = vld [vmem:[%s7429_s11 + $0x8a0] ss:$16 sps:$4 sm:$0xff]  }
  0x9a   : > { %4221 = vmatprep.subr.bf16.mxu1 %v6363_v32  ;;  %v6437_v32 = vld [vmem:[%s7429_s11 + $0xaa0] ss:$16 sps:$4 sm:$0xff]  }
  0x9c   : > { %4181 = vmatpush1.bf16.msra.mxu0 %v6358_v35  ;;  %v6440_v35 = vld [vmem:[%s7429_s11 + $0x880] ss:$16 sps:$4 sm:$0xff]  }
  0x9d   : > { %4222 = vmatpush1.bf16.msra.mxu1 %v6361_v36  ;;  %4182 = vmatprep.subr.bf16.mxu0 %v6366_v39  ;;  %v6443_v36 = vld [vmem:[%s7429_s11 + $0xa80] ss:$16 sps:$4 sm:$0xff]   ;;  %v6448_v39 = vld [vmem:[%s7429_s11 + $0x864] ss:$16 sps:$4 sm:$0xff]  }
  0x9e   : > { %4223 = vmatprep.subr.bf16.mxu1 %v6369_v40  ;;  %v6451_v40 = vld [vmem:[%s7429_s11 + $0xa64] ss:$16 sps:$4 sm:$0xff]  }
  0xa0   : > { %4183 = vmatpush1.bf16.msra.mxu0 %v6364_v41  ;;  %v6446_v41 = vld [vmem:[%s7429_s11 + $0x860] ss:$16 sps:$4 sm:$0xff]  }
  0xa1   : > { %4224 = vmatpush1.bf16.msra.mxu1 %v6367_v42  ;;  %4184 = vmatprep.subr.bf16.mxu0 %v6372_v43  ;;  %v6449_v42 = vld [vmem:[%s7429_s11 + $0xa60] ss:$16 sps:$4 sm:$0xff]   ;;  %v6454_v43 = vld [vmem:[%s7429_s11 + $0x844] ss:$16 sps:$4 sm:$0xff]  }
  0xa2   : > { %4225 = vmatprep.subr.bf16.mxu1 %v6375_v44  ;;  %v6457_v44 = vld [vmem:[%s7429_s11 + $0xa44] ss:$16 sps:$4 sm:$0xff]  }
  0xa4   : > { %4185 = vmatpush2.bf16.msra.mxu0 %v6370_v45  ;;  %v6452_v45 = vld [vmem:[%s7429_s11 + $0x840] ss:$16 sps:$4 sm:$0xff]  }
  0xa5   : > { %4226 = vmatpush2.bf16.msra.mxu1 %v6373_v46  ;;  %4186 = vmatprep.subr.bf16.mxu0 %v6378_v47  ;;  %v6455_v46 = vld [vmem:[%s7429_s11 + $0xa40] ss:$16 sps:$4 sm:$0xff]   ;;  %v6460_v47 = vld [vmem:[%s7429_s11 + $0x824] ss:$16 sps:$4 sm:$0xff]  }
  0xa6   : > { %4227 = vmatprep.subr.bf16.mxu1 %v6381_v49  ;;  %v6463_v49 = vld [vmem:[%s7429_s11 + $0xa24] ss:$16 sps:$4 sm:$0xff]  }
  0xa8   : > { %4187 = vmatpush2.bf16.msra.mxu0 %v6376_v50  ;;  %v6458_v50 = vld [vmem:[%s7429_s11 + $0x820] ss:$16 sps:$4 sm:$0xff]  }
  0xa9   : > { %4228 = vmatpush2.bf16.msra.mxu1 %v6379_v51  ;;  %4188 = vmatprep.subr.bf16.mxu0 %v6384_v53  ;;  %v6461_v51 = vld [vmem:[%s7429_s11 + $0xa20] ss:$16 sps:$4 sm:$0xff]   ;;  %v6466_v53 = vld [vmem:[%s7429_s11 + $0x804] ss:$16 sps:$4 sm:$0xff]  }
  0xaa   : > { %4229 = vmatprep.subr.bf16.mxu1 %v6387_v54  ;;  %v6469_v54 = vld [vmem:[%s7429_s11 + $0xa04] ss:$16 sps:$4 sm:$0xff]  }
  0xac   : > { %4189 = vmatpush2.bf16.msra.mxu0 %v6382_v55  ;;  %v6464_v55 = vld [vmem:[%s7429_s11 + $0x800] ss:$16 sps:$4 sm:$0xff]  }
  0xad   : > { %4230 = vmatpush2.bf16.msra.mxu1 %v6385_v56  ;;  %4190 = vmatprep.subr.bf16.mxu0 %v6390_v57  ;;  %v6467_v56 = vld [vmem:[%s7429_s11 + $0xa00] ss:$16 sps:$4 sm:$0xff]   ;;  %v6472_v57 = vld [vmem:[%s7429_s11 + $0x9e4] ss:$16 sps:$4 sm:$0xff]  }
  0xae   : > { %4231 = vmatprep.subr.bf16.mxu1 %v6393_v58  ;;  %v6475_v58 = vld [vmem:[%s7429_s11 + $0xbe4] ss:$16 sps:$4 sm:$0xff]  }
  0xb0   : > { %4191 = vmatpush2.bf16.msra.mxu0 %v6388_v59  ;;  %v6470_v59 = vld [vmem:[%s7429_s11 + $0x9e0] ss:$16 sps:$4 sm:$0xff]  }
  0xb1   : > { %4232 = vmatpush2.bf16.msra.mxu1 %v6391_v60  ;;  %4192 = vmatprep.subr.bf16.mxu0 %v6396_v61  ;;  %v6473_v60 = vld [vmem:[%s7429_s11 + $0xbe0] ss:$16 sps:$4 sm:$0xff]   ;;  %v6478_v61 = vld [vmem:[%s7429_s11 + $0x9c4] ss:$16 sps:$4 sm:$0xff]  }
  0xb2   : > { %4233 = vmatprep.subr.bf16.mxu1 %v6399_v62  ;;  %v6481_v62 = vld [vmem:[%s7429_s11 + $0xbc4] ss:$16 sps:$4 sm:$0xff]  }
  0xb4   : > { %4193 = vmatpush2.bf16.msra.mxu0 %v6394_v63  ;;  %v6476_v63 = vld [vmem:[%s7429_s11 + $0x9c0] ss:$16 sps:$4 sm:$0xff]  }
  0xb5   : > { %4234 = vmatpush2.bf16.msra.mxu1 %v6397_v0  ;;  %4194 = vmatprep.subr.bf16.mxu0 %v6402_v1  ;;  %v6479_v0 = vld [vmem:[%s7429_s11 + $0xbc0] ss:$16 sps:$4 sm:$0xff]   ;;  %v6484_v1 = vld [vmem:[%s7429_s11 + $0x9a4] ss:$16 sps:$4 sm:$0xff]  }
  0xb6   : > { %4235 = vmatprep.subr.bf16.mxu1 %v6405_v2  ;;  %v6487_v2 = vld [vmem:[%s7429_s11 + $0xba4] ss:$16 sps:$4 sm:$0xff]  }
  0xb8   : > { %4195 = vmatpush2.bf16.msra.mxu0 %v6400_v3  ;;  %v6482_v3 = vld [vmem:[%s7429_s11 + $0x9a0] ss:$16 sps:$4 sm:$0xff]  }
  0xb9   : > { %4236 = vmatpush2.bf16.msra.mxu1 %v6403_v4  ;;  %4196 = vmatprep.subr.bf16.mxu0 %v6408_v5  ;;  %v6485_v4 = vld [vmem:[%s7429_s11 + $0xba0] ss:$16 sps:$4 sm:$0xff]   ;;  %v6490_v5 = vld [vmem:[%s7429_s11 + $0x984] ss:$16 sps:$4 sm:$0xff]  }
  0xba   : > { %4237 = vmatprep.subr.bf16.mxu1 %v6411_v6  ;;  %v6493_v6 = vld [vmem:[%s7429_s11 + $0xb84] ss:$16 sps:$4 sm:$0xff]  }
  0xbc   : > { %4197 = vmatpush2.bf16.msra.mxu0 %v6406_v9  ;;  %v6488_v9 = vld [vmem:[%s7429_s11 + $0x980] ss:$16 sps:$4 sm:$0xff]  }
  0xbd   : > { %4238 = vmatpush2.bf16.msra.mxu1 %v6409_v10  ;;  %4198 = vmatprep.subr.bf16.mxu0 %v6414_v11  ;;  %v6491_v10 = vld [vmem:[%s7429_s11 + $0xb80] ss:$16 sps:$4 sm:$0xff]   ;;  %v6496_v11 = vld [vmem:[%s7429_s11 + $0x964] ss:$16 sps:$4 sm:$0xff]  }
  0xbe   : > { %4239 = vmatprep.subr.bf16.mxu1 %v6417_v12  ;;  %v6499_v12 = vld [vmem:[%s7429_s11 + $0xb64] ss:$16 sps:$4 sm:$0xff]  }
  0xc0   : > { %4199 = vmatpush2.bf16.msra.mxu0 %v6412_v13  ;;  %v6494_v13 = vld [vmem:[%s7429_s11 + $0x960] ss:$16 sps:$4 sm:$0xff]  }
  0xc1   : > { %4240 = vmatpush2.bf16.msra.mxu1 %v6415_v14  ;;  %4250 = vmatprep.subr.bf16.mxu0 %v6424_v15  ;;  %v6497_v14 = vld [vmem:[%s7429_s11 + $0xb60] ss:$16 sps:$4 sm:$0xff]   ;;  %v6502_v15 = vld [vmem:[%s7429_s11 + $0x944] ss:$16 sps:$4 sm:$0xff]  }
  0xc2   : > { %4291 = vmatprep.subr.bf16.mxu1 %v6427_v16  ;;  %v6505_v16 = vld [vmem:[%s7429_s11 + $0xb44] ss:$16 sps:$4 sm:$0xff]  }
  0xc3   : > { %4201 = vmatmul.mubr.bf16.vlgmr.msra.gmra.mxu0 %v7608_v17 }
  0xc4   : > { %4242 = vmatmul.mubr.bf16.vlgmr.msra.gmra.mxu1 %v7612_v18  ;;  %4251 = vmatpush1.bf16.msra.mxu0 %v6422_v19  ;;  %v6500_v19 = vld [vmem:[%s7429_s11 + $0x940] ss:$16 sps:$4 sm:$0xff]  }
  0xc5   : > { %4292 = vmatpush1.bf16.msra.mxu1 %v6425_v20  ;;  %4252 = vmatprep.subr.bf16.mxu0 %v6430_v21  ;;  %v6503_v20 = vld [vmem:[%s7429_s11 + $0xb40] ss:$16 sps:$4 sm:$0xff]   ;;  %v6508_v21 = vld [vmem:[%s7429_s11 + $0x924] ss:$16 sps:$4 sm:$0xff]  }
  0xc6   : > { %4293 = vmatprep.subr.bf16.mxu1 %v6433_v22  ;;  %4282 = vmatprep.mubr.bf16.mxu0 %v7626_v25  ;;  %v6511_v22 = vld [vmem:[%s7429_s11 + $0xb24] ss:$16 sps:$4 sm:$0xff]  }
  0xc7   : > { %4323 = vmatprep.mubr.bf16.mxu1 %v7630_v26 }
  0xc8   : > { %4253 = vmatpush1.bf16.msra.mxu0 %v6428_v27  ;;  %v6506_v27 = vld [vmem:[%s7429_s11 + $0x920] ss:$16 sps:$4 sm:$0xff]  }
  0xc9   : > { %4294 = vmatpush1.bf16.msra.mxu1 %v6431_v28  ;;  %4254 = vmatprep.subr.bf16.mxu0 %v6436_v29  ;;  %v6509_v28 = vld [vmem:[%s7429_s11 + $0xb20] ss:$16 sps:$4 sm:$0xff]   ;;  %v6514_v29 = vld [vmem:[%s7429_s11 + $0x904] ss:$16 sps:$4 sm:$0xff]  }
  0xca   : > { %4295 = vmatprep.subr.bf16.mxu1 %v6439_v30  ;;  %v6517_v30 = vld [vmem:[%s7429_s11 + $0xb04] ss:$16 sps:$4 sm:$0xff]  }
  0xcc   : > { %4255 = vmatpush1.bf16.msra.mxu0 %v6434_v31  ;;  %v6512_v31 = vld [vmem:[%s7429_s11 + $0x900] ss:$16 sps:$4 sm:$0xff]  }
  0xcd   : > { %4296 = vmatpush1.bf16.msra.mxu1 %v6437_v32  ;;  %4256 = vmatprep.subr.bf16.mxu0 %v6442_v33  ;;  %v6515_v32 = vld [vmem:[%s7429_s11 + $0xb00] ss:$16 sps:$4 sm:$0xff]   ;;  %v6524_v33 = vld [vmem:[%s7429_s11 + $0xce4] ss:$16 sps:$4 sm:$0xff]  }
  0xce   : > { %4297 = vmatprep.subr.bf16.mxu1 %v6445_v34  ;;  %v6527_v34 = vld [vmem:[%s7429_s11 + $0xee4] ss:$16 sps:$4 sm:$0xff]  }
  0xd0   : > { %4257 = vmatpush1.bf16.msra.mxu0 %v6440_v35  ;;  %v6522_v35 = vld [vmem:[%s7429_s11 + $0xce0] ss:$16 sps:$4 sm:$0xff]  }
  0xd1   : > { %4298 = vmatpush1.bf16.msra.mxu1 %v6443_v36  ;;  %4258 = vmatprep.subr.bf16.mxu0 %v6448_v39  ;;  %v6525_v36 = vld [vmem:[%s7429_s11 + $0xee0] ss:$16 sps:$4 sm:$0xff]   ;;  %v7700_v39 = vcombine.low %v7619_v23, %v7619_v23 }
  0xd2   : > { %4299 = vmatprep.subr.bf16.mxu1 %v6451_v40  ;;  %v7704_v40 = vcombine.low %v7622_v24, %v7622_v24 }
  0xd4   : > { %4259 = vmatpush1.bf16.msra.mxu0 %v6446_v41  ;;  %v7707_v41 = vld [vmem:[%s7443_s13 + $0x30] sm:$0xff] }
  0xd5   : > { %4300 = vmatpush1.bf16.msra.mxu1 %v6449_v42  ;;  %4260 = vmatprep.subr.bf16.mxu0 %v6454_v43  ;;  %v7710_v42 = vld [vmem:[%s7443_s13 + $0x38] sm:$0xff]  ;;  %v6530_v43 = vld [vmem:[%s7429_s11 + $0xcc4] ss:$16 sps:$4 sm:$0xff]   ;;  %v7716_v23 = vcombine.high %v7707_v41, %v7707_v41 }
  0xd6   : > { %4301 = vmatprep.subr.bf16.mxu1 %v6457_v44  ;;  %v6533_v44 = vld [vmem:[%s7429_s11 + $0xec4] ss:$16 sps:$4 sm:$0xff]   ;;  %v7720_v24 = vcombine.high %v7710_v42, %v7710_v42 }
  0xd8   : > { %4261 = vmatpush1.bf16.msra.mxu0 %v6452_v45  ;;  %v6528_v45 = vld [vmem:[%s7429_s11 + $0xcc0] ss:$16 sps:$4 sm:$0xff]  }
  0xd9   : > { %4302 = vmatpush1.bf16.msra.mxu1 %v6455_v46  ;;  %4262 = vmatprep.subr.bf16.mxu0 %v6460_v47  ;;  %v6531_v46 = vld [vmem:[%s7429_s11 + $0xec0] ss:$16 sps:$4 sm:$0xff]   ;;  %v6536_v47 = vld [vmem:[%s7429_s11 + $0xca4] ss:$16 sps:$4 sm:$0xff]  }
  0xda   : > { %4303 = vmatprep.subr.bf16.mxu1 %v6463_v49  ;;  %v6539_v49 = vld [vmem:[%s7429_s11 + $0xea4] ss:$16 sps:$4 sm:$0xff]  }
  0xdc   : > { %4263 = vmatpush1.bf16.msra.mxu0 %v6458_v50  ;;  %v6534_v50 = vld [vmem:[%s7429_s11 + $0xca0] ss:$16 sps:$4 sm:$0xff]  }
  0xdd   : > { %4304 = vmatpush1.bf16.msra.mxu1 %v6461_v51  ;;  %4264 = vmatprep.subr.bf16.mxu0 %v6466_v53  ;;  %v6537_v51 = vld [vmem:[%s7429_s11 + $0xea0] ss:$16 sps:$4 sm:$0xff]   ;;  %v6542_v53 = vld [vmem:[%s7429_s11 + $0xc84] ss:$16 sps:$4 sm:$0xff]  }
  0xde   : > { %4305 = vmatprep.subr.bf16.mxu1 %v6469_v54  ;;  %v6545_v54 = vld [vmem:[%s7429_s11 + $0xe84] ss:$16 sps:$4 sm:$0xff]  }
  0xe0   : > { %4265 = vmatpush1.bf16.msra.mxu0 %v6464_v55  ;;  %v6540_v55 = vld [vmem:[%s7429_s11 + $0xc80] ss:$16 sps:$4 sm:$0xff]  }
  0xe1   : > { %4306 = vmatpush1.bf16.msra.mxu1 %v6467_v56  ;;  %4266 = vmatprep.subr.bf16.mxu0 %v6472_v57  ;;  %v6543_v56 = vld [vmem:[%s7429_s11 + $0xe80] ss:$16 sps:$4 sm:$0xff]   ;;  %v6548_v57 = vld [vmem:[%s7429_s11 + $0xc64] ss:$16 sps:$4 sm:$0xff]  }
  0xe2   : > { %4307 = vmatprep.subr.bf16.mxu1 %v6475_v58  ;;  %v6551_v58 = vld [vmem:[%s7429_s11 + $0xe64] ss:$16 sps:$4 sm:$0xff]  }
  0xe4   : > { %4267 = vmatpush2.bf16.msra.mxu0 %v6470_v59  ;;  %v6546_v59 = vld [vmem:[%s7429_s11 + $0xc60] ss:$16 sps:$4 sm:$0xff]  }
  0xe5   : > { %4308 = vmatpush2.bf16.msra.mxu1 %v6473_v60  ;;  %4268 = vmatprep.subr.bf16.mxu0 %v6478_v61  ;;  %v6549_v60 = vld [vmem:[%s7429_s11 + $0xe60] ss:$16 sps:$4 sm:$0xff]   ;;  %v6554_v61 = vld [vmem:[%s7429_s11 + $0xc44] ss:$16 sps:$4 sm:$0xff]  }
  0xe6   : > { %4309 = vmatprep.subr.bf16.mxu1 %v6481_v62  ;;  %v6557_v62 = vld [vmem:[%s7429_s11 + $0xe44] ss:$16 sps:$4 sm:$0xff]  }
  0xe8   : > { %4269 = vmatpush2.bf16.msra.mxu0 %v6476_v63  ;;  %v6552_v63 = vld [vmem:[%s7429_s11 + $0xc40] ss:$16 sps:$4 sm:$0xff]  }
  0xe9   : > { %4310 = vmatpush2.bf16.msra.mxu1 %v6479_v0  ;;  %4270 = vmatprep.subr.bf16.mxu0 %v6484_v1  ;;  %v6555_v0 = vld [vmem:[%s7429_s11 + $0xe40] ss:$16 sps:$4 sm:$0xff]   ;;  %v6560_v1 = vld [vmem:[%s7429_s11 + $0xc24] ss:$16 sps:$4 sm:$0xff]  }
  0xea   : > { %4311 = vmatprep.subr.bf16.mxu1 %v6487_v2  ;;  %v6563_v2 = vld [vmem:[%s7429_s11 + $0xe24] ss:$16 sps:$4 sm:$0xff]  }
  0xec   : > { %4271 = vmatpush2.bf16.msra.mxu0 %v6482_v3  ;;  %v6558_v3 = vld [vmem:[%s7429_s11 + $0xc20] ss:$16 sps:$4 sm:$0xff]  }
  0xed   : > { %4312 = vmatpush2.bf16.msra.mxu1 %v6485_v4  ;;  %4272 = vmatprep.subr.bf16.mxu0 %v6490_v5  ;;  %v6561_v4 = vld [vmem:[%s7429_s11 + $0xe20] ss:$16 sps:$4 sm:$0xff]   ;;  %v6566_v5 = vld [vmem:[%s7429_s11 + $0xc04] ss:$16 sps:$4 sm:$0xff]  }
  0xee   : > { %4313 = vmatprep.subr.bf16.mxu1 %v6493_v6  ;;  %v6569_v6 = vld [vmem:[%s7429_s11 + $0xe04] ss:$16 sps:$4 sm:$0xff]  }
  0xf0   : > { %4273 = vmatpush2.bf16.msra.mxu0 %v6488_v9  ;;  %v6564_v9 = vld [vmem:[%s7429_s11 + $0xc00] ss:$16 sps:$4 sm:$0xff]  }
  0xf1   : > { %4314 = vmatpush2.bf16.msra.mxu1 %v6491_v10  ;;  %4274 = vmatprep.subr.bf16.mxu0 %v6496_v11  ;;  %v6567_v10 = vld [vmem:[%s7429_s11 + $0xe00] ss:$16 sps:$4 sm:$0xff]   ;;  %v6572_v11 = vld [vmem:[%s7429_s11 + $0xde4] ss:$16 sps:$4 sm:$0xff]  }
  0xf2   : > { %4315 = vmatprep.subr.bf16.mxu1 %v6499_v12  ;;  %v6575_v12 = vld [vmem:[%s7429_s11 + $0xfe4] ss:$16 sps:$4 sm:$0xff]  }
  0xf4   : > { %4275 = vmatpush2.bf16.msra.mxu0 %v6494_v13  ;;  %v6570_v13 = vld [vmem:[%s7429_s11 + $0xde0] ss:$16 sps:$4 sm:$0xff]  }
  0xf5   : > { %4316 = vmatpush2.bf16.msra.mxu1 %v6497_v14  ;;  %4276 = vmatprep.subr.bf16.mxu0 %v6502_v15  ;;  %v6573_v14 = vld [vmem:[%s7429_s11 + $0xfe0] ss:$16 sps:$4 sm:$0xff]   ;;  %v6578_v15 = vld [vmem:[%s7429_s11 + $0xdc4] ss:$16 sps:$4 sm:$0xff]  }
  0xf6   : > { %4317 = vmatprep.subr.bf16.mxu1 %v6505_v16  ;;  %v6581_v16 = vld [vmem:[%s7429_s11 + $0xfc4] ss:$16 sps:$4 sm:$0xff]  }
  0xf8   : > { %4277 = vmatpush2.bf16.msra.mxu0 %v6500_v19  ;;  %v6576_v19 = vld [vmem:[%s7429_s11 + $0xdc0] ss:$16 sps:$4 sm:$0xff]  }
  0xf9   : > { %4318 = vmatpush2.bf16.msra.mxu1 %v6503_v20  ;;  %4278 = vmatprep.subr.bf16.mxu0 %v6508_v21  ;;  %v6579_v20 = vld [vmem:[%s7429_s11 + $0xfc0] ss:$16 sps:$4 sm:$0xff]   ;;  %v6584_v21 = vld [vmem:[%s7429_s11 + $0xda4] ss:$16 sps:$4 sm:$0xff]  }
  0xfa   : > { %4319 = vmatprep.subr.bf16.mxu1 %v6511_v22  ;;  %v6587_v22 = vld [vmem:[%s7429_s11 + $0xfa4] ss:$16 sps:$4 sm:$0xff]  }
  0xfc   : > { %4279 = vmatpush2.bf16.msra.mxu0 %v6506_v27  ;;  %v6582_v27 = vld [vmem:[%s7429_s11 + $0xda0] ss:$16 sps:$4 sm:$0xff]  }
  0xfd   : > { %4320 = vmatpush2.bf16.msra.mxu1 %v6509_v28  ;;  %4280 = vmatprep.subr.bf16.mxu0 %v6514_v29  ;;  %v6585_v28 = vld [vmem:[%s7429_s11 + $0xfa0] ss:$16 sps:$4 sm:$0xff]   ;;  %v6590_v29 = vld [vmem:[%s7429_s11 + $0xd84] ss:$16 sps:$4 sm:$0xff]  }
  0xfe   : > { %4321 = vmatprep.subr.bf16.mxu1 %v6517_v30  ;;  %v6593_v30 = vld [vmem:[%s7429_s11 + $0xf84] ss:$16 sps:$4 sm:$0xff]  }
 0x100   : > { %4281 = vmatpush2.bf16.msra.mxu0 %v6512_v31  ;;  %v6588_v31 = vld [vmem:[%s7429_s11 + $0xd80] ss:$16 sps:$4 sm:$0xff]  }
 0x101   : > { %4322 = vmatpush2.bf16.msra.mxu1 %v6515_v32  ;;  %4332 = vmatprep.subr.bf16.mxu0 %v6524_v33  ;;  %v6591_v32 = vld [vmem:[%s7429_s11 + $0xf80] ss:$16 sps:$4 sm:$0xff]   ;;  %v6596_v33 = vld [vmem:[%s7429_s11 + $0xd64] ss:$16 sps:$4 sm:$0xff]  }
 0x102   : > { %4373 = vmatprep.subr.bf16.mxu1 %v6527_v34  ;;  %v6599_v34 = vld [vmem:[%s7429_s11 + $0xf64] ss:$16 sps:$4 sm:$0xff]  }
 0x103   : > { %4283 = vmatmul.mubr.bf16.vlgmr.msra.gmra.mxu0 %v7700_v39 }
 0x104   : > { %4324 = vmatmul.mubr.bf16.vlgmr.msra.gmra.mxu1 %v7704_v40  ;;  %4333 = vmatpush1.bf16.msra.mxu0 %v6522_v35  ;;  %v6594_v35 = vld [vmem:[%s7429_s11 + $0xd60] ss:$16 sps:$4 sm:$0xff]  }
 0x105   : > { %4374 = vmatpush1.bf16.msra.mxu1 %v6525_v36  ;;  %4334 = vmatprep.subr.bf16.mxu0 %v6530_v43  ;;  %v6597_v36 = vld [vmem:[%s7429_s11 + $0xf60] ss:$16 sps:$4 sm:$0xff]   ;;  %v6602_v43 = vld [vmem:[%s7429_s11 + $0xd44] ss:$16 sps:$4 sm:$0xff]  }
 0x106   : > { %4375 = vmatprep.subr.bf16.mxu1 %v6533_v44  ;;  %4364 = vmatprep.mubr.bf16.mxu0 %v7716_v23  ;;  %v6605_v44 = vld [vmem:[%s7429_s11 + $0xf44] ss:$16 sps:$4 sm:$0xff]  }
 0x107   : > { %4405 = vmatprep.mubr.bf16.mxu1 %v7720_v24 }
 0x108   : > { %4335 = vmatpush1.bf16.msra.mxu0 %v6528_v45  ;;  %v6600_v45 = vld [vmem:[%s7429_s11 + $0xd40] ss:$16 sps:$4 sm:$0xff]  }
 0x109   : > { %4376 = vmatpush1.bf16.msra.mxu1 %v6531_v46  ;;  %4336 = vmatprep.subr.bf16.mxu0 %v6536_v47  ;;  %v6603_v46 = vld [vmem:[%s7429_s11 + $0xf40] ss:$16 sps:$4 sm:$0xff]   ;;  %v6608_v47 = vld [vmem:[%s7429_s11 + $0xd24] ss:$16 sps:$4 sm:$0xff]  }
 0x10a   : > { %4377 = vmatprep.subr.bf16.mxu1 %v6539_v49  ;;  %v6611_v49 = vld [vmem:[%s7429_s11 + $0xf24] ss:$16 sps:$4 sm:$0xff]  }
 0x10c   : > { %4337 = vmatpush1.bf16.msra.mxu0 %v6534_v50  ;;  %v6606_v50 = vld [vmem:[%s7429_s11 + $0xd20] ss:$16 sps:$4 sm:$0xff]  }
 0x10d   : > { %4378 = vmatpush1.bf16.msra.mxu1 %v6537_v51  ;;  %4338 = vmatprep.subr.bf16.mxu0 %v6542_v53  ;;  %v6609_v51 = vld [vmem:[%s7429_s11 + $0xf20] ss:$16 sps:$4 sm:$0xff]   ;;  %v6614_v53 = vld [vmem:[%s7429_s11 + $0xd04] ss:$16 sps:$4 sm:$0xff]  }
 0x10e   : > { %4379 = vmatprep.subr.bf16.mxu1 %v6545_v54  ;;  %v6617_v54 = vld [vmem:[%s7429_s11 + $0xf04] ss:$16 sps:$4 sm:$0xff]  }
 0x110   : > { %4339 = vmatpush1.bf16.msra.mxu0 %v6540_v55  ;;  %v6612_v55 = vld [vmem:[%s7429_s11 + $0xd00] ss:$16 sps:$4 sm:$0xff]  }
 0x111   : > { %4380 = vmatpush1.bf16.msra.mxu1 %v6543_v56  ;;  %4340 = vmatprep.subr.bf16.mxu0 %v6548_v57  ;;  %v6615_v56 = vld [vmem:[%s7429_s11 + $0xf00] ss:$16 sps:$4 sm:$0xff]   ;;  %v6624_v57 = vld [vmem:[%s7429_s11 + $0x10e4] ss:$16 sps:$4 sm:$0xff]  }
 0x112   : > { %4381 = vmatprep.subr.bf16.mxu1 %v6551_v58  ;;  %v6627_v58 = vld [vmem:[%s7429_s11 + $0x12e4] ss:$16 sps:$4 sm:$0xff]  }
 0x114   : > { %4341 = vmatpush1.bf16.msra.mxu0 %v6546_v59  ;;  %v7788_v59 = vcombine.low %v7707_v41, %v7707_v41 }
 0x115   : > { %4382 = vmatpush1.bf16.msra.mxu1 %v6549_v60  ;;  %4342 = vmatprep.subr.bf16.mxu0 %v6554_v61  ;;  %v7792_v60 = vcombine.low %v7710_v42, %v7710_v42  ;;  %v6622_v61 = vld [vmem:[%s7429_s11 + $0x10e0] ss:$16 sps:$4 sm:$0xff]  }
 0x116   : > { %4383 = vmatprep.subr.bf16.mxu1 %v6557_v62  ;;  %v7796_v62 = vld [vmem:[%s7443_s13 + $0x40] sm:$0xff] }
 0x117   : > { %v7803_v41 = vcombine.high %v7796_v62, %v7796_v62 }
 0x118   : > { %4343 = vmatpush1.bf16.msra.mxu0 %v6552_v63  ;;  %v6625_v63 = vld [vmem:[%s7429_s11 + $0x12e0] ss:$16 sps:$4 sm:$0xff]  }
 0x119   : > { %4384 = vmatpush1.bf16.msra.mxu1 %v6555_v0  ;;  %4344 = vmatprep.subr.bf16.mxu0 %v6560_v1  ;;  %v6630_v0 = vld [vmem:[%s7429_s11 + $0x10c4] ss:$16 sps:$4 sm:$0xff]  }
 0x11a   : > { %4385 = vmatprep.subr.bf16.mxu1 %v6563_v2  ;;  %v6633_v1 = vld [vmem:[%s7429_s11 + $0x12c4] ss:$16 sps:$4 sm:$0xff]  }
 0x11c   : > { %4345 = vmatpush1.bf16.msra.mxu0 %v6558_v3  ;;  %v6628_v3 = vld [vmem:[%s7429_s11 + $0x10c0] ss:$16 sps:$4 sm:$0xff]  }
 0x11d   : > { %4386 = vmatpush1.bf16.msra.mxu1 %v6561_v4  ;;  %4346 = vmatprep.subr.bf16.mxu0 %v6566_v5  ;;  %v6631_v5 = vld [vmem:[%s7429_s11 + $0x12c0] ss:$16 sps:$4 sm:$0xff]  }
 0x11e   : > { %4387 = vmatprep.subr.bf16.mxu1 %v6569_v6  ;;  %v6636_v6 = vld [vmem:[%s7429_s11 + $0x10a4] ss:$16 sps:$4 sm:$0xff]  }
 0x120   : > { %4347 = vmatpush1.bf16.msra.mxu0 %v6564_v9 }
 0x121   : > { %4388 = vmatpush1.bf16.msra.mxu1 %v6567_v10  ;;  %4348 = vmatprep.subr.bf16.mxu0 %v6572_v11  ;;  %v6639_v11 = vld [vmem:[%s7429_s11 + $0x12a4] ss:$16 sps:$4 sm:$0xff]  }
 0x122   : > { %4389 = vmatprep.subr.bf16.mxu1 %v6575_v12 }
 0x124   : > { %4349 = vmatpush2.bf16.msra.mxu0 %v6570_v13  ;;  %v7303_v13 = vmov 0  }
 0x125   : > { %4390 = vmatpush2.bf16.msra.mxu1 %v6573_v14  ;;  %4350 = vmatprep.subr.bf16.mxu0 %v6578_v15 }
 0x126   : > { %4391 = vmatprep.subr.bf16.mxu1 %v6581_v16  ;;  %v6634_v16 = vld [vmem:[%s7429_s11 + $0x10a0] ss:$16 sps:$4 sm:$0xff]  }
 0x128   : > { %4351 = vmatpush2.bf16.msra.mxu0 %v6576_v19  ;;  %v6637_v19 = vld [vmem:[%s7429_s11 + $0x12a0] ss:$16 sps:$4 sm:$0xff]  }
 0x129   : > { %4392 = vmatpush2.bf16.msra.mxu1 %v6579_v20  ;;  %4352 = vmatprep.subr.bf16.mxu0 %v6584_v21  ;;  %v6642_v20 = vld [vmem:[%s7429_s11 + $0x1084] ss:$16 sps:$4 sm:$0xff]  }
 0x12a   : > { %4393 = vmatprep.subr.bf16.mxu1 %v6587_v22 }
 0x12c   : > { %4353 = vmatpush2.bf16.msra.mxu0 %v6582_v27  ;;  %v6645_v27 = vld [vmem:[%s7429_s11 + $0x1284] ss:$16 sps:$4 sm:$0xff]  }
 0x12d   : > { %4394 = vmatpush2.bf16.msra.mxu1 %v6585_v28  ;;  %4354 = vmatprep.subr.bf16.mxu0 %v6590_v29  ;;  %v6640_v28 = vld [vmem:[%s7429_s11 + $0x1080] ss:$16 sps:$4 sm:$0xff]  }
 0x12e   : > { %4395 = vmatprep.subr.bf16.mxu1 %v6593_v30  ;;  %v6643_v29 = vld [vmem:[%s7429_s11 + $0x1280] ss:$16 sps:$4 sm:$0xff]   ;;  %v6648_v30 = vld [vmem:[%s7429_s11 + $0x1064] ss:$16 sps:$4 sm:$0xff]  }
 0x130   : > { %4355 = vmatpush2.bf16.msra.mxu0 %v6588_v31  ;;  %v6651_v31 = vld [vmem:[%s7429_s11 + $0x1264] ss:$16 sps:$4 sm:$0xff]  }
 0x131   : > { %4396 = vmatpush2.bf16.msra.mxu1 %v6591_v32  ;;  %4356 = vmatprep.subr.bf16.mxu0 %v6596_v33  ;;  %v6646_v32 = vld [vmem:[%s7429_s11 + $0x1060] ss:$16 sps:$4 sm:$0xff]  }
 0x132   : > { %4397 = vmatprep.subr.bf16.mxu1 %v6599_v34  ;;  %v6649_v33 = vld [vmem:[%s7429_s11 + $0x1260] ss:$16 sps:$4 sm:$0xff]   ;;  %v6654_v34 = vld [vmem:[%s7429_s11 + $0x1044] ss:$16 sps:$4 sm:$0xff]  }
 0x134   : > { %4357 = vmatpush2.bf16.msra.mxu0 %v6594_v35  ;;  %v6657_v35 = vld [vmem:[%s7429_s11 + $0x1244] ss:$16 sps:$4 sm:$0xff]  }
 0x135   : > { %4398 = vmatpush2.bf16.msra.mxu1 %v6597_v36  ;;  %4358 = vmatprep.subr.bf16.mxu0 %v6602_v43  ;;  %v6652_v36 = vld [vmem:[%s7429_s11 + $0x1040] ss:$16 sps:$4 sm:$0xff]  }
 0x136   : > { %4399 = vmatprep.subr.bf16.mxu1 %v6605_v44  ;;  %v6655_v43 = vld [vmem:[%s7429_s11 + $0x1240] ss:$16 sps:$4 sm:$0xff]   ;;  %v6660_v44 = vld [vmem:[%s7429_s11 + $0x1024] ss:$16 sps:$4 sm:$0xff]  }
 0x138   : > { %4359 = vmatpush2.bf16.msra.mxu0 %v6600_v45  ;;  %v6663_v45 = vld [vmem:[%s7429_s11 + $0x1224] ss:$16 sps:$4 sm:$0xff]  }
 0x139   : > { %4400 = vmatpush2.bf16.msra.mxu1 %v6603_v46  ;;  %4360 = vmatprep.subr.bf16.mxu0 %v6608_v47  ;;  %v6658_v46 = vld [vmem:[%s7429_s11 + $0x1020] ss:$16 sps:$4 sm:$0xff]  }
 0x13a   : > { %4401 = vmatprep.subr.bf16.mxu1 %v6611_v49  ;;  %v6661_v47 = vld [vmem:[%s7429_s11 + $0x1220] ss:$16 sps:$4 sm:$0xff]   ;;  %v6666_v49 = vld [vmem:[%s7429_s11 + $0x1004] ss:$16 sps:$4 sm:$0xff]  }
 0x13c   : > { %4361 = vmatpush2.bf16.msra.mxu0 %v6606_v50  ;;  %v6669_v50 = vld [vmem:[%s7429_s11 + $0x1204] ss:$16 sps:$4 sm:$0xff]  }
 0x13d   : > { %4402 = vmatpush2.bf16.msra.mxu1 %v6609_v51  ;;  %4362 = vmatprep.subr.bf16.mxu0 %v6614_v53  ;;  %v6664_v51 = vld [vmem:[%s7429_s11 + $0x1000] ss:$16 sps:$4 sm:$0xff]  }
 0x13e   : > { %4403 = vmatprep.subr.bf16.mxu1 %v6617_v54  ;;  %v6667_v53 = vld [vmem:[%s7429_s11 + $0x1200] ss:$16 sps:$4 sm:$0xff]   ;;  %v6672_v54 = vld [vmem:[%s7429_s11 + $0x11e4] ss:$16 sps:$4 sm:$0xff]  }
 0x140   : > { %4363 = vmatpush2.bf16.msra.mxu0 %v6612_v55  ;;  %v6673_v55 = vld [vmem:[%s7443_s13 + $0x48] ss:$0 sps:$4 sm:$0xff]  }
 0x141   : > { %4404 = vmatpush2.bf16.msra.mxu1 %v6615_v56  ;;  %4414 = vmatprep.subr.bf16.mxu0 %v6624_v57  ;;  %v6676_v56 = vld [vmem:[%s7429_s11 + $0xec] ss:$16 sps:$4 sm:$0xff]   ;;  %v6670_v57 = vld [vmem:[%s7429_s11 + $0x11e0] ss:$16 sps:$4 sm:$0xff]  }
 0x142   : > { %4455 = vmatprep.subr.bf16.mxu1 %v6627_v58  ;;  %v6674_v58 = vld [vmem:[%s7429_s11 + $0xe8] ss:$16 sps:$4 sm:$0xff]  }
 0x143   : > { %v4120_v2 = vpop.f32.mrf.mxu0  ;;  %4365 = vmatmul.mubr.bf16.vlgmr.msra.gmra.mxu0 %v7788_v59 }
 0x144   : > { %v4161_v42 = vpop.f32.mrf.mxu1  ;;  %4406 = vmatmul.mubr.bf16.vlgmr.msra.gmra.mxu1 %v7792_v60  ;;  %4415 = vmatpush1.bf16.msra.mxu0 %v6622_v61  ;;  %v6679_v61 = vld [vmem:[%s7429_s11 + $0x11c4] ss:$16 sps:$4 sm:$0xff]  }
 0x145   : > { %v7808_v4 = vadd.f32 %v4161_v42, %v4120_v2  ;;  %4456 = vmatpush1.bf16.msra.mxu1 %v6625_v63  ;;  %v4122_v9 = vpop.f32.mrf.mxu0  ;;  %4416 = vmatprep.subr.bf16.mxu0 %v6630_v0  ;;  %v6682_v63 = vld [vmem:[%s7429_s11 + $0xcc] ss:$16 sps:$4 sm:$0xff]   ;;  %v6677_v0 = vld [vmem:[%s7429_s11 + $0x11c0] ss:$16 sps:$4 sm:$0xff]   ;;  %v6685_v2 = vld [vmem:[%s7429_s11 + $0x11a4] ss:$16 sps:$4 sm:$0xff]  }
 0x146   : > { %v4163_v10 = vpop.f32.mrf.mxu1  ;;  %4457 = vmatprep.subr.bf16.mxu1 %v6633_v1  ;;  %4487 = vmatprep.mubr.bf16.mxu1 %v7303_v13  ;;  %v6680_v1 = vld [vmem:[%s7429_s11 + $0xc8] ss:$16 sps:$4 sm:$0xff]   ;;  %v6688_v42 = vld [vmem:[%s7429_s11 + $0xac] ss:$16 sps:$4 sm:$0xff]  }
 0x147   : > { %v7813_v12 = vadd.f32 %v4163_v10, %v4122_v9  ;;  %4446 = vmatprep.mubr.bf16.mxu0 %v7803_v41  ;;  %v4124_v14 = vpop.f32.mrf.mxu0  ;;  %v6694_v9 = vld [vmem:[%s7429_s11 + $0x8c] ss:$16 sps:$4 sm:$0xff]   ;;  %v6689_v10 = vld [vmem:[%s7429_s11 + $0x1180] ss:$16 sps:$4 sm:$0xff]  }
 0x148   : > { %v4165_v15 = vpop.f32.mrf.mxu1  ;;  %4417 = vmatpush1.bf16.msra.mxu0 %v6628_v3  ;;  %v6683_v3 = vld [vmem:[%s7429_s11 + $0x11a0] ss:$16 sps:$4 sm:$0xff]   ;;  %v6700_v14 = vld [vmem:[%s7429_s11 + $0x6c] ss:$16 sps:$4 sm:$0xff]  }
 0x149   : > { %4458 = vmatpush1.bf16.msra.mxu1 %v6631_v5  ;;  %v4125_v21 = vpop.f32.mrf.mxu0  ;;  %4418 = vmatprep.subr.bf16.mxu0 %v6636_v6  ;;  %v6686_v5 = vld [vmem:[%s7429_s11 + $0xa8] ss:$16 sps:$4 sm:$0xff]   ;;  %v6691_v6 = vld [vmem:[%s7429_s11 + $0x1184] ss:$16 sps:$4 sm:$0xff]   ;;  %v6695_v15 = vld [vmem:[%s7429_s11 + $0x1160] ss:$16 sps:$4 sm:$0xff]  }
 0x14a   : > { %v4166_v22 = vpop.f32.mrf.mxu1  ;;  %4459 = vmatprep.subr.bf16.mxu1 %v6639_v11  ;;  %v6692_v11 = vld [vmem:[%s7429_s11 + $0x88] ss:$16 sps:$4 sm:$0xff]   ;;  %v6701_v21 = vld [vmem:[%s7429_s11 + $0x1140] ss:$16 sps:$4 sm:$0xff]  }
 0x14b   : > { %v6704_v22 = vld [vmem:[%s7429_s11 + $0x48] ss:$16 sps:$4 sm:$0xff]  }
 0x14c   : > { %4419 = vmatpush1.bf16.msra.mxu0 %v6634_v16  ;;  %v6698_v16 = vld [vmem:[%s7429_s11 + $0x68] ss:$16 sps:$4 sm:$0xff]  }
 0x14d   : > { %4460 = vmatpush1.bf16.msra.mxu1 %v6637_v19  ;;  %4420 = vmatprep.subr.bf16.mxu0 %v6642_v20  ;;  %v6703_v19 = vld [vmem:[%s7429_s11 + $0x1144] ss:$16 sps:$4 sm:$0xff]   ;;  %v6706_v20 = vld [vmem:[%s7429_s11 + $0x4c] ss:$16 sps:$4 sm:$0xff]  }
 0x14e   : > { %4461 = vmatprep.subr.bf16.mxu1 %v6645_v27  ;;  %v6709_v27 = vld [vmem:[%s7429_s11 + $0x1124] ss:$16 sps:$4 sm:$0xff]  }
 0x150   : > { %4421 = vmatpush1.bf16.msra.mxu0 %v6640_v28  ;;  %v6712_v28 = vld [vmem:[%s7429_s11 + $0x2c] ss:$16 sps:$4 sm:$0xff]  }
 0x151   : > { %4462 = vmatpush1.bf16.msra.mxu1 %v6643_v29  ;;  %4422 = vmatprep.subr.bf16.mxu0 %v6648_v30  ;;  %v6707_v29 = vld [vmem:[%s7429_s11 + $0x1120] ss:$16 sps:$4 sm:$0xff]   ;;  %v6710_v30 = vld [vmem:[%s7429_s11 + $0x28] ss:$16 sps:$4 sm:$0xff]  }
 0x152   : > { %4463 = vmatprep.subr.bf16.mxu1 %v6651_v31  ;;  %v6715_v31 = vld [vmem:[%s7429_s11 + $0x1104] ss:$16 sps:$4 sm:$0xff]  }
 0x154   : > { %4423 = vmatpush1.bf16.msra.mxu0 %v6646_v32  ;;  %v6718_v32 = vld [vmem:[%s7429_s11 + $0xc] ss:$16 sps:$4 sm:$0xff]  }
 0x155   : > { %4464 = vmatpush1.bf16.msra.mxu1 %v6649_v33  ;;  %4424 = vmatprep.subr.bf16.mxu0 %v6654_v34  ;;  %v6713_v33 = vld [vmem:[%s7429_s11 + $0x1100] ss:$16 sps:$4 sm:$0xff]   ;;  %v6716_v34 = vld [vmem:[%s7429_s11 + $0x8] ss:$16 sps:$4 sm:$0xff]  }
 0x156   : > { %4465 = vmatprep.subr.bf16.mxu1 %v6657_v35  ;;  %v6723_v35 = vld [vmem:[%s7429_s11 + $0x1ec] ss:$16 sps:$4 sm:$0xff]  }
 0x158   : > { %4425 = vmatpush1.bf16.msra.mxu0 %v6652_v36  ;;  %v6726_v36 = vld [vmem:[%s7429_s11 + $0x2ec] ss:$16 sps:$4 sm:$0xff]  }
 0x159   : > { %4466 = vmatpush1.bf16.msra.mxu1 %v6655_v43  ;;  %4426 = vmatprep.subr.bf16.mxu0 %v6660_v44  ;;  %v6721_v43 = vld [vmem:[%s7429_s11 + $0x1e8] ss:$16 sps:$4 sm:$0xff]  }
 0x15a   : > { %4467 = vmatprep.subr.bf16.mxu1 %v6663_v45  ;;  %v6724_v44 = vld [vmem:[%s7429_s11 + $0x2e8] ss:$16 sps:$4 sm:$0xff]   ;;  %v7879_v45 = vcombine.low %v7796_v62, %v7796_v62 }
 0x15c   : > { %4427 = vmatpush1.bf16.msra.mxu0 %v6658_v46  ;;  %v6729_v46 = vld [vmem:[%s7429_s11 + $0x1cc] ss:$16 sps:$4 sm:$0xff]  }
 0x15d   : > { %4468 = vmatpush1.bf16.msra.mxu1 %v6661_v47  ;;  %4428 = vmatprep.subr.bf16.mxu0 %v6666_v49  ;;  %v6732_v47 = vld [vmem:[%s7429_s11 + $0x2cc] ss:$16 sps:$4 sm:$0xff]   ;;  %v6727_v49 = vld [vmem:[%s7429_s11 + $0x1c8] ss:$16 sps:$4 sm:$0xff]  }
 0x15e   : > { %4469 = vmatprep.subr.bf16.mxu1 %v6669_v50  ;;  %v6730_v50 = vld [vmem:[%s7429_s11 + $0x2c8] ss:$16 sps:$4 sm:$0xff]  }
 0x160   : > { %4429 = vmatpush1.bf16.msra.mxu0 %v6664_v51 }
 0x161   : > { %4470 = vmatpush1.bf16.msra.mxu1 %v6667_v53  ;;  %4430 = vmatprep.subr.bf16.mxu0 %v6672_v54 }
 0x162   : > { %4496 = vmatprep.subr.bf16.mxu1 %v6676_v56  ;;  %v6735_v56 = vld [vmem:[%s7429_s11 + $0x1ac] ss:$16 sps:$4 sm:$0xff]  }
 0x164   : > { %4488 = vmatmul.mubr.bf16.vlgmr.msra.gmra.mxu1 %v6673_v55  ;;  %4431 = vmatpush2.bf16.msra.mxu0 %v6670_v57  ;;  %v6738_v57 = vld [vmem:[%s7429_s11 + $0x2ac] ss:$16 sps:$4 sm:$0xff]  }
 0x165   : > { %4497 = vmatpush1.bf16.msra.mxu1 %v6674_v58  ;;  %4432 = vmatprep.subr.bf16.mxu0 %v6679_v61 }
 0x166   : > { %4498 = vmatprep.subr.bf16.mxu1 %v6682_v63  ;;  %4528 = vmatprep.mubr.bf16.mxu1 %v7493_v48  ;;  %v6697_v48 = vld [vmem:[%s7429_s11 + $0x1164] ss:$16 sps:$4 sm:$0xff]   ;;  %v6733_v63 = vld [vmem:[%s7429_s11 + $0x1a8] ss:$16 sps:$4 sm:$0xff]  }
 0x168   : > { %4433 = vmatpush2.bf16.msra.mxu0 %v6677_v0  ;;  %v6736_v0 = vld [vmem:[%s7429_s11 + $0x2a8] ss:$16 sps:$4 sm:$0xff]  }
 0x169   : > { %4499 = vmatpush1.bf16.msra.mxu1 %v6680_v1  ;;  %4434 = vmatprep.subr.bf16.mxu0 %v6685_v2 }
 0x16a   : > { %4500 = vmatprep.subr.bf16.mxu1 %v6688_v42 }
 0x16c   : > { %4435 = vmatpush2.bf16.msra.mxu0 %v6683_v3 }
 0x16d   : > { %4501 = vmatpush1.bf16.msra.mxu1 %v6686_v5  ;;  %4436 = vmatprep.subr.bf16.mxu0 %v6691_v6  ;;  %v6744_v5 = vld [vmem:[%s7429_s11 + $0x28c] ss:$16 sps:$4 sm:$0xff]   ;;  %v6742_v6 = vld [vmem:[%s7429_s11 + $0x288] ss:$16 sps:$4 sm:$0xff]  }
 0x16e   : > { %4502 = vmatprep.subr.bf16.mxu1 %v6694_v9  ;;  %v6747_v9 = vld [vmem:[%s7429_s11 + $0x16c] ss:$16 sps:$4 sm:$0xff]  }
 0x170   : > { %4437 = vmatpush2.bf16.msra.mxu0 %v6689_v10  ;;  %v6750_v10 = vld [vmem:[%s7429_s11 + $0x26c] ss:$16 sps:$4 sm:$0xff]  }
 0x171   : > { %4503 = vmatpush1.bf16.msra.mxu1 %v6692_v11  ;;  %4438 = vmatprep.subr.bf16.mxu0 %v6697_v48  ;;  %v6745_v11 = vld [vmem:[%s7429_s11 + $0x168] ss:$16 sps:$4 sm:$0xff]  }
 0x172   : > { %4504 = vmatprep.subr.bf16.mxu1 %v6700_v14  ;;  %v6748_v48 = vld [vmem:[%s7429_s11 + $0x268] ss:$16 sps:$4 sm:$0xff]   ;;  %v6753_v14 = vld [vmem:[%s7429_s11 + $0x14c] ss:$16 sps:$4 sm:$0xff]  }
 0x174   : > { %4439 = vmatpush2.bf16.msra.mxu0 %v6695_v15  ;;  %v6756_v15 = vld [vmem:[%s7429_s11 + $0x24c] ss:$16 sps:$4 sm:$0xff]  }
 0x175   : > { %4505 = vmatpush1.bf16.msra.mxu1 %v6698_v16  ;;  %4440 = vmatprep.subr.bf16.mxu0 %v6703_v19  ;;  %v6751_v16 = vld [vmem:[%s7429_s11 + $0x148] ss:$16 sps:$4 sm:$0xff]  }
 0x176   : > { %4506 = vmatprep.subr.bf16.mxu1 %v6706_v20  ;;  %v6754_v19 = vld [vmem:[%s7429_s11 + $0x248] ss:$16 sps:$4 sm:$0xff]   ;;  %v6759_v20 = vld [vmem:[%s7429_s11 + $0x12c] ss:$16 sps:$4 sm:$0xff]  }
 0x178   : > { %4441 = vmatpush2.bf16.msra.mxu0 %v6701_v21  ;;  %v6762_v21 = vld [vmem:[%s7429_s11 + $0x22c] ss:$16 sps:$4 sm:$0xff]  }
 0x179   : > { %4507 = vmatpush1.bf16.msra.mxu1 %v6704_v22  ;;  %4442 = vmatprep.subr.bf16.mxu0 %v6709_v27  ;;  %v6757_v22 = vld [vmem:[%s7429_s11 + $0x128] ss:$16 sps:$4 sm:$0xff]  }
 0x17a   : > { %4508 = vmatprep.subr.bf16.mxu1 %v6712_v28  ;;  %v6760_v27 = vld [vmem:[%s7429_s11 + $0x228] ss:$16 sps:$4 sm:$0xff]   ;;  %v6765_v28 = vld [vmem:[%s7429_s11 + $0x10c] ss:$16 sps:$4 sm:$0xff]  }
 0x17c   : > { %4443 = vmatpush2.bf16.msra.mxu0 %v6707_v29  ;;  %v6768_v29 = vld [vmem:[%s7429_s11 + $0x20c] ss:$16 sps:$4 sm:$0xff]  }
 0x17d   : > { %4509 = vmatpush1.bf16.msra.mxu1 %v6710_v30  ;;  %4444 = vmatprep.subr.bf16.mxu0 %v6715_v31  ;;  %v6763_v30 = vld [vmem:[%s7429_s11 + $0x108] ss:$16 sps:$4 sm:$0xff]  }
 0x17e   : > { %4510 = vmatprep.subr.bf16.mxu1 %v6718_v32  ;;  %v6766_v31 = vld [vmem:[%s7429_s11 + $0x208] ss:$16 sps:$4 sm:$0xff]   ;;  %v6771_v32 = vld [vmem:[%s7429_s11 + $0x3ec] ss:$16 sps:$4 sm:$0xff]  }
 0x180   : > { %4445 = vmatpush2.bf16.msra.mxu0 %v6713_v33  ;;  %v6774_v33 = vld [vmem:[%s7429_s11 + $0x4ec] ss:$16 sps:$4 sm:$0xff]  }
 0x181   : > { %4511 = vmatpush1.bf16.msra.mxu1 %v6716_v34  ;;  %4537 = vmatprep.subr.bf16.mxu0 %v6726_v36  ;;  %v6769_v34 = vld [vmem:[%s7429_s11 + $0x3e8] ss:$16 sps:$4 sm:$0xff]   ;;  %v6777_v36 = vld [vmem:[%s7429_s11 + $0x3cc] ss:$16 sps:$4 sm:$0xff]  }
 0x182   : > { %4512 = vmatprep.subr.bf16.mxu1 %v6723_v35  ;;  %v6772_v35 = vld [vmem:[%s7429_s11 + $0x4e8] ss:$16 sps:$4 sm:$0xff]  }
 0x183   : > { %v4202_v51 = vpop.f32.mrf.mxu0  ;;  %4447 = vmatmul.mubr.bf16.vlgmr.msra.gmra.mxu0 %v7879_v45 }
 0x184   : > { %v4243_v53 = vpop.f32.mrf.mxu1  ;;  %v4203_v54 = vadd.f32 %v4202_v51, %v7808_v4  ;;  %4538 = vmatpush1.bf16.msra.mxu0 %v6724_v44  ;;  %4569 = vmatprep.mubr.bf16.mxu0 %v7498_v52  ;;  %v6739_v52 = vld [vmem:[%s7429_s11 + $0x188] ss:$16 sps:$4 sm:$0xff]  }
 0x185   : > { %4513 = vmatpush2.bf16.msra.mxu1 %v6721_v43  ;;  %v4204_v62 = vpop.f32.mrf.mxu0  ;;  %4539 = vmatprep.subr.bf16.mxu0 %v6732_v47  ;;  %v6780_v43 = vld [vmem:[%s7429_s11 + $0x4cc] ss:$16 sps:$4 sm:$0xff]   ;;  %v6775_v44 = vld [vmem:[%s7429_s11 + $0x3c8] ss:$16 sps:$4 sm:$0xff]  }
 0x186   : > { %v4245_v55 = vpop.f32.mrf.mxu1  ;;  %4514 = vmatprep.subr.bf16.mxu1 %v6729_v46  ;;  %v7889_v58 = vadd.f32 %v4243_v53, %v4203_v54  ;;  %v4205_v61 = vadd.f32 %v4204_v62, %v7813_v12  ;;  %v6741_v12 = vld [vmem:[%s7429_s11 + $0x18c] ss:$16 sps:$4 sm:$0xff]   ;;  %v6778_v46 = vld [vmem:[%s7429_s11 + $0x4c8] ss:$16 sps:$4 sm:$0xff]  }
 0x187   : > { %v4206_v4 = vpop.f32.mrf.mxu0  ;;  %v6783_v47 = vld [vmem:[%s7429_s11 + $0x3ac] ss:$16 sps:$4 sm:$0xff]   ;;  %v6784_v51 = vld [vmem:[%s7429_s11 + $0x4a8] ss:$16 sps:$4 sm:$0xff]  }
 0x188   : > { %v4247_v1 = vpop.f32.mrf.mxu1  ;;  %v7895_v2 = vadd.f32 %v4245_v55, %v4205_v61  ;;  %4540 = vmatpush1.bf16.msra.mxu0 %v6730_v50  ;;  %v6781_v50 = vld [vmem:[%s7429_s11 + $0x3a8] ss:$16 sps:$4 sm:$0xff]   ;;  %v6792_v53 = vld [vmem:[%s7429_s11 + $0x48c] ss:$16 sps:$4 sm:$0xff]  }
 0x189   : > { %4515 = vmatpush2.bf16.msra.mxu1 %v6727_v49  ;;  %v4207_v42 = vpop.f32.mrf.mxu0  ;;  %4541 = vmatprep.subr.bf16.mxu0 %v6738_v57  ;;  %v6786_v49 = vld [vmem:[%s7429_s11 + $0x4ac] ss:$16 sps:$4 sm:$0xff]   ;;  %v6787_v54 = vld [vmem:[%s7429_s11 + $0x388] ss:$16 sps:$4 sm:$0xff]  }
 0x18a   : > { %v4248_v3 = vpop.f32.mrf.mxu1  ;;  %4516 = vmatprep.subr.bf16.mxu1 %v6735_v56  ;;  %v6790_v62 = vld [vmem:[%s7429_s11 + $0x488] ss:$16 sps:$4 sm:$0xff]   ;;  %v6795_v55 = vld [vmem:[%s7429_s11 + $0x36c] ss:$16 sps:$4 sm:$0xff]  }
 0x18b   : > { %v6793_v56 = vld [vmem:[%s7429_s11 + $0x368] ss:$16 sps:$4 sm:$0xff]   ;;  %v6801_v61 = vld [vmem:[%s7429_s11 + $0x34c] ss:$16 sps:$4 sm:$0xff]  }
 0x18c   : > { %4542 = vmatpush1.bf16.msra.mxu0 %v6736_v0  ;;  %v6796_v57 = vld [vmem:[%s7429_s11 + $0x468] ss:$16 sps:$4 sm:$0xff]   ;;  %v6807_v1 = vld [vmem:[%s7429_s11 + $0x32c] ss:$16 sps:$4 sm:$0xff]  }
 0x18d   : > { %4517 = vmatpush2.bf16.msra.mxu1 %v6733_v63  ;;  %4543 = vmatprep.subr.bf16.mxu0 %v6744_v5  ;;  %v6804_v63 = vld [vmem:[%s7429_s11 + $0x44c] ss:$16 sps:$4 sm:$0xff]   ;;  %v6799_v0 = vld [vmem:[%s7429_s11 + $0x348] ss:$16 sps:$4 sm:$0xff]  }
 0x18e   : > { %4518 = vmatprep.subr.bf16.mxu1 %v6741_v12  ;;  %v6802_v4 = vld [vmem:[%s7429_s11 + $0x448] ss:$16 sps:$4 sm:$0xff]   ;;  %v6810_v42 = vld [vmem:[%s7429_s11 + $0x42c] ss:$16 sps:$4 sm:$0xff]  }
 0x18f   : > { %v6805_v3 = vld [vmem:[%s7429_s11 + $0x328] ss:$16 sps:$4 sm:$0xff]   ;;  %v6813_v5 = vld [vmem:[%s7429_s11 + $0x30c] ss:$16 sps:$4 sm:$0xff]  }
 0x190   : > { %4544 = vmatpush1.bf16.msra.mxu0 %v6742_v6  ;;  %v6808_v12 = vld [vmem:[%s7429_s11 + $0x428] ss:$16 sps:$4 sm:$0xff]  }
 0x191   : > { %4519 = vmatpush2.bf16.msra.mxu1 %v6739_v52  ;;  %4545 = vmatprep.subr.bf16.mxu0 %v6750_v10  ;;  %v6816_v52 = vld [vmem:[%s7429_s11 + $0x40c] ss:$16 sps:$4 sm:$0xff]   ;;  %v6811_v6 = vld [vmem:[%s7429_s11 + $0x308] ss:$16 sps:$4 sm:$0xff]  }
 0x192   : > { %4520 = vmatprep.subr.bf16.mxu1 %v6747_v9  ;;  %v6814_v9 = vld [vmem:[%s7429_s11 + $0x408] ss:$16 sps:$4 sm:$0xff]   ;;  %v6819_v10 = vld [vmem:[%s7429_s11 + $0x5ec] ss:$16 sps:$4 sm:$0xff]  }
 0x194   : > { %4546 = vmatpush1.bf16.msra.mxu0 %v6748_v48  ;;  %v6817_v48 = vld [vmem:[%s7429_s11 + $0x5e8] ss:$16 sps:$4 sm:$0xff]  }
 0x195   : > { %4521 = vmatpush2.bf16.msra.mxu1 %v6745_v11  ;;  %4547 = vmatprep.subr.bf16.mxu0 %v6756_v15  ;;  %v6822_v11 = vld [vmem:[%s7429_s11 + $0x6ec] ss:$16 sps:$4 sm:$0xff]  }
 0x196   : > { %4522 = vmatprep.subr.bf16.mxu1 %v6753_v14  ;;  %v6820_v14 = vld [vmem:[%s7429_s11 + $0x6e8] ss:$16 sps:$4 sm:$0xff]   ;;  %v6825_v15 = vld [vmem:[%s7429_s11 + $0x5cc] ss:$16 sps:$4 sm:$0xff]  }
 0x198   : > { %4548 = vmatpush1.bf16.msra.mxu0 %v6754_v19 }
 0x199   : > { %4523 = vmatpush2.bf16.msra.mxu1 %v6751_v16  ;;  %4549 = vmatprep.subr.bf16.mxu0 %v6762_v21  ;;  %v6828_v16 = vld [vmem:[%s7429_s11 + $0x6cc] ss:$16 sps:$4 sm:$0xff]  }
 0x19a   : > { %4524 = vmatprep.subr.bf16.mxu1 %v6759_v20 }
 0x19c   : > { %4550 = vmatpush1.bf16.msra.mxu0 %v6760_v27  ;;  %v6826_v27 = vld [vmem:[%s7429_s11 + $0x6c8] ss:$16 sps:$4 sm:$0xff]  }
 0x19d   : > { %4525 = vmatpush2.bf16.msra.mxu1 %v6757_v22  ;;  %4551 = vmatprep.subr.bf16.mxu0 %v6768_v29  ;;  %v6823_v22 = vld [vmem:[%s7429_s11 + $0x5c8] ss:$16 sps:$4 sm:$0xff]  }
 0x19e   : > { %4526 = vmatprep.subr.bf16.mxu1 %v6765_v28 }
 0x1a0   : > { %4552 = vmatpush1.bf16.msra.mxu0 %v6766_v31  ;;  %v6834_v31 = vld [vmem:[%s7429_s11 + $0x6ac] ss:$16 sps:$4 sm:$0xff]  }
 0x1a1   : > { %4527 = vmatpush2.bf16.msra.mxu1 %v6763_v30  ;;  %4553 = vmatprep.subr.bf16.mxu0 %v6771_v32  ;;  %v6831_v30 = vld [vmem:[%s7429_s11 + $0x5ac] ss:$16 sps:$4 sm:$0xff]  }
 0x1a2   : > { %4578 = vmatprep.subr.bf16.mxu1 %v6774_v33 }
 0x1a4   : > { %4529 = vmatmul.mubr.bf16.vlgmr.msra.gmra.mxu1 %v7520_v7  ;;  %4554 = vmatpush2.bf16.msra.mxu0 %v6769_v34  ;;  %v6789_v7 = vld [vmem:[%s7429_s11 + $0x38c] ss:$16 sps:$4 sm:$0xff]  }
 0x1a5   : > { %4579 = vmatpush1.bf16.msra.mxu1 %v6772_v35  ;;  %4555 = vmatprep.subr.bf16.mxu0 %v6777_v36  ;;  %v6829_v35 = vld [vmem:[%s7429_s11 + $0x5a8] ss:$16 sps:$4 sm:$0xff]  }
 0x1a6   : > { %4580 = vmatprep.subr.bf16.mxu1 %v6780_v43  ;;  %4610 = vmatprep.mubr.bf16.mxu1 %v7560_v37  ;;  %v6798_v37 = vld [vmem:[%s7429_s11 + $0x46c] ss:$16 sps:$4 sm:$0xff]   ;;  %v6832_v36 = vld [vmem:[%s7429_s11 + $0x6a8] ss:$16 sps:$4 sm:$0xff]  }
 0x1a8   : > { %4556 = vmatpush2.bf16.msra.mxu0 %v6775_v44 }
 0x1a9   : > { %4581 = vmatpush1.bf16.msra.mxu1 %v6778_v46  ;;  %4557 = vmatprep.subr.bf16.mxu0 %v6783_v47  ;;  %v6835_v46 = vld [vmem:[%s7429_s11 + $0x588] ss:$16 sps:$4 sm:$0xff]  }
 0x1aa   : > { %4582 = vmatprep.subr.bf16.mxu1 %v6786_v49  ;;  %v6838_v47 = vld [vmem:[%s7429_s11 + $0x688] ss:$16 sps:$4 sm:$0xff]   ;;  %v6843_v49 = vld [vmem:[%s7429_s11 + $0x56c] ss:$16 sps:$4 sm:$0xff]  }
 0x1ac   : > { %4558 = vmatpush2.bf16.msra.mxu0 %v6781_v50  ;;  %v6846_v50 = vld [vmem:[%s7429_s11 + $0x66c] ss:$16 sps:$4 sm:$0xff]  }
 0x1ad   : > { %4583 = vmatpush1.bf16.msra.mxu1 %v6784_v51  ;;  %4559 = vmatprep.subr.bf16.mxu0 %v6789_v7  ;;  %v6841_v51 = vld [vmem:[%s7429_s11 + $0x568] ss:$16 sps:$4 sm:$0xff]  }
 0x1ae   : > { %4584 = vmatprep.subr.bf16.mxu1 %v6792_v53  ;;  %v6844_v7 = vld [vmem:[%s7429_s11 + $0x668] ss:$16 sps:$4 sm:$0xff]   ;;  %v6849_v53 = vld [vmem:[%s7429_s11 + $0x54c] ss:$16 sps:$4 sm:$0xff]  }
 0x1b0   : > { %4560 = vmatpush2.bf16.msra.mxu0 %v6787_v54  ;;  %v6852_v54 = vld [vmem:[%s7429_s11 + $0x64c] ss:$16 sps:$4 sm:$0xff]  }
 0x1b1   : > { %4585 = vmatpush1.bf16.msra.mxu1 %v6790_v62  ;;  %4561 = vmatprep.subr.bf16.mxu0 %v6795_v55  ;;  %v6847_v62 = vld [vmem:[%s7429_s11 + $0x548] ss:$16 sps:$4 sm:$0xff]  }
 0x1b2   : > { %4586 = vmatprep.subr.bf16.mxu1 %v6798_v37  ;;  %v6850_v55 = vld [vmem:[%s7429_s11 + $0x648] ss:$16 sps:$4 sm:$0xff]   ;;  %v6855_v37 = vld [vmem:[%s7429_s11 + $0x52c] ss:$16 sps:$4 sm:$0xff]  }
 0x1b4   : > { %4562 = vmatpush2.bf16.msra.mxu0 %v6793_v56  ;;  %v6858_v56 = vld [vmem:[%s7429_s11 + $0x62c] ss:$16 sps:$4 sm:$0xff]  }
 0x1b5   : > { %4587 = vmatpush1.bf16.msra.mxu1 %v6796_v57  ;;  %4563 = vmatprep.subr.bf16.mxu0 %v6801_v61  ;;  %v6853_v57 = vld [vmem:[%s7429_s11 + $0x528] ss:$16 sps:$4 sm:$0xff]  }
 0x1b6   : > { %4588 = vmatprep.subr.bf16.mxu1 %v6804_v63  ;;  %v6856_v61 = vld [vmem:[%s7429_s11 + $0x628] ss:$16 sps:$4 sm:$0xff]   ;;  %v6861_v63 = vld [vmem:[%s7429_s11 + $0x50c] ss:$16 sps:$4 sm:$0xff]  }
 0x1b8   : > { %4564 = vmatpush2.bf16.msra.mxu0 %v6799_v0  ;;  %v6864_v0 = vld [vmem:[%s7429_s11 + $0x60c] ss:$16 sps:$4 sm:$0xff]  }
 0x1b9   : > { %4589 = vmatpush1.bf16.msra.mxu1 %v6802_v4  ;;  %4565 = vmatprep.subr.bf16.mxu0 %v6807_v1  ;;  %v6859_v4 = vld [vmem:[%s7429_s11 + $0x508] ss:$16 sps:$4 sm:$0xff]  }
 0x1ba   : > { %4590 = vmatprep.subr.bf16.mxu1 %v6810_v42  ;;  %v6862_v1 = vld [vmem:[%s7429_s11 + $0x608] ss:$16 sps:$4 sm:$0xff]   ;;  %v6867_v42 = vld [vmem:[%s7429_s11 + $0x7ec] ss:$16 sps:$4 sm:$0xff]  }
 0x1bc   : > { %4566 = vmatpush2.bf16.msra.mxu0 %v6805_v3  ;;  %v6870_v3 = vld [vmem:[%s7429_s11 + $0x8ec] ss:$16 sps:$4 sm:$0xff]  }
 0x1bd   : > { %4591 = vmatpush1.bf16.msra.mxu1 %v6808_v12  ;;  %4567 = vmatprep.subr.bf16.mxu0 %v6813_v5  ;;  %v6865_v12 = vld [vmem:[%s7429_s11 + $0x7e8] ss:$16 sps:$4 sm:$0xff]  }
 0x1be   : > { %4592 = vmatprep.subr.bf16.mxu1 %v6816_v52  ;;  %v6868_v5 = vld [vmem:[%s7429_s11 + $0x8e8] ss:$16 sps:$4 sm:$0xff]   ;;  %v6873_v52 = vld [vmem:[%s7429_s11 + $0x7cc] ss:$16 sps:$4 sm:$0xff]  }
 0x1c0   : > { %4568 = vmatpush2.bf16.msra.mxu0 %v6811_v6  ;;  %v6876_v6 = vld [vmem:[%s7429_s11 + $0x8cc] ss:$16 sps:$4 sm:$0xff]  }
 0x1c1   : > { %4593 = vmatpush1.bf16.msra.mxu1 %v6814_v9  ;;  %4619 = vmatprep.subr.bf16.mxu0 %v6822_v11  ;;  %v6871_v9 = vld [vmem:[%s7429_s11 + $0x7c8] ss:$16 sps:$4 sm:$0xff]   ;;  %v6879_v11 = vld [vmem:[%s7429_s11 + $0x7ac] ss:$16 sps:$4 sm:$0xff]  }
 0x1c2   : > { %4594 = vmatprep.subr.bf16.mxu1 %v6819_v10  ;;  %v6874_v10 = vld [vmem:[%s7429_s11 + $0x8c8] ss:$16 sps:$4 sm:$0xff]  }
 0x1c3   : > { %v4284_v19 = vpop.f32.mrf.mxu0  ;;  %4570 = vmatmul.mubr.bf16.vlgmr.msra.gmra.mxu0 %v7522_v8 }
 0x1c4   : > { %v4325_v20 = vpop.f32.mrf.mxu1  ;;  %v4285_v21 = vadd.f32 %v4284_v19, %v7889_v58  ;;  %4620 = vmatpush1.bf16.msra.mxu0 %v6820_v14  ;;  %4651 = vmatprep.mubr.bf16.mxu0 %v7564_v38  ;;  %v6840_v38 = vld [vmem:[%s7429_s11 + $0x68c] ss:$16 sps:$4 sm:$0xff]   ;;  %v6877_v14 = vld [vmem:[%s7429_s11 + $0x7a8] ss:$16 sps:$4 sm:$0xff]  }
 0x1c5   : > { %4595 = vmatpush2.bf16.msra.mxu1 %v6817_v48  ;;  %v4286_v28 = vpop.f32.mrf.mxu0  ;;  %4621 = vmatprep.subr.bf16.mxu0 %v6828_v16  ;;  %v6882_v48 = vld [vmem:[%s7429_s11 + $0x8ac] ss:$16 sps:$4 sm:$0xff]   ;;  %v6883_v19 = vld [vmem:[%s7429_s11 + $0x788] ss:$16 sps:$4 sm:$0xff]  }
 0x1c6   : > { %v4327_v29 = vpop.f32.mrf.mxu1  ;;  %4596 = vmatprep.subr.bf16.mxu1 %v6825_v15  ;;  %v7963_v32 = vadd.f32 %v4325_v20, %v4285_v21  ;;  %v4287_v8 = vadd.f32 %v4286_v28, %v7895_v2  ;;  %v6837_v2 = vld [vmem:[%s7429_s11 + $0x58c] ss:$16 sps:$4 sm:$0xff]   ;;  %v6886_v20 = vld [vmem:[%s7429_s11 + $0x888] ss:$16 sps:$4 sm:$0xff]  }
 0x1c7   : > { %v4288_v58 = vpop.f32.mrf.mxu0  ;;  %v6885_v15 = vld [vmem:[%s7429_s11 + $0x78c] ss:$16 sps:$4 sm:$0xff]  }
 0x1c8   : > { %v4329_v33 = vpop.f32.mrf.mxu1  ;;  %v7967_v34 = vadd.f32 %v4327_v29, %v4287_v8  ;;  %4622 = vmatpush1.bf16.msra.mxu0 %v6826_v27  ;;  %v6888_v16 = vld [vmem:[%s7429_s11 + $0x88c] ss:$16 sps:$4 sm:$0xff]   ;;  %v6892_v27 = vld [vmem:[%s7429_s11 + $0x868] ss:$16 sps:$4 sm:$0xff]  }
 0x1c9   : > { %4597 = vmatpush2.bf16.msra.mxu1 %v6823_v22  ;;  %v4289_v43 = vpop.f32.mrf.mxu0  ;;  %4623 = vmatprep.subr.bf16.mxu0 %v6834_v31  ;;  %v6894_v21 = vld [vmem:[%s7429_s11 + $0x86c] ss:$16 sps:$4 sm:$0xff]   ;;  %v6889_v22 = vld [vmem:[%s7429_s11 + $0x768] ss:$16 sps:$4 sm:$0xff]  }
 0x1ca   : > { %v4330_v44 = vpop.f32.mrf.mxu1  ;;  %4598 = vmatprep.subr.bf16.mxu1 %v6831_v30  ;;  %v6897_v28 = vld [vmem:[%s7429_s11 + $0x74c] ss:$16 sps:$4 sm:$0xff]   ;;  %v6895_v30 = vld [vmem:[%s7429_s11 + $0x748] ss:$16 sps:$4 sm:$0xff]  }
 0x1cb   : > { %v6900_v29 = vld [vmem:[%s7429_s11 + $0x84c] ss:$16 sps:$4 sm:$0xff]   ;;  %v6898_v31 = vld [vmem:[%s7429_s11 + $0x848] ss:$16 sps:$4 sm:$0xff]  }
 0x1cc   : > { %4624 = vmatpush1.bf16.msra.mxu0 %v6832_v36  ;;  %v6903_v8 = vld [vmem:[%s7429_s11 + $0x72c] ss:$16 sps:$4 sm:$0xff]   ;;  %v6901_v33 = vld [vmem:[%s7429_s11 + $0x728] ss:$16 sps:$4 sm:$0xff]  }
 0x1cd   : > { %4599 = vmatpush2.bf16.msra.mxu1 %v6829_v35  ;;  %4625 = vmatprep.subr.bf16.mxu0 %v6840_v38  ;;  %v6906_v58 = vld [vmem:[%s7429_s11 + $0x82c] ss:$16 sps:$4 sm:$0xff]   ;;  %v6904_v35 = vld [vmem:[%s7429_s11 + $0x828] ss:$16 sps:$4 sm:$0xff]  }
 0x1ce   : > { %4600 = vmatprep.subr.bf16.mxu1 %v6837_v2  ;;  %v6909_v36 = vld [vmem:[%s7429_s11 + $0x70c] ss:$16 sps:$4 sm:$0xff]   ;;  %v6907_v44 = vld [vmem:[%s7429_s11 + $0x708] ss:$16 sps:$4 sm:$0xff]  }
 0x1cf   : > { %v6912_v43 = vld [vmem:[%s7429_s11 + $0x80c] ss:$16 sps:$4 sm:$0xff]   ;;  %v6910_v2 = vld [vmem:[%s7429_s11 + $0x808] ss:$16 sps:$4 sm:$0xff]  }
 0x1d0   : > { %4626 = vmatpush1.bf16.msra.mxu0 %v6838_v47  ;;  %v6915_v38 = vld [vmem:[%s7429_s11 + $0x9ec] ss:$16 sps:$4 sm:$0xff]   ;;  %v6913_v47 = vld [vmem:[%s7429_s11 + $0x9e8] ss:$16 sps:$4 sm:$0xff]  }
 0x1d1   : > { %4601 = vmatpush2.bf16.msra.mxu1 %v6835_v46  ;;  %4627 = vmatprep.subr.bf16.mxu0 %v6846_v50  ;;  %v6918_v46 = vld [vmem:[%s7429_s11 + $0xaec] ss:$16 sps:$4 sm:$0xff]  }
 0x1d2   : > { %4602 = vmatprep.subr.bf16.mxu1 %v6843_v49  ;;  %v6916_v49 = vld [vmem:[%s7429_s11 + $0xae8] ss:$16 sps:$4 sm:$0xff]   ;;  %v6921_v50 = vld [vmem:[%s7429_s11 + $0x9cc] ss:$16 sps:$4 sm:$0xff]  }
 0x1d4   : > { %4628 = vmatpush1.bf16.msra.mxu0 %v6844_v7 }
 0x1d5   : > { %4603 = vmatpush2.bf16.msra.mxu1 %v6841_v51  ;;  %4629 = vmatprep.subr.bf16.mxu0 %v6852_v54  ;;  %v6924_v51 = vld [vmem:[%s7429_s11 + $0xacc] ss:$16 sps:$4 sm:$0xff]   ;;  %v6919_v54 = vld [vmem:[%s7429_s11 + $0x9c8] ss:$16 sps:$4 sm:$0xff]  }
 0x1d6   : > { %4604 = vmatprep.subr.bf16.mxu1 %v6849_v53 }
 0x1d8   : > { %4630 = vmatpush1.bf16.msra.mxu0 %v6850_v55 }
 0x1d9   : > { %4605 = vmatpush2.bf16.msra.mxu1 %v6847_v62  ;;  %4631 = vmatprep.subr.bf16.mxu0 %v6858_v56  ;;  %v6922_v62 = vld [vmem:[%s7429_s11 + $0xac8] ss:$16 sps:$4 sm:$0xff]   ;;  %v6927_v56 = vld [vmem:[%s7429_s11 + $0x9ac] ss:$16 sps:$4 sm:$0xff]  }
 0x1da   : > { %4606 = vmatprep.subr.bf16.mxu1 %v6855_v37 }
 0x1dc   : > { %4632 = vmatpush1.bf16.msra.mxu0 %v6856_v61 }
 0x1dd   : > { %4607 = vmatpush2.bf16.msra.mxu1 %v6853_v57  ;;  %4633 = vmatprep.subr.bf16.mxu0 %v6864_v0  ;;  %v6930_v57 = vld [vmem:[%s7429_s11 + $0xaac] ss:$16 sps:$4 sm:$0xff]   ;;  %v6928_v0 = vld [vmem:[%s7429_s11 + $0xaa8] ss:$16 sps:$4 sm:$0xff]  }
 0x1de   : > { %4608 = vmatprep.subr.bf16.mxu1 %v6861_v63  ;;  %v6925_v63 = vld [vmem:[%s7429_s11 + $0x9a8] ss:$16 sps:$4 sm:$0xff]  }
 0x1e0   : > { %4634 = vmatpush1.bf16.msra.mxu0 %v6862_v1 }
 0x1e1   : > { %4609 = vmatpush2.bf16.msra.mxu1 %v6859_v4  ;;  %4635 = vmatprep.subr.bf16.mxu0 %v6867_v42  ;;  %v6933_v42 = vld [vmem:[%s7429_s11 + $0x98c] ss:$16 sps:$4 sm:$0xff]  }
 0x1e2   : > { %4660 = vmatprep.subr.bf16.mxu1 %v6870_v3  ;;  %v6936_v3 = vld [vmem:[%s7429_s11 + $0xa8c] ss:$16 sps:$4 sm:$0xff]  }
 0x1e4   : > { %4611 = vmatmul.mubr.bf16.vlgmr.msra.gmra.mxu1 %v7608_v17  ;;  %4636 = vmatpush2.bf16.msra.mxu0 %v6865_v12  ;;  %v6880_v17 = vld [vmem:[%s7429_s11 + $0x8a8] ss:$16 sps:$4 sm:$0xff]  }
 0x1e5   : > { %4661 = vmatpush1.bf16.msra.mxu1 %v6868_v5  ;;  %4637 = vmatprep.subr.bf16.mxu0 %v6873_v52  ;;  %v6934_v12 = vld [vmem:[%s7429_s11 + $0xa88] ss:$16 sps:$4 sm:$0xff]   ;;  %v6939_v5 = vld [vmem:[%s7429_s11 + $0x96c] ss:$16 sps:$4 sm:$0xff]  }
 0x1e6   : > { %4662 = vmatprep.subr.bf16.mxu1 %v6876_v6  ;;  %4692 = vmatprep.mubr.bf16.mxu1 %v7626_v25  ;;  %v6891_v25 = vld [vmem:[%s7429_s11 + $0x76c] ss:$16 sps:$4 sm:$0xff]   ;;  %v6937_v6 = vld [vmem:[%s7429_s11 + $0x968] ss:$16 sps:$4 sm:$0xff]  }
 0x1e7   : > { %v6942_v52 = vld [vmem:[%s7429_s11 + $0xa6c] ss:$16 sps:$4 sm:$0xff]  }
 0x1e8   : > { %4638 = vmatpush2.bf16.msra.mxu0 %v6871_v9  ;;  %v6940_v9 = vld [vmem:[%s7429_s11 + $0xa68] ss:$16 sps:$4 sm:$0xff]  }
 0x1e9   : > { %4663 = vmatpush1.bf16.msra.mxu1 %v6874_v10  ;;  %4639 = vmatprep.subr.bf16.mxu0 %v6879_v11  ;;  %v6945_v10 = vld [vmem:[%s7429_s11 + $0x94c] ss:$16 sps:$4 sm:$0xff]  }
 0x1ea   : > { %4664 = vmatprep.subr.bf16.mxu1 %v6882_v48  ;;  %v6948_v11 = vld [vmem:[%s7429_s11 + $0xa4c] ss:$16 sps:$4 sm:$0xff]   ;;  %v6943_v48 = vld [vmem:[%s7429_s11 + $0x948] ss:$16 sps:$4 sm:$0xff]  }
 0x1ec   : > { %4640 = vmatpush2.bf16.msra.mxu0 %v6877_v14  ;;  %v6946_v14 = vld [vmem:[%s7429_s11 + $0xa48] ss:$16 sps:$4 sm:$0xff]  }
 0x1ed   : > { %4665 = vmatpush1.bf16.msra.mxu1 %v6880_v17  ;;  %4641 = vmatprep.subr.bf16.mxu0 %v6885_v15  ;;  %v6951_v17 = vld [vmem:[%s7429_s11 + $0x92c] ss:$16 sps:$4 sm:$0xff]  }
 0x1ee   : > { %4666 = vmatprep.subr.bf16.mxu1 %v6888_v16  ;;  %v6954_v15 = vld [vmem:[%s7429_s11 + $0xa2c] ss:$16 sps:$4 sm:$0xff]   ;;  %v6949_v16 = vld [vmem:[%s7429_s11 + $0x928] ss:$16 sps:$4 sm:$0xff]  }
 0x1f0   : > { %4642 = vmatpush2.bf16.msra.mxu0 %v6883_v19  ;;  %v6952_v19 = vld [vmem:[%s7429_s11 + $0xa28] ss:$16 sps:$4 sm:$0xff]  }
 0x1f1   : > { %4667 = vmatpush1.bf16.msra.mxu1 %v6886_v20  ;;  %4643 = vmatprep.subr.bf16.mxu0 %v6891_v25  ;;  %v6957_v20 = vld [vmem:[%s7429_s11 + $0x90c] ss:$16 sps:$4 sm:$0xff]  }
 0x1f2   : > { %4668 = vmatprep.subr.bf16.mxu1 %v6894_v21  ;;  %v6960_v25 = vld [vmem:[%s7429_s11 + $0xa0c] ss:$16 sps:$4 sm:$0xff]   ;;  %v6955_v21 = vld [vmem:[%s7429_s11 + $0x908] ss:$16 sps:$4 sm:$0xff]  }
 0x1f4   : > { %4644 = vmatpush2.bf16.msra.mxu0 %v6889_v22  ;;  %v6958_v22 = vld [vmem:[%s7429_s11 + $0xa08] ss:$16 sps:$4 sm:$0xff]  }
 0x1f5   : > { %4669 = vmatpush1.bf16.msra.mxu1 %v6892_v27  ;;  %4645 = vmatprep.subr.bf16.mxu0 %v6897_v28  ;;  %v6963_v27 = vld [vmem:[%s7429_s11 + $0xbec] ss:$16 sps:$4 sm:$0xff]  }
 0x1f6   : > { %4670 = vmatprep.subr.bf16.mxu1 %v6900_v29  ;;  %v6966_v28 = vld [vmem:[%s7429_s11 + $0xcec] ss:$16 sps:$4 sm:$0xff]   ;;  %v6961_v29 = vld [vmem:[%s7429_s11 + $0xbe8] ss:$16 sps:$4 sm:$0xff]  }
 0x1f8   : > { %4646 = vmatpush2.bf16.msra.mxu0 %v6895_v30  ;;  %v6964_v30 = vld [vmem:[%s7429_s11 + $0xce8] ss:$16 sps:$4 sm:$0xff]  }
 0x1f9   : > { %4671 = vmatpush1.bf16.msra.mxu1 %v6898_v31  ;;  %4647 = vmatprep.subr.bf16.mxu0 %v6903_v8  ;;  %v6969_v31 = vld [vmem:[%s7429_s11 + $0xbcc] ss:$16 sps:$4 sm:$0xff]  }
 0x1fa   : > { %4672 = vmatprep.subr.bf16.mxu1 %v6906_v58  ;;  %v6972_v8 = vld [vmem:[%s7429_s11 + $0xccc] ss:$16 sps:$4 sm:$0xff]  }
 0x1fc   : > { %4648 = vmatpush2.bf16.msra.mxu0 %v6901_v33  ;;  %v6967_v33 = vld [vmem:[%s7429_s11 + $0xbc8] ss:$16 sps:$4 sm:$0xff]  }
 0x1fd   : > { %4673 = vmatpush1.bf16.msra.mxu1 %v6904_v35  ;;  %4649 = vmatprep.subr.bf16.mxu0 %v6909_v36  ;;  %v6970_v35 = vld [vmem:[%s7429_s11 + $0xcc8] ss:$16 sps:$4 sm:$0xff]  }
 0x1fe   : > { %4674 = vmatprep.subr.bf16.mxu1 %v6912_v43  ;;  %v6975_v43 = vld [vmem:[%s7429_s11 + $0xbac] ss:$16 sps:$4 sm:$0xff]  }
 0x200   : > { %4650 = vmatpush2.bf16.msra.mxu0 %v6907_v44  ;;  %v6978_v44 = vld [vmem:[%s7429_s11 + $0xcac] ss:$16 sps:$4 sm:$0xff]  }
 0x201   : > { %4675 = vmatpush1.bf16.msra.mxu1 %v6910_v2  ;;  %4701 = vmatprep.subr.bf16.mxu0 %v6918_v46 }
 0x202   : > { %4676 = vmatprep.subr.bf16.mxu1 %v6915_v38  ;;  %v6976_v38 = vld [vmem:[%s7429_s11 + $0xca8] ss:$16 sps:$4 sm:$0xff]  }
 0x203   : > { %v8031_v7 = vpop.f32.mrf.mxu0  ;;  %4652 = vmatmul.mubr.bf16.vlgmr.msra.gmra.mxu0 %v7612_v18 }
 0x204   : > { %v8033_v53 = vpop.f32.mrf.mxu1  ;;  %4702 = vmatpush1.bf16.msra.mxu0 %v6916_v49  ;;  %4733 = vmatprep.mubr.bf16.mxu0 %v7630_v26  ;;  %v6931_v26 = vld [vmem:[%s7429_s11 + $0x988] ss:$16 sps:$4 sm:$0xff]   ;;  %v6984_v49 = vld [vmem:[%s7429_s11 + $0xc8c] ss:$16 sps:$4 sm:$0xff]  }
 0x205   : > { %4677 = vmatpush2.bf16.msra.mxu1 %v6913_v47  ;;  %v8038_v55 = vpop.f32.mrf.mxu0  ;;  %4703 = vmatprep.subr.bf16.mxu0 %v6924_v51  ;;  %v6981_v47 = vld [vmem:[%s7429_s11 + $0xb8c] ss:$16 sps:$4 sm:$0xff]  }
 0x206   : > { %v8040_v37 = vpop.f32.mrf.mxu1  ;;  %4678 = vmatprep.subr.bf16.mxu1 %v6921_v50  ;;  %v6979_v50 = vld [vmem:[%s7429_s11 + $0xb88] ss:$16 sps:$4 sm:$0xff]   ;;  %v6987_v51 = vld [vmem:[%s7429_s11 + $0xb6c] ss:$16 sps:$4 sm:$0xff]  }
 0x207   : > { %v4370_v18 = vpop.f32.mrf.mxu0 }
 0x208   : > { %v4411_v61 = vpop.f32.mrf.mxu1  ;;  %4704 = vmatpush1.bf16.msra.mxu0 %v6922_v62  ;;  %v6985_v62 = vld [vmem:[%s7429_s11 + $0xb68] ss:$16 sps:$4 sm:$0xff]   ;;  %v6996_v18 = vld [vmem:[%s7429_s11 + $0xc4c] ss:$16 sps:$4 sm:$0xff]  }
 0x209   : > { %4679 = vmatpush2.bf16.msra.mxu1 %v6919_v54  ;;  %v4371_v4 = vpop.f32.mrf.mxu0  ;;  %4705 = vmatprep.subr.bf16.mxu0 %v6930_v57  ;;  %v6990_v54 = vld [vmem:[%s7429_s11 + $0xc6c] ss:$16 sps:$4 sm:$0xff]   ;;  %v6991_v61 = vld [vmem:[%s7429_s11 + $0xb48] ss:$16 sps:$4 sm:$0xff]  }
 0x20a   : > { %v4412_v1 = vpop.f32.mrf.mxu1  ;;  %4680 = vmatprep.subr.bf16.mxu1 %v6927_v56  ;;  %v6988_v56 = vld [vmem:[%s7429_s11 + $0xc68] ss:$16 sps:$4 sm:$0xff]   ;;  %v6993_v57 = vld [vmem:[%s7429_s11 + $0xb4c] ss:$16 sps:$4 sm:$0xff]  }
 0x20b   : > { %v7002_v4 = vld [vmem:[%s7429_s11 + $0xc2c] ss:$16 sps:$4 sm:$0xff]   ;;  %v6997_v1 = vld [vmem:[%s7429_s11 + $0xb28] ss:$16 sps:$4 sm:$0xff]  }
 0x20c   : > { %4706 = vmatpush1.bf16.msra.mxu0 %v6928_v0  ;;  %v6999_v0 = vld [vmem:[%s7429_s11 + $0xb2c] ss:$16 sps:$4 sm:$0xff]  }
 0x20d   : > { %4681 = vmatpush2.bf16.msra.mxu1 %v6925_v63  ;;  %4707 = vmatprep.subr.bf16.mxu0 %v6936_v3  ;;  %v6994_v63 = vld [vmem:[%s7429_s11 + $0xc48] ss:$16 sps:$4 sm:$0xff]   ;;  %v7005_v3 = vld [vmem:[%s7429_s11 + $0xb0c] ss:$16 sps:$4 sm:$0xff]  }
 0x20e   : > { %4682 = vmatprep.subr.bf16.mxu1 %v6933_v42  ;;  %v7000_v42 = vld [vmem:[%s7429_s11 + $0xc28] ss:$16 sps:$4 sm:$0xff]  }
 0x210   : > { %4708 = vmatpush1.bf16.msra.mxu0 %v6934_v12  ;;  %v7003_v12 = vld [vmem:[%s7429_s11 + $0xb08] ss:$16 sps:$4 sm:$0xff]  }
 0x211   : > { %4683 = vmatpush2.bf16.msra.mxu1 %v6931_v26  ;;  %4709 = vmatprep.subr.bf16.mxu0 %v6942_v52  ;;  %v7008_v26 = vld [vmem:[%s7429_s11 + $0xc0c] ss:$16 sps:$4 sm:$0xff]  }
 0x212   : > { %4684 = vmatprep.subr.bf16.mxu1 %v6939_v5  ;;  %v7006_v5 = vld [vmem:[%s7429_s11 + $0xc08] ss:$16 sps:$4 sm:$0xff]   ;;  %v7011_v52 = vld [vmem:[%s7429_s11 + $0xdec] ss:$16 sps:$4 sm:$0xff]  }
 0x214   : > { %4710 = vmatpush1.bf16.msra.mxu0 %v6940_v9  ;;  %v4367_v9 = vadd.f32 %v8031_v7, %v7963_v32  ;;  %v7015_v7 = vld [vmem:[%s7429_s11 + $0xdc8] ss:$16 sps:$4 sm:$0xff]  }
 0x215   : > { %4685 = vmatpush2.bf16.msra.mxu1 %v6937_v6  ;;  %4711 = vmatprep.subr.bf16.mxu0 %v6948_v11  ;;  %v7014_v6 = vld [vmem:[%s7429_s11 + $0xeec] ss:$16 sps:$4 sm:$0xff]   ;;  %v7009_v11 = vld [vmem:[%s7429_s11 + $0xde8] ss:$16 sps:$4 sm:$0xff]  }
 0x216   : > { %4686 = vmatprep.subr.bf16.mxu1 %v6945_v10  ;;  %v4369_v10 = vadd.f32 %v8038_v55, %v7967_v34  ;;  %v7018_v55 = vld [vmem:[%s7429_s11 + $0xec8] ss:$16 sps:$4 sm:$0xff]  }
 0x218   : > { %4712 = vmatpush1.bf16.msra.mxu0 %v6946_v14  ;;  %v7017_v14 = vld [vmem:[%s7429_s11 + $0xdcc] ss:$16 sps:$4 sm:$0xff]   ;;  %v4410_v32 = vadd.f32 %v8040_v37, %v4369_v10  ;;  %v358_v37 = vld [vmem:[#allocation2] sm:$0xff] }
 0x219   : > { %4687 = vmatpush2.bf16.msra.mxu1 %v6943_v48  ;;  %4713 = vmatprep.subr.bf16.mxu0 %v6954_v15  ;;  %v7012_v48 = vld [vmem:[%s7429_s11 + $0xee8] ss:$16 sps:$4 sm:$0xff]   ;;  %v4408_v15 = vadd.f32 %v8033_v53, %v4367_v9 }
 0x21a   : > { %4688 = vmatprep.subr.bf16.mxu1 %v6951_v17  ;;  %v7020_v17 = vld [vmem:[%s7429_s11 + $0xecc] ss:$16 sps:$4 sm:$0xff]   ;;  %v7072_v9 = vld [vmem:[%s7429_s11 + $0x10a8] ss:$16 sps:$4 sm:$0xff]  }
 0x21c   : > { %4714 = vmatpush1.bf16.msra.mxu0 %v6952_v19  ;;  %v357_v19 = vld [vmem:[#allocation2 + $0x10] sm:$0xff] }
 0x21d   : > { %4689 = vmatpush2.bf16.msra.mxu1 %v6949_v16  ;;  %4715 = vmatprep.subr.bf16.mxu0 %v6960_v25  ;;  %v7023_v25 = vld [vmem:[%s7429_s11 + $0xdac] ss:$16 sps:$4 sm:$0xff]  }
 0x21e   : > { %4690 = vmatprep.subr.bf16.mxu1 %v6957_v20 }
 0x220   : > { %4716 = vmatpush1.bf16.msra.mxu0 %v6958_v22 }
 0x221   : > { %4691 = vmatpush2.bf16.msra.mxu1 %v6955_v21  ;;  %4717 = vmatprep.subr.bf16.mxu0 %v6963_v27  ;;  %v7026_v21 = vld [vmem:[%s7429_s11 + $0xeac] ss:$16 sps:$4 sm:$0xff]  }
 0x222   : > { %4742 = vmatprep.subr.bf16.mxu1 %v6966_v28 }
 0x224   : > { %v8073_v58 = vpop.f32.mrf.mxu1  ;;  %4693 = vmatmul.mubr.bf16.vlgmr.msra.gmra.mxu1 %v7700_v39  ;;  %4718 = vmatpush2.bf16.msra.mxu0 %v6961_v29  ;;  %v6973_v39 = vld [vmem:[%s7429_s11 + $0xba8] ss:$16 sps:$4 sm:$0xff]  }
 0x225   : > { %4743 = vmatpush1.bf16.msra.mxu1 %v6964_v30  ;;  %4719 = vmatprep.subr.bf16.mxu0 %v6969_v31  ;;  %v7021_v29 = vld [vmem:[%s7429_s11 + $0xda8] ss:$16 sps:$4 sm:$0xff]  }
 0x226   : > { %v8078_v36 = vpop.f32.mrf.mxu1  ;;  %4744 = vmatprep.subr.bf16.mxu1 %v6972_v8  ;;  %4774 = vmatprep.mubr.bf16.mxu1 %v7716_v23  ;;  %v6982_v23 = vld [vmem:[%s7429_s11 + $0xc88] ss:$16 sps:$4 sm:$0xff]   ;;  %v7029_v8 = vld [vmem:[%s7429_s11 + $0xd8c] ss:$16 sps:$4 sm:$0xff]  }
 0x227   : > { %v7024_v30 = vld [vmem:[%s7429_s11 + $0xea8] ss:$16 sps:$4 sm:$0xff]  }
 0x228   : > { %v4493_v2 = vpop.f32.mrf.mxu1  ;;  %4720 = vmatpush2.bf16.msra.mxu0 %v6967_v33  ;;  %v7027_v33 = vld [vmem:[%s7429_s11 + $0xd88] ss:$16 sps:$4 sm:$0xff]  }
 0x229   : > { %4745 = vmatpush1.bf16.msra.mxu1 %v6970_v35  ;;  %4721 = vmatprep.subr.bf16.mxu0 %v6975_v43  ;;  %v7030_v35 = vld [vmem:[%s7429_s11 + $0xe88] ss:$16 sps:$4 sm:$0xff]   ;;  %v7038_v43 = vld [vmem:[%s7429_s11 + $0xe6c] ss:$16 sps:$4 sm:$0xff]  }
 0x22a   : > { %v4494_v46 = vpop.f32.mrf.mxu1  ;;  %4746 = vmatprep.subr.bf16.mxu1 %v6978_v44  ;;  %v7033_v44 = vld [vmem:[%s7429_s11 + $0xd68] ss:$16 sps:$4 sm:$0xff]  }
 0x22b   : > { %v7036_v2 = vld [vmem:[%s7429_s11 + $0xe68] ss:$16 sps:$4 sm:$0xff]  }
 0x22c   : > { %4722 = vmatpush2.bf16.msra.mxu0 %v6973_v39  ;;  %v7041_v39 = vld [vmem:[%s7429_s11 + $0xd4c] ss:$16 sps:$4 sm:$0xff]   ;;  %v7039_v46 = vld [vmem:[%s7429_s11 + $0xd48] ss:$16 sps:$4 sm:$0xff]  }
 0x22d   : > { %4747 = vmatpush1.bf16.msra.mxu1 %v6976_v38  ;;  %4723 = vmatprep.subr.bf16.mxu0 %v6981_v47  ;;  %v7044_v38 = vld [vmem:[%s7429_s11 + $0xe4c] ss:$16 sps:$4 sm:$0xff]   ;;  %v7042_v47 = vld [vmem:[%s7429_s11 + $0xe48] ss:$16 sps:$4 sm:$0xff]  }
 0x22e   : > { %4748 = vmatprep.subr.bf16.mxu1 %v6984_v49  ;;  %v7047_v49 = vld [vmem:[%s7429_s11 + $0xd2c] ss:$16 sps:$4 sm:$0xff]  }
 0x230   : > { %4724 = vmatpush2.bf16.msra.mxu0 %v6979_v50  ;;  %v7050_v50 = vld [vmem:[%s7429_s11 + $0xe2c] ss:$16 sps:$4 sm:$0xff]  }
 0x231   : > { %4749 = vmatpush1.bf16.msra.mxu1 %v6982_v23  ;;  %4725 = vmatprep.subr.bf16.mxu0 %v6987_v51  ;;  %v7045_v23 = vld [vmem:[%s7429_s11 + $0xd28] ss:$16 sps:$4 sm:$0xff]  }
 0x232   : > { %4750 = vmatprep.subr.bf16.mxu1 %v6990_v54  ;;  %v7048_v51 = vld [vmem:[%s7429_s11 + $0xe28] ss:$16 sps:$4 sm:$0xff]   ;;  %v7053_v54 = vld [vmem:[%s7429_s11 + $0xd0c] ss:$16 sps:$4 sm:$0xff]  }
 0x234   : > { %4726 = vmatpush2.bf16.msra.mxu0 %v6985_v62  ;;  %v7056_v62 = vld [vmem:[%s7429_s11 + $0xe0c] ss:$16 sps:$4 sm:$0xff]  }
 0x235   : > { %4751 = vmatpush1.bf16.msra.mxu1 %v6988_v56  ;;  %4727 = vmatprep.subr.bf16.mxu0 %v6993_v57  ;;  %v7051_v56 = vld [vmem:[%s7429_s11 + $0xd08] ss:$16 sps:$4 sm:$0xff]  }
 0x236   : > { %4752 = vmatprep.subr.bf16.mxu1 %v6996_v18  ;;  %v7054_v57 = vld [vmem:[%s7429_s11 + $0xe08] ss:$16 sps:$4 sm:$0xff]   ;;  %v7059_v18 = vld [vmem:[%s7429_s11 + $0xfec] ss:$16 sps:$4 sm:$0xff]  }
 0x238   : > { %4728 = vmatpush2.bf16.msra.mxu0 %v6991_v61  ;;  %v7062_v61 = vld [vmem:[%s7429_s11 + $0x10ec] ss:$16 sps:$4 sm:$0xff]  }
 0x239   : > { %4753 = vmatpush1.bf16.msra.mxu1 %v6994_v63  ;;  %4729 = vmatprep.subr.bf16.mxu0 %v6999_v0  ;;  %v7057_v63 = vld [vmem:[%s7429_s11 + $0xfe8] ss:$16 sps:$4 sm:$0xff]  }
 0x23a   : > { %4754 = vmatprep.subr.bf16.mxu1 %v7002_v4  ;;  %v7060_v0 = vld [vmem:[%s7429_s11 + $0x10e8] ss:$16 sps:$4 sm:$0xff]   ;;  %v7065_v4 = vld [vmem:[%s7429_s11 + $0xfcc] ss:$16 sps:$4 sm:$0xff]  }
 0x23c   : > { %4730 = vmatpush2.bf16.msra.mxu0 %v6997_v1  ;;  %v7068_v1 = vld [vmem:[%s7429_s11 + $0x10cc] ss:$16 sps:$4 sm:$0xff]  }
 0x23d   : > { %4755 = vmatpush1.bf16.msra.mxu1 %v7000_v42  ;;  %4731 = vmatprep.subr.bf16.mxu0 %v7005_v3  ;;  %v7063_v3 = vld [vmem:[%s7429_s11 + $0xfc8] ss:$16 sps:$4 sm:$0xff]  }
 0x23e   : > { %4756 = vmatprep.subr.bf16.mxu1 %v7008_v26  ;;  %v7066_v26 = vld [vmem:[%s7429_s11 + $0x10c8] ss:$16 sps:$4 sm:$0xff]  }
 0x240   : > { %4732 = vmatpush2.bf16.msra.mxu0 %v7003_v12 }
 0x241   : > { %4757 = vmatpush1.bf16.msra.mxu1 %v7006_v5  ;;  %4783 = vmatprep.subr.bf16.mxu0 %v7014_v6  ;;  %v7071_v5 = vld [vmem:[%s7429_s11 + $0xfac] ss:$16 sps:$4 sm:$0xff]  }
 0x242   : > { %4758 = vmatprep.subr.bf16.mxu1 %v7011_v52  ;;  %v7074_v52 = vld [vmem:[%s7429_s11 + $0x10ac] ss:$16 sps:$4 sm:$0xff]  }
 0x243   : > { %v4448_v16 = vpop.f32.mrf.mxu0  ;;  %4734 = vmatmul.mubr.bf16.vlgmr.msra.gmra.mxu0 %v7704_v40 }
 0x244   : > { %v4449_v34 = vadd.f32 %v4448_v16, %v4408_v15  ;;  %4784 = vmatpush1.bf16.msra.mxu0 %v7012_v48  ;;  %4815 = vmatprep.mubr.bf16.mxu0 %v7720_v24  ;;  %v7032_v24 = vld [vmem:[%s7429_s11 + $0xe8c] ss:$16 sps:$4 sm:$0xff]   ;;  %v7081_v16 = vld [vmem:[%s7429_s11 + $0xf68] ss:$16 sps:$4 sm:$0xff]  }
 0x245   : > { %4759 = vmatpush2.bf16.msra.mxu1 %v7009_v11  ;;  %v4450_v20 = vpop.f32.mrf.mxu0  ;;  %4785 = vmatprep.subr.bf16.mxu0 %v7020_v17  ;;  %v7077_v11 = vld [vmem:[%s7429_s11 + $0xf8c] ss:$16 sps:$4 sm:$0xff]  }
 0x246   : > { %4760 = vmatprep.subr.bf16.mxu1 %v7017_v14  ;;  %v4490_v53 = vadd.f32 %v8073_v58, %v4449_v34  ;;  %v4451_v40 = vadd.f32 %v4450_v20, %v4410_v32  ;;  %v7080_v48 = vld [vmem:[%s7429_s11 + $0x108c] ss:$16 sps:$4 sm:$0xff]   ;;  %v7075_v14 = vld [vmem:[%s7429_s11 + $0xf88] ss:$16 sps:$4 sm:$0xff]  }
 0x247   : > { %v4452_v22 = vpop.f32.mrf.mxu0  ;;  %v7083_v17 = vld [vmem:[%s7429_s11 + $0xf6c] ss:$16 sps:$4 sm:$0xff]   ;;  %v7084_v32 = vld [vmem:[%s7429_s11 + $0x1068] ss:$16 sps:$4 sm:$0xff]  }
 0x248   : > { %v4906_v27 = vadd.f32 %v4490_v53, %v357_v19  ;;  %v4492_v28 = vadd.f32 %v8078_v36, %v4451_v40  ;;  %4786 = vmatpush1.bf16.msra.mxu0 %v7018_v55  ;;  %v7035_v36 = vld [vmem:[%s7429_s11 + $0xd6c] ss:$16 sps:$4 sm:$0xff]   ;;  %v7087_v55 = vld [vmem:[%s7429_s11 + $0xf48] ss:$16 sps:$4 sm:$0xff]  }
 0x249   : > { %4761 = vmatpush2.bf16.msra.mxu1 %v7015_v7  ;;  %v4453_v31 = vpop.f32.mrf.mxu0  ;;  %4787 = vmatprep.subr.bf16.mxu0 %v7026_v21  ;;  %v7086_v15 = vld [vmem:[%s7429_s11 + $0x106c] ss:$16 sps:$4 sm:$0xff]   ;;  %v7090_v19 = vld [vmem:[%s7429_s11 + $0x1048] ss:$16 sps:$4 sm:$0xff]  }
 0x24a   : > { %4762 = vmatprep.subr.bf16.mxu1 %v7023_v25  ;;  %4910 = vst [vmem:[#allocation2 + $0x10] sm:$0xff] %v4906_v27  ;;  %v4907_v58 = vadd.f32 %v4492_v28, %v358_v37  ;;  %v7089_v34 = vld [vmem:[%s7429_s11 + $0xf4c] ss:$16 sps:$4 sm:$0xff]   ;;  %v7093_v21 = vld [vmem:[%s7429_s11 + $0xf28] ss:$16 sps:$4 sm:$0xff]  }
 0x24b   : > { %v7092_v7 = vld [vmem:[%s7429_s11 + $0x104c] ss:$16 sps:$4 sm:$0xff]   ;;  %v7096_v53 = vld [vmem:[%s7429_s11 + $0x1028] ss:$16 sps:$4 sm:$0xff]  }
 0x24c   : > { %4911 = vst [vmem:[#allocation2] sm:$0xff] %v4907_v58  ;;  %4788 = vmatpush1.bf16.msra.mxu0 %v7024_v30  ;;  %v7095_v20 = vld [vmem:[%s7429_s11 + $0xf2c] ss:$16 sps:$4 sm:$0xff]   ;;  %v7099_v22 = vld [vmem:[%s7429_s11 + $0xf08] ss:$16 sps:$4 sm:$0xff]  }
 0x24d   : > { %4763 = vmatpush2.bf16.msra.mxu1 %v7021_v29  ;;  %4789 = vmatprep.subr.bf16.mxu0 %v7032_v24  ;;  %v7098_v25 = vld [vmem:[%s7429_s11 + $0x102c] ss:$16 sps:$4 sm:$0xff]   ;;  %v7102_v27 = vld [vmem:[%s7429_s11 + $0x1008] ss:$16 sps:$4 sm:$0xff]  }
 0x24e   : > { %4764 = vmatprep.subr.bf16.mxu1 %v7029_v8  ;;  %v7101_v40 = vld [vmem:[%s7429_s11 + $0xf0c] ss:$16 sps:$4 sm:$0xff]   ;;  %v7105_v30 = vld [vmem:[%s7429_s11 + $0x11e8] ss:$16 sps:$4 sm:$0xff]  }
 0x24f   : > { %v7104_v37 = vld [vmem:[%s7429_s11 + $0x100c] ss:$16 sps:$4 sm:$0xff]   ;;  %v7108_v31 = vld [vmem:[%s7429_s11 + $0x12e8] ss:$16 sps:$4 sm:$0xff]  }
 0x250   : > { %4790 = vmatpush1.bf16.msra.mxu0 %v7030_v35  ;;  %v7107_v28 = vld [vmem:[%s7429_s11 + $0x11ec] ss:$16 sps:$4 sm:$0xff]   ;;  %v7111_v35 = vld [vmem:[%s7429_s11 + $0x11c8] ss:$16 sps:$4 sm:$0xff]  }
 0x251   : > { %4765 = vmatpush2.bf16.msra.mxu1 %v7027_v33  ;;  %4791 = vmatprep.subr.bf16.mxu0 %v7038_v43  ;;  %v7110_v29 = vld [vmem:[%s7429_s11 + $0x12ec] ss:$16 sps:$4 sm:$0xff]  }
 0x252   : > { %4766 = vmatprep.subr.bf16.mxu1 %v7035_v36  ;;  %v7113_v8 = vld [vmem:[%s7429_s11 + $0x11cc] ss:$16 sps:$4 sm:$0xff]   ;;  %v7114_v36 = vld [vmem:[%s7429_s11 + $0x12c8] ss:$16 sps:$4 sm:$0xff]  }
 0x253   : > { %v7116_v24 = vld [vmem:[%s7429_s11 + $0x12cc] ss:$16 sps:$4 sm:$0xff]  }
 0x254   : > { %4792 = vmatpush1.bf16.msra.mxu0 %v7036_v2  ;;  %v7122_v2 = vld [vmem:[%s7429_s11 + $0x12ac] ss:$16 sps:$4 sm:$0xff]  }
 0x255   : > { %4767 = vmatpush2.bf16.msra.mxu1 %v7033_v44  ;;  %4793 = vmatprep.subr.bf16.mxu0 %v7044_v38  ;;  %v7119_v44 = vld [vmem:[%s7429_s11 + $0x11ac] ss:$16 sps:$4 sm:$0xff]   ;;  %v7117_v38 = vld [vmem:[%s7429_s11 + $0x11a8] ss:$16 sps:$4 sm:$0xff]  }
 0x256   : > { %4768 = vmatprep.subr.bf16.mxu1 %v7041_v39 }
 0x258   : > { %4794 = vmatpush1.bf16.msra.mxu0 %v7042_v47 }
 0x259   : > { %4769 = vmatpush2.bf16.msra.mxu1 %v7039_v46  ;;  %4795 = vmatprep.subr.bf16.mxu0 %v7050_v50  ;;  %v7120_v46 = vld [vmem:[%s7429_s11 + $0x12a8] ss:$16 sps:$4 sm:$0xff]   ;;  %v7128_v50 = vld [vmem:[%s7429_s11 + $0x128c] ss:$16 sps:$4 sm:$0xff]  }
 0x25a   : > { %4770 = vmatprep.subr.bf16.mxu1 %v7047_v49  ;;  %v7125_v49 = vld [vmem:[%s7429_s11 + $0x118c] ss:$16 sps:$4 sm:$0xff]  }
 0x25c   : > { %4796 = vmatpush1.bf16.msra.mxu0 %v7048_v51  ;;  %v7131_v51 = vld [vmem:[%s7429_s11 + $0x116c] ss:$16 sps:$4 sm:$0xff]  }
 0x25d   : > { %4771 = vmatpush2.bf16.msra.mxu1 %v7045_v23  ;;  %4797 = vmatprep.subr.bf16.mxu0 %v7056_v62  ;;  %v7123_v23 = vld [vmem:[%s7429_s11 + $0x1188] ss:$16 sps:$4 sm:$0xff]  }
 0x25e   : > { %4772 = vmatprep.subr.bf16.mxu1 %v7053_v54  ;;  %v7134_v54 = vld [vmem:[%s7429_s11 + $0x126c] ss:$16 sps:$4 sm:$0xff]   ;;  %v7129_v62 = vld [vmem:[%s7429_s11 + $0x1168] ss:$16 sps:$4 sm:$0xff]  }
 0x260   : > { %4798 = vmatpush1.bf16.msra.mxu0 %v7054_v57  ;;  %v7137_v57 = vld [vmem:[%s7429_s11 + $0x114c] ss:$16 sps:$4 sm:$0xff]  }
 0x261   : > { %4773 = vmatpush2.bf16.msra.mxu1 %v7051_v56  ;;  %4799 = vmatprep.subr.bf16.mxu0 %v7059_v18  ;;  %v7132_v56 = vld [vmem:[%s7429_s11 + $0x1268] ss:$16 sps:$4 sm:$0xff]   ;;  %v7140_v18 = vld [vmem:[%s7429_s11 + $0x124c] ss:$16 sps:$4 sm:$0xff]  }
 0x262   : > { %4824 = vmatprep.subr.bf16.mxu1 %v7062_v61  ;;  %v7135_v61 = vld [vmem:[%s7429_s11 + $0x1148] ss:$16 sps:$4 sm:$0xff]  }
 0x264   : > { %v8153_v42 = vpop.f32.mrf.mxu1  ;;  %4775 = vmatmul.mubr.bf16.vlgmr.msra.gmra.mxu1 %v7788_v59  ;;  %4800 = vmatpush2.bf16.msra.mxu0 %v7057_v63  ;;  %v7069_v59 = vld [vmem:[%s7429_s11 + $0xfa8] ss:$16 sps:$4 sm:$0xff]  }
 0x265   : > { %4825 = vmatpush1.bf16.msra.mxu1 %v7060_v0  ;;  %4801 = vmatprep.subr.bf16.mxu0 %v7065_v4  ;;  %v7138_v63 = vld [vmem:[%s7429_s11 + $0x1248] ss:$16 sps:$4 sm:$0xff]   ;;  %v7143_v0 = vld [vmem:[%s7429_s11 + $0x112c] ss:$16 sps:$4 sm:$0xff]  }
 0x266   : > { %v8158_v12 = vpop.f32.mrf.mxu1  ;;  %4826 = vmatprep.subr.bf16.mxu1 %v7068_v1  ;;  %4856 = vmatprep.mubr.bf16.mxu1 %v7803_v41  ;;  %v7078_v41 = vld [vmem:[%s7429_s11 + $0x1088] ss:$16 sps:$4 sm:$0xff]   ;;  %v7146_v4 = vld [vmem:[%s7429_s11 + $0x122c] ss:$16 sps:$4 sm:$0xff]  }
 0x267   : > { %v7141_v1 = vld [vmem:[%s7429_s11 + $0x1128] ss:$16 sps:$4 sm:$0xff]  }
 0x268   : > { %v4534_v6 = vpop.f32.mrf.mxu1  ;;  %4802 = vmatpush2.bf16.msra.mxu0 %v7063_v3  ;;  %v7149_v3 = vld [vmem:[%s7429_s11 + $0x110c] ss:$16 sps:$4 sm:$0xff]  }
 0x269   : > { %4827 = vmatpush1.bf16.msra.mxu1 %v7066_v26  ;;  %4803 = vmatprep.subr.bf16.mxu0 %v7071_v5  ;;  %v7152_v26 = vld [vmem:[%s7429_s11 + $0x120c] ss:$16 sps:$4 sm:$0xff]   ;;  %v7150_v5 = vld [vmem:[%s7429_s11 + $0x1208] ss:$16 sps:$4 sm:$0xff]  }
 0x26a   : > { %v4535_v10 = vpop.f32.mrf.mxu1  ;;  %4828 = vmatprep.subr.bf16.mxu1 %v7074_v52  ;;  %v7153_v6 = vld [vmem:[%s7443_s13 + $0x48] ss:$0 sps:$4 sm:$0xff]  }
 0x26c   : > { %4804 = vmatpush2.bf16.msra.mxu0 %v7069_v59 }
 0x26d   : > { %4829 = vmatpush1.bf16.msra.mxu1 %v7072_v9  ;;  %4805 = vmatprep.subr.bf16.mxu0 %v7077_v11 }
 0x26e   : > { %4830 = vmatprep.subr.bf16.mxu1 %v7080_v48 }
 0x270   : > { %4806 = vmatpush2.bf16.msra.mxu0 %v7075_v14 }
 0x271   : > { %4831 = vmatpush1.bf16.msra.mxu1 %v7078_v41  ;;  %4807 = vmatprep.subr.bf16.mxu0 %v7083_v17 }
 0x272   : > { %4832 = vmatprep.subr.bf16.mxu1 %v7086_v15 }
 0x274   : > { %4808 = vmatpush2.bf16.msra.mxu0 %v7081_v16 }
 0x275   : > { %4833 = vmatpush1.bf16.msra.mxu1 %v7084_v32  ;;  %4809 = vmatprep.subr.bf16.mxu0 %v7089_v34 }
 0x276   : > { %4834 = vmatprep.subr.bf16.mxu1 %v7092_v7 }
 0x278   : > { %4810 = vmatpush2.bf16.msra.mxu0 %v7087_v55 }
 0x279   : > { %4835 = vmatpush1.bf16.msra.mxu1 %v7090_v19  ;;  %4811 = vmatprep.subr.bf16.mxu0 %v7095_v20 }
 0x27a   : > { %4836 = vmatprep.subr.bf16.mxu1 %v7098_v25 }
 0x27c   : > { %4812 = vmatpush2.bf16.msra.mxu0 %v7093_v21 }
 0x27d   : > { %4837 = vmatpush1.bf16.msra.mxu1 %v7096_v53  ;;  %4813 = vmatprep.subr.bf16.mxu0 %v7101_v40 }
 0x27e   : > { %4838 = vmatprep.subr.bf16.mxu1 %v7104_v37 }
 0x280   : > { %4814 = vmatpush2.bf16.msra.mxu0 %v7099_v22 }
 0x281   : > { %4839 = vmatpush1.bf16.msra.mxu1 %v7102_v27  ;;  %4865 = vmatprep.subr.bf16.mxu0 %v7110_v29 }
 0x282   : > { %4840 = vmatprep.subr.bf16.mxu1 %v7107_v28 }
 0x283   : > { %v4571_v58 = vpop.f32.mrf.mxu0  ;;  %4816 = vmatmul.mubr.bf16.vlgmr.msra.gmra.mxu0 %v7792_v60 }
 0x284   : > { %v8193_v33 = vadd.f32 %v4571_v58, %v8153_v42  ;;  %4866 = vmatpush1.bf16.msra.mxu0 %v7108_v31  ;;  %4897 = vmatprep.mubr.bf16.mxu0 %v7303_v13  ;;  %v7126_v13 = vld [vmem:[%s7429_s11 + $0x1288] ss:$16 sps:$4 sm:$0xff]  }
 0x285   : > { %4841 = vmatpush2.bf16.msra.mxu1 %v7105_v30  ;;  %v4573_v43 = vpop.f32.mrf.mxu0  ;;  %4867 = vmatprep.subr.bf16.mxu0 %v7116_v24  ;;  %v7144_v42 = vld [vmem:[%s7429_s11 + $0x1228] ss:$16 sps:$4 sm:$0xff]  }
 0x286   : > { %4842 = vmatprep.subr.bf16.mxu1 %v7113_v8  ;;  %v4574_v60 = vadd.f32 %v4573_v43, %v8158_v12  ;;  %v7147_v12 = vld [vmem:[%s7429_s11 + $0x1108] ss:$16 sps:$4 sm:$0xff]  }
 0x287   : > { %v4575_v39 = vpop.f32.mrf.mxu0 }
 0x288   : > { %4868 = vmatpush1.bf16.msra.mxu0 %v7114_v36  ;;  %v359_v39 = vld [vmem:[#allocation2 + $0x18] sm:$0xff] }
 0x289   : > { %4843 = vmatpush2.bf16.msra.mxu1 %v7111_v35  ;;  %v4576_v47 = vpop.f32.mrf.mxu0  ;;  %4869 = vmatprep.subr.bf16.mxu0 %v7122_v2 }
 0x28a   : > { %4844 = vmatprep.subr.bf16.mxu1 %v7119_v44 }
 0x28c   : > { %4870 = vmatpush1.bf16.msra.mxu0 %v7120_v46 }
 0x28d   : > { %4845 = vmatpush2.bf16.msra.mxu1 %v7117_v38  ;;  %4871 = vmatprep.subr.bf16.mxu0 %v7128_v50  ;;  %v360_v50 = vld [vmem:[#allocation2 + $0x8] sm:$0xff] }
 0x28e   : > { %4846 = vmatprep.subr.bf16.mxu1 %v7125_v49 }
 0x290   : > { %4872 = vmatpush1.bf16.msra.mxu0 %v7126_v13 }
 0x291   : > { %4847 = vmatpush2.bf16.msra.mxu1 %v7123_v23  ;;  %4873 = vmatprep.subr.bf16.mxu0 %v7134_v54 }
 0x292   : > { %4848 = vmatprep.subr.bf16.mxu1 %v7131_v51 }
 0x294   : > { %4874 = vmatpush1.bf16.msra.mxu0 %v7132_v56 }
 0x295   : > { %4849 = vmatpush2.bf16.msra.mxu1 %v7129_v62  ;;  %4875 = vmatprep.subr.bf16.mxu0 %v7140_v18 }
 0x296   : > { %4850 = vmatprep.subr.bf16.mxu1 %v7137_v57 }
 0x298   : > { %4876 = vmatpush1.bf16.msra.mxu0 %v7138_v63 }
 0x299   : > { %4851 = vmatpush2.bf16.msra.mxu1 %v7135_v61  ;;  %4877 = vmatprep.subr.bf16.mxu0 %v7146_v4 }
 0x29a   : > { %4852 = vmatprep.subr.bf16.mxu1 %v7143_v0 }
 0x29c   : > { %4878 = vmatpush1.bf16.msra.mxu0 %v7144_v42 }
 0x29d   : > { %4853 = vmatpush2.bf16.msra.mxu1 %v7141_v1  ;;  %4879 = vmatprep.subr.bf16.mxu0 %v7152_v26 }
 0x29e   : > { %4854 = vmatprep.subr.bf16.mxu1 %v7149_v3 }
 0x2a0   : > { %4880 = vmatpush1.bf16.msra.mxu0 %v7150_v5 }
 0x2a1   : > { %4855 = vmatpush2.bf16.msra.mxu1 %v7147_v12 }
 0x2a3   : > { %4898 = vmatmul.mubr.bf16.vlgmr.msra.gmra.mxu0 %v7153_v6 }
 0x2a4   : > { %v4612_v52 = vpop.f32.mrf.mxu1  ;;  %4857 = vmatmul.mubr.bf16.vlgmr.msra.gmra.mxu1 %v7879_v45 }
 0x2a5   : > { %v4613_v59 = vadd.f32 %v4612_v52, %v8193_v33 }
 0x2a6   : > { %v4614_v9 = vpop.f32.mrf.mxu1 }
 0x2a7   : > { %v4615_v10 = vadd.f32 %v4614_v9, %v4574_v60 }
 0x2a8   : > { %v4616_v11 = vpop.f32.mrf.mxu1 }
 0x2aa   : > { %v4617_v48 = vpop.f32.mrf.mxu1 }
 0x2c3   : > { %v4653_v14 = vpop.f32.mrf.mxu0 }
 0x2c4   : > { %v4654_v41 = vadd.f32 %v4653_v14, %v4613_v59 }
 0x2c5   : > { %v4655_v17 = vpop.f32.mrf.mxu0 }
 0x2c6   : > { %v4656_v15 = vadd.f32 %v4655_v17, %v4615_v10 }
 0x2c7   : > { %v4657_v16 = vpop.f32.mrf.mxu0 }
 0x2c9   : > { %v4658_v32 = vpop.f32.mrf.mxu0 }
 0x2e4   : > { %v4694_v34 = vpop.f32.mrf.mxu1 }
 0x2e5   : > { %v4695_v7 = vadd.f32 %v4694_v34, %v4654_v41 }
 0x2e6   : > { %v4696_v55 = vpop.f32.mrf.mxu1 }
 0x2e7   : > { %v4697_v19 = vadd.f32 %v4696_v55, %v4656_v15 }
 0x2e8   : > { %v4698_v20 = vpop.f32.mrf.mxu1 }
 0x2ea   : > { %v4699_v45 = vpop.f32.mrf.mxu1 }
 0x303   : > { %v4735_v25 = vpop.f32.mrf.mxu0 }
 0x304   : > { %v4736_v21 = vadd.f32 %v4735_v25, %v4695_v7 }
 0x305   : > { %v4737_v53 = vpop.f32.mrf.mxu0 }
 0x306   : > { %v4738_v40 = vadd.f32 %v4737_v53, %v4697_v19 }
 0x307   : > { %v4739_v37 = vpop.f32.mrf.mxu0 }
 0x309   : > { %v4740_v22 = vpop.f32.mrf.mxu0 }
 0x324   : > { %v4776_v27 = vpop.f32.mrf.mxu1 }
 0x325   : > { %v4777_v33 = vadd.f32 %v4776_v27, %v4736_v21 }
 0x326   : > { %v4778_v28 = vpop.f32.mrf.mxu1 }
 0x327   : > { %v4779_v35 = vadd.f32 %v4778_v28, %v4738_v40 }
 0x328   : > { %v4780_v29 = vpop.f32.mrf.mxu1 }
 0x32a   : > { %v4781_v30 = vpop.f32.mrf.mxu1 }
 0x343   : > { %v4817_v31 = vpop.f32.mrf.mxu0 }
 0x344   : > { %v4818_v36 = vadd.f32 %v4817_v31, %v4777_v33 }
 0x345   : > { %v4819_v8 = vpop.f32.mrf.mxu0 }
 0x346   : > { %v4820_v2 = vadd.f32 %v4819_v8, %v4779_v35 }
 0x347   : > { %v4821_v24 = vpop.f32.mrf.mxu0 }
 0x349   : > { %v4822_v58 = vpop.f32.mrf.mxu0 }
 0x363   : > { %v4899_v44 = vpop.f32.mrf.mxu0 }
 0x364   : > { %v4858_v43 = vpop.f32.mrf.mxu1 }
 0x365   : > { %v4859_v60 = vadd.f32 %v4858_v43, %v4818_v36  ;;  %v4901_v46 = vpop.f32.mrf.mxu0 }
 0x366   : > { %v4860_v38 = vpop.f32.mrf.mxu1 }
 0x367   : > { %v4900_v47 = vadd.f32 %v4899_v44, %v4859_v60  ;;  %v4861_v49 = vadd.f32 %v4860_v38, %v4820_v2  ;;  %v4903_v13 = vpop.f32.mrf.mxu0 }
 0x368   : > { %v4862_v23 = vpop.f32.mrf.mxu1 }
 0x369   : > { %v4908_v51 = vadd.f32 %v4900_v47, %v359_v39  ;;  %v4902_v54 = vadd.f32 %v4901_v46, %v4861_v49  ;;  %v4904_v56 = vpop.f32.mrf.mxu0  ;;  %4917 = sbr.rel (%p6063_p1) target bundleno = 1114 (0x45a), region = 56 }
 0x36a   : > { %v4863_v62 = vpop.f32.mrf.mxu1 }
 0x36b   : > { %4912 = vst [vmem:[#allocation2 + $0x18] sm:$0xff] %v4908_v51  ;;  %v4909_v57 = vadd.f32 %v4902_v54, %v360_v50 }
 0x36d   : > { %4913 = vst [vmem:[#allocation2 + $0x8] sm:$0xff] %v4909_v57 }
 0x36e   : > { %v7154_v18 = vld [vmem:[#allocation5 + $0x78] sm:$0xff]   ;;  %v7158_v4 = vld [vmem:[#allocation5 + $0x70] sm:$0xff]   ;;  %v7162_v26 = vld [vmem:[#allocation5 + $0x68] sm:$0xff]   ;;  %v4924_v41 = vlaneseq }
 0x36f   : > { %v7155_v61 = vld [vmem:[#allocation5 + $0xf8] sm:$0xff]   ;;  %6104 = vmatprep.subr.bf16.mxu0 %v7154_v18  ;;  %v7159_v1 = vld [vmem:[#allocation5 + $0xf0] sm:$0xff]   ;;  %v7163_v12 = vld [vmem:[#allocation5 + $0xe8] sm:$0xff]  }
 0x370   : > { %v7156_v63 = vld [vmem:[#allocation5 + $0x38] sm:$0xff]   ;;  %6126 = vmatprep.subr.bf16.mxu1 %v7155_v61  ;;  %v7160_v42 = vld [vmem:[#allocation5 + $0x30] sm:$0xff]   ;;  %v7164_v5 = vld [vmem:[#allocation5 + $0x28] sm:$0xff]   ;;  %v4925_v34 = vshrl.u32 %v4924_v41, 7 }
 0x371   : > { %v7157_v0 = vld [vmem:[#allocation5 + $0xb8] sm:$0xff]   ;;  %6105 = vmatpush3.bf16.msra.mxu0 %v7156_v63  ;;  %v7161_v3 = vld [vmem:[#allocation5 + $0xb0] sm:$0xff]   ;;  %v7165_v52 = vld [vmem:[#allocation5 + $0xa8] sm:$0xff]  }
 0x372   : > { %6127 = vmatpush3.bf16.msra.mxu1 %v7157_v0  ;;  %6106 = vmatprep.subr.bf16.mxu0 %v7158_v4  ;;  %v7166_v6 = vld [vmem:[#allocation5 + $0x60] sm:$0xff]   ;;  %v7170_v11 = vld [vmem:[#allocation5 + $0x58] sm:$0xff]   ;;  %v7174_v15 = vld [vmem:[#allocation5 + $0x50] sm:$0xff]   ;;  %v4930_v45 = vsub.s32 1, %v4925_v34  ;;  %v4938_v21 = vsub.s32 3, %v4925_v34  ;;  %v4926_v40 = vsub.s32 0, %v4925_v34 }
 0x373   : > { %6128 = vmatprep.subr.bf16.mxu1 %v7159_v1  ;;  %v7167_v59 = vld [vmem:[#allocation5 + $0xe0] sm:$0xff]   ;;  %v7171_v48 = vld [vmem:[#allocation5 + $0xd8] sm:$0xff]   ;;  %v7175_v16 = vld [vmem:[#allocation5 + $0xd0] sm:$0xff]   ;;  %v4934_v22 = vsub.s32 2, %v4925_v34 }
 0x374   : > { %v7168_v9 = vld [vmem:[#allocation5 + $0x20] sm:$0xff]   ;;  %v7172_v14 = vld [vmem:[#allocation5 + $0x18] sm:$0xff]   ;;  %v7176_v32 = vld [vmem:[#allocation5 + $0x10] sm:$0xff]  }
 0x375   : > { %6107 = vmatpush3.bf16.msra.mxu0 %v7160_v42  ;;  %v7169_v10 = vld [vmem:[#allocation5 + $0xa0] sm:$0xff]   ;;  %v7173_v17 = vld [vmem:[#allocation5 + $0x98] sm:$0xff]   ;;  %v7177_v7 = vld [vmem:[#allocation5 + $0x90] sm:$0xff]  }
 0x376   : > { %6129 = vmatpush3.bf16.msra.mxu1 %v7161_v3  ;;  %6108 = vmatprep.subr.bf16.mxu0 %v7162_v26  ;;  %v7178_v55 = vld [vmem:[#allocation5 + $0x48] sm:$0xff]   ;;  %v7182_v53 = vld [vmem:[#allocation5 + $0x40] sm:$0xff]   ;;  %v4918_v58 = vld [vmem:[#allocation2 + $0x10] sm:$0xff] }
 0x377   : > { %6130 = vmatprep.subr.bf16.mxu1 %v7163_v12  ;;  %v7179_v19 = vld [vmem:[#allocation5 + $0xc8] sm:$0xff]   ;;  %v7183_v37 = vld [vmem:[#allocation5 + $0xc0] sm:$0xff]   ;;  %v4920_v35 = vld [vmem:[#allocation2 + $0x18] sm:$0xff] }
 0x378   : > { %v7180_v20 = vld [vmem:[#allocation5 + $0x8] sm:$0xff]   ;;  %v7184_v27 = vld [vmem:[#allocation5] sm:$0xff]  }
 0x379   : > { %6109 = vmatpush3.bf16.msra.mxu0 %v7164_v5  ;;  %v7181_v25 = vld [vmem:[#allocation5 + $0x88] sm:$0xff]   ;;  %v7185_v28 = vld [vmem:[#allocation5 + $0x80] sm:$0xff]  }
 0x37a   : > { %6131 = vmatpush3.bf16.msra.mxu1 %v7165_v52  ;;  %6110 = vmatprep.subr.bf16.mxu0 %v7166_v6  ;;  %v4919_v29 = vld [vmem:[#allocation2] sm:$0xff]  ;;  %v4921_v31 = vld [vmem:[#allocation2 + $0x8] sm:$0xff] }
 0x37b   : > { %6132 = vmatprep.subr.bf16.mxu1 %v7167_v59  ;;  %v4922_v30 = vld [vmem:[%s8268_s2] ss:$8 sm:$0xf] }
 0x37c   : > { %v4931_v8 = vrot.slane %v4922_v30, %v4930_v45  ;;  %v4939_v24 = vrot.slane %v4922_v30, %v4938_v21  ;;  %v4927_v33 = vrot.slane %v4922_v30, %v4926_v40  ;;  %v4935_v36 = vrot.slane %v4922_v30, %v4934_v22  ;;  %v6064_v23 = vld [vmem:[%s8270_s4] ss:$0 sm:$0xff] }
 0x37d   : > { %6111 = vmatpush3.bf16.msra.mxu0 %v7168_v9 }
 0x37e   : > { %6133 = vmatpush3.bf16.msra.mxu1 %v7169_v10  ;;  %6112 = vmatprep.subr.bf16.mxu0 %v7170_v11  ;;  %v4945_v43 = vadd.f32 %v4931_v8, %v4919_v29  ;;  %v4947_v44 = vadd.f32 %v4939_v24, %v4921_v31  ;;  %v4944_v2 = vadd.f32 %v4927_v33, %v4918_v58 }
 0x37f   : > { %6134 = vmatprep.subr.bf16.mxu1 %v7171_v48  ;;  %v4946_v60 = vadd.f32 %v4935_v36, %v4920_v35 }
 0x380   : > { %4949 = vst [vmem:[%s8271_s5 + $0x8] sm:$0xff] %v4945_v43  ;;  %v4953_v39 = vpack.c.bf16 %v4945_v43, %v4945_v43  ;;  %4951 = vst [vmem:[%s8271_s5 + $0x18] sm:$0xff] %v4947_v44  ;;  %v4955_v38 = vpack.c.bf16 %v4947_v44, %v4947_v44  ;;  %v4952_v46 = vpack.c.bf16 %v4944_v2, %v4944_v2 }
 0x381   : > { %6113 = vmatpush3.bf16.msra.mxu0 %v7172_v14  ;;  %4948 = vst [vmem:[%s8271_s5] sm:$0xff] %v4944_v2  ;;  %4950 = vst [vmem:[%s8271_s5 + $0x10] sm:$0xff] %v4946_v60  ;;  %v4954_v47 = vpack.c.bf16 %v4946_v60, %v4946_v60 }
 0x382   : > { %6135 = vmatpush3.bf16.msra.mxu1 %v7173_v17  ;;  %6114 = vmatprep.subr.bf16.mxu0 %v7174_v15 }
 0x383   : > { %6136 = vmatprep.subr.bf16.mxu1 %v7175_v16  ;;  %5249 = vmatprep.mubr.bf16.mxu0 %v4953_v39 }
 0x384   : > { %5289 = vmatprep.mubr.bf16.mxu1 %v4955_v38 }
 0x385   : > { %6115 = vmatpush3.bf16.msra.mxu0 %v7176_v32 }
 0x386   : > { %6137 = vmatpush3.bf16.msra.mxu1 %v7177_v7  ;;  %6116 = vmatprep.subr.bf16.mxu0 %v7178_v55 }
 0x387   : > { %6138 = vmatprep.subr.bf16.mxu1 %v7179_v19 }
 0x389   : > { %6117 = vmatpush3.bf16.msra.mxu0 %v7180_v20 }
 0x38a   : > { %6139 = vmatpush3.bf16.msra.mxu1 %v7181_v25  ;;  %6118 = vmatprep.subr.bf16.mxu0 %v7182_v53 }
 0x38b   : > { %6140 = vmatprep.subr.bf16.mxu1 %v7183_v37 }
 0x38d   : > { %6119 = vmatpush3.bf16.msra.mxu0 %v7184_v27 }
 0x38e   : > { %6141 = vmatpush3.bf16.msra.mxu1 %v7185_v28 }
 0x390   : > { %5250 = vmatmul.mubr.bf16.vlgmr.msra.gmra.mxu0 %v4952_v46 }
 0x391   : > { %5290 = vmatmul.mubr.bf16.vlgmr.msra.gmra.mxu1 %v4954_v47 }
 0x450   : > { %v6120_v49 = vpop.f32.mrf.mxu0 }
 0x451   : > { %v6142_v50 = vpop.f32.mrf.mxu1 }
 0x452   : > { %v6121_v13 = vpop.f32.mrf.mxu0 }
 0x453   : > { %v6143_v51 = vpop.f32.mrf.mxu1  ;;  %v6122_v54 = vadd.f32 %v6121_v13, %v6120_v49 }
 0x454   : > { %v6123_v62 = vpop.f32.mrf.mxu0  ;;  %v6144_v18 = vadd.f32 %v6143_v51, %v6142_v50 }
 0x455   : > { %v6145_v56 = vpop.f32.mrf.mxu1  ;;  %v5252_v57 = vadd.f32 %v6122_v54, %v6064_v23 }
 0x456   : > { %v6124_v61 = vpop.f32.mrf.mxu0 }
 0x457   : > { %v6146_v63 = vpop.f32.mrf.mxu1  ;;  %v5292_v0 = vadd.f32 %v6144_v18, %v5252_v57 }
 0x459   : > { %5297 = vst [vmem:[%s8272_s6] sm:$0xff] %v5292_v0 }
 0x45a PF: > { %s21_s26 = sadd.s32 1, %s7294_s26   ;;  %s8278_s20 = smov %s7416_s21 }
 0x45b   : > { %p18_p4 = scmp.ge.s32.totalorder %s21_s26, 5   ;;  %s8279_s21 = smov %s7278_s22 }
 0x45c   : > { %s8280_s22 = smov %s7282_s23  ;;  %s8281_s23 = smov %s8278_s20 }
 0x45d   : > { %s8282_s24 = smov %s7290_s25  ;;  %s8283_s25 = smov %s8285_s10 }
 0x45e   :  { %20 = sbr.rel (!%p18_p4) target bundleno = 5 (0x5), region = 107 }
 0x463   :  { %5333 = vsyncpa [#allocation4], 1 }
 0x464   :  { %5335 = vsyncpa [#allocation4 + $0x1], 1 }
 0x465   :  { %5336 = vsyncpa [#allocation6], 1 }

// kernel: cnn_distillation_forward.18
= control target key start
LH: loop header
LB: loop body
LE: loop exit
PB: predicated region body
PF: predicated region fallthrough
CT: control target
= control target key end

     0   :  { %s326_s6 = smov 0   ;;  %s383_s0 = inlined_call_operand.vmem [shape: bf16[2,16,8,128], index: 0, kind: input, shape index: {}]   ;;  %s384_s1 = inlined_call_operand.vmem [shape: bf16[2,8,8,64], index: 1, kind: output, shape index: {}]  }
   0x1 LB: > { %s285_s7 = sadd.s32 4294967295, %s313_s6   ;;  %p289_p0 = scmp.ge.s32.totalorder %s313_s6, 1  ;;  %s313_s6 = sphi %s326_s6, %s11_s6  }
   0x2   : > { %p87_p1 = scmp.lt.s32.totalorder %s313_s6, 3 }
   0x4   : > { %p88_p2 = pnand %p289_p0, %p87_p1 }
   0x5   : > { %p107_p3 = scmp.lt.s32.totalorder (!%p88_p2), %s285_s7, 1  ;;  %s315_s12 = smov (!%p88_p2), 64  }
   0x6   : > { %91 = sbr.rel (%p88_p2) target bundleno = 163 (0xa3), region = 24 }
   0xb   : > { %s386_s7 = smov (!%p107_p3, %s285_s7), 1  ;;  %vm221_vm0 = vcmask 519168  }
   0xc   : > { %s296_s8 = sshll.u32 %s386_s7, 6  ;;  %s297_s13 = sshll.u32 %s386_s7, 5 }
   0xd   : > { %s340_s11 = scalar_lea.vmem %s383_s0, %s296_s8  ;;  %s362_s16 = scalar_lea.vmem %s384_s1, %s297_s13 }
   0xe   : > { %v119_v0 = vld [vmem:[%s340_s11 + $0x8] sm:$0xf]  ;;  %v117_v1 = vld [vmem:[%s340_s11] sm:$0xf]  ;;  %v120_v2 = vld [vmem:[%s340_s11 + $0xc] sm:$0xf] }
   0xf   : > { %153 = vrot.lane.b32.xlu1 %v119_v0, %s315_s12  ;;  %149 = vrot.lane.b32.xlu0 %v117_v1, %s315_s12  ;;  %v118_v3 = vld [vmem:[%s340_s11 + $0x4] sm:$0xf]  ;;  %v122_v4 = vld [vmem:[%s340_s11 + $0x14] sm:$0xf] }
  0x10   : > { %v121_v5 = vld [vmem:[%s340_s11 + $0x10] sm:$0xf]  ;;  %v124_v6 = vld [vmem:[%s340_s11 + $0x1c] sm:$0xf]  ;;  %v123_v7 = vld [vmem:[%s340_s11 + $0x18] sm:$0xf] }
  0x11   : > { %v126_v8 = vld [vmem:[%s340_s11 + $0x24] sm:$0xf]  ;;  %v125_v9 = vld [vmem:[%s340_s11 + $0x20] sm:$0xf]  ;;  %v128_v10 = vld [vmem:[%s340_s11 + $0x2c] sm:$0xf] }
  0x12   : > { %v127_v11 = vld [vmem:[%s340_s11 + $0x28] sm:$0xf]  ;;  %v130_v12 = vld [vmem:[%s340_s11 + $0x34] sm:$0xf]  ;;  %v129_v13 = vld [vmem:[%s340_s11 + $0x30] sm:$0xf] }
  0x13   : > { %155 = vrot.lane.b32.xlu1 %v120_v2, %s315_s12  ;;  %151 = vrot.lane.b32.xlu0 %v118_v3, %s315_s12  ;;  %v132_v14 = vld [vmem:[%s340_s11 + $0x3c] sm:$0xf]  ;;  %v131_v15 = vld [vmem:[%s340_s11 + $0x38] sm:$0xf] }
  0x17   : > { %159 = vrot.lane.b32.xlu1 %v122_v4, %s315_s12  ;;  %157 = vrot.lane.b32.xlu0 %v121_v5, %s315_s12 }
  0x1b   : > { %163 = vrot.lane.b32.xlu1 %v124_v6, %s315_s12  ;;  %161 = vrot.lane.b32.xlu0 %v123_v7, %s315_s12 }
  0x1f   : > { %167 = vrot.lane.b32.xlu1 %v126_v8, %s315_s12  ;;  %165 = vrot.lane.b32.xlu0 %v125_v9, %s315_s12 }
  0x23   : > { %171 = vrot.lane.b32.xlu1 %v128_v10, %s315_s12  ;;  %169 = vrot.lane.b32.xlu0 %v127_v11, %s315_s12 }
  0x27   : > { %175 = vrot.lane.b32.xlu1 %v130_v12, %s315_s12  ;;  %173 = vrot.lane.b32.xlu0 %v129_v13, %s315_s12 }
  0x2b   : > { %179 = vrot.lane.b32.xlu1 %v132_v14, %s315_s12  ;;  %177 = vrot.lane.b32.xlu0 %v131_v15, %s315_s12 }
  0x81   : > { %v154_v16 = vpop.permute.xlu1 %153  ;;  %v150_v17 = vpop.permute.xlu0 %149 }
  0x82   : > { %v199_v20 = vmax.bf16 %v154_v16, %v119_v0  ;;  %v197_v21 = vmax.bf16 %v150_v17, %v117_v1 }
  0x85   : > { %v156_v18 = vpop.permute.xlu1 %155  ;;  %v152_v19 = vpop.permute.xlu0 %151 }
  0x86   : > { %v200_v22 = vmax.bf16 %v156_v18, %v120_v2  ;;  %v198_v23 = vmax.bf16 %v152_v19, %v118_v3 }
  0x88   : > { %v214_v24 = vmax.bf16 %v200_v22, %v199_v20  ;;  %v213_v25 = vmax.bf16 %v198_v23, %v197_v21 }
  0x89   : > { %v160_v26 = vpop.permute.xlu1 %159  ;;  %v158_v27 = vpop.permute.xlu0 %157 }
  0x8a   : > { %223 = vst.msk [vmem:[%s362_s16 + $0x4] sm:$0xf] %vm221_vm0, %v214_v24  ;;  %222 = vst.msk [vmem:[%s362_s16] sm:$0xf] %vm221_vm0, %v213_v25  ;;  %v202_v28 = vmax.bf16 %v160_v26, %v122_v4  ;;  %v201_v29 = vmax.bf16 %v158_v27, %v121_v5 }
  0x8c   : > { %v215_v30 = vmax.bf16 %v202_v28, %v201_v29 }
  0x8d   : > { %v164_v31 = vpop.permute.xlu1 %163  ;;  %v162_v32 = vpop.permute.xlu0 %161 }
  0x8e   : > { %224 = vst.msk [vmem:[%s362_s16 + $0x8] sm:$0xf] %vm221_vm0, %v215_v30  ;;  %v204_v33 = vmax.bf16 %v164_v31, %v124_v6  ;;  %v203_v34 = vmax.bf16 %v162_v32, %v123_v7 }
  0x90   : > { %v216_v35 = vmax.bf16 %v204_v33, %v203_v34 }
  0x91   : > { %v168_v36 = vpop.permute.xlu1 %167  ;;  %v166_v37 = vpop.permute.xlu0 %165 }
  0x92   : > { %225 = vst.msk [vmem:[%s362_s16 + $0xc] sm:$0xf] %vm221_vm0, %v216_v35  ;;  %v206_v38 = vmax.bf16 %v168_v36, %v126_v8  ;;  %v205_v39 = vmax.bf16 %v166_v37, %v125_v9 }
  0x94   : > { %v217_v40 = vmax.bf16 %v206_v38, %v205_v39 }
  0x95   : > { %v172_v41 = vpop.permute.xlu1 %171  ;;  %v170_v42 = vpop.permute.xlu0 %169 }
  0x96   : > { %226 = vst.msk [vmem:[%s362_s16 + $0x10] sm:$0xf] %vm221_vm0, %v217_v40  ;;  %v208_v43 = vmax.bf16 %v172_v41, %v128_v10  ;;  %v207_v44 = vmax.bf16 %v170_v42, %v127_v11 }
  0x98   : > { %v218_v45 = vmax.bf16 %v208_v43, %v207_v44 }
  0x99   : > { %v176_v46 = vpop.permute.xlu1 %175  ;;  %v174_v47 = vpop.permute.xlu0 %173 }
  0x9a   : > { %227 = vst.msk [vmem:[%s362_s16 + $0x14] sm:$0xf] %vm221_vm0, %v218_v45  ;;  %v210_v48 = vmax.bf16 %v176_v46, %v130_v12  ;;  %v209_v49 = vmax.bf16 %v174_v47, %v129_v13 }
  0x9c   : > { %v219_v50 = vmax.bf16 %v210_v48, %v209_v49 }
  0x9d   : > { %v180_v51 = vpop.permute.xlu1 %179  ;;  %v178_v52 = vpop.permute.xlu0 %177 }
  0x9e   : > { %228 = vst.msk [vmem:[%s362_s16 + $0x18] sm:$0xf] %vm221_vm0, %v219_v50  ;;  %v212_v53 = vmax.bf16 %v180_v51, %v132_v14  ;;  %v211_v54 = vmax.bf16 %v178_v52, %v131_v15 }
  0xa0   : > { %v220_v55 = vmax.bf16 %v212_v53, %v211_v54 }
  0xa2   : > { %229 = vst.msk [vmem:[%s362_s16 + $0x1c] sm:$0xf] %vm221_vm0, %v220_v55 }
  0xa3 PF: > { %s11_s6 = sadd.s32 1, %s313_s6  }
  0xa4   : > { %p8_p4 = scmp.ge.s32.totalorder %s11_s6, 4  }
  0xa6   :  { %10 = sbr.rel (!%p8_p4) target bundleno = 1 (0x1), region = 54 }

// kernel: cnn_distillation_forward.17
= control target key start
LH: loop header
LB: loop body
LE: loop exit
PB: predicated region body
PF: predicated region fallthrough
CT: control target
= control target key end

     0   :  { %s1516_s12 = smov 0   ;;  %s1518_s13 = smov 0   ;;  %s1685_s0 = inlined_call_operand.vmem [shape: bf16[512,384], index: 0, kind: input, shape index: {}]   ;;  %s1686_s1 = inlined_call_operand.vmem [shape: bf16[384,128], index: 1, kind: input, shape index: {}]   ;;  %s1687_s2 = inlined_call_operand.vmem [shape: f32[8,128], index: 2, kind: input, shape index: {}]   ;;  %s1688_s3 = inlined_call_operand.vmem [shape: bf16[512,128], index: 3, kind: output, shape index: {}]  }
   0x1   :  { %s1520_s14 = smov 0  }
   0x2 LB: > { %s32_s15 = sadd.s32 1, %s1490_s13  ;;  %p1144_p0 = scmp.ge.s32.totalorder %s1494_s14, 1  ;;  %s1494_s14 = sphi %s1520_s14, %s13_s14   ;;  %s1490_s13 = sphi %s1518_s13, %s1690_s13   ;;  %s1486_s12 = sphi %s1516_s12, %s1689_s12  }
   0x3   : > { %p34_p1 = scmp.ge.s32.totalorder %s32_s15, 4  ;;  %p192_p2 = scmp.lt.s32.totalorder %s1494_s14, 5 }
   0x5   : > { %s1692_s15 = smov (%p34_p1, %s32_s15), 0  ;;  %p193_p3 = pnand %p1144_p0, %p192_p2 }
   0x6   : > { %s1145_s5 = sshll.u32 (!%p193_p3), %s1486_s12, 4 }
   0x7   : > { %196 = sbr.rel (%p193_p3) target bundleno = 311 (0x137), region = 32  ;;  %p238_p4 = scmp.lt.s32.totalorder (!%p193_p3), %s1145_s5, 63 }
   0xc   : > { %v1416_v0 = vld [vmem:[%s1686_s1 + $0x78] sm:$0xff]   ;;  %v1419_v3 = vld [vmem:[%s1686_s1 + $0x70] sm:$0xff]   ;;  %v1422_v6 = vld [vmem:[%s1686_s1 + $0x68] sm:$0xff]   ;;  %s1694_s5 = smov (!%p238_p4, %s1145_s5), 63 }
   0xd   : > { %v1417_v1 = vld [vmem:[%s1686_s1 + $0x38] sm:$0xff]   ;;  %1279 = vmatprep.subr.bf16.mxu0 %v1416_v0  ;;  %v1420_v4 = vld [vmem:[%s1686_s1 + $0x30] sm:$0xff]   ;;  %v1423_v7 = vld [vmem:[%s1686_s1 + $0x28] sm:$0xff]   ;;  %s1391_s27 = smul.u32 12, %s1694_s5  ;;  %s1148_s24 = sshll.u32 %s1694_s5, 2 }
   0xe   : > { %v1418_v2 = vld [vmem:[%s1686_s1 + $0xb8] sm:$0xff]   ;;  %1280 = vmatpush3.bf16.msra.mxu0 %v1417_v1  ;;  %v1421_v5 = vld [vmem:[%s1686_s1 + $0xb0] sm:$0xff]   ;;  %v1424_v8 = vld [vmem:[%s1686_s1 + $0xa8] sm:$0xff]  }
   0xf   : > { %1359 = vmatprep.subr.bf16.mxu1 %v1418_v2  ;;  %1281 = vmatprep.subr.bf16.mxu0 %v1419_v3  ;;  %v1425_v9 = vld [vmem:[%s1686_s1 + $0x60] sm:$0xff]   ;;  %v1428_v12 = vld [vmem:[%s1686_s1 + $0x58] sm:$0xff]   ;;  %v1431_v15 = vld [vmem:[%s1686_s1 + $0x50] sm:$0xff]   ;;  %s1606_s16 = scalar_lea.vmem %s1685_s0, %s1391_s27  ;;  %s1652_s27 = scalar_lea.vmem %s1688_s3, %s1148_s24 }
  0x10   : > { %1360 = vmatpush3.bf16.msra.mxu1 %v1418_v2  ;;  %v1426_v10 = vld [vmem:[%s1686_s1 + $0x20] sm:$0xff]   ;;  %v1430_v13 = vld [vmem:[%s1686_s1 + $0x98] sm:$0xff]   ;;  %v1433_v16 = vld [vmem:[%s1686_s1 + $0x90] sm:$0xff]  }
  0x11   : > { %1361 = vmatprep.subr.bf16.mxu1 %v1421_v5  ;;  %v1427_v11 = vld [vmem:[%s1686_s1 + $0xa0] sm:$0xff]   ;;  %v1429_v14 = vld [vmem:[%s1686_s1 + $0x18] sm:$0xff]   ;;  %v1432_v17 = vld [vmem:[%s1686_s1 + $0x10] sm:$0xff]  }
  0x12   : > { %1282 = vmatpush3.bf16.msra.mxu0 %v1420_v4  ;;  %v1434_v18 = vld [vmem:[%s1686_s1 + $0x48] sm:$0xff]   ;;  %v1437_v21 = vld [vmem:[%s1686_s1 + $0x40] sm:$0xff]   ;;  %v1452_v32 = vld [vmem:[%s1606_s16 + $0x50] ss:$12 sps:$4 sm:$0xff]  }
  0x13   : > { %1283 = vmatprep.subr.bf16.mxu0 %v1422_v6  ;;  %v1435_v19 = vld [vmem:[%s1686_s1 + $0x8] sm:$0xff]   ;;  %v1439_v22 = vld [vmem:[%s1686_s1 + $0x80] sm:$0xff]   ;;  %v1450_v34 = vld [vmem:[%s1606_s16 + $0x30] ss:$12 sps:$4 sm:$0xff]  }
  0x14   : > { %1362 = vmatpush3.bf16.msra.mxu1 %v1421_v5  ;;  %v1436_v20 = vld [vmem:[%s1686_s1 + $0x88] sm:$0xff]   ;;  %v1442_v23 = vld [vmem:[%s1606_s16 + $0x4] ss:$12 sps:$4 sm:$0xff]   ;;  %v1448_v31 = vld [vmem:[%s1606_s16 + $0x34] ss:$12 sps:$4 sm:$0xff]  }
  0x15   : > { %1363 = vmatprep.subr.bf16.mxu1 %v1424_v8  ;;  %v1443_v24 = vld [vmem:[%s1606_s16 + $0x8] ss:$12 sps:$4 sm:$0xff]   ;;  %v1438_v25 = vld [vmem:[%s1686_s1] sm:$0xff]   ;;  %691 = vmatprep.mubr.bf16.mxu0 %v1442_v23  ;;  %v1453_v35 = vld [vmem:[%s1606_s16 + $0x4c] ss:$12 sps:$4 sm:$0xff]  }
  0x16   : > { %1284 = vmatpush3.bf16.msra.mxu0 %v1423_v7  ;;  %1375 = vmatprep.mubr.bf16.mxu1 %v1443_v24  ;;  %v1440_v26 = vld [vmem:[%s1606_s16] ss:$12 sps:$4 sm:$0xff]   ;;  %v1445_v27 = vld [vmem:[%s1606_s16 + $0x1c] ss:$12 sps:$4 sm:$0xff]   ;;  %v1451_v29 = vld [vmem:[%s1606_s16 + $0x38] ss:$12 sps:$4 sm:$0xff]  }
  0x17   : > { %1285 = vmatprep.subr.bf16.mxu0 %v1425_v9  ;;  %v1444_v28 = vld [vmem:[%s1606_s16 + $0x20] ss:$12 sps:$4 sm:$0xff]   ;;  %v1447_v30 = vld [vmem:[%s1606_s16 + $0x18] ss:$12 sps:$4 sm:$0xff]   ;;  %v1459_v33 = vld [vmem:[%s1606_s16 + $0x68] ss:$12 sps:$4 sm:$0xff]  }
  0x18   : > { %1364 = vmatpush3.bf16.msra.mxu1 %v1424_v8  ;;  %v1460_v36 = vld [vmem:[%s1606_s16 + $0x80] ss:$12 sps:$4 sm:$0xff]   ;;  %v1467_v37 = vld [vmem:[%s1606_s16 + $0x98] ss:$12 sps:$4 sm:$0xff]   ;;  %v1455_v38 = vld [vmem:[%s1606_s16 + $0x48] ss:$12 sps:$4 sm:$0xff]  }
  0x19   : > { %1365 = vmatprep.subr.bf16.mxu1 %v1427_v11  ;;  %v1456_v39 = vld [vmem:[%s1606_s16 + $0x64] ss:$12 sps:$4 sm:$0xff]   ;;  %v1458_v41 = vld [vmem:[%s1606_s16 + $0x60] ss:$12 sps:$4 sm:$0xff]   ;;  %v1461_v42 = vld [vmem:[%s1606_s16 + $0x7c] ss:$12 sps:$4 sm:$0xff]  }
  0x1a   : > { %1286 = vmatpush3.bf16.msra.mxu0 %v1426_v10  ;;  %v1468_v40 = vld [vmem:[%s1606_s16 + $0xb0] ss:$12 sps:$4 sm:$0xff]   ;;  %v1463_v43 = vld [vmem:[%s1606_s16 + $0x78] ss:$12 sps:$4 sm:$0xff]   ;;  %v1464_v44 = vld [vmem:[%s1606_s16 + $0x94] ss:$12 sps:$4 sm:$0xff]  }
  0x1b   : > { %1287 = vmatprep.subr.bf16.mxu0 %v1428_v12  ;;  %v1466_v45 = vld [vmem:[%s1606_s16 + $0x90] ss:$12 sps:$4 sm:$0xff]   ;;  %v1469_v46 = vld [vmem:[%s1606_s16 + $0xac] ss:$12 sps:$4 sm:$0xff]   ;;  %v1471_v47 = vld [vmem:[%s1606_s16 + $0xa8] ss:$12 sps:$4 sm:$0xff]  }
  0x1c   : > { %1366 = vmatpush3.bf16.msra.mxu1 %v1427_v11  ;;  %v1644_v55 = vld [vmem:[%s1687_s2] ss:$0 sm:$0xff] }
  0x1d   : > { %1367 = vmatprep.subr.bf16.mxu1 %v1430_v13 }
  0x1e   : > { %1288 = vmatpush3.bf16.msra.mxu0 %v1429_v14 }
  0x1f   : > { %1289 = vmatprep.subr.bf16.mxu0 %v1431_v15 }
  0x20   : > { %1368 = vmatpush3.bf16.msra.mxu1 %v1430_v13 }
  0x21   : > { %1369 = vmatprep.subr.bf16.mxu1 %v1433_v16 }
  0x22   : > { %1290 = vmatpush3.bf16.msra.mxu0 %v1432_v17 }
  0x23   : > { %1291 = vmatprep.subr.bf16.mxu0 %v1434_v18 }
  0x24   : > { %1370 = vmatpush3.bf16.msra.mxu1 %v1433_v16 }
  0x25   : > { %1371 = vmatprep.subr.bf16.mxu1 %v1436_v20 }
  0x26   : > { %1292 = vmatpush3.bf16.msra.mxu0 %v1435_v19 }
  0x27   : > { %1293 = vmatprep.subr.bf16.mxu0 %v1437_v21 }
  0x28   : > { %1372 = vmatpush3.bf16.msra.mxu1 %v1436_v20 }
  0x29   : > { %1373 = vmatprep.subr.bf16.mxu1 %v1439_v22 }
  0x2a   : > { %1294 = vmatpush3.bf16.msra.mxu0 %v1438_v25 }
  0x2c   : > { %1374 = vmatpush3.bf16.msra.mxu1 %v1439_v22 }
  0x2d   : > { %692 = vmatmul.mubr.bf16.vlgmr.msra.gmra.mxu0 %v1440_v26 }
  0x2e   : > { %699 = vmatprep.mubr.bf16.mxu0 %v1445_v27 }
  0x2f   : > { %1376 = vmatmul.mubr.bf16.vlgmr.msra.gmra.mxu1 %v1444_v28 }
  0x30   : > { %1379 = vmatprep.mubr.bf16.mxu1 %v1451_v29 }
  0x35   : > { %700 = vmatmul.mubr.bf16.gmra.mxu0 %v1447_v30 }
  0x36   : > { %707 = vmatprep.mubr.bf16.mxu0 %v1448_v31 }
  0x37   : > { %1380 = vmatmul.mubr.bf16.gmra.mxu1 %v1452_v32 }
  0x38   : > { %1383 = vmatprep.mubr.bf16.mxu1 %v1459_v33 }
  0x3d   : > { %708 = vmatmul.mubr.bf16.gmra.mxu0 %v1450_v34 }
  0x3e   : > { %715 = vmatprep.mubr.bf16.mxu0 %v1453_v35 }
  0x3f   : > { %1384 = vmatmul.mubr.bf16.gmra.mxu1 %v1460_v36 }
  0x40   : > { %1387 = vmatprep.mubr.bf16.mxu1 %v1467_v37 }
  0x45   : > { %716 = vmatmul.mubr.bf16.gmra.mxu0 %v1455_v38 }
  0x46   : > { %723 = vmatprep.mubr.bf16.mxu0 %v1456_v39 }
  0x47   : > { %1388 = vmatmul.mubr.bf16.gmra.mxu1 %v1468_v40 }
  0x4d   : > { %724 = vmatmul.mubr.bf16.gmra.mxu0 %v1458_v41 }
  0x4e   : > { %731 = vmatprep.mubr.bf16.mxu0 %v1461_v42 }
  0x55   : > { %732 = vmatmul.mubr.bf16.gmra.mxu0 %v1463_v43 }
  0x56   : > { %739 = vmatprep.mubr.bf16.mxu0 %v1464_v44 }
  0x5d   : > { %740 = vmatmul.mubr.bf16.gmra.mxu0 %v1466_v45 }
  0x5e   : > { %747 = vmatprep.mubr.bf16.mxu0 %v1469_v46 }
  0x65   : > { %748 = vmatmul.mubr.bf16.gmra.mxu0 %v1471_v47 }
  0xed   : > { %v1295_v48 = vpop.f32.mrf.mxu0 }
  0xef   : > { %v1296_v49 = vpop.f32.mrf.mxu0  ;;  %v1377_v50 = vpop.f32.mrf.mxu1 }
  0xf0   : > { %v1297_v51 = vadd.f32 %v1296_v49, %v1295_v48 }
  0xf1   : > { %v1298_v52 = vpop.f32.mrf.mxu0  ;;  %v790_v53 = vpop.f32.mrf.mxu1 }
  0xf2   : > { %v791_v54 = vadd.f32 %v1297_v51, %v790_v53 }
  0xf3   : > { %v1299_v56 = vpop.f32.mrf.mxu0  ;;  %v1378_v57 = vpop.f32.mrf.mxu1 }
  0xf4   : > { %v1300_v58 = vadd.f32 %v1299_v56, %v1298_v52  ;;  %v909_v61 = vadd.f32 %v1644_v55, %v791_v54 }
  0xf5   : > { %v1301_v59 = vpop.f32.mrf.mxu0  ;;  %v793_v60 = vpop.f32.mrf.mxu1 }
  0xf6   : > { %v794_v62 = vadd.f32 %v1300_v58, %v793_v60  ;;  %v925_v4 = vmax.f32 %v909_v61, 0.0 }
  0xf7   : > { %v1302_v63 = vpop.f32.mrf.mxu0  ;;  %v1381_v0 = vpop.f32.mrf.mxu1 }
  0xf8   : > { %v910_v1 = vadd.f32 %v1644_v55, %v794_v62  ;;  %v1303_v2 = vadd.f32 %v1302_v63, %v1301_v59 }
  0xf9   : > { %v1304_v3 = vpop.f32.mrf.mxu0  ;;  %v806_v8 = vpop.f32.mrf.mxu1 }
  0xfa   : > { %v926_v5 = vmax.f32 %v910_v1, 0.0  ;;  %v799_v6 = vadd.f32 %v1377_v50, %v1303_v2 }
  0xfb   : > { %v1305_v7 = vpop.f32.mrf.mxu0  ;;  %v1382_v15 = vpop.f32.mrf.mxu1 }
  0xfc   : > { %v1235_v9 = vpack.c.bf16 %v926_v5, %v925_v4  ;;  %v1306_v10 = vadd.f32 %v1305_v7, %v1304_v3  ;;  %v911_v12 = vadd.f32 %v1644_v55, %v799_v6 }
  0xfd   : > { %v1307_v11 = vpop.f32.mrf.mxu0  ;;  %v809_v23 = vpop.f32.mrf.mxu1 }
  0xfe   : > { %1236 = vst [vmem:[%s1652_s27] sm:$0xff] %v1235_v9   ;;  %v802_v13 = vadd.f32 %v1378_v57, %v1306_v10  ;;  %v927_v19 = vmax.f32 %v911_v12, 0.0 }
  0xff   : > { %v1308_v14 = vpop.f32.mrf.mxu0  ;;  %v1385_v30 = vpop.f32.mrf.mxu1 }
 0x100   : > { %v912_v16 = vadd.f32 %v1644_v55, %v802_v13  ;;  %v1309_v17 = vadd.f32 %v1308_v14, %v1307_v11 }
 0x101   : > { %v1310_v18 = vpop.f32.mrf.mxu0  ;;  %v822_v38 = vpop.f32.mrf.mxu1 }
 0x102   : > { %v928_v20 = vmax.f32 %v912_v16, 0.0  ;;  %v807_v21 = vadd.f32 %v1309_v17, %v806_v8 }
 0x103   : > { %v1311_v22 = vpop.f32.mrf.mxu0  ;;  %v1386_v45 = vpop.f32.mrf.mxu1 }
 0x104   : > { %v1240_v24 = vpack.c.bf16 %v928_v20, %v927_v19  ;;  %v1312_v25 = vadd.f32 %v1311_v22, %v1310_v18  ;;  %v913_v27 = vadd.f32 %v1644_v55, %v807_v21 }
 0x105   : > { %v1313_v26 = vpop.f32.mrf.mxu0  ;;  %v825_v53 = vpop.f32.mrf.mxu1 }
 0x106   : > { %1272 = vst [vmem:[%s1652_s27 + $0x8] sm:$0xff] %v1240_v24   ;;  %v810_v28 = vadd.f32 %v1312_v25, %v809_v23  ;;  %v929_v34 = vmax.f32 %v913_v27, 0.0 }
 0x107   : > { %v1314_v29 = vpop.f32.mrf.mxu0  ;;  %v1389_v61 = vpop.f32.mrf.mxu1 }
 0x108   : > { %v914_v31 = vadd.f32 %v1644_v55, %v810_v28  ;;  %v1315_v32 = vadd.f32 %v1314_v29, %v1313_v26 }
 0x109   : > { %v1316_v33 = vpop.f32.mrf.mxu0  ;;  %v838_v5 = vpop.f32.mrf.mxu1 }
 0x10a   : > { %v930_v35 = vmax.f32 %v914_v31, 0.0  ;;  %v815_v36 = vadd.f32 %v1381_v0, %v1315_v32 }
 0x10b   : > { %v1317_v37 = vpop.f32.mrf.mxu0  ;;  %v1390_v12 = vpop.f32.mrf.mxu1 }
 0x10c   : > { %v1245_v39 = vpack.c.bf16 %v930_v35, %v929_v34  ;;  %v1318_v40 = vadd.f32 %v1317_v37, %v1316_v33  ;;  %v915_v42 = vadd.f32 %v1644_v55, %v815_v36 }
 0x10d   : > { %v1319_v41 = vpop.f32.mrf.mxu0  ;;  %v841_v20 = vpop.f32.mrf.mxu1 }
 0x10e   : > { %1273 = vst [vmem:[%s1652_s27 + $0x10] sm:$0xff] %v1245_v39   ;;  %v818_v43 = vadd.f32 %v1382_v15, %v1318_v40  ;;  %v931_v49 = vmax.f32 %v915_v42, 0.0 }
 0x10f   : > { %v1320_v44 = vpop.f32.mrf.mxu0 }
 0x110   : > { %v916_v46 = vadd.f32 %v1644_v55, %v818_v43  ;;  %v1321_v47 = vadd.f32 %v1320_v44, %v1319_v41 }
 0x111   : > { %v1322_v48 = vpop.f32.mrf.mxu0 }
 0x112   : > { %v932_v50 = vmax.f32 %v916_v46, 0.0  ;;  %v823_v51 = vadd.f32 %v1321_v47, %v822_v38 }
 0x113   : > { %v1323_v52 = vpop.f32.mrf.mxu0 }
 0x114   : > { %v1250_v54 = vpack.c.bf16 %v932_v50, %v931_v49  ;;  %v1324_v56 = vadd.f32 %v1323_v52, %v1322_v48  ;;  %v917_v58 = vadd.f32 %v1644_v55, %v823_v51 }
 0x115   : > { %v1325_v57 = vpop.f32.mrf.mxu0 }
 0x116   : > { %1274 = vst [vmem:[%s1652_s27 + $0x18] sm:$0xff] %v1250_v54   ;;  %v826_v59 = vadd.f32 %v1324_v56, %v825_v53  ;;  %v933_v1 = vmax.f32 %v917_v58, 0.0 }
 0x117   : > { %v1326_v60 = vpop.f32.mrf.mxu0 }
 0x118   : > { %v918_v62 = vadd.f32 %v1644_v55, %v826_v59  ;;  %v1327_v63 = vadd.f32 %v1326_v60, %v1325_v57 }
 0x119   : > { %v1328_v0 = vpop.f32.mrf.mxu0 }
 0x11a   : > { %v934_v2 = vmax.f32 %v918_v62, 0.0  ;;  %v831_v3 = vadd.f32 %v1385_v30, %v1327_v63 }
 0x11b   : > { %v1329_v4 = vpop.f32.mrf.mxu0 }
 0x11c   : > { %v1255_v6 = vpack.c.bf16 %v934_v2, %v933_v1  ;;  %v1330_v7 = vadd.f32 %v1329_v4, %v1328_v0  ;;  %v919_v9 = vadd.f32 %v1644_v55, %v831_v3 }
 0x11d   : > { %v1331_v8 = vpop.f32.mrf.mxu0 }
 0x11e   : > { %1275 = vst [vmem:[%s1652_s27 + $0x20] sm:$0xff] %v1255_v6   ;;  %v834_v10 = vadd.f32 %v1386_v45, %v1330_v7  ;;  %v935_v16 = vmax.f32 %v919_v9, 0.0 }
 0x11f   : > { %v1332_v11 = vpop.f32.mrf.mxu0 }
 0x120   : > { %v920_v13 = vadd.f32 %v1644_v55, %v834_v10  ;;  %v1333_v14 = vadd.f32 %v1332_v11, %v1331_v8 }
 0x121   : > { %v1334_v15 = vpop.f32.mrf.mxu0 }
 0x122   : > { %v936_v17 = vmax.f32 %v920_v13, 0.0  ;;  %v839_v18 = vadd.f32 %v1333_v14, %v838_v5 }
 0x123   : > { %v1335_v19 = vpop.f32.mrf.mxu0 }
 0x124   : > { %v1260_v21 = vpack.c.bf16 %v936_v17, %v935_v16  ;;  %v1336_v22 = vadd.f32 %v1335_v19, %v1334_v15  ;;  %v921_v24 = vadd.f32 %v1644_v55, %v839_v18 }
 0x125   : > { %v1337_v23 = vpop.f32.mrf.mxu0 }
 0x126   : > { %1276 = vst [vmem:[%s1652_s27 + $0x28] sm:$0xff] %v1260_v21   ;;  %v842_v25 = vadd.f32 %v1336_v22, %v841_v20  ;;  %v937_v30 = vmax.f32 %v921_v24, 0.0 }
 0x127   : > { %v1338_v26 = vpop.f32.mrf.mxu0 }
 0x128   : > { %v922_v27 = vadd.f32 %v1644_v55, %v842_v25  ;;  %v1339_v28 = vadd.f32 %v1338_v26, %v1337_v23 }
 0x129   : > { %v1340_v29 = vpop.f32.mrf.mxu0 }
 0x12a   : > { %v938_v31 = vmax.f32 %v922_v27, 0.0  ;;  %v847_v32 = vadd.f32 %v1389_v61, %v1339_v28 }
 0x12b   : > { %v1341_v33 = vpop.f32.mrf.mxu0 }
 0x12c   : > { %v1265_v34 = vpack.c.bf16 %v938_v31, %v937_v30  ;;  %v1342_v35 = vadd.f32 %v1341_v33, %v1340_v29  ;;  %v923_v36 = vadd.f32 %v1644_v55, %v847_v32 }
 0x12e   : > { %1277 = vst [vmem:[%s1652_s27 + $0x30] sm:$0xff] %v1265_v34   ;;  %v850_v37 = vadd.f32 %v1390_v12, %v1342_v35  ;;  %v939_v39 = vmax.f32 %v923_v36, 0.0 }
 0x130   : > { %v924_v38 = vadd.f32 %v1644_v55, %v850_v37 }
 0x132   : > { %v940_v40 = vmax.f32 %v924_v38, 0.0 }
 0x134   : > { %v1270_v41 = vpack.c.bf16 %v940_v40, %v939_v39 }
 0x136   : > { %1278 = vst [vmem:[%s1652_s27 + $0x38] sm:$0xff] %v1270_v41  }
 0x137 PF: > { %s13_s14 = sadd.s32 1, %s1494_s14   ;;  %s1689_s12 = smov %s1490_s13 }
 0x138   : > { %p10_p5 = scmp.ge.s32.totalorder %s13_s14, 6   ;;  %s1690_s13 = smov %s1692_s15 }
 0x13a   :  { %12 = sbr.rel (!%p10_p5) target bundleno = 2 (0x2), region = 76 }

// kernel: cnn_distillation_forward.20
= control target key start
LH: loop header
LB: loop body
LE: loop exit
PB: predicated region body
PF: predicated region fallthrough
CT: control target
= control target key end

     0   :  { %s270_s6 = smov 0   ;;  %s295_s0 = inlined_call_operand.vmem [shape: bf16[2,8,4,128], index: 0, kind: input, shape index: {}]   ;;  %s296_s1 = inlined_call_operand.vmem [shape: bf16[2,4,4,64], index: 1, kind: output, shape index: {}]  }
   0x1 LB: > { %s229_s7 = sadd.s32 4294967295, %s257_s6   ;;  %p233_p0 = scmp.ge.s32.totalorder %s257_s6, 1  ;;  %s257_s6 = sphi %s270_s6, %s11_s6  }
   0x2   : > { %p87_p1 = scmp.lt.s32.totalorder %s257_s6, 3 }
   0x4   : > { %p88_p2 = pnand %p233_p0, %p87_p1 }
   0x5   : > { %p107_p3 = scmp.lt.s32.totalorder (!%p88_p2), %s229_s7, 1  ;;  %s259_s12 = smov (!%p88_p2), 64  }
   0x6   : > { %91 = sbr.rel (%p88_p2) target bundleno = 147 (0x93), region = 24 }
   0xb   : > { %s298_s7 = smov (!%p107_p3, %s229_s7), 1  ;;  %vm169_vm0 = vcmask 517120  }
   0xc   : > { %s240_s8 = sshll.u32 %s298_s7, 4  ;;  %s241_s13 = sshll.u32 %s298_s7, 3 }
   0xd   : > { %s111_s11 = scalar_lea.vmem %s295_s0, %s240_s8  ;;  %s116_s16 = scalar_lea.vmem %s296_s1, %s241_s13 }
   0xe   : > { %v119_v0 = vld [vmem:[%s111_s11 + $0x4] sm:$0x3]  ;;  %v117_v1 = vld [vmem:[%s111_s11] sm:$0x3]  ;;  %v120_v2 = vld [vmem:[%s111_s11 + $0x6] sm:$0x3] }
   0xf   : > { %137 = vrot.lane.b32.xlu1 %v119_v0, %s259_s12  ;;  %133 = vrot.lane.b32.xlu0 %v117_v1, %s259_s12  ;;  %v118_v3 = vld [vmem:[%s111_s11 + $0x2] sm:$0x3]  ;;  %v122_v4 = vld [vmem:[%s111_s11 + $0xa] sm:$0x3] }
  0x10   : > { %v121_v5 = vld [vmem:[%s111_s11 + $0x8] sm:$0x3]  ;;  %v124_v6 = vld [vmem:[%s111_s11 + $0xe] sm:$0x3]  ;;  %v123_v7 = vld [vmem:[%s111_s11 + $0xc] sm:$0x3] }
  0x13   : > { %139 = vrot.lane.b32.xlu1 %v120_v2, %s259_s12  ;;  %135 = vrot.lane.b32.xlu0 %v118_v3, %s259_s12 }
  0x17   : > { %143 = vrot.lane.b32.xlu1 %v122_v4, %s259_s12  ;;  %141 = vrot.lane.b32.xlu0 %v121_v5, %s259_s12 }
  0x1b   : > { %147 = vrot.lane.b32.xlu1 %v124_v6, %s259_s12  ;;  %145 = vrot.lane.b32.xlu0 %v123_v7, %s259_s12 }
  0x81   : > { %v138_v8 = vpop.permute.xlu1 %137  ;;  %v134_v9 = vpop.permute.xlu0 %133 }
  0x82   : > { %v159_v12 = vmax.bf16 %v138_v8, %v119_v0  ;;  %v157_v13 = vmax.bf16 %v134_v9, %v117_v1 }
  0x85   : > { %v140_v10 = vpop.permute.xlu1 %139  ;;  %v136_v11 = vpop.permute.xlu0 %135 }
  0x86   : > { %v160_v14 = vmax.bf16 %v140_v10, %v120_v2  ;;  %v158_v15 = vmax.bf16 %v136_v11, %v118_v3 }
  0x88   : > { %v166_v16 = vmax.bf16 %v160_v14, %v159_v12  ;;  %v165_v17 = vmax.bf16 %v158_v15, %v157_v13 }
  0x89   : > { %v144_v18 = vpop.permute.xlu1 %143  ;;  %v142_v19 = vpop.permute.xlu0 %141 }
  0x8a   : > { %171 = vst.msk [vmem:[%s116_s16 + $0x2] sm:$0x3] %vm169_vm0, %v166_v16  ;;  %170 = vst.msk [vmem:[%s116_s16] sm:$0x3] %vm169_vm0, %v165_v17  ;;  %v162_v20 = vmax.bf16 %v144_v18, %v122_v4  ;;  %v161_v21 = vmax.bf16 %v142_v19, %v121_v5 }
  0x8c   : > { %v167_v22 = vmax.bf16 %v162_v20, %v161_v21 }
  0x8d   : > { %v148_v23 = vpop.permute.xlu1 %147  ;;  %v146_v24 = vpop.permute.xlu0 %145 }
  0x8e   : > { %172 = vst.msk [vmem:[%s116_s16 + $0x4] sm:$0x3] %vm169_vm0, %v167_v22  ;;  %v164_v25 = vmax.bf16 %v148_v23, %v124_v6  ;;  %v163_v26 = vmax.bf16 %v146_v24, %v123_v7 }
  0x90   : > { %v168_v27 = vmax.bf16 %v164_v25, %v163_v26 }
  0x92   : > { %173 = vst.msk [vmem:[%s116_s16 + $0x6] sm:$0x3] %vm169_vm0, %v168_v27 }
  0x93 PF: > { %s11_s6 = sadd.s32 1, %s257_s6  }
  0x94   : > { %p8_p4 = scmp.ge.s32.totalorder %s11_s6, 4  }
  0x96   :  { %10 = sbr.rel (!%p8_p4) target bundleno = 1 (0x1), region = 54 }

// kernel: cnn_distillation_forward.22
= control target key start
LH: loop header
LB: loop body
LE: loop exit
PB: predicated region body
PF: predicated region fallthrough
CT: control target
= control target key end

     0   :  { %s231_s6 = smov 0   ;;  %s248_s0 = inlined_call_operand.vmem [shape: bf16[2,4,2,128], index: 0, kind: input, shape index: {}]   ;;  %s249_s1 = inlined_call_operand.vmem [shape: bf16[2,2,2,64], index: 1, kind: output, shape index: {}]  }
   0x1 LB: > { %s194_s7 = sadd.s32 4294967295, %s218_s6   ;;  %p198_p0 = scmp.ge.s32.totalorder %s218_s6, 1  ;;  %s218_s6 = sphi %s231_s6, %s11_s6  }
   0x2   : > { %p86_p1 = scmp.lt.s32.totalorder %s218_s6, 3 }
   0x4   : > { %p87_p2 = pnand %p198_p0, %p86_p1 }
   0x5   : > { %p104_p3 = scmp.lt.s32.totalorder (!%p87_p2), %s194_s7, 1  ;;  %s220_s12 = smov (!%p87_p2), 64  }
   0x6   : > { %90 = sbr.rel (%p87_p2) target bundleno = 139 (0x8b), region = 24 }
   0xb   : > { %s251_s7 = smov (!%p104_p3, %s194_s7), 1  ;;  %vm138_vm0 = vcmask 516096  }
   0xc   : > { %s199_s8 = sshll.u32 %s251_s7, 2  ;;  %s200_s13 = sshll.u32 %s251_s7, 1 }
   0xd   : > { %s107_s11 = scalar_lea.vmem %s248_s0, %s199_s8  ;;  %s111_s16 = scalar_lea.vmem %s249_s1, %s200_s13 }
   0xe   : > { %v114_v0 = vld [vmem:[%s107_s11 + $0x2] sm:$0x1]  ;;  %v112_v1 = vld [vmem:[%s107_s11] sm:$0x1]  ;;  %v115_v2 = vld [vmem:[%s107_s11 + $0x3] sm:$0x1] }
   0xf   : > { %124 = vrot.lane.b32.xlu1 %v114_v0, %s220_s12  ;;  %120 = vrot.lane.b32.xlu0 %v112_v1, %s220_s12  ;;  %v113_v3 = vld [vmem:[%s107_s11 + $0x1] sm:$0x1] }
  0x13   : > { %126 = vrot.lane.b32.xlu1 %v115_v2, %s220_s12  ;;  %122 = vrot.lane.b32.xlu0 %v113_v3, %s220_s12 }
  0x81   : > { %v125_v4 = vpop.permute.xlu1 %124  ;;  %v121_v5 = vpop.permute.xlu0 %120 }
  0x82   : > { %v134_v8 = vmax.bf16 %v125_v4, %v114_v0  ;;  %v132_v9 = vmax.bf16 %v121_v5, %v112_v1 }
  0x85   : > { %v127_v6 = vpop.permute.xlu1 %126  ;;  %v123_v7 = vpop.permute.xlu0 %122 }
  0x86   : > { %v135_v10 = vmax.bf16 %v127_v6, %v115_v2  ;;  %v133_v11 = vmax.bf16 %v123_v7, %v113_v3 }
  0x88   : > { %v137_v12 = vmax.bf16 %v135_v10, %v134_v8  ;;  %v136_v13 = vmax.bf16 %v133_v11, %v132_v9 }
  0x8a   : > { %140 = vst.msk [vmem:[%s111_s16 + $0x1] sm:$0x1] %vm138_vm0, %v137_v12  ;;  %139 = vst.msk [vmem:[%s111_s16] sm:$0x1] %vm138_vm0, %v136_v13 }
  0x8b PF: > { %s11_s6 = sadd.s32 1, %s218_s6  }
  0x8c   : > { %p8_p4 = scmp.ge.s32.totalorder %s11_s6, 4  }
  0x8e   :  { %10 = sbr.rel (!%p8_p4) target bundleno = 1 (0x1), region = 54 }

// kernel: cnn_distillation_forward.21
= control target key start
LH: loop header
LB: loop body
LE: loop exit
PB: predicated region body
PF: predicated region fallthrough
CT: control target
= control target key end

     0   :  { %s999_s1 = inlined_call_operand.vmem [shape: bf16[640,128], index: 1, kind: input, shape index: {}]   ;;  %s1000_s0 = inlined_call_operand.vmem [shape: bf16[32,640], index: 0, kind: input, shape index: {}]   ;;  %s1001_s2 = inlined_call_operand.vmem [shape: f32[8,128], index: 2, kind: input, shape index: {}]   ;;  %s1002_s3 = inlined_call_operand.vmem [shape: bf16[32,128], index: 3, kind: output, shape index: {}]  }
   0x1   :  { %v766_v0 = vld [vmem:[%s999_s1 + $0x78] sm:$0xff]   ;;  %v770_v4 = vld [vmem:[%s999_s1 + $0x70] sm:$0xff]   ;;  %v774_v8 = vld [vmem:[%s999_s1 + $0x68] sm:$0xff]  }
   0x2   :  { %v767_v1 = vld [vmem:[%s999_s1 + $0xf8] sm:$0xff]   ;;  %680 = vmatprep.subr.bf16.mxu0 %v766_v0  ;;  %v771_v5 = vld [vmem:[%s999_s1 + $0xf0] sm:$0xff]   ;;  %v775_v9 = vld [vmem:[%s999_s1 + $0xe8] sm:$0xff]  }
   0x3   :  { %v768_v2 = vld [vmem:[%s999_s1 + $0x38] sm:$0xff]   ;;  %708 = vmatprep.subr.bf16.mxu1 %v767_v1  ;;  %v772_v6 = vld [vmem:[%s999_s1 + $0x30] sm:$0xff]   ;;  %v776_v10 = vld [vmem:[%s999_s1 + $0x28] sm:$0xff]  }
   0x4   :  { %v769_v3 = vld [vmem:[%s999_s1 + $0xb8] sm:$0xff]   ;;  %681 = vmatpush3.bf16.msra.mxu0 %v768_v2  ;;  %v773_v7 = vld [vmem:[%s999_s1 + $0xb0] sm:$0xff]   ;;  %v777_v11 = vld [vmem:[%s999_s1 + $0xa8] sm:$0xff]  }
   0x5   :  { %709 = vmatpush3.bf16.msra.mxu1 %v769_v3  ;;  %682 = vmatprep.subr.bf16.mxu0 %v770_v4  ;;  %v778_v12 = vld [vmem:[%s999_s1 + $0x60] sm:$0xff]   ;;  %v782_v16 = vld [vmem:[%s999_s1 + $0x58] sm:$0xff]   ;;  %v786_v20 = vld [vmem:[%s999_s1 + $0x50] sm:$0xff]  }
   0x6   :  { %710 = vmatprep.subr.bf16.mxu1 %v771_v5  ;;  %v779_v13 = vld [vmem:[%s999_s1 + $0xe0] sm:$0xff]   ;;  %v783_v17 = vld [vmem:[%s999_s1 + $0xd8] sm:$0xff]   ;;  %v787_v21 = vld [vmem:[%s999_s1 + $0xd0] sm:$0xff]  }
   0x7   :  { %v780_v14 = vld [vmem:[%s999_s1 + $0x20] sm:$0xff]   ;;  %v784_v18 = vld [vmem:[%s999_s1 + $0x18] sm:$0xff]   ;;  %v788_v22 = vld [vmem:[%s999_s1 + $0x10] sm:$0xff]  }
   0x8   :  { %683 = vmatpush3.bf16.msra.mxu0 %v772_v6  ;;  %v781_v15 = vld [vmem:[%s999_s1 + $0xa0] sm:$0xff]   ;;  %v785_v19 = vld [vmem:[%s999_s1 + $0x98] sm:$0xff]   ;;  %v789_v23 = vld [vmem:[%s999_s1 + $0x90] sm:$0xff]  }
   0x9   :  { %711 = vmatpush3.bf16.msra.mxu1 %v773_v7  ;;  %684 = vmatprep.subr.bf16.mxu0 %v774_v8  ;;  %v790_v24 = vld [vmem:[%s999_s1 + $0x48] sm:$0xff]   ;;  %v794_v28 = vld [vmem:[%s999_s1 + $0x40] sm:$0xff]   ;;  %v804_v36 = vld [vmem:[%s999_s1 + $0x138] sm:$0xff]  }
   0xa   :  { %712 = vmatprep.subr.bf16.mxu1 %v775_v9  ;;  %v791_v25 = vld [vmem:[%s999_s1 + $0xc8] sm:$0xff]   ;;  %v795_v29 = vld [vmem:[%s999_s1 + $0xc0] sm:$0xff]   ;;  %v805_v37 = vld [vmem:[%s999_s1 + $0x130] sm:$0xff]  }
   0xb   :  { %v792_v26 = vld [vmem:[%s999_s1 + $0x8] sm:$0xff]   ;;  %v796_v30 = vld [vmem:[%s999_s1] sm:$0xff]   ;;  %v808_v45 = vld [vmem:[%s999_s1 + $0x118] sm:$0xff]  }
   0xc   :  { %685 = vmatpush3.bf16.msra.mxu0 %v776_v10  ;;  %v793_v27 = vld [vmem:[%s999_s1 + $0x88] sm:$0xff]   ;;  %v797_v31 = vld [vmem:[%s999_s1 + $0x80] sm:$0xff]   ;;  %v815_v46 = vld [vmem:[%s999_s1 + $0x110] sm:$0xff]  }
   0xd   :  { %713 = vmatpush3.bf16.msra.mxu1 %v777_v11  ;;  %686 = vmatprep.subr.bf16.mxu0 %v778_v12  ;;  %v798_v32 = vld [vmem:[%s1000_s0] ss:$20 sps:$4 sm:$0xff]   ;;  %v800_v33 = vld [vmem:[%s1000_s0 + $0x4] ss:$20 sps:$4 sm:$0xff]   ;;  %v801_v34 = vld [vmem:[%s1000_s0 + $0x8] ss:$20 sps:$4 sm:$0xff]  }
   0xe   :  { %714 = vmatprep.subr.bf16.mxu1 %v779_v13  ;;  %v803_v35 = vld [vmem:[%s1000_s0 + $0xc] ss:$20 sps:$4 sm:$0xff]   ;;  %443 = vmatprep.mubr.bf16.mxu0 %v800_v33  ;;  %v811_v40 = vld [vmem:[%s1000_s0 + $0x34] ss:$20 sps:$4 sm:$0xff]   ;;  %v814_v42 = vld [vmem:[%s1000_s0 + $0x30] ss:$20 sps:$4 sm:$0xff]  }
   0xf   :  { %492 = vmatprep.mubr.bf16.mxu1 %v803_v35  ;;  %v806_v38 = vld [vmem:[%s999_s1 + $0x128] sm:$0xff]   ;;  %v807_v43 = vld [vmem:[%s999_s1 + $0x120] sm:$0xff]  }
  0x10   :  { %687 = vmatpush3.bf16.msra.mxu0 %v780_v14  ;;  %v809_v39 = vld [vmem:[%s1000_s0 + $0x2c] ss:$20 sps:$4 sm:$0xff]   ;;  %v813_v41 = vld [vmem:[%s1000_s0 + $0x28] ss:$20 sps:$4 sm:$0xff]   ;;  %v818_v44 = vld [vmem:[%s1000_s0 + $0x10] ss:$20 sps:$4 sm:$0xff]  }
  0x11   :  { %715 = vmatpush3.bf16.msra.mxu1 %v781_v15  ;;  %688 = vmatprep.subr.bf16.mxu0 %v782_v16  ;;  %v816_v47 = vld [vmem:[%s999_s1 + $0x108] sm:$0xff]   ;;  %v817_v48 = vld [vmem:[%s999_s1 + $0x100] sm:$0xff]  }
  0x12   :  { %716 = vmatprep.subr.bf16.mxu1 %v783_v17  ;;  %v819_v49 = vld [vmem:[%s1000_s0 + $0x38] ss:$20 sps:$4 sm:$0xff]   ;;  %v660_v14 = vld [vmem:[%s1001_s2] ss:$0 sm:$0xff] }
  0x14   :  { %689 = vmatpush3.bf16.msra.mxu0 %v784_v18 }
  0x15   :  { %717 = vmatpush3.bf16.msra.mxu1 %v785_v19  ;;  %690 = vmatprep.subr.bf16.mxu0 %v786_v20 }
  0x16   :  { %718 = vmatprep.subr.bf16.mxu1 %v787_v21 }
  0x18   :  { %691 = vmatpush3.bf16.msra.mxu0 %v788_v22 }
  0x19   :  { %719 = vmatpush3.bf16.msra.mxu1 %v789_v23  ;;  %692 = vmatprep.subr.bf16.mxu0 %v790_v24 }
  0x1a   :  { %720 = vmatprep.subr.bf16.mxu1 %v791_v25 }
  0x1c   :  { %693 = vmatpush3.bf16.msra.mxu0 %v792_v26 }
  0x1d   :  { %721 = vmatpush3.bf16.msra.mxu1 %v793_v27  ;;  %694 = vmatprep.subr.bf16.mxu0 %v794_v28 }
  0x1e   :  { %722 = vmatprep.subr.bf16.mxu1 %v795_v29 }
  0x20   :  { %695 = vmatpush3.bf16.msra.mxu0 %v796_v30 }
  0x21   :  { %723 = vmatpush3.bf16.msra.mxu1 %v797_v31  ;;  %746 = vmatprep.subr.bf16.mxu0 %v804_v36 }
  0x23   :  { %444 = vmatmul.mubr.bf16.vlgmr.msra.gmra.mxu0 %v798_v32 }
  0x24   :  { %493 = vmatmul.mubr.bf16.vlgmr.msra.gmra.mxu1 %v801_v34  ;;  %747 = vmatpush3.bf16.msra.mxu0 %v804_v36 }
  0x25   :  { %748 = vmatprep.subr.bf16.mxu0 %v805_v37  ;;  %451 = vmatprep.mubr.bf16.mxu0 %v809_v39 }
  0x26   :  { %500 = vmatprep.mubr.bf16.mxu1 %v811_v40 }
  0x28   :  { %749 = vmatpush3.bf16.msra.mxu0 %v805_v37 }
  0x29   :  { %750 = vmatprep.subr.bf16.mxu0 %v806_v38 }
  0x2b   :  { %452 = vmatmul.mubr.bf16.gmra.mxu0 %v813_v41 }
  0x2c   :  { %501 = vmatmul.mubr.bf16.gmra.mxu1 %v814_v42  ;;  %751 = vmatpush3.bf16.msra.mxu0 %v806_v38 }
  0x2d   :  { %752 = vmatprep.subr.bf16.mxu0 %v807_v43  ;;  %762 = vmatprep.mubr.bf16.mxu0 %v818_v44 }
  0x30   :  { %753 = vmatpush3.bf16.msra.mxu0 %v807_v43 }
  0x31   :  { %754 = vmatprep.subr.bf16.mxu0 %v808_v45 }
  0x34   :  { %755 = vmatpush3.bf16.msra.mxu0 %v808_v45 }
  0x35   :  { %756 = vmatprep.subr.bf16.mxu0 %v815_v46 }
  0x38   :  { %757 = vmatpush3.bf16.msra.mxu0 %v815_v46 }
  0x39   :  { %758 = vmatprep.subr.bf16.mxu0 %v816_v47 }
  0x3c   :  { %759 = vmatpush3.bf16.msra.mxu0 %v816_v47 }
  0x3d   :  { %760 = vmatprep.subr.bf16.mxu0 %v817_v48 }
  0x40   :  { %761 = vmatpush3.bf16.msra.mxu0 %v817_v48 }
  0x43   :  { %763 = vmatmul.mubr.bf16.vlgmr.msra.gmra.mxu0 %v819_v49 }
  0xe3   :  { %v696_v50 = vpop.f32.mrf.mxu0 }
  0xe4   :  { %v724_v51 = vpop.f32.mrf.mxu1 }
  0xe5   :  { %v697_v52 = vpop.f32.mrf.mxu0 }
  0xe6   :  { %v725_v53 = vpop.f32.mrf.mxu1  ;;  %v698_v4 = vadd.f32 %v697_v52, %v696_v50 }
  0xe7   :  { %v699_v54 = vpop.f32.mrf.mxu0  ;;  %v726_v5 = vadd.f32 %v725_v53, %v724_v51 }
  0xe8   :  { %v727_v55 = vpop.f32.mrf.mxu1 }
  0xe9   :  { %v700_v56 = vpop.f32.mrf.mxu0  ;;  %v495_v13 = vadd.f32 %v726_v5, %v698_v4 }
  0xea   :  { %v728_v57 = vpop.f32.mrf.mxu1  ;;  %v701_v10 = vadd.f32 %v700_v56, %v699_v54 }
  0xeb   :  { %v702_v58 = vpop.f32.mrf.mxu0  ;;  %v729_v11 = vadd.f32 %v728_v57, %v727_v55 }
  0xec   :  { %v730_v59 = vpop.f32.mrf.mxu1 }
  0xed   :  { %v703_v60 = vpop.f32.mrf.mxu0  ;;  %v498_v21 = vadd.f32 %v729_v11, %v701_v10 }
  0xee   :  { %v731_v61 = vpop.f32.mrf.mxu1  ;;  %v704_v0 = vadd.f32 %v703_v60, %v702_v58 }
  0xef   :  { %v705_v62 = vpop.f32.mrf.mxu0  ;;  %v732_v1 = vadd.f32 %v731_v61, %v730_v59 }
  0xf0   :  { %v733_v63 = vpop.f32.mrf.mxu1 }
  0xf1   :  { %v706_v2 = vpop.f32.mrf.mxu0  ;;  %v503_v8 = vadd.f32 %v732_v1, %v704_v0 }
  0xf2   :  { %v734_v3 = vpop.f32.mrf.mxu1  ;;  %v707_v6 = vadd.f32 %v706_v2, %v705_v62 }
  0xf3   :  { %v735_v7 = vadd.f32 %v734_v3, %v733_v63 }
  0xf5   :  { %v506_v17 = vadd.f32 %v735_v7, %v707_v6 }
 0x103   :  { %v764_v9 = vpop.f32.mrf.mxu0 }
 0x104   :  { %v552_v12 = vadd.f32 %v764_v9, %v503_v8 }
 0x105   :  { %v543_v15 = vpop.f32.mrf.mxu0 }
 0x106   :  { %v544_v16 = vadd.f32 %v543_v15, %v495_v13  ;;  %v580_v19 = vadd.f32 %v660_v14, %v552_v12 }
 0x107   :  { %v765_v18 = vpop.f32.mrf.mxu0 }
 0x108   :  { %v555_v20 = vadd.f32 %v765_v18, %v506_v17  ;;  %v578_v23 = vadd.f32 %v660_v14, %v544_v16  ;;  %v584_v26 = vmax.f32 %v580_v19, 0.0 }
 0x109   :  { %v546_v22 = vpop.f32.mrf.mxu0 }
 0x10a   :  { %v581_v24 = vadd.f32 %v660_v14, %v555_v20  ;;  %v547_v25 = vadd.f32 %v546_v22, %v498_v21  ;;  %v582_v29 = vmax.f32 %v578_v23, 0.0 }
 0x10c   :  { %v585_v27 = vmax.f32 %v581_v24, 0.0  ;;  %v579_v28 = vadd.f32 %v660_v14, %v547_v25 }
 0x10e   :  { %v677_v30 = vpack.c.bf16 %v585_v27, %v584_v26  ;;  %v583_v31 = vmax.f32 %v579_v28, 0.0 }
 0x110   :  { %679 = vst [vmem:[%s1002_s3 + $0x8] sm:$0xff] %v677_v30   ;;  %v672_v32 = vpack.c.bf16 %v583_v31, %v582_v29 }
 0x112   :  { %673 = vst [vmem:[%s1002_s3] sm:$0xff] %v672_v32  }

// kernel: cnn_distillation_forward.19
= control target key start
LH: loop header
LB: loop body
LE: loop exit
PB: predicated region body
PF: predicated region fallthrough
CT: control target
= control target key end

     0   :  { %s1867_s1 = inlined_call_operand.vmem [shape: bf16[640,128], index: 1, kind: input, shape index: {}]   ;;  %s1868_s0 = inlined_call_operand.vmem [shape: bf16[128,640], index: 0, kind: input, shape index: {}]   ;;  %s1869_s2 = inlined_call_operand.vmem [shape: f32[8,128], index: 2, kind: input, shape index: {}]   ;;  %s1870_s3 = inlined_call_operand.vmem [shape: bf16[128,128], index: 3, kind: output, shape index: {}]  }
   0x1   :  { %v1442_v0 = vld [vmem:[%s1867_s1 + $0x78] sm:$0xff]   ;;  %v1446_v4 = vld [vmem:[%s1867_s1 + $0x70] sm:$0xff]   ;;  %v1450_v8 = vld [vmem:[%s1867_s1 + $0x68] sm:$0xff]  }
   0x2   :  { %v1443_v1 = vld [vmem:[%s1867_s1 + $0xf8] sm:$0xff]   ;;  %1250 = vmatprep.subr.bf16.mxu0 %v1442_v0  ;;  %v1447_v5 = vld [vmem:[%s1867_s1 + $0xf0] sm:$0xff]   ;;  %v1451_v9 = vld [vmem:[%s1867_s1 + $0xe8] sm:$0xff]  }
   0x3   :  { %v1444_v2 = vld [vmem:[%s1867_s1 + $0x38] sm:$0xff]   ;;  %1314 = vmatprep.subr.bf16.mxu1 %v1443_v1  ;;  %v1448_v6 = vld [vmem:[%s1867_s1 + $0x30] sm:$0xff]   ;;  %v1452_v10 = vld [vmem:[%s1867_s1 + $0x28] sm:$0xff]  }
   0x4   :  { %v1445_v3 = vld [vmem:[%s1867_s1 + $0xb8] sm:$0xff]   ;;  %1251 = vmatpush3.bf16.msra.mxu0 %v1444_v2  ;;  %v1449_v7 = vld [vmem:[%s1867_s1 + $0xb0] sm:$0xff]   ;;  %v1453_v11 = vld [vmem:[%s1867_s1 + $0xa8] sm:$0xff]  }
   0x5   :  { %1315 = vmatpush3.bf16.msra.mxu1 %v1445_v3  ;;  %1252 = vmatprep.subr.bf16.mxu0 %v1446_v4  ;;  %v1454_v12 = vld [vmem:[%s1867_s1 + $0x60] sm:$0xff]   ;;  %v1458_v16 = vld [vmem:[%s1867_s1 + $0x58] sm:$0xff]   ;;  %v1462_v20 = vld [vmem:[%s1867_s1 + $0x50] sm:$0xff]  }
   0x6   :  { %1316 = vmatprep.subr.bf16.mxu1 %v1447_v5  ;;  %v1455_v13 = vld [vmem:[%s1867_s1 + $0xe0] sm:$0xff]   ;;  %v1459_v17 = vld [vmem:[%s1867_s1 + $0xd8] sm:$0xff]   ;;  %v1463_v21 = vld [vmem:[%s1867_s1 + $0xd0] sm:$0xff]  }
   0x7   :  { %v1456_v14 = vld [vmem:[%s1867_s1 + $0x20] sm:$0xff]   ;;  %v1460_v18 = vld [vmem:[%s1867_s1 + $0x18] sm:$0xff]   ;;  %v1464_v22 = vld [vmem:[%s1867_s1 + $0x10] sm:$0xff]  }
   0x8   :  { %1253 = vmatpush3.bf16.msra.mxu0 %v1448_v6  ;;  %v1457_v15 = vld [vmem:[%s1867_s1 + $0xa0] sm:$0xff]   ;;  %v1461_v19 = vld [vmem:[%s1867_s1 + $0x98] sm:$0xff]   ;;  %v1465_v23 = vld [vmem:[%s1867_s1 + $0x90] sm:$0xff]  }
   0x9   :  { %1317 = vmatpush3.bf16.msra.mxu1 %v1449_v7  ;;  %1254 = vmatprep.subr.bf16.mxu0 %v1450_v8  ;;  %v1466_v24 = vld [vmem:[%s1867_s1 + $0x48] sm:$0xff]   ;;  %v1470_v28 = vld [vmem:[%s1867_s1 + $0x40] sm:$0xff]   ;;  %v1480_v36 = vld [vmem:[%s1867_s1 + $0x138] sm:$0xff]  }
   0xa   :  { %1318 = vmatprep.subr.bf16.mxu1 %v1451_v9  ;;  %v1467_v25 = vld [vmem:[%s1867_s1 + $0xc8] sm:$0xff]   ;;  %v1471_v29 = vld [vmem:[%s1867_s1 + $0xc0] sm:$0xff]   ;;  %v1487_v39 = vld [vmem:[%s1867_s1 + $0x130] sm:$0xff]  }
   0xb   :  { %v1468_v26 = vld [vmem:[%s1867_s1 + $0x8] sm:$0xff]   ;;  %v1472_v30 = vld [vmem:[%s1867_s1] sm:$0xff]   ;;  %v1490_v43 = vld [vmem:[%s1868_s0 + $0x5c] ss:$20 sps:$4 sm:$0xff]  }
   0xc   :  { %1255 = vmatpush3.bf16.msra.mxu0 %v1452_v10  ;;  %v1469_v27 = vld [vmem:[%s1867_s1 + $0x88] sm:$0xff]   ;;  %v1473_v31 = vld [vmem:[%s1867_s1 + $0x80] sm:$0xff]   ;;  %v1495_v48 = vld [vmem:[%s1868_s0 + $0x7c] ss:$20 sps:$4 sm:$0xff]  }
   0xd   :  { %1319 = vmatpush3.bf16.msra.mxu1 %v1453_v11  ;;  %1256 = vmatprep.subr.bf16.mxu0 %v1454_v12  ;;  %v1474_v32 = vld [vmem:[%s1868_s0] ss:$20 sps:$4 sm:$0xff]   ;;  %v1476_v33 = vld [vmem:[%s1868_s0 + $0x4] ss:$20 sps:$4 sm:$0xff]   ;;  %v1477_v34 = vld [vmem:[%s1868_s0 + $0x8] ss:$20 sps:$4 sm:$0xff]  }
   0xe   :  { %1320 = vmatprep.subr.bf16.mxu1 %v1455_v13  ;;  %v1479_v35 = vld [vmem:[%s1868_s0 + $0xc] ss:$20 sps:$4 sm:$0xff]   ;;  %659 = vmatprep.mubr.bf16.mxu0 %v1476_v33  ;;  %v1483_v38 = vld [vmem:[%s1868_s0 + $0x34] ss:$20 sps:$4 sm:$0xff]   ;;  %v1486_v41 = vld [vmem:[%s1868_s0 + $0x30] ss:$20 sps:$4 sm:$0xff]  }
   0xf   :  { %756 = vmatprep.mubr.bf16.mxu1 %v1479_v35  ;;  %v1481_v37 = vld [vmem:[%s1868_s0 + $0x2c] ss:$20 sps:$4 sm:$0xff]   ;;  %v1485_v40 = vld [vmem:[%s1868_s0 + $0x28] ss:$20 sps:$4 sm:$0xff]   ;;  %v1492_v46 = vld [vmem:[%s1868_s0 + $0x50] ss:$20 sps:$4 sm:$0xff]  }
  0x10   :  { %1257 = vmatpush3.bf16.msra.mxu0 %v1456_v14  ;;  %v1488_v42 = vld [vmem:[%s1868_s0 + $0x54] ss:$20 sps:$4 sm:$0xff]   ;;  %v1501_v45 = vld [vmem:[%s1867_s1 + $0x120] sm:$0xff]   ;;  %v1493_v47 = vld [vmem:[%s1868_s0 + $0x58] ss:$20 sps:$4 sm:$0xff]  }
  0x11   :  { %1321 = vmatpush3.bf16.msra.mxu1 %v1457_v15  ;;  %1258 = vmatprep.subr.bf16.mxu0 %v1458_v16  ;;  %v1494_v44 = vld [vmem:[%s1867_s1 + $0x128] sm:$0xff]   ;;  %v1497_v49 = vld [vmem:[%s1868_s0 + $0x84] ss:$20 sps:$4 sm:$0xff]   ;;  %v1515_v51 = vld [vmem:[%s1867_s1 + $0x110] sm:$0xff]  }
  0x12   :  { %1322 = vmatprep.subr.bf16.mxu1 %v1459_v17  ;;  %v1508_v50 = vld [vmem:[%s1867_s1 + $0x118] sm:$0xff]   ;;  %v1500_v53 = vld [vmem:[%s1868_s0 + $0x80] ss:$20 sps:$4 sm:$0xff]   ;;  %v1522_v55 = vld [vmem:[%s1867_s1 + $0x108] sm:$0xff]  }
  0x13   :  { %v1499_v52 = vld [vmem:[%s1868_s0 + $0x78] ss:$20 sps:$4 sm:$0xff]   ;;  %v1529_v57 = vld [vmem:[%s1867_s1 + $0x100] sm:$0xff]   ;;  %v1507_v59 = vld [vmem:[%s1868_s0 + $0xa8] ss:$20 sps:$4 sm:$0xff]  }
  0x14   :  { %1259 = vmatpush3.bf16.msra.mxu0 %v1460_v18  ;;  %v1502_v54 = vld [vmem:[%s1868_s0 + $0xa4] ss:$20 sps:$4 sm:$0xff]   ;;  %v1504_v56 = vld [vmem:[%s1868_s0 + $0xac] ss:$20 sps:$4 sm:$0xff]   ;;  %v1511_v61 = vld [vmem:[%s1868_s0 + $0xd4] ss:$20 sps:$4 sm:$0xff]  }
  0x15   :  { %1323 = vmatpush3.bf16.msra.mxu1 %v1461_v19  ;;  %1260 = vmatprep.subr.bf16.mxu0 %v1462_v20  ;;  %v1506_v58 = vld [vmem:[%s1868_s0 + $0xa0] ss:$20 sps:$4 sm:$0xff]   ;;  %v1513_v62 = vld [vmem:[%s1868_s0 + $0xc8] ss:$20 sps:$4 sm:$0xff]   ;;  %v1514_v63 = vld [vmem:[%s1868_s0 + $0xd0] ss:$20 sps:$4 sm:$0xff]  }
  0x16   :  { %1324 = vmatprep.subr.bf16.mxu1 %v1463_v21  ;;  %v1509_v60 = vld [vmem:[%s1868_s0 + $0xcc] ss:$20 sps:$4 sm:$0xff]   ;;  %v1516_v0 = vld [vmem:[%s1868_s0 + $0xf4] ss:$20 sps:$4 sm:$0xff]   ;;  %v1518_v1 = vld [vmem:[%s1868_s0 + $0xfc] ss:$20 sps:$4 sm:$0xff]  }
  0x17   :  { %v1520_v2 = vld [vmem:[%s1868_s0 + $0xf0] ss:$20 sps:$4 sm:$0xff]   ;;  %v1521_v3 = vld [vmem:[%s1868_s0 + $0xf8] ss:$20 sps:$4 sm:$0xff]   ;;  %v1528_v7 = vld [vmem:[%s1868_s0 + $0x120] ss:$20 sps:$4 sm:$0xff]  }
  0x18   :  { %1261 = vmatpush3.bf16.msra.mxu0 %v1464_v22  ;;  %v1523_v4 = vld [vmem:[%s1868_s0 + $0x11c] ss:$20 sps:$4 sm:$0xff]   ;;  %v1525_v5 = vld [vmem:[%s1868_s0 + $0x124] ss:$20 sps:$4 sm:$0xff]   ;;  %v1534_v12 = vld [vmem:[%s1868_s0 + $0x60] ss:$20 sps:$4 sm:$0xff]  }
  0x19   :  { %1325 = vmatpush3.bf16.msra.mxu1 %v1465_v23  ;;  %1262 = vmatprep.subr.bf16.mxu0 %v1466_v24  ;;  %v1527_v6 = vld [vmem:[%s1868_s0 + $0x118] ss:$20 sps:$4 sm:$0xff]   ;;  %v1530_v8 = vld [vmem:[%s1868_s0 + $0x10] ss:$20 sps:$4 sm:$0xff]   ;;  %v1535_v13 = vld [vmem:[%s1868_s0 + $0x100] ss:$20 sps:$4 sm:$0xff]  }
  0x1a   :  { %1326 = vmatprep.subr.bf16.mxu1 %v1467_v25  ;;  %v1531_v9 = vld [vmem:[%s1868_s0 + $0xb0] ss:$20 sps:$4 sm:$0xff]   ;;  %v1532_v10 = vld [vmem:[%s1868_s0 + $0x38] ss:$20 sps:$4 sm:$0xff]   ;;  %v1536_v14 = vld [vmem:[%s1868_s0 + $0x88] ss:$20 sps:$4 sm:$0xff]  }
  0x1b   :  { %v1533_v11 = vld [vmem:[%s1868_s0 + $0xd8] ss:$20 sps:$4 sm:$0xff]   ;;  %v1537_v15 = vld [vmem:[%s1868_s0 + $0x128] ss:$20 sps:$4 sm:$0xff]  }
  0x1c   :  { %1263 = vmatpush3.bf16.msra.mxu0 %v1468_v26 }
  0x1d   :  { %1327 = vmatpush3.bf16.msra.mxu1 %v1469_v27  ;;  %1264 = vmatprep.subr.bf16.mxu0 %v1470_v28 }
  0x1e   :  { %1328 = vmatprep.subr.bf16.mxu1 %v1471_v29 }
  0x20   :  { %1265 = vmatpush3.bf16.msra.mxu0 %v1472_v30 }
  0x21   :  { %1329 = vmatpush3.bf16.msra.mxu1 %v1473_v31  ;;  %1394 = vmatprep.subr.bf16.mxu0 %v1480_v36 }
  0x22   :  { %1426 = vmatprep.subr.bf16.mxu1 %v1480_v36 }
  0x23   :  { %660 = vmatmul.mubr.bf16.vlgmr.msra.gmra.mxu0 %v1474_v32 }
  0x24   :  { %757 = vmatmul.mubr.bf16.vlgmr.msra.gmra.mxu1 %v1477_v34  ;;  %1395 = vmatpush3.bf16.msra.mxu0 %v1480_v36 }
  0x25   :  { %1434 = vmatpush3.bf16.msra.mxu1 %v1480_v36  ;;  %667 = vmatprep.mubr.bf16.mxu0 %v1481_v37 }
  0x26   :  { %764 = vmatprep.mubr.bf16.mxu1 %v1483_v38  ;;  %1396 = vmatprep.subr.bf16.mxu0 %v1487_v39 }
  0x27   :  { %1427 = vmatprep.subr.bf16.mxu1 %v1487_v39 }
  0x28   :  { %1397 = vmatpush3.bf16.msra.mxu0 %v1487_v39 }
  0x29   :  { %1435 = vmatpush3.bf16.msra.mxu1 %v1487_v39  ;;  %1398 = vmatprep.subr.bf16.mxu0 %v1494_v44 }
  0x2a   :  { %1428 = vmatprep.subr.bf16.mxu1 %v1494_v44 }
  0x2b   :  { %668 = vmatmul.mubr.bf16.gmra.mxu0 %v1485_v40 }
  0x2c   :  { %765 = vmatmul.mubr.bf16.gmra.mxu1 %v1486_v41  ;;  %675 = vmatprep.mubr.bf16.mxu0 %v1488_v42 }
  0x2d   :  { %772 = vmatprep.mubr.bf16.mxu1 %v1490_v43  ;;  %1399 = vmatpush3.bf16.msra.mxu0 %v1494_v44 }
  0x2e   :  { %1436 = vmatpush3.bf16.msra.mxu1 %v1494_v44  ;;  %1400 = vmatprep.subr.bf16.mxu0 %v1501_v45 }
  0x2f   :  { %1429 = vmatprep.subr.bf16.mxu1 %v1501_v45 }
  0x31   :  { %1401 = vmatpush3.bf16.msra.mxu0 %v1501_v45 }
  0x32   :  { %1437 = vmatpush3.bf16.msra.mxu1 %v1501_v45  ;;  %1402 = vmatprep.subr.bf16.mxu0 %v1508_v50 }
  0x33   :  { %676 = vmatmul.mubr.bf16.gmra.mxu0 %v1492_v46  ;;  %1430 = vmatprep.subr.bf16.mxu1 %v1508_v50 }
  0x34   :  { %773 = vmatmul.mubr.bf16.gmra.mxu1 %v1493_v47  ;;  %683 = vmatprep.mubr.bf16.mxu0 %v1495_v48 }
  0x35   :  { %780 = vmatprep.mubr.bf16.mxu1 %v1497_v49  ;;  %1403 = vmatpush3.bf16.msra.mxu0 %v1508_v50 }
  0x36   :  { %1438 = vmatpush3.bf16.msra.mxu1 %v1508_v50  ;;  %1404 = vmatprep.subr.bf16.mxu0 %v1515_v51 }
  0x37   :  { %1431 = vmatprep.subr.bf16.mxu1 %v1515_v51 }
  0x39   :  { %1405 = vmatpush3.bf16.msra.mxu0 %v1515_v51 }
  0x3a   :  { %1439 = vmatpush3.bf16.msra.mxu1 %v1515_v51  ;;  %1406 = vmatprep.subr.bf16.mxu0 %v1522_v55 }
  0x3b   :  { %684 = vmatmul.mubr.bf16.gmra.mxu0 %v1499_v52  ;;  %1432 = vmatprep.subr.bf16.mxu1 %v1522_v55 }
  0x3c   :  { %781 = vmatmul.mubr.bf16.gmra.mxu1 %v1500_v53  ;;  %691 = vmatprep.mubr.bf16.mxu0 %v1502_v54 }
  0x3d   :  { %788 = vmatprep.mubr.bf16.mxu1 %v1504_v56  ;;  %1407 = vmatpush3.bf16.msra.mxu0 %v1522_v55 }
  0x3e   :  { %1440 = vmatpush3.bf16.msra.mxu1 %v1522_v55  ;;  %1408 = vmatprep.subr.bf16.mxu0 %v1529_v57 }
  0x3f   :  { %1433 = vmatprep.subr.bf16.mxu1 %v1529_v57 }
  0x41   :  { %1409 = vmatpush3.bf16.msra.mxu0 %v1529_v57 }
  0x42   :  { %1441 = vmatpush3.bf16.msra.mxu1 %v1529_v57 }
  0x43   :  { %692 = vmatmul.mubr.bf16.gmra.mxu0 %v1506_v58 }
  0x44   :  { %789 = vmatmul.mubr.bf16.gmra.mxu1 %v1507_v59  ;;  %699 = vmatprep.mubr.bf16.mxu0 %v1509_v60 }
  0x45   :  { %796 = vmatprep.mubr.bf16.mxu1 %v1511_v61 }
  0x4b   :  { %700 = vmatmul.mubr.bf16.gmra.mxu0 %v1513_v62 }
  0x4c   :  { %797 = vmatmul.mubr.bf16.gmra.mxu1 %v1514_v63  ;;  %707 = vmatprep.mubr.bf16.mxu0 %v1516_v0 }
  0x4d   :  { %804 = vmatprep.mubr.bf16.mxu1 %v1518_v1 }
  0x53   :  { %708 = vmatmul.mubr.bf16.gmra.mxu0 %v1520_v2 }
  0x54   :  { %805 = vmatmul.mubr.bf16.gmra.mxu1 %v1521_v3  ;;  %715 = vmatprep.mubr.bf16.mxu0 %v1523_v4 }
  0x55   :  { %812 = vmatprep.mubr.bf16.mxu1 %v1525_v5 }
  0x5b   :  { %716 = vmatmul.mubr.bf16.gmra.mxu0 %v1527_v6 }
  0x5c   :  { %813 = vmatmul.mubr.bf16.gmra.mxu1 %v1528_v7  ;;  %1410 = vmatprep.mubr.bf16.mxu0 %v1530_v8 }
  0x5d   :  { %1418 = vmatprep.mubr.bf16.mxu1 %v1531_v9 }
  0x63   :  { %1411 = vmatmul.mubr.bf16.vlgmr.msra.gmra.mxu0 %v1532_v10 }
  0x64   :  { %1419 = vmatmul.mubr.bf16.vlgmr.msra.gmra.mxu1 %v1533_v11  ;;  %1414 = vmatprep.mubr.bf16.mxu0 %v1534_v12 }
  0x65   :  { %1422 = vmatprep.mubr.bf16.mxu1 %v1535_v13 }
  0x6b   :  { %1415 = vmatmul.mubr.bf16.gmra.mxu0 %v1536_v14 }
  0x6c   :  { %1423 = vmatmul.mubr.bf16.gmra.mxu1 %v1537_v15 }
  0xe3   :  { %v1266_v16 = vpop.f32.mrf.mxu0 }
  0xe4   :  { %v1330_v17 = vpop.f32.mrf.mxu1 }
  0xe5   :  { %v1267_v18 = vpop.f32.mrf.mxu0 }
  0xe6   :  { %v1268_v19 = vadd.f32 %v1267_v18, %v1266_v16  ;;  %v1331_v20 = vpop.f32.mrf.mxu1 }
  0xe7   :  { %v1332_v21 = vadd.f32 %v1331_v20, %v1330_v17  ;;  %v1269_v22 = vpop.f32.mrf.mxu0 }
  0xe8   :  { %v1333_v23 = vpop.f32.mrf.mxu1 }
  0xe9   :  { %v1270_v24 = vpop.f32.mrf.mxu0  ;;  %v1798_v25 = vadd.f32 %v1332_v21, %v1268_v19 }
  0xea   :  { %v1334_v26 = vpop.f32.mrf.mxu1  ;;  %v1271_v11 = vadd.f32 %v1270_v24, %v1269_v22 }
  0xeb   :  { %1871 = vst [vmem:[#allocation3_spill] sm:$0xff] %v1798_v25  ;;  %v1272_v27 = vpop.f32.mrf.mxu0  ;;  %v1335_v12 = vadd.f32 %v1334_v26, %v1333_v23 }
  0xec   :  { %v1336_v28 = vpop.f32.mrf.mxu1 }
  0xed   :  { %v1273_v29 = vpop.f32.mrf.mxu0  ;;  %v762_v22 = vadd.f32 %v1335_v12, %v1271_v11 }
  0xee   :  { %v1337_v30 = vpop.f32.mrf.mxu1  ;;  %v1274_v14 = vadd.f32 %v1273_v29, %v1272_v27 }
  0xef   :  { %v1275_v31 = vpop.f32.mrf.mxu0  ;;  %v1338_v15 = vadd.f32 %v1337_v30, %v1336_v28 }
  0xf0   :  { %v1339_v32 = vpop.f32.mrf.mxu1 }
  0xf1   :  { %v1276_v33 = vpop.f32.mrf.mxu0 }
  0xf2   :  { %v1340_v34 = vpop.f32.mrf.mxu1  ;;  %v1277_v16 = vadd.f32 %v1276_v33, %v1275_v31 }
  0xf3   :  { %v1278_v35 = vpop.f32.mrf.mxu0  ;;  %v1341_v17 = vadd.f32 %v1340_v34, %v1339_v32 }
  0xf4   :  { %v1342_v36 = vpop.f32.mrf.mxu1 }
  0xf5   :  { %v1279_v37 = vpop.f32.mrf.mxu0 }
  0xf6   :  { %v1343_v38 = vpop.f32.mrf.mxu1  ;;  %v1280_v20 = vadd.f32 %v1279_v37, %v1278_v35 }
  0xf7   :  { %v1281_v39 = vpop.f32.mrf.mxu0  ;;  %v1344_v21 = vadd.f32 %v1343_v38, %v1342_v36 }
  0xf8   :  { %v1800_v40 = vpop.f32.mrf.mxu1 }
  0xf9   :  { %1872 = vst [vmem:[#allocation4_spill] sm:$0xff] %v1800_v40  ;;  %v1282_v41 = vpop.f32.mrf.mxu0  ;;  %v775_v33 = vadd.f32 %v1344_v21, %v1280_v20 }
  0xfa   :  { %v1802_v42 = vpop.f32.mrf.mxu1  ;;  %v1812_v28 = vadd.f32 %v1282_v41, %v1281_v39  ;;  %v1819_v39 = vld [vmem:[%s1869_s2] ss:$0 sm:$0xff] }
  0xfb   :  { %1873 = vst [vmem:[#allocation5_spill] sm:$0xff] %v1802_v42  ;;  %v1284_v43 = vpop.f32.mrf.mxu0 }
  0xfc   :  { %v1348_v44 = vpop.f32.mrf.mxu1 }
  0xfd   :  { %v1285_v45 = vpop.f32.mrf.mxu0 }
  0xfe   :  { %v1349_v46 = vpop.f32.mrf.mxu1  ;;  %v1286_v24 = vadd.f32 %v1285_v45, %v1284_v43 }
  0xff   :  { %v1287_v47 = vpop.f32.mrf.mxu0  ;;  %v1350_v23 = vadd.f32 %v1349_v46, %v1348_v44 }
 0x100   :  { %v1351_v48 = vpop.f32.mrf.mxu1  ;;  %v1878_v44 = vld [vmem:[#allocation4_spill] sm:$0xff] }
 0x101   :  { %v1288_v49 = vpop.f32.mrf.mxu0 }
 0x102   :  { %v1352_v50 = vpop.f32.mrf.mxu1  ;;  %v1289_v30 = vadd.f32 %v1288_v49, %v1287_v47  ;;  %v1879_v45 = vld [vmem:[#allocation5_spill] sm:$0xff]  ;;  %v783_v49 = vadd.f32 %v1350_v23, %v1286_v24 }
 0x103   :  { %v1290_v51 = vpop.f32.mrf.mxu0  ;;  %v1353_v31 = vadd.f32 %v1352_v50, %v1351_v48  ;;  %v1347_v46 = vadd.f32 %v1879_v45, %v1878_v44 }
 0x104   :  { %v1354_v52 = vpop.f32.mrf.mxu1 }
 0x105   :  { %v1291_v53 = vpop.f32.mrf.mxu0 }
 0x106   :  { %v1355_v54 = vpop.f32.mrf.mxu1  ;;  %v1292_v26 = vadd.f32 %v1291_v53, %v1290_v51 }
 0x107   :  { %v1293_v55 = vpop.f32.mrf.mxu0  ;;  %v1356_v27 = vadd.f32 %v1355_v54, %v1354_v52  ;;  %v786_v54 = vadd.f32 %v1353_v31, %v1289_v30 }
 0x108   :  { %v1357_v56 = vpop.f32.mrf.mxu1 }
 0x109   :  { %v1294_v57 = vpop.f32.mrf.mxu0  ;;  %v791_v48 = vadd.f32 %v1356_v27, %v1292_v26 }
 0x10a   :  { %v1358_v58 = vpop.f32.mrf.mxu1  ;;  %v1295_v34 = vadd.f32 %v1294_v57, %v1293_v55 }
 0x10b   :  { %v1296_v59 = vpop.f32.mrf.mxu0 }
 0x10c   :  { %v1360_v60 = vpop.f32.mrf.mxu1 }
 0x10d   :  { %v1297_v61 = vpop.f32.mrf.mxu0 }
 0x10e   :  { %v1361_v62 = vpop.f32.mrf.mxu1  ;;  %v1298_v42 = vadd.f32 %v1297_v61, %v1296_v59  ;;  %v1359_v59 = vadd.f32 %v1358_v58, %v1357_v56 }
 0x10f   :  { %v1299_v63 = vpop.f32.mrf.mxu0 }
 0x110   :  { %v1363_v0 = vpop.f32.mrf.mxu1 }
 0x111   :  { %v1300_v1 = vpop.f32.mrf.mxu0 }
 0x112   :  { %v1364_v2 = vpop.f32.mrf.mxu1  ;;  %v1301_v35 = vadd.f32 %v1300_v1, %v1299_v63 }
 0x113   :  { %v1302_v3 = vpop.f32.mrf.mxu0  ;;  %v1365_v36 = vadd.f32 %v1364_v2, %v1363_v0 }
 0x114   :  { %v1366_v4 = vpop.f32.mrf.mxu1 }
 0x115   :  { %v1303_v5 = vpop.f32.mrf.mxu0  ;;  %v802_v63 = vadd.f32 %v1365_v36, %v1301_v35 }
 0x116   :  { %v1367_v6 = vpop.f32.mrf.mxu1 }
 0x117   :  { %v1804_v7 = vpop.f32.mrf.mxu0  ;;  %v1368_v61 = vadd.f32 %v1367_v6, %v1366_v4 }
 0x118   :  { %1874 = vst [vmem:[#allocation6_spill] sm:$0xff] %v1804_v7  ;;  %v1806_v8 = vpop.f32.mrf.mxu1  ;;  %v1362_v7 = vadd.f32 %v1361_v62, %v1360_v60  ;;  %v1304_v60 = vadd.f32 %v1303_v5, %v1302_v3  ;;  %v794_v3 = vadd.f32 %v1359_v59, %v1295_v34 }
 0x119   :  { %1875 = vst [vmem:[#allocation7_spill] sm:$0xff] %v1806_v8  ;;  %v1808_v9 = vpop.f32.mrf.mxu0 }
 0x11a   :  { %1876 = vst [vmem:[#allocation8_spill] sm:$0xff] %v1808_v9  ;;  %v1810_v10 = vpop.f32.mrf.mxu1  ;;  %v767_v9 = vadd.f32 %v1338_v15, %v1274_v14  ;;  %v799_v38 = vadd.f32 %v1362_v7, %v1298_v42  ;;  %v1880_v42 = vld [vmem:[#allocation3_spill] sm:$0xff]  ;;  %v807_v4 = vadd.f32 %v1368_v61, %v1304_v60 }
 0x11b   :  { %1877 = vst [vmem:[#allocation9_spill] sm:$0xff] %v1810_v10  ;;  %v1308_v13 = vpop.f32.mrf.mxu0  ;;  %v770_v10 = vadd.f32 %v1341_v17, %v1277_v16 }
 0x11c   :  { %v1372_v18 = vpop.f32.mrf.mxu1 }
 0x11d   :  { %v1309_v19 = vpop.f32.mrf.mxu0 }
 0x11e   :  { %v1373_v25 = vpop.f32.mrf.mxu1  ;;  %v1310_v50 = vadd.f32 %v1309_v19, %v1308_v13 }
 0x11f   :  { %v1311_v40 = vpop.f32.mrf.mxu0  ;;  %v1374_v51 = vadd.f32 %v1373_v25, %v1372_v18  ;;  %v1881_v5 = vld [vmem:[#allocation6_spill] sm:$0xff] }
 0x120   :  { %v1375_v8 = vpop.f32.mrf.mxu1 }
 0x121   :  { %v1312_v29 = vpop.f32.mrf.mxu0  ;;  %v1882_v6 = vld [vmem:[#allocation8_spill] sm:$0xff] }
 0x122   :  { %v1376_v32 = vpop.f32.mrf.mxu1  ;;  %v1313_v55 = vadd.f32 %v1312_v29, %v1311_v40  ;;  %v1307_v7 = vadd.f32 %v1882_v6, %v1881_v5  ;;  %v1884_v25 = vld [vmem:[#allocation9_spill] sm:$0xff] }
 0x123   :  { %v1412_v37 = vpop.f32.mrf.mxu0  ;;  %v1377_v56 = vadd.f32 %v1376_v32, %v1375_v8 }
 0x124   :  { %v864_v62 = vadd.f32 %v1412_v37, %v767_v9  ;;  %v1420_v43 = vpop.f32.mrf.mxu1  ;;  %v1883_v9 = vld [vmem:[#allocation7_spill] sm:$0xff] }
 0x125   :  { %v896_v41 = vadd.f32 %v1420_v43, %v799_v38  ;;  %v855_v47 = vpop.f32.mrf.mxu0  ;;  %v1371_v11 = vadd.f32 %v1884_v25, %v1883_v9  ;;  %v818_v21 = vadd.f32 %v1377_v56, %v1313_v55 }
 0x126   :  { %v856_v52 = vadd.f32 %v855_v47, %v1880_v42  ;;  %v887_v53 = vpop.f32.mrf.mxu1  ;;  %v976_v0 = vadd.f32 %v1819_v39, %v864_v62 }
 0x127   :  { %v888_v57 = vadd.f32 %v887_v53, %v791_v48  ;;  %v1413_v58 = vpop.f32.mrf.mxu0  ;;  %v984_v12 = vadd.f32 %v1819_v39, %v896_v41 }
 0x128   :  { %v867_v1 = vadd.f32 %v1413_v58, %v770_v10  ;;  %v1421_v2 = vpop.f32.mrf.mxu1  ;;  %v974_v8 = vadd.f32 %v1819_v39, %v856_v52  ;;  %v815_v10 = vadd.f32 %v1374_v51, %v1310_v50  ;;  %v992_v24 = vmax.f32 %v976_v0, 0.0 }
 0x129   :  { %v899_v13 = vadd.f32 %v1421_v2, %v802_v63  ;;  %v858_v40 = vpop.f32.mrf.mxu0  ;;  %v982_v17 = vadd.f32 %v1819_v39, %v888_v57  ;;  %v1000_v30 = vmax.f32 %v984_v12, 0.0  ;;  %v810_v52 = vadd.f32 %v1371_v11, %v1307_v7 }
 0x12a   :  { %v977_v14 = vadd.f32 %v1819_v39, %v867_v1  ;;  %v859_v15 = vadd.f32 %v858_v40, %v762_v22  ;;  %v890_v16 = vpop.f32.mrf.mxu1  ;;  %v990_v35 = vmax.f32 %v974_v8, 0.0 }
 0x12b   :  { %v985_v18 = vadd.f32 %v1819_v39, %v899_v13  ;;  %v891_v19 = vadd.f32 %v890_v16, %v794_v3  ;;  %v1416_v20 = vpop.f32.mrf.mxu0  ;;  %v998_v60 = vmax.f32 %v982_v17, 0.0 }
 0x12c   :  { %v993_v23 = vmax.f32 %v977_v14, 0.0  ;;  %v975_v26 = vadd.f32 %v1819_v39, %v859_v15  ;;  %v880_v27 = vadd.f32 %v1416_v20, %v783_v49  ;;  %v1424_v29 = vpop.f32.mrf.mxu1  ;;  %v778_v49 = vadd.f32 %v1347_v46, %v1812_v28 }
 0x12d   :  { %v1001_v31 = vmax.f32 %v985_v18, 0.0  ;;  %v983_v32 = vadd.f32 %v1819_v39, %v891_v19  ;;  %v912_v22 = vadd.f32 %v1424_v29, %v815_v10  ;;  %v871_v34 = vpop.f32.mrf.mxu0 }
 0x12e   :  { %v1211_v36 = vpack.c.bf16 %v993_v23, %v992_v24  ;;  %v991_v37 = vmax.f32 %v975_v26, 0.0  ;;  %v872_v38 = vadd.f32 %v871_v34, %v775_v33  ;;  %v903_v59 = vpop.f32.mrf.mxu1  ;;  %v980_v41 = vadd.f32 %v1819_v39, %v880_v27 }
 0x12f   :  { %v1231_v61 = vpack.c.bf16 %v1001_v31, %v1000_v30  ;;  %v999_v62 = vmax.f32 %v983_v32, 0.0  ;;  %v904_v43 = vadd.f32 %v903_v59, %v807_v4  ;;  %v1417_v44 = vpop.f32.mrf.mxu0  ;;  %v988_v50 = vadd.f32 %v1819_v39, %v912_v22 }
 0x130   :  { %1243 = vst [vmem:[%s1870_s3 + $0x8] sm:$0xff] %v1211_v36   ;;  %v1206_v45 = vpack.c.bf16 %v991_v37, %v990_v35  ;;  %v883_v47 = vadd.f32 %v1417_v44, %v786_v54  ;;  %v1425_v48 = vpop.f32.mrf.mxu1  ;;  %v978_v53 = vadd.f32 %v1819_v39, %v872_v38  ;;  %v996_v58 = vmax.f32 %v980_v41, 0.0 }
 0x131   :  { %1247 = vst [vmem:[%s1870_s3 + $0x28] sm:$0xff] %v1231_v61   ;;  %v1226_v33 = vpack.c.bf16 %v999_v62, %v998_v60  ;;  %v915_v51 = vadd.f32 %v1425_v48, %v818_v21  ;;  %v874_v42 = vpop.f32.mrf.mxu0  ;;  %v986_v46 = vadd.f32 %v1819_v39, %v904_v43  ;;  %v1004_v1 = vmax.f32 %v988_v50, 0.0 }
 0x132   :  { %1207 = vst [vmem:[%s1870_s3] sm:$0xff] %v1206_v45   ;;  %v981_v54 = vadd.f32 %v1819_v39, %v883_v47  ;;  %v875_v55 = vadd.f32 %v874_v42, %v778_v49  ;;  %v906_v28 = vpop.f32.mrf.mxu1  ;;  %v994_v4 = vmax.f32 %v978_v53, 0.0 }
 0x133   :  { %1246 = vst [vmem:[%s1870_s3 + $0x20] sm:$0xff] %v1226_v33   ;;  %v989_v56 = vadd.f32 %v1819_v39, %v915_v51  ;;  %v907_v57 = vadd.f32 %v906_v28, %v810_v52  ;;  %v1002_v7 = vmax.f32 %v986_v46, 0.0 }
 0x134   :  { %v997_v63 = vmax.f32 %v981_v54, 0.0  ;;  %v979_v0 = vadd.f32 %v1819_v39, %v875_v55 }
 0x135   :  { %v1005_v2 = vmax.f32 %v989_v56, 0.0  ;;  %v987_v3 = vadd.f32 %v1819_v39, %v907_v57 }
 0x136   :  { %v1221_v5 = vpack.c.bf16 %v997_v63, %v996_v58  ;;  %v995_v6 = vmax.f32 %v979_v0, 0.0 }
 0x137   :  { %v1241_v9 = vpack.c.bf16 %v1005_v2, %v1004_v1  ;;  %v1003_v25 = vmax.f32 %v987_v3, 0.0 }
 0x138   :  { %1245 = vst [vmem:[%s1870_s3 + $0x18] sm:$0xff] %v1221_v5   ;;  %v1216_v11 = vpack.c.bf16 %v995_v6, %v994_v4 }
 0x139   :  { %1249 = vst [vmem:[%s1870_s3 + $0x38] sm:$0xff] %v1241_v9   ;;  %v1236_v12 = vpack.c.bf16 %v1003_v25, %v1002_v7 }
 0x13a   :  { %1244 = vst [vmem:[%s1870_s3 + $0x10] sm:$0xff] %v1216_v11  }
 0x13b   :  { %1248 = vst [vmem:[%s1870_s3 + $0x30] sm:$0xff] %v1236_v12  }

// kernel: cnn_distillation_forward.23
= control target key start
LH: loop header
LB: loop body
LE: loop exit
PB: predicated region body
PF: predicated region fallthrough
CT: control target
= control target key end

     0   :  { %s1528_s1 = inlined_call_operand.vmem [shape: bf16[256,512], index: 1, kind: input, shape index: {}]   ;;  %s1529_s0 = inlined_call_operand.vmem [shape: bf16[8,256], index: 0, kind: input, shape index: {}]   ;;  %s1530_s3 = inlined_call_operand.vmem [shape: bf16[512,128], index: 3, kind: input, shape index: {}]   ;;  %s1531_s2 = inlined_call_operand.vmem [shape: f32[8,512], index: 2, kind: input, shape index: {}]   ;;  %s1532_s5 = inlined_call_operand.vmem [shape: f32[8,512], index: 5, kind: output, shape index: {0}]   ;;  %s1533_s4 = inlined_call_operand.vmem [shape: f32[8,128], index: 4, kind: input, shape index: {}]   ;;  %s1534_s6 = inlined_call_operand.vmem [shape: f32[8,128], index: 6, kind: output, shape index: {1}]  }
   0x1   :  { %v1051_v0 = vld [vmem:[%s1528_s1 + $0xe4] ss:$16 sps:$4 sm:$0xff]   ;;  %v1053_v1 = vld [vmem:[%s1528_s1 + $0xec] ss:$16 sps:$4 sm:$0xff]   ;;  %v1055_v2 = vld [vmem:[%s1528_s1 + $0xe0] ss:$16 sps:$4 sm:$0xff]  }
   0x2   :  { %427 = vmatprep.subr.bf16.mxu0 %v1051_v0  ;;  %v1056_v3 = vld [vmem:[%s1528_s1 + $0xe8] ss:$16 sps:$4 sm:$0xff]   ;;  %468 = vmatprep.subr.bf16.mxu1 %v1053_v1  ;;  %v1057_v4 = vld [vmem:[%s1528_s1 + $0xc4] ss:$16 sps:$4 sm:$0xff]   ;;  %v1059_v5 = vld [vmem:[%s1528_s1 + $0xcc] ss:$16 sps:$4 sm:$0xff]  }
   0x3   :  { %428 = vmatpush1.bf16.msra.mxu0 %v1055_v2  ;;  %469 = vmatpush1.bf16.msra.mxu1 %v1056_v3  ;;  %v1061_v6 = vld [vmem:[%s1528_s1 + $0xc0] ss:$16 sps:$4 sm:$0xff]   ;;  %v1062_v7 = vld [vmem:[%s1528_s1 + $0xc8] ss:$16 sps:$4 sm:$0xff]   ;;  %v1063_v8 = vld [vmem:[%s1528_s1 + $0xa4] ss:$16 sps:$4 sm:$0xff]  }
   0x4   :  { %429 = vmatprep.subr.bf16.mxu0 %v1057_v4  ;;  %470 = vmatprep.subr.bf16.mxu1 %v1059_v5  ;;  %v1065_v9 = vld [vmem:[%s1528_s1 + $0xac] ss:$16 sps:$4 sm:$0xff]   ;;  %v1067_v10 = vld [vmem:[%s1528_s1 + $0xa0] ss:$16 sps:$4 sm:$0xff]   ;;  %v1068_v11 = vld [vmem:[%s1528_s1 + $0xa8] ss:$16 sps:$4 sm:$0xff]  }
   0x5   :  { %v1069_v12 = vld [vmem:[%s1528_s1 + $0x84] ss:$16 sps:$4 sm:$0xff]   ;;  %v1071_v13 = vld [vmem:[%s1528_s1 + $0x8c] ss:$16 sps:$4 sm:$0xff]   ;;  %v1073_v14 = vld [vmem:[%s1528_s1 + $0x80] ss:$16 sps:$4 sm:$0xff]  }
   0x6   :  { %v1074_v15 = vld [vmem:[%s1528_s1 + $0x88] ss:$16 sps:$4 sm:$0xff]   ;;  %v1075_v16 = vld [vmem:[%s1528_s1 + $0x64] ss:$16 sps:$4 sm:$0xff]   ;;  %v1077_v17 = vld [vmem:[%s1528_s1 + $0x6c] ss:$16 sps:$4 sm:$0xff]  }
   0x7   :  { %430 = vmatpush1.bf16.msra.mxu0 %v1061_v6  ;;  %471 = vmatpush1.bf16.msra.mxu1 %v1062_v7  ;;  %v1079_v18 = vld [vmem:[%s1528_s1 + $0x60] ss:$16 sps:$4 sm:$0xff]   ;;  %v1080_v19 = vld [vmem:[%s1528_s1 + $0x68] ss:$16 sps:$4 sm:$0xff]   ;;  %v1081_v20 = vld [vmem:[%s1528_s1 + $0x44] ss:$16 sps:$4 sm:$0xff]  }
   0x8   :  { %431 = vmatprep.subr.bf16.mxu0 %v1063_v8  ;;  %472 = vmatprep.subr.bf16.mxu1 %v1065_v9  ;;  %v1083_v21 = vld [vmem:[%s1528_s1 + $0x4c] ss:$16 sps:$4 sm:$0xff]   ;;  %v1085_v22 = vld [vmem:[%s1528_s1 + $0x40] ss:$16 sps:$4 sm:$0xff]   ;;  %v1086_v23 = vld [vmem:[%s1528_s1 + $0x48] ss:$16 sps:$4 sm:$0xff]  }
   0x9   :  { %v1087_v24 = vld [vmem:[%s1528_s1 + $0x24] ss:$16 sps:$4 sm:$0xff]   ;;  %v1089_v25 = vld [vmem:[%s1528_s1 + $0x2c] ss:$16 sps:$4 sm:$0xff]   ;;  %v1091_v26 = vld [vmem:[%s1528_s1 + $0x20] ss:$16 sps:$4 sm:$0xff]  }
   0xa   :  { %v1092_v27 = vld [vmem:[%s1528_s1 + $0x28] ss:$16 sps:$4 sm:$0xff]   ;;  %v1093_v28 = vld [vmem:[%s1528_s1 + $0x4] ss:$16 sps:$4 sm:$0xff]   ;;  %v1095_v29 = vld [vmem:[%s1528_s1 + $0xc] ss:$16 sps:$4 sm:$0xff]  }
   0xb   :  { %432 = vmatpush1.bf16.msra.mxu0 %v1067_v10  ;;  %473 = vmatpush1.bf16.msra.mxu1 %v1068_v11  ;;  %v1097_v30 = vld [vmem:[%s1528_s1] ss:$16 sps:$4 sm:$0xff]   ;;  %v1098_v31 = vld [vmem:[%s1528_s1 + $0x8] ss:$16 sps:$4 sm:$0xff]   ;;  %v1099_v32 = vld [vmem:[%s1528_s1 + $0x1e4] ss:$16 sps:$4 sm:$0xff]  }
   0xc   :  { %433 = vmatprep.subr.bf16.mxu0 %v1069_v12  ;;  %474 = vmatprep.subr.bf16.mxu1 %v1071_v13  ;;  %v1101_v33 = vld [vmem:[%s1528_s1 + $0x1ec] ss:$16 sps:$4 sm:$0xff]   ;;  %v1103_v34 = vld [vmem:[%s1528_s1 + $0x1e0] ss:$16 sps:$4 sm:$0xff]   ;;  %v1104_v35 = vld [vmem:[%s1528_s1 + $0x1e8] ss:$16 sps:$4 sm:$0xff]  }
   0xd   :  { %v1105_v36 = vld [vmem:[%s1528_s1 + $0x1c4] ss:$16 sps:$4 sm:$0xff]   ;;  %v1107_v37 = vld [vmem:[%s1528_s1 + $0x1cc] ss:$16 sps:$4 sm:$0xff]   ;;  %v1109_v38 = vld [vmem:[%s1528_s1 + $0x1c0] ss:$16 sps:$4 sm:$0xff]  }
   0xe   :  { %v1110_v39 = vld [vmem:[%s1528_s1 + $0x1c8] ss:$16 sps:$4 sm:$0xff]   ;;  %v1111_v40 = vld [vmem:[%s1528_s1 + $0x1a4] ss:$16 sps:$4 sm:$0xff]   ;;  %v1113_v41 = vld [vmem:[%s1528_s1 + $0x1ac] ss:$16 sps:$4 sm:$0xff]  }
   0xf   :  { %434 = vmatpush1.bf16.msra.mxu0 %v1073_v14  ;;  %475 = vmatpush1.bf16.msra.mxu1 %v1074_v15  ;;  %v1115_v42 = vld [vmem:[%s1528_s1 + $0x1a0] ss:$16 sps:$4 sm:$0xff]   ;;  %v1116_v43 = vld [vmem:[%s1528_s1 + $0x1a8] ss:$16 sps:$4 sm:$0xff]   ;;  %v1117_v44 = vld [vmem:[%s1528_s1 + $0x184] ss:$16 sps:$4 sm:$0xff]  }
  0x10   :  { %435 = vmatprep.subr.bf16.mxu0 %v1075_v16  ;;  %476 = vmatprep.subr.bf16.mxu1 %v1077_v17  ;;  %v1119_v45 = vld [vmem:[%s1528_s1 + $0x18c] ss:$16 sps:$4 sm:$0xff]   ;;  %v1121_v46 = vld [vmem:[%s1528_s1 + $0x180] ss:$16 sps:$4 sm:$0xff]   ;;  %v1122_v48 = vld [vmem:[%s1528_s1 + $0x188] ss:$16 sps:$4 sm:$0xff]  }
  0x11   :  { %v35_v47 = vld [vmem:[%s1529_s0] sm:$0xff]  ;;  %v1125_v51 = vld [vmem:[%s1528_s1 + $0x16c] ss:$16 sps:$4 sm:$0xff]   ;;  %v1128_v53 = vld [vmem:[%s1528_s1 + $0x168] ss:$16 sps:$4 sm:$0xff]  }
  0x12   :  { %v909_v49 = vcombine.high %v35_v47, %v35_v47  ;;  %v1123_v50 = vld [vmem:[%s1528_s1 + $0x164] ss:$16 sps:$4 sm:$0xff]   ;;  %v1127_v52 = vld [vmem:[%s1528_s1 + $0x160] ss:$16 sps:$4 sm:$0xff]   ;;  %v1131_v55 = vld [vmem:[%s1528_s1 + $0x14c] ss:$16 sps:$4 sm:$0xff]   ;;  %v908_v5 = vcombine.low %v35_v47, %v35_v47 }
  0x13   :  { %436 = vmatpush1.bf16.msra.mxu0 %v1079_v18  ;;  %477 = vmatpush1.bf16.msra.mxu1 %v1080_v19  ;;  %v1129_v54 = vld [vmem:[%s1528_s1 + $0x144] ss:$16 sps:$4 sm:$0xff]   ;;  %v1133_v56 = vld [vmem:[%s1528_s1 + $0x140] ss:$16 sps:$4 sm:$0xff]   ;;  %v1134_v57 = vld [vmem:[%s1528_s1 + $0x148] ss:$16 sps:$4 sm:$0xff]  }
  0x14   :  { %437 = vmatprep.subr.bf16.mxu0 %v1081_v20  ;;  %478 = vmatprep.subr.bf16.mxu1 %v1083_v21  ;;  %v1135_v58 = vld [vmem:[%s1528_s1 + $0x124] ss:$16 sps:$4 sm:$0xff]   ;;  %v1137_v59 = vld [vmem:[%s1528_s1 + $0x12c] ss:$16 sps:$4 sm:$0xff]   ;;  %v1139_v60 = vld [vmem:[%s1528_s1 + $0x120] ss:$16 sps:$4 sm:$0xff]  }
  0x15   :  { %459 = vmatprep.mubr.bf16.mxu0 %v909_v49  ;;  %500 = vmatprep.mubr.bf16.mxu1 %v909_v49  ;;  %v1140_v61 = vld [vmem:[%s1528_s1 + $0x128] ss:$16 sps:$4 sm:$0xff]   ;;  %v1141_v62 = vld [vmem:[%s1528_s1 + $0x104] ss:$16 sps:$4 sm:$0xff]   ;;  %v1143_v63 = vld [vmem:[%s1528_s1 + $0x10c] ss:$16 sps:$4 sm:$0xff]  }
  0x16   :  { %v1145_v0 = vld [vmem:[%s1528_s1 + $0x100] ss:$16 sps:$4 sm:$0xff]   ;;  %v1146_v1 = vld [vmem:[%s1528_s1 + $0x108] ss:$16 sps:$4 sm:$0xff]  }
  0x17   :  { %438 = vmatpush1.bf16.msra.mxu0 %v1085_v22  ;;  %479 = vmatpush1.bf16.msra.mxu1 %v1086_v23  ;;  %v1149_v2 = vld [vmem:[%s1530_s3 + $0x78] sm:$0xff]   ;;  %v1153_v7 = vld [vmem:[%s1530_s3 + $0x70] sm:$0xff]   ;;  %v1157_v11 = vld [vmem:[%s1530_s3 + $0x68] sm:$0xff]  }
  0x18   :  { %439 = vmatprep.subr.bf16.mxu0 %v1087_v24  ;;  %480 = vmatprep.subr.bf16.mxu1 %v1089_v25  ;;  %v1150_v3 = vld [vmem:[%s1530_s3 + $0xf8] sm:$0xff]   ;;  %v1154_v8 = vld [vmem:[%s1530_s3 + $0xf0] sm:$0xff]   ;;  %v1158_v12 = vld [vmem:[%s1530_s3 + $0xe8] sm:$0xff]  }
  0x19   :  { %v1151_v4 = vld [vmem:[%s1530_s3 + $0x38] sm:$0xff]   ;;  %v1155_v9 = vld [vmem:[%s1530_s3 + $0x30] sm:$0xff]   ;;  %v1159_v13 = vld [vmem:[%s1530_s3 + $0x28] sm:$0xff]  }
  0x1a   :  { %v1152_v6 = vld [vmem:[%s1530_s3 + $0xb8] sm:$0xff]   ;;  %v1156_v10 = vld [vmem:[%s1530_s3 + $0xb0] sm:$0xff]   ;;  %v1160_v14 = vld [vmem:[%s1530_s3 + $0xa8] sm:$0xff]  }
  0x1b   :  { %440 = vmatpush1.bf16.msra.mxu0 %v1091_v26  ;;  %481 = vmatpush1.bf16.msra.mxu1 %v1092_v27  ;;  %v1161_v15 = vld [vmem:[%s1530_s3 + $0x60] sm:$0xff]   ;;  %v1165_v19 = vld [vmem:[%s1530_s3 + $0x58] sm:$0xff]   ;;  %v1169_v23 = vld [vmem:[%s1530_s3 + $0x50] sm:$0xff]  }
  0x1c   :  { %441 = vmatprep.subr.bf16.mxu0 %v1093_v28  ;;  %482 = vmatprep.subr.bf16.mxu1 %v1095_v29  ;;  %v1162_v16 = vld [vmem:[%s1530_s3 + $0xe0] sm:$0xff]   ;;  %v1166_v20 = vld [vmem:[%s1530_s3 + $0xd8] sm:$0xff]   ;;  %v1170_v24 = vld [vmem:[%s1530_s3 + $0xd0] sm:$0xff]  }
  0x1d   :  { %v1163_v17 = vld [vmem:[%s1530_s3 + $0x20] sm:$0xff]   ;;  %v1167_v21 = vld [vmem:[%s1530_s3 + $0x18] sm:$0xff]   ;;  %v1171_v25 = vld [vmem:[%s1530_s3 + $0x10] sm:$0xff]  }
  0x1e   :  { %v1164_v18 = vld [vmem:[%s1530_s3 + $0xa0] sm:$0xff]   ;;  %v1168_v22 = vld [vmem:[%s1530_s3 + $0x98] sm:$0xff]   ;;  %v1172_v26 = vld [vmem:[%s1530_s3 + $0x90] sm:$0xff]  }
  0x1f   :  { %442 = vmatpush1.bf16.msra.mxu0 %v1097_v30  ;;  %483 = vmatpush1.bf16.msra.mxu1 %v1098_v31  ;;  %v1173_v27 = vld [vmem:[%s1530_s3 + $0x48] sm:$0xff]   ;;  %v1177_v31 = vld [vmem:[%s1530_s3 + $0x40] sm:$0xff]  }
  0x20   :  { %443 = vmatprep.subr.bf16.mxu0 %v1099_v32  ;;  %484 = vmatprep.subr.bf16.mxu1 %v1101_v33  ;;  %v1174_v28 = vld [vmem:[%s1530_s3 + $0xc8] sm:$0xff]   ;;  %v1178_v32 = vld [vmem:[%s1530_s3 + $0xc0] sm:$0xff]  }
  0x21   :  { %v1175_v29 = vld [vmem:[%s1530_s3 + $0x8] sm:$0xff]   ;;  %v1179_v33 = vld [vmem:[%s1530_s3] sm:$0xff]  }
  0x22   :  { %v1176_v30 = vld [vmem:[%s1530_s3 + $0x88] sm:$0xff]  }
  0x23   :  { %444 = vmatpush2.bf16.msra.mxu0 %v1103_v34  ;;  %485 = vmatpush2.bf16.msra.mxu1 %v1104_v35  ;;  %v1180_v34 = vld [vmem:[%s1530_s3 + $0x80] sm:$0xff]   ;;  %v526_v35 = vlaneseq }
  0x24   :  { %445 = vmatprep.subr.bf16.mxu0 %v1105_v36  ;;  %486 = vmatprep.subr.bf16.mxu1 %v1107_v37 }
  0x25   :  { %v527_v36 = vshrl.u32 %v526_v35, 7 }
  0x27   :  { %446 = vmatpush2.bf16.msra.mxu0 %v1109_v38  ;;  %487 = vmatpush2.bf16.msra.mxu1 %v1110_v39  ;;  %v528_v37 = vsub.s32 0, %v527_v36  ;;  %v536_v38 = vsub.s32 2, %v527_v36  ;;  %v524_v39 = vld [vmem:[%s1531_s2] ss:$8 sm:$0xf] }
  0x28   :  { %447 = vmatprep.subr.bf16.mxu0 %v1111_v40  ;;  %488 = vmatprep.subr.bf16.mxu1 %v1113_v41  ;;  %v532_v40 = vsub.s32 1, %v527_v36  ;;  %v540_v41 = vsub.s32 3, %v527_v36 }
  0x2b   :  { %448 = vmatpush2.bf16.msra.mxu0 %v1115_v42  ;;  %489 = vmatpush2.bf16.msra.mxu1 %v1116_v43  ;;  %v529_v42 = vrot.slane %v524_v39, %v528_v37  ;;  %v537_v43 = vrot.slane %v524_v39, %v536_v38 }
  0x2c   :  { %449 = vmatprep.subr.bf16.mxu0 %v1117_v44  ;;  %490 = vmatprep.subr.bf16.mxu1 %v1119_v45  ;;  %v533_v44 = vrot.slane %v524_v39, %v532_v40  ;;  %v541_v45 = vrot.slane %v524_v39, %v540_v41 }
  0x2f   :  { %450 = vmatpush2.bf16.msra.mxu0 %v1121_v46  ;;  %491 = vmatpush2.bf16.msra.mxu1 %v1122_v48 }
  0x30   :  { %451 = vmatprep.subr.bf16.mxu0 %v1123_v50  ;;  %492 = vmatprep.subr.bf16.mxu1 %v1125_v51 }
  0x33   :  { %452 = vmatpush2.bf16.msra.mxu0 %v1127_v52  ;;  %493 = vmatpush2.bf16.msra.mxu1 %v1128_v53 }
  0x34   :  { %453 = vmatprep.subr.bf16.mxu0 %v1129_v54  ;;  %494 = vmatprep.subr.bf16.mxu1 %v1131_v55 }
  0x37   :  { %454 = vmatpush2.bf16.msra.mxu0 %v1133_v56  ;;  %495 = vmatpush2.bf16.msra.mxu1 %v1134_v57 }
  0x38   :  { %455 = vmatprep.subr.bf16.mxu0 %v1135_v58  ;;  %496 = vmatprep.subr.bf16.mxu1 %v1137_v59 }
  0x3b   :  { %456 = vmatpush2.bf16.msra.mxu0 %v1139_v60  ;;  %497 = vmatpush2.bf16.msra.mxu1 %v1140_v61 }
  0x3c   :  { %457 = vmatprep.subr.bf16.mxu0 %v1141_v62  ;;  %498 = vmatprep.subr.bf16.mxu1 %v1143_v63 }
  0x3f   :  { %458 = vmatpush2.bf16.msra.mxu0 %v1145_v0  ;;  %499 = vmatpush2.bf16.msra.mxu1 %v1146_v1  ;;  %v974_v0 = vld [vmem:[%s1533_s4] ss:$0 sm:$0xff] }
  0x40   :  { %1007 = vmatprep.subr.bf16.mxu0 %v1149_v2  ;;  %1029 = vmatprep.subr.bf16.mxu1 %v1150_v3 }
  0x42   :  { %460 = vmatmul.mubr.bf16.vlgmr.msra.gmra.mxu0 %v908_v5  ;;  %501 = vmatmul.mubr.bf16.vlgmr.msra.gmra.mxu1 %v908_v5 }
  0x43   :  { %1008 = vmatpush3.bf16.msra.mxu0 %v1151_v4  ;;  %1030 = vmatpush3.bf16.msra.mxu1 %v1152_v6 }
  0x44   :  { %1009 = vmatprep.subr.bf16.mxu0 %v1153_v7  ;;  %1031 = vmatprep.subr.bf16.mxu1 %v1154_v8 }
  0x47   :  { %1010 = vmatpush3.bf16.msra.mxu0 %v1155_v9  ;;  %1032 = vmatpush3.bf16.msra.mxu1 %v1156_v10 }
  0x48   :  { %1011 = vmatprep.subr.bf16.mxu0 %v1157_v11  ;;  %1033 = vmatprep.subr.bf16.mxu1 %v1158_v12 }
  0x4b   :  { %1012 = vmatpush3.bf16.msra.mxu0 %v1159_v13  ;;  %1034 = vmatpush3.bf16.msra.mxu1 %v1160_v14 }
  0x4c   :  { %1013 = vmatprep.subr.bf16.mxu0 %v1161_v15  ;;  %1035 = vmatprep.subr.bf16.mxu1 %v1162_v16 }
  0x4f   :  { %1014 = vmatpush3.bf16.msra.mxu0 %v1163_v17  ;;  %1036 = vmatpush3.bf16.msra.mxu1 %v1164_v18 }
  0x50   :  { %1015 = vmatprep.subr.bf16.mxu0 %v1165_v19  ;;  %1037 = vmatprep.subr.bf16.mxu1 %v1166_v20 }
  0x53   :  { %1016 = vmatpush3.bf16.msra.mxu0 %v1167_v21  ;;  %1038 = vmatpush3.bf16.msra.mxu1 %v1168_v22 }
  0x54   :  { %1017 = vmatprep.subr.bf16.mxu0 %v1169_v23  ;;  %1039 = vmatprep.subr.bf16.mxu1 %v1170_v24 }
  0x57   :  { %1018 = vmatpush3.bf16.msra.mxu0 %v1171_v25  ;;  %1040 = vmatpush3.bf16.msra.mxu1 %v1172_v26 }
  0x58   :  { %1019 = vmatprep.subr.bf16.mxu0 %v1173_v27  ;;  %1041 = vmatprep.subr.bf16.mxu1 %v1174_v28 }
  0x5b   :  { %1020 = vmatpush3.bf16.msra.mxu0 %v1175_v29  ;;  %1042 = vmatpush3.bf16.msra.mxu1 %v1176_v30 }
  0x5c   :  { %1021 = vmatprep.subr.bf16.mxu0 %v1177_v31  ;;  %1043 = vmatprep.subr.bf16.mxu1 %v1178_v32 }
  0x5f   :  { %1022 = vmatpush3.bf16.msra.mxu0 %v1179_v33  ;;  %1044 = vmatpush3.bf16.msra.mxu1 %v1180_v34 }
 0x102   :  { %v461_v46 = vpop.f32.mrf.mxu0  ;;  %v502_v47 = vpop.f32.mrf.mxu1 }
 0x103   :  { %v546_v48 = vadd.f32 %v529_v42, %v461_v46  ;;  %v548_v49 = vadd.f32 %v537_v43, %v502_v47 }
 0x104   :  { %v463_v50 = vpop.f32.mrf.mxu0  ;;  %v504_v51 = vpop.f32.mrf.mxu1 }
 0x105   :  { %550 = vst [vmem:[%s1532_s5] sm:$0xff] %v546_v48  ;;  %552 = vst [vmem:[%s1532_s5 + $0x10] sm:$0xff] %v548_v49  ;;  %v547_v52 = vadd.f32 %v533_v44, %v463_v50  ;;  %v549_v53 = vadd.f32 %v541_v45, %v504_v51  ;;  %v556_v54 = vpack.c.bf16 %v548_v49, %v548_v49 }
 0x106   :  { %v465_v55 = vpop.f32.mrf.mxu0  ;;  %v506_v56 = vpop.f32.mrf.mxu1  ;;  %v554_v59 = vpack.c.bf16 %v546_v48, %v546_v48 }
 0x107   :  { %551 = vst [vmem:[%s1532_s5 + $0x8] sm:$0xff] %v547_v52  ;;  %v555_v57 = vpack.c.bf16 %v547_v52, %v547_v52  ;;  %553 = vst [vmem:[%s1532_s5 + $0x18] sm:$0xff] %v549_v53  ;;  %v557_v58 = vpack.c.bf16 %v549_v53, %v549_v53 }
 0x108   :  { %v466_v60 = vpop.f32.mrf.mxu0  ;;  %v507_v61 = vpop.f32.mrf.mxu1 }
 0x109   :  { %851 = vmatprep.mubr.bf16.mxu0 %v555_v57  ;;  %891 = vmatprep.mubr.bf16.mxu1 %v557_v58 }
 0x10a   :  { %852 = vmatmul.mubr.bf16.vlgmr.msra.gmra.mxu0 %v554_v59  ;;  %892 = vmatmul.mubr.bf16.vlgmr.msra.gmra.mxu1 %v556_v54 }
 0x1ca   :  { %v1023_v62 = vpop.f32.mrf.mxu0  ;;  %v1045_v63 = vpop.f32.mrf.mxu1 }
 0x1cc   :  { %v1024_v1 = vpop.f32.mrf.mxu0  ;;  %v1046_v2 = vpop.f32.mrf.mxu1 }
 0x1cd   :  { %v1025_v3 = vadd.f32 %v1024_v1, %v1023_v62  ;;  %v1047_v7 = vadd.f32 %v1046_v2, %v1045_v63 }
 0x1ce   :  { %v1026_v4 = vpop.f32.mrf.mxu0  ;;  %v1048_v5 = vpop.f32.mrf.mxu1 }
 0x1cf   :  { %v854_v6 = vadd.f32 %v1025_v3, %v974_v0 }
 0x1d0   :  { %v1027_v8 = vpop.f32.mrf.mxu0  ;;  %v1049_v9 = vpop.f32.mrf.mxu1 }
 0x1d1   :  { %v894_v10 = vadd.f32 %v1047_v7, %v854_v6 }
 0x1d3   :  { %899 = vst [vmem:[%s1534_s6] sm:$0xff] %v894_v10 }

</bundles_post_ra>
